<compile_context>
chip_gen: v6e
topology: v6e:2x2x1
jax: 0.10.0
libtpu: 0.0.40
codegen_flags: <defaults>
</compile_context>

<pallas_src>
import functools

import jax
import jax.numpy as jnp
from jax.experimental import pallas as pl
from jax.experimental.pallas import tpu as pltpu

# 10 linear layers: 6 -> 200 -> 200 -> 200 -> 400 -> 800 -> 800 -> 800 -> 400 -> 200 -> 30
LAYER_DIMS = [6, 200, 200, 200, 400, 800, 800, 800, 400, 200, 30]
OUT_PAD = 128  # lane-dense padded width of the final output
_TOTAL_MACS = sum(LAYER_DIMS[i] * LAYER_DIMS[i + 1] for i in range(len(LAYER_DIMS) - 1))


def _round_up(x, m):
    return ((x + m - 1) // m) * m


def decoder_kernel(x_ref, *refs):
    """Fused 10-layer MLP for one batch tile.

    refs = (w1, b1, w2, b2, ..., w10, b10, out_ref)
    Weights are [in, out] in act_dtype (bf16 by default); biases are f32 (1, out).
    All weights/biases are full-extent, single-buffered VMEM tiles.
    """
    out_ref = refs[-1]
    wb = refs[:-1]
    n_layers = len(wb) // 2
    act_dtype = wb[0].dtype            # bf16 default; f32 fallback path

    h = x_ref[...].astype(act_dtype)
    for i in range(n_layers):
        w = wb[2 * i][...]             # [in, out]
        b = wb[2 * i + 1][...]         # f32 (1, out)
        acc = jnp.dot(h, w, preferred_element_type=jnp.float32) + b
        if i < n_layers - 1:
            # ReLU in f32 (no bf16 VALU on v5e), then carry bf16 between layers
            # to halve spill store/load traffic on the 800-wide activations.
            h = jnp.maximum(acc, 0.0).astype(act_dtype)
        else:
            out_ref[...] = acc.astype(out_ref.dtype)


def prepare_params(params, weight_dtype=jnp.bfloat16):
    """One-time host-side param prep (hoisted out of the jitted forward).

    Casts weights to `weight_dtype` ([in, out] layout), reshapes biases to
    (1, out) f32, and pads the final layer to OUT_PAD output columns so the
    kernel's output block is lane-dense.  Call once, reuse across forward calls.
    """
    prepared = []
    n = len(params)
    for li, (w, b) in enumerate(params):
        w = jnp.asarray(w, weight_dtype)
        b = jnp.asarray(b, jnp.float32).reshape(1, -1)
        if li == n - 1:
            pad = OUT_PAD - w.shape[1]
            w = jnp.pad(w, ((0, 0), (0, pad)))
            b = jnp.pad(b, ((0, 0), (0, pad)))
        prepared.append((w, b))
    return prepared


@functools.partial(jax.jit, static_argnames=("block_b",))
def decoder_forward(x, prepared_params, block_b=512):
    """x: [B, 6] float32. prepared_params: output of prepare_params()."""
    B, D_in = x.shape
    assert D_in == LAYER_DIMS[0]
    D_out = LAYER_DIMS[-1]

    # --- Adaptive, balanced batch tiling (all static Python on shapes) ------
    B8 = _round_up(B, 8)                       # sublane multiple
    grid_steps = pl.cdiv(B8, block_b)
    tm = _round_up(pl.cdiv(B8, grid_steps), 8) # balanced tile, multiple of 8
    if tm >= 256:
        tm = _round_up(tm, 128)                # nice MXU/lane-friendly tile at large batch
    Bp = grid_steps * tm
    if Bp != B:
        x = jnp.pad(x, ((0, Bp - B), (0, 0)))

    flat_args = [x.astype(jnp.float32)]
    in_specs = [pl.BlockSpec((tm, D_in), lambda i: (i, 0))]

    # Weights/biases: constant index_map -> resident across grid; single-buffer.
    resident = pl.Buffered(1)
    weight_bytes = 0
    for w, b in prepared_params:
        flat_args.append(w)
        flat_args.append(b)
        in_specs.append(
            pl.BlockSpec(w.shape, lambda i: (0, 0), pipeline_mode=resident))
        in_specs.append(
            pl.BlockSpec(b.shape, lambda i: (0, 0), pipeline_mode=resident))
        weight_bytes += w.size * w.dtype.itemsize + b.size * b.dtype.itemsize

    # --- VMEM budget: size from actual usage, clamp so v7x (64 MiB) keeps headroom.
    act_bytes = tm * max(LAYER_DIMS) * 4 * 4          # f32 acc + bf16 carry + temps
    io_bytes = 2 * (tm * D_in * 4 + tm * OUT_PAD * 4)  # double-buffered in/out blocks
    vmem_limit = int(weight_bytes + act_bytes + io_bytes + (4 << 20))
    vmem_limit = min(max(vmem_limit, 16 << 20), 48 << 20)

    # --- Megacore gate (only matters on multi-TC parts, e.g. v7x):
    # "parallel" duplicates the ~4.4 MB weight DMA + residency per core; only
    # worth it when per-core matmul time clearly exceeds that fetch, i.e. at
    # roughly Bp >= ~1024 rows and >= 2 grid steps (bf16 MXU ~1 PF/s vs ~1.4 us
    # duplicated weight fetch at 3.2 TB/s).  Single-TC parts ignore the flag.
    semantics = "parallel" if (grid_steps >= 2 and Bp >= 1024) else "arbitrary"

    # Advisory cost estimate so XLA can overlap surrounding work with the kernel.
    cost = pl.CostEstimate(
        flops=2 * Bp * _TOTAL_MACS,
        transcendentals=0,
        bytes_accessed=weight_bytes + Bp * (D_in + OUT_PAD) * 4,
    )

    out = pl.pallas_call(
        decoder_kernel,
        out_shape=jax.ShapeDtypeStruct((Bp, OUT_PAD), jnp.float32),
        grid=(grid_steps,),
        in_specs=in_specs,
        out_specs=pl.BlockSpec((tm, OUT_PAD), lambda i: (i, 0)),
        compiler_params=pltpu.CompilerParams(
            dimension_semantics=(semantics,),
            vmem_limit_bytes=vmem_limit,
        ),
        cost_estimate=cost,
    )(*flat_args)

    # NOTE: consumers that can accept the padded (Bp, 128) buffer should take
    # `out` directly and skip this lane-sparse slice.
    return out[:B, :D_out]


def init_params(key):
    """nn.Linear-style init (uniform +/- 1/sqrt(fan_in)); stored [in, out]."""
    params = []
    for i in range(len(LAYER_DIMS) - 1):
        fan_in, fan_out = LAYER_DIMS[i], LAYER_DIMS[i + 1]
        key, kw, kb = jax.random.split(key, 3)
        bound = 1.0 / jnp.sqrt(fan_in)
        w = jax.random.uniform(kw, (fan_in, fan_out), jnp.float32, -bound, bound)
        b = jax.random.uniform(kb, (fan_out,), jnp.float32, -bound, bound)
        params.append((w, b))
    return params


def decoder_reference_mixed(x, params):
    """Pure-JAX reference with the same bf16-weight / bf16-activation-carry recipe."""
    h = x.astype(jnp.bfloat16)
    n = len(params)
    for i, (w, b) in enumerate(params):
        acc = jnp.dot(h, w.astype(jnp.bfloat16),
                      preferred_element_type=jnp.float32) + b.astype(jnp.float32)
        if i < n - 1:
            h = jnp.maximum(acc, 0.0).astype(jnp.bfloat16)
        else:
            h = acc
    return h


def decoder_reference_f32(x, params):
    """Full-f32 reference matching the original PyTorch forward."""
    h = x.astype(jnp.float32)
    n = len(params)
    for i, (w, b) in enumerate(params):
        h = h @ w + b
        if i < n - 1:
            h = jnp.maximum(h, 0.0)
    return h


if __name__ == "__main__":
    key = jax.random.PRNGKey(0)
    kx1, kx2, kp = jax.random.split(key, 3)
    params = init_params(kp)
    prepared = prepare_params(params)          # one-time bf16 cast / pad, outside jit

    # Small batch (single grid step, tiny tile).
    B1 = 16
    x1 = jax.random.normal(kx1, (B1, 6), jnp.float32)
    out1 = jax.block_until_ready(decoder_forward(x1, prepared))
    assert out1.shape == (B1, 30), out1.shape

    # Non-multiple-of-8 batch with the default large tile (single balanced step).
    B2 = 300
    x2 = jax.random.normal(kx2, (B2, 6), jnp.float32)
    out2 = jax.block_until_ready(decoder_forward(x2, prepared))
    assert out2.shape == (B2, 30), out2.shape

    # Same batch with a small block_b to exercise the multi-step grid + padding path.
    out3 = jax.block_until_ready(decoder_forward(x2, prepared, block_b=128))
    assert out3.shape == (B2, 30), out3.shape

    for x, out in ((x1, out1), (x2, out2), (x2, out3)):
        ref_mixed = decoder_reference_mixed(x, params)
        ref_f32 = decoder_reference_f32(x, params)
        # Kernel must match the same mixed-precision recipe tightly ...
        assert jnp.allclose(out, ref_mixed, atol=2e-3, rtol=2e-3), (
            float(jnp.max(jnp.abs(out - ref_mixed))))
        # ... and the original f32 semantics within bf16 tolerance.
        assert jnp.allclose(out, ref_f32, atol=5e-2, rtol=5e-2), (
            float(jnp.max(jnp.abs(out - ref_f32))))

    # Tile-independence: block_b must not change the numerics.
    assert jnp.array_equal(out2, out3)

    print("KERNEL_OK")
</pallas_src>

<mosaic_0001>
module attributes {stable_mosaic.version = 11 : i64} {
  func.func @decoder_kernel(%arg0: i32, %arg1: memref<16x6xf32, #tpu.memory_space<vmem>>, %arg2: memref<6x200xbf16, #tpu.memory_space<vmem>>, %arg3: memref<1x200xf32, #tpu.memory_space<vmem>>, %arg4: memref<200x200xbf16, #tpu.memory_space<vmem>>, %arg5: memref<1x200xf32, #tpu.memory_space<vmem>>, %arg6: memref<200x200xbf16, #tpu.memory_space<vmem>>, %arg7: memref<1x200xf32, #tpu.memory_space<vmem>>, %arg8: memref<200x400xbf16, #tpu.memory_space<vmem>>, %arg9: memref<1x400xf32, #tpu.memory_space<vmem>>, %arg10: memref<400x800xbf16, #tpu.memory_space<vmem>>, %arg11: memref<1x800xf32, #tpu.memory_space<vmem>>, %arg12: memref<800x800xbf16, #tpu.memory_space<vmem>>, %arg13: memref<1x800xf32, #tpu.memory_space<vmem>>, %arg14: memref<800x800xbf16, #tpu.memory_space<vmem>>, %arg15: memref<1x800xf32, #tpu.memory_space<vmem>>, %arg16: memref<800x400xbf16, #tpu.memory_space<vmem>>, %arg17: memref<1x400xf32, #tpu.memory_space<vmem>>, %arg18: memref<400x200xbf16, #tpu.memory_space<vmem>>, %arg19: memref<1x200xf32, #tpu.memory_space<vmem>>, %arg20: memref<200x128xbf16, #tpu.memory_space<vmem>>, %arg21: memref<1x128xf32, #tpu.memory_space<vmem>>, %arg22: memref<16x128xf32, #tpu.memory_space<vmem>>) attributes {dimension_semantics = [#tpu.dimension_semantics<arbitrary>], iteration_bounds = array<i64: 1>, scalar_prefetch = 0 : i64, scratch_operands = 0 : i64, tpu.core_type = #tpu.core_type<tc>, window_params = [{transform_indices = @transform_0, window_bounds = array<i64: 16, 6>}, {pipeline_mode = #tpu.pipeline_mode<synchronous>, transform_indices = @transform_1, window_bounds = array<i64: 6, 200>}, {pipeline_mode = #tpu.pipeline_mode<synchronous>, transform_indices = @transform_2, window_bounds = array<i64: 1, 200>}, {pipeline_mode = #tpu.pipeline_mode<synchronous>, transform_indices = @transform_3, window_bounds = array<i64: 200, 200>}, {pipeline_mode = #tpu.pipeline_mode<synchronous>, transform_indices = @transform_4, window_bounds = array<i64: 1, 200>}, {pipeline_mode = #tpu.pipeline_mode<synchronous>, transform_indices = @transform_5, window_bounds = array<i64: 200, 200>}, {pipeline_mode = #tpu.pipeline_mode<synchronous>, transform_indices = @transform_6, window_bounds = array<i64: 1, 200>}, {pipeline_mode = #tpu.pipeline_mode<synchronous>, transform_indices = @transform_7, window_bounds = array<i64: 200, 400>}, {pipeline_mode = #tpu.pipeline_mode<synchronous>, transform_indices = @transform_8, window_bounds = array<i64: 1, 400>}, {pipeline_mode = #tpu.pipeline_mode<synchronous>, transform_indices = @transform_9, window_bounds = array<i64: 400, 800>}, {pipeline_mode = #tpu.pipeline_mode<synchronous>, transform_indices = @transform_10, window_bounds = array<i64: 1, 800>}, {pipeline_mode = #tpu.pipeline_mode<synchronous>, transform_indices = @transform_11, window_bounds = array<i64: 800, 800>}, {pipeline_mode = #tpu.pipeline_mode<synchronous>, transform_indices = @transform_12, window_bounds = array<i64: 1, 800>}, {pipeline_mode = #tpu.pipeline_mode<synchronous>, transform_indices = @transform_13, window_bounds = array<i64: 800, 800>}, {pipeline_mode = #tpu.pipeline_mode<synchronous>, transform_indices = @transform_14, window_bounds = array<i64: 1, 800>}, {pipeline_mode = #tpu.pipeline_mode<synchronous>, transform_indices = @transform_15, window_bounds = array<i64: 800, 400>}, {pipeline_mode = #tpu.pipeline_mode<synchronous>, transform_indices = @transform_16, window_bounds = array<i64: 1, 400>}, {pipeline_mode = #tpu.pipeline_mode<synchronous>, transform_indices = @transform_17, window_bounds = array<i64: 400, 200>}, {pipeline_mode = #tpu.pipeline_mode<synchronous>, transform_indices = @transform_18, window_bounds = array<i64: 1, 200>}, {pipeline_mode = #tpu.pipeline_mode<synchronous>, transform_indices = @transform_19, window_bounds = array<i64: 200, 128>}, {pipeline_mode = #tpu.pipeline_mode<synchronous>, transform_indices = @transform_20, window_bounds = array<i64: 1, 128>}, {transform_indices = @transform_21, window_bounds = array<i64: 16, 128>}]} {
    %c0 = arith.constant 0 : index
    %c0_0 = arith.constant 0 : index
    %0 = vector.load %arg1[%c0, %c0_0] : memref<16x6xf32, #tpu.memory_space<vmem>>, vector<16x6xf32>
    %1 = arith.truncf %0 : vector<16x6xf32> to vector<16x6xbf16>
    %c0_1 = arith.constant 0 : index
    %c0_2 = arith.constant 0 : index
    %2 = vector.load %arg2[%c0_1, %c0_2] : memref<6x200xbf16, #tpu.memory_space<vmem>>, vector<6x200xbf16>
    %c0_3 = arith.constant 0 : index
    %c0_4 = arith.constant 0 : index
    %3 = vector.load %arg3[%c0_3, %c0_4] : memref<1x200xf32, #tpu.memory_space<vmem>>, vector<1x200xf32>
    %cst = arith.constant dense<0.000000e+00> : vector<16x200xf32>
    %4 = tpu.matmul %1, %2, %cst {dimension_numbers = #tpu.dot_dimension_numbers<[1], [0], [0], [1], [0, 0, 1, 1], [], []>} : vector<16x6xbf16>, vector<6x200xbf16>, vector<16x200xf32> -> vector<16x200xf32>
    %5 = vector.broadcast %3 : vector<1x200xf32> to vector<16x200xf32>
    %6 = arith.addf %4, %5 : vector<16x200xf32>
    %cst_5 = arith.constant 0.000000e+00 : f32
    %7 = vector.broadcast %cst_5 : f32 to vector<16x200xf32>
    %8 = arith.maximumf %6, %7 : vector<16x200xf32>
    %9 = arith.truncf %8 : vector<16x200xf32> to vector<16x200xbf16>
    %c0_6 = arith.constant 0 : index
    %c0_7 = arith.constant 0 : index
    %10 = vector.load %arg4[%c0_6, %c0_7] : memref<200x200xbf16, #tpu.memory_space<vmem>>, vector<200x200xbf16>
    %c0_8 = arith.constant 0 : index
    %c0_9 = arith.constant 0 : index
    %11 = vector.load %arg5[%c0_8, %c0_9] : memref<1x200xf32, #tpu.memory_space<vmem>>, vector<1x200xf32>
    %cst_10 = arith.constant dense<0.000000e+00> : vector<16x200xf32>
    %12 = tpu.matmul %9, %10, %cst_10 {dimension_numbers = #tpu.dot_dimension_numbers<[1], [0], [0], [1], [0, 0, 1, 1], [], []>} : vector<16x200xbf16>, vector<200x200xbf16>, vector<16x200xf32> -> vector<16x200xf32>
    %13 = vector.broadcast %11 : vector<1x200xf32> to vector<16x200xf32>
    %14 = arith.addf %12, %13 : vector<16x200xf32>
    %cst_11 = arith.constant 0.000000e+00 : f32
    %15 = vector.broadcast %cst_11 : f32 to vector<16x200xf32>
    %16 = arith.maximumf %14, %15 : vector<16x200xf32>
    %17 = arith.truncf %16 : vector<16x200xf32> to vector<16x200xbf16>
    %c0_12 = arith.constant 0 : index
    %c0_13 = arith.constant 0 : index
    %18 = vector.load %arg6[%c0_12, %c0_13] : memref<200x200xbf16, #tpu.memory_space<vmem>>, vector<200x200xbf16>
    %c0_14 = arith.constant 0 : index
    %c0_15 = arith.constant 0 : index
    %19 = vector.load %arg7[%c0_14, %c0_15] : memref<1x200xf32, #tpu.memory_space<vmem>>, vector<1x200xf32>
    %cst_16 = arith.constant dense<0.000000e+00> : vector<16x200xf32>
    %20 = tpu.matmul %17, %18, %cst_16 {dimension_numbers = #tpu.dot_dimension_numbers<[1], [0], [0], [1], [0, 0, 1, 1], [], []>} : vector<16x200xbf16>, vector<200x200xbf16>, vector<16x200xf32> -> vector<16x200xf32>
    %21 = vector.broadcast %19 : vector<1x200xf32> to vector<16x200xf32>
    %22 = arith.addf %20, %21 : vector<16x200xf32>
    %cst_17 = arith.constant 0.000000e+00 : f32
    %23 = vector.broadcast %cst_17 : f32 to vector<16x200xf32>
    %24 = arith.maximumf %22, %23 : vector<16x200xf32>
    %25 = arith.truncf %24 : vector<16x200xf32> to vector<16x200xbf16>
    %c0_18 = arith.constant 0 : index
    %c0_19 = arith.constant 0 : index
    %26 = vector.load %arg8[%c0_18, %c0_19] : memref<200x400xbf16, #tpu.memory_space<vmem>>, vector<200x400xbf16>
    %c0_20 = arith.constant 0 : index
    %c0_21 = arith.constant 0 : index
    %27 = vector.load %arg9[%c0_20, %c0_21] : memref<1x400xf32, #tpu.memory_space<vmem>>, vector<1x400xf32>
    %cst_22 = arith.constant dense<0.000000e+00> : vector<16x400xf32>
    %28 = tpu.matmul %25, %26, %cst_22 {dimension_numbers = #tpu.dot_dimension_numbers<[1], [0], [0], [1], [0, 0, 1, 1], [], []>} : vector<16x200xbf16>, vector<200x400xbf16>, vector<16x400xf32> -> vector<16x400xf32>
    %29 = vector.broadcast %27 : vector<1x400xf32> to vector<16x400xf32>
    %30 = arith.addf %28, %29 : vector<16x400xf32>
    %cst_23 = arith.constant 0.000000e+00 : f32
    %31 = vector.broadcast %cst_23 : f32 to vector<16x400xf32>
    %32 = arith.maximumf %30, %31 : vector<16x400xf32>
    %33 = arith.truncf %32 : vector<16x400xf32> to vector<16x400xbf16>
    %c0_24 = arith.constant 0 : index
    %c0_25 = arith.constant 0 : index
    %34 = vector.load %arg10[%c0_24, %c0_25] : memref<400x800xbf16, #tpu.memory_space<vmem>>, vector<400x800xbf16>
    %c0_26 = arith.constant 0 : index
    %c0_27 = arith.constant 0 : index
    %35 = vector.load %arg11[%c0_26, %c0_27] : memref<1x800xf32, #tpu.memory_space<vmem>>, vector<1x800xf32>
    %cst_28 = arith.constant dense<0.000000e+00> : vector<16x800xf32>
    %36 = tpu.matmul %33, %34, %cst_28 {dimension_numbers = #tpu.dot_dimension_numbers<[1], [0], [0], [1], [0, 0, 1, 1], [], []>} : vector<16x400xbf16>, vector<400x800xbf16>, vector<16x800xf32> -> vector<16x800xf32>
    %37 = vector.broadcast %35 : vector<1x800xf32> to vector<16x800xf32>
    %38 = arith.addf %36, %37 : vector<16x800xf32>
    %cst_29 = arith.constant 0.000000e+00 : f32
    %39 = vector.broadcast %cst_29 : f32 to vector<16x800xf32>
    %40 = arith.maximumf %38, %39 : vector<16x800xf32>
    %41 = arith.truncf %40 : vector<16x800xf32> to vector<16x800xbf16>
    %c0_30 = arith.constant 0 : index
    %c0_31 = arith.constant 0 : index
    %42 = vector.load %arg12[%c0_30, %c0_31] : memref<800x800xbf16, #tpu.memory_space<vmem>>, vector<800x800xbf16>
    %c0_32 = arith.constant 0 : index
    %c0_33 = arith.constant 0 : index
    %43 = vector.load %arg13[%c0_32, %c0_33] : memref<1x800xf32, #tpu.memory_space<vmem>>, vector<1x800xf32>
    %cst_34 = arith.constant dense<0.000000e+00> : vector<16x800xf32>
    %44 = tpu.matmul %41, %42, %cst_34 {dimension_numbers = #tpu.dot_dimension_numbers<[1], [0], [0], [1], [0, 0, 1, 1], [], []>} : vector<16x800xbf16>, vector<800x800xbf16>, vector<16x800xf32> -> vector<16x800xf32>
    %45 = vector.broadcast %43 : vector<1x800xf32> to vector<16x800xf32>
    %46 = arith.addf %44, %45 : vector<16x800xf32>
    %cst_35 = arith.constant 0.000000e+00 : f32
    %47 = vector.broadcast %cst_35 : f32 to vector<16x800xf32>
    %48 = arith.maximumf %46, %47 : vector<16x800xf32>
    %49 = arith.truncf %48 : vector<16x800xf32> to vector<16x800xbf16>
    %c0_36 = arith.constant 0 : index
    %c0_37 = arith.constant 0 : index
    %50 = vector.load %arg14[%c0_36, %c0_37] : memref<800x800xbf16, #tpu.memory_space<vmem>>, vector<800x800xbf16>
    %c0_38 = arith.constant 0 : index
    %c0_39 = arith.constant 0 : index
    %51 = vector.load %arg15[%c0_38, %c0_39] : memref<1x800xf32, #tpu.memory_space<vmem>>, vector<1x800xf32>
    %cst_40 = arith.constant dense<0.000000e+00> : vector<16x800xf32>
    %52 = tpu.matmul %49, %50, %cst_40 {dimension_numbers = #tpu.dot_dimension_numbers<[1], [0], [0], [1], [0, 0, 1, 1], [], []>} : vector<16x800xbf16>, vector<800x800xbf16>, vector<16x800xf32> -> vector<16x800xf32>
    %53 = vector.broadcast %51 : vector<1x800xf32> to vector<16x800xf32>
    %54 = arith.addf %52, %53 : vector<16x800xf32>
    %cst_41 = arith.constant 0.000000e+00 : f32
    %55 = vector.broadcast %cst_41 : f32 to vector<16x800xf32>
    %56 = arith.maximumf %54, %55 : vector<16x800xf32>
    %57 = arith.truncf %56 : vector<16x800xf32> to vector<16x800xbf16>
    %c0_42 = arith.constant 0 : index
    %c0_43 = arith.constant 0 : index
    %58 = vector.load %arg16[%c0_42, %c0_43] : memref<800x400xbf16, #tpu.memory_space<vmem>>, vector<800x400xbf16>
    %c0_44 = arith.constant 0 : index
    %c0_45 = arith.constant 0 : index
    %59 = vector.load %arg17[%c0_44, %c0_45] : memref<1x400xf32, #tpu.memory_space<vmem>>, vector<1x400xf32>
    %cst_46 = arith.constant dense<0.000000e+00> : vector<16x400xf32>
    %60 = tpu.matmul %57, %58, %cst_46 {dimension_numbers = #tpu.dot_dimension_numbers<[1], [0], [0], [1], [0, 0, 1, 1], [], []>} : vector<16x800xbf16>, vector<800x400xbf16>, vector<16x400xf32> -> vector<16x400xf32>
    %61 = vector.broadcast %59 : vector<1x400xf32> to vector<16x400xf32>
    %62 = arith.addf %60, %61 : vector<16x400xf32>
    %cst_47 = arith.constant 0.000000e+00 : f32
    %63 = vector.broadcast %cst_47 : f32 to vector<16x400xf32>
    %64 = arith.maximumf %62, %63 : vector<16x400xf32>
    %65 = arith.truncf %64 : vector<16x400xf32> to vector<16x400xbf16>
    %c0_48 = arith.constant 0 : index
    %c0_49 = arith.constant 0 : index
    %66 = vector.load %arg18[%c0_48, %c0_49] : memref<400x200xbf16, #tpu.memory_space<vmem>>, vector<400x200xbf16>
    %c0_50 = arith.constant 0 : index
    %c0_51 = arith.constant 0 : index
    %67 = vector.load %arg19[%c0_50, %c0_51] : memref<1x200xf32, #tpu.memory_space<vmem>>, vector<1x200xf32>
    %cst_52 = arith.constant dense<0.000000e+00> : vector<16x200xf32>
    %68 = tpu.matmul %65, %66, %cst_52 {dimension_numbers = #tpu.dot_dimension_numbers<[1], [0], [0], [1], [0, 0, 1, 1], [], []>} : vector<16x400xbf16>, vector<400x200xbf16>, vector<16x200xf32> -> vector<16x200xf32>
    %69 = vector.broadcast %67 : vector<1x200xf32> to vector<16x200xf32>
    %70 = arith.addf %68, %69 : vector<16x200xf32>
    %cst_53 = arith.constant 0.000000e+00 : f32
    %71 = vector.broadcast %cst_53 : f32 to vector<16x200xf32>
    %72 = arith.maximumf %70, %71 : vector<16x200xf32>
    %73 = arith.truncf %72 : vector<16x200xf32> to vector<16x200xbf16>
    %c0_54 = arith.constant 0 : index
    %c0_55 = arith.constant 0 : index
    %74 = vector.load %arg20[%c0_54, %c0_55] : memref<200x128xbf16, #tpu.memory_space<vmem>>, vector<200x128xbf16>
    %c0_56 = arith.constant 0 : index
    %c0_57 = arith.constant 0 : index
    %75 = vector.load %arg21[%c0_56, %c0_57] : memref<1x128xf32, #tpu.memory_space<vmem>>, vector<1x128xf32>
    %cst_58 = arith.constant dense<0.000000e+00> : vector<16x128xf32>
    %76 = tpu.matmul %73, %74, %cst_58 {dimension_numbers = #tpu.dot_dimension_numbers<[1], [0], [0], [1], [0, 0, 1, 1], [], []>} : vector<16x200xbf16>, vector<200x128xbf16>, vector<16x128xf32> -> vector<16x128xf32>
    %77 = vector.broadcast %75 : vector<1x128xf32> to vector<16x128xf32>
    %78 = arith.addf %76, %77 : vector<16x128xf32>
    %c0_59 = arith.constant 0 : index
    %c0_60 = arith.constant 0 : index
    %79 = vector.load %arg22[%c0_59, %c0_60] : memref<16x128xf32, #tpu.memory_space<vmem>>, vector<16x128xf32>
    tpu.vector_store %arg22[%c0_59, %c0_60], %78 {strides = array<i32>} : memref<16x128xf32, #tpu.memory_space<vmem>>, vector<16x128xf32>,
    return
  }
  func.func @transform_0(%arg0: i32) -> (i32, i32) {
    %c0_i32 = arith.constant 0 : i32
    %c0_i32_0 = arith.constant 0 : i32
    return %arg0, %c0_i32 : i32, i32
  }
  func.func @transform_1(%arg0: i32) -> (i32, i32) {
    %c0_i32 = arith.constant 0 : i32
    %c0_i32_0 = arith.constant 0 : i32
    %c0_i32_1 = arith.constant 0 : i32
    return %c0_i32, %c0_i32_0 : i32, i32
  }
  func.func @transform_2(%arg0: i32) -> (i32, i32) {
    %c0_i32 = arith.constant 0 : i32
    %c0_i32_0 = arith.constant 0 : i32
    %c0_i32_1 = arith.constant 0 : i32
    return %c0_i32, %c0_i32_0 : i32, i32
  }
  func.func @transform_3(%arg0: i32) -> (i32, i32) {
    %c0_i32 = arith.constant 0 : i32
    %c0_i32_0 = arith.constant 0 : i32
    %c0_i32_1 = arith.constant 0 : i32
    return %c0_i32, %c0_i32_0 : i32, i32
  }
  func.func @transform_4(%arg0: i32) -> (i32, i32) {
    %c0_i32 = arith.constant 0 : i32
    %c0_i32_0 = arith.constant 0 : i32
    %c0_i32_1 = arith.constant 0 : i32
    return %c0_i32, %c0_i32_0 : i32, i32
  }
  func.func @transform_5(%arg0: i32) -> (i32, i32) {
    %c0_i32 = arith.constant 0 : i32
    %c0_i32_0 = arith.constant 0 : i32
    %c0_i32_1 = arith.constant 0 : i32
    return %c0_i32, %c0_i32_0 : i32, i32
  }
  func.func @transform_6(%arg0: i32) -> (i32, i32) {
    %c0_i32 = arith.constant 0 : i32
    %c0_i32_0 = arith.constant 0 : i32
    %c0_i32_1 = arith.constant 0 : i32
    return %c0_i32, %c0_i32_0 : i32, i32
  }
  func.func @transform_7(%arg0: i32) -> (i32, i32) {
    %c0_i32 = arith.constant 0 : i32
    %c0_i32_0 = arith.constant 0 : i32
    %c0_i32_1 = arith.constant 0 : i32
    return %c0_i32, %c0_i32_0 : i32, i32
  }
  func.func @transform_8(%arg0: i32) -> (i32, i32) {
    %c0_i32 = arith.constant 0 : i32
    %c0_i32_0 = arith.constant 0 : i32
    %c0_i32_1 = arith.constant 0 : i32
    return %c0_i32, %c0_i32_0 : i32, i32
  }
  func.func @transform_9(%arg0: i32) -> (i32, i32) {
    %c0_i32 = arith.constant 0 : i32
    %c0_i32_0 = arith.constant 0 : i32
    %c0_i32_1 = arith.constant 0 : i32
    return %c0_i32, %c0_i32_0 : i32, i32
  }
  func.func @transform_10(%arg0: i32) -> (i32, i32) {
    %c0_i32 = arith.constant 0 : i32
    %c0_i32_0 = arith.constant 0 : i32
    %c0_i32_1 = arith.constant 0 : i32
    return %c0_i32, %c0_i32_0 : i32, i32
  }
  func.func @transform_11(%arg0: i32) -> (i32, i32) {
    %c0_i32 = arith.constant 0 : i32
    %c0_i32_0 = arith.constant 0 : i32
    %c0_i32_1 = arith.constant 0 : i32
    return %c0_i32, %c0_i32_0 : i32, i32
  }
  func.func @transform_12(%arg0: i32) -> (i32, i32) {
    %c0_i32 = arith.constant 0 : i32
    %c0_i32_0 = arith.constant 0 : i32
    %c0_i32_1 = arith.constant 0 : i32
    return %c0_i32, %c0_i32_0 : i32, i32
  }
  func.func @transform_13(%arg0: i32) -> (i32, i32) {
    %c0_i32 = arith.constant 0 : i32
    %c0_i32_0 = arith.constant 0 : i32
    %c0_i32_1 = arith.constant 0 : i32
    return %c0_i32, %c0_i32_0 : i32, i32
  }
  func.func @transform_14(%arg0: i32) -> (i32, i32) {
    %c0_i32 = arith.constant 0 : i32
    %c0_i32_0 = arith.constant 0 : i32
    %c0_i32_1 = arith.constant 0 : i32
    return %c0_i32, %c0_i32_0 : i32, i32
  }
  func.func @transform_15(%arg0: i32) -> (i32, i32) {
    %c0_i32 = arith.constant 0 : i32
    %c0_i32_0 = arith.constant 0 : i32
    %c0_i32_1 = arith.constant 0 : i32
    return %c0_i32, %c0_i32_0 : i32, i32
  }
  func.func @transform_16(%arg0: i32) -> (i32, i32) {
    %c0_i32 = arith.constant 0 : i32
    %c0_i32_0 = arith.constant 0 : i32
    %c0_i32_1 = arith.constant 0 : i32
    return %c0_i32, %c0_i32_0 : i32, i32
  }
  func.func @transform_17(%arg0: i32) -> (i32, i32) {
    %c0_i32 = arith.constant 0 : i32
    %c0_i32_0 = arith.constant 0 : i32
    %c0_i32_1 = arith.constant 0 : i32
    return %c0_i32, %c0_i32_0 : i32, i32
  }
  func.func @transform_18(%arg0: i32) -> (i32, i32) {
    %c0_i32 = arith.constant 0 : i32
    %c0_i32_0 = arith.constant 0 : i32
    %c0_i32_1 = arith.constant 0 : i32
    return %c0_i32, %c0_i32_0 : i32, i32
  }
  func.func @transform_19(%arg0: i32) -> (i32, i32) {
    %c0_i32 = arith.constant 0 : i32
    %c0_i32_0 = arith.constant 0 : i32
    %c0_i32_1 = arith.constant 0 : i32
    return %c0_i32, %c0_i32_0 : i32, i32
  }
  func.func @transform_20(%arg0: i32) -> (i32, i32) {
    %c0_i32 = arith.constant 0 : i32
    %c0_i32_0 = arith.constant 0 : i32
    %c0_i32_1 = arith.constant 0 : i32
    return %c0_i32, %c0_i32_0 : i32, i32
  }
  func.func @transform_21(%arg0: i32) -> (i32, i32) {
    %c0_i32 = arith.constant 0 : i32
    %c0_i32_0 = arith.constant 0 : i32
    return %arg0, %c0_i32 : i32, i32
  }
}

</mosaic_0001>

<bundles_post_ra>
// kernel: decoder_forward.1
= control target key start
LH: loop header
LB: loop body
LE: loop exit
PB: predicated region body
PF: predicated region fallthrough
CT: control target
= control target key end

     0   :  { %s16359_s0 = inlined_call_operand.vmem [shape: f32[16,6], index: 0, kind: input, shape index: {}]   ;;  %s16360_s1 = inlined_call_operand.vmem [shape: bf16[6,200], index: 1, kind: input, shape index: {}]   ;;  %s16361_s2 = inlined_call_operand.vmem [shape: f32[1,200], index: 2, kind: input, shape index: {}]   ;;  %s16362_s3 = inlined_call_operand.vmem [shape: bf16[200,200], index: 3, kind: input, shape index: {}]   ;;  %s16363_s4 = inlined_call_operand.vmem [shape: f32[1,200], index: 4, kind: input, shape index: {}]   ;;  %s16364_s5 = inlined_call_operand.hbm [shape: bf16[200,200], index: 5, kind: input, shape index: {}]   ;;  %s16365_s6 = inlined_call_operand.vmem [shape: f32[1,200], index: 6, kind: input, shape index: {}]   ;;  %s16366_s7 = inlined_call_operand.hbm [shape: bf16[200,400], index: 7, kind: input, shape index: {}]   ;;  %s16367_s8 = inlined_call_operand.vmem [shape: f32[1,400], index: 8, kind: input, shape index: {}]   ;;  %s16368_s9 = inlined_call_operand.hbm [shape: bf16[400,800], index: 9, kind: input, shape index: {}]   ;;  %s16369_s10 = inlined_call_operand.vmem [shape: f32[1,800], index: 10, kind: input, shape index: {}]   ;;  %s16370_s11 = inlined_call_operand.vmem [shape: bf16[800,800], index: 11, kind: input, shape index: {}]   ;;  %s16371_s12 = inlined_call_operand.vmem [shape: f32[1,800], index: 12, kind: input, shape index: {}]   ;;  %s16372_s13 = inlined_call_operand.hbm [shape: bf16[800,800], index: 13, kind: input, shape index: {}]   ;;  %s16373_s14 = inlined_call_operand.vmem [shape: f32[1,800], index: 14, kind: input, shape index: {}]   ;;  %s16374_s15 = inlined_call_operand.vmem [shape: bf16[800,400], index: 15, kind: input, shape index: {}]   ;;  %s16375_s16 = inlined_call_operand.vmem [shape: f32[1,400], index: 16, kind: input, shape index: {}]   ;;  %s16376_s17 = inlined_call_operand.hbm [shape: bf16[400,200], index: 17, kind: input, shape index: {}]   ;;  %s16377_s18 = inlined_call_operand.vmem [shape: f32[1,200], index: 18, kind: input, shape index: {}]   ;;  %s16378_s19 = inlined_call_operand.hbm [shape: bf16[200,128], index: 19, kind: input, shape index: {}]   ;;  %s16379_s20 = inlined_call_operand.vmem [shape: f32[1,128], index: 20, kind: input, shape index: {}]   ;;  %s16380_s21 = inlined_call_operand.hbm [shape: f32[16,128], index: 21, kind: output, shape index: {}]  }
   0x1   :  { %16383 = sst [smem:[#allocation19_spill]] %s16359_s0 }
   0x2   :  { %16384 = sst [smem:[#allocation20_spill]] %s16360_s1 }
   0x3   :  { %16385 = sst [smem:[#allocation21_spill]] %s16361_s2 }
   0x4   :  { %16386 = sst [smem:[#allocation22_spill]] %s16362_s3 }
   0x5   :  { %16387 = sst [smem:[#allocation23_spill]] %s16363_s4 }
   0x6   :  { %16388 = sst [smem:[#allocation24_spill]] %s16364_s5 }
   0x7   :  { %26 = vsyncpa [#allocation3], 0 }
   0x8   :  { %27 = vsyncpa [#allocation6], 0 }
   0x9   :  { %28 = vsyncpa [#allocation9], 0 }
   0xa   :  { %29 = vsyncpa [#allocation12], 0 }
   0xb   :  { %30 = vsyncpa [#allocation4], 0  ;;  %s14067_s2 = smov [#allocation5]  }
   0xc   :  { %s60_s25 = sshll.u32 %s14067_s2, 4  ;;  %s61_s25 = int_to_ptr.vmem [resolvable:$true] %s60_s25 }
   0xd   :  { %s13925_s26 = scalar_lea.vmem %s61_s25, 6400  ;;  %p13930_p1 = scmp.lt.s32.totalorder %s61_s25, %s61_s25 }
   0xe   :  { %p13926_p0 = scmp.ne.s32.totalorder %s61_s25, %s13925_s26  ;;  %p13931_p2 = scmp.lt.s32.totalorder %s13925_s26, %s13925_s26 }
  0x10   :  { %p13932_p3 = por %p13931_p2, %p13930_p1 }
  0x12   :  { %p13933_p4 = pnand %p13932_p3, %p13926_p0 }
  0x14   :  { %13936 = shalt.err (!%p13933_p4)
}
  0x15   :  { %s14068_s27 = smov 256   ;;  %s14069_s3 = smov 16  }
  0x16   :  { %66 = dma.hbm_to_vmem [thread:$0]  %s16366_s7, 6400, %s61_s25, [#allocation6], %s14068_s27, %s14068_s27, %s14069_s3  }
  0x17   :  { %s14070_s0 = smov [#allocation8]   ;;  %s14071_s30 = smov [#allocation2]  }
  0x18   :  { %s92_s4 = sshll.u32 %s14070_s0, 4  ;;  %s46_s5 = sshll.u32 %s14071_s30, 4  ;;  %s93_s4 = int_to_ptr.vmem [resolvable:$true] %s92_s4  ;;  %s47_s5 = int_to_ptr.vmem [resolvable:$true] %s46_s5 }
  0x19   :  { %s13945_s22 = scalar_lea.vmem %s93_s4, 44800  ;;  %p13950_p6 = scmp.lt.s32.totalorder %s93_s4, %s93_s4 }
  0x1a   :  { %p13946_p5 = scmp.ne.s32.totalorder %s93_s4, %s13945_s22  ;;  %p13951_p7 = scmp.lt.s32.totalorder %s13945_s22, %s13945_s22 }
  0x1c   :  { %p13952_p8 = por %p13951_p7, %p13950_p6 }
  0x1e   :  { %p13953_p9 = pnand %p13952_p8, %p13946_p5 }
  0x20   :  { %13956 = shalt.err (!%p13953_p9)
}
  0x21   :  { %s14072_s23 = smov 448   ;;  %s14073_s1 = smov 28  }
  0x22   :  { %98 = dma.hbm_to_vmem [thread:$0]  %s16372_s13, 44800, %s93_s4, [#allocation9], %s14072_s23, %s14072_s23, %s14073_s1  }
  0x23   :  { %s13965_s7 = scalar_lea.vmem %s47_s5, 3200  ;;  %p13970_p11 = scmp.lt.s32.totalorder %s47_s5, %s47_s5 }
  0x24   :  { %p13966_p10 = scmp.ne.s32.totalorder %s47_s5, %s13965_s7  ;;  %p13971_p12 = scmp.lt.s32.totalorder %s13965_s7, %s13965_s7 }
  0x26   :  { %p13972_p13 = por %p13971_p12, %p13970_p11 }
  0x28   :  { %p13973_p0 = pnand %p13972_p13, %p13966_p10 }
  0x2a   :  { %13976 = shalt.err (!%p13973_p0)
}
  0x2b   :  { %s14074_s25 = smov 128   ;;  %s14075_s26 = smov 8  }
  0x2c   :  { %s16389_s28 = sld [smem:[#allocation24_spill]]  ;;  %s14076_s29 = smov [#allocation7]  }
  0x2d   :  { %s74_s0 = sshll.u32 %s14076_s29, 4  ;;  %s14077_s13 = smov [#allocation10]   ;;  %s75_s0 = int_to_ptr.vmem [resolvable:$true] %s74_s0 }
  0x2e   :  { %s110_s4 = sshll.u32 %s14077_s13, 4  ;;  %s13985_s30 = scalar_lea.vmem %s75_s0, 22400  ;;  %s111_s4 = int_to_ptr.vmem [resolvable:$true] %s110_s4 }
  0x2f   :  { %p13986_p1 = scmp.ne.s32.totalorder %s75_s0, %s13985_s30  ;;  %p13990_p2 = scmp.lt.s32.totalorder %s75_s0, %s75_s0 }
  0x30   :  { %p13991_p3 = scmp.lt.s32.totalorder %s13985_s30, %s13985_s30 }
  0x32   :  { %52 = dma.hbm_to_vmem [thread:$0]  %s16389_s28, 3200, %s47_s5, [#allocation3], %s14074_s25, %s14074_s25, %s14075_s26  }
  0x33   :  { %p13992_p4 = por %p13991_p3, %p13990_p2 }
  0x35   :  { %p13993_p5 = pnand %p13992_p4, %p13986_p1 }
  0x37   :  { %13996 = shalt.err (!%p13993_p5)
}
  0x38   :  { %80 = dma.hbm_to_vmem [thread:$0]  %s16368_s9, 22400, %s75_s0, [#allocation6], %s14072_s23, %s14072_s23, %s14073_s1  }
  0x39   :  { %s14005_s2 = scalar_lea.vmem %s111_s4, 6400  ;;  %p14010_p7 = scmp.lt.s32.totalorder %s111_s4, %s111_s4 }
  0x3a   :  { %p14006_p6 = scmp.ne.s32.totalorder %s111_s4, %s14005_s2  ;;  %p14011_p8 = scmp.lt.s32.totalorder %s14005_s2, %s14005_s2 }
  0x3c   :  { %p14012_p9 = por %p14011_p8, %p14010_p7 }
  0x3e   :  { %p14013_p10 = pnand %p14012_p9, %p14006_p6 }
  0x40   :  { %14016 = shalt.err (!%p14013_p10)
}
  0x41   :  { %116 = dma.hbm_to_vmem [thread:$0]  %s16376_s17, 6400, %s111_s4, [#allocation9], %s14074_s25, %s14074_s25, %s14075_s26  }
  0x42   :  { %s14078_s27 = smov [#allocation11]  }
  0x43   :  { %s124_s3 = sshll.u32 %s14078_s27, 4  ;;  %s125_s3 = int_to_ptr.vmem [resolvable:$true] %s124_s3 }
  0x44   :  { %s14025_s28 = scalar_lea.vmem %s125_s3, 1600  ;;  %p14030_p12 = scmp.lt.s32.totalorder %s125_s3, %s125_s3 }
  0x45   :  { %p14026_p11 = scmp.ne.s32.totalorder %s125_s3, %s14025_s28  ;;  %p14031_p13 = scmp.lt.s32.totalorder %s14025_s28, %s14025_s28 }
  0x47   :  { %p14032_p0 = por %p14031_p13, %p14030_p12 }
  0x49   :  { %p14033_p1 = pnand %p14032_p0, %p14026_p11 }
  0x4b   :  { %14036 = shalt.err (!%p14033_p1)
}
  0x4c   :  { %s14079_s9 = smov 64   ;;  %s14080_s23 = smov 4  }
  0x4d   :  { %130 = dma.hbm_to_vmem [thread:$0]  %s16378_s19, 1600, %s125_s3, [#allocation12], %s14079_s9, %s14079_s9, %s14080_s23  }
  0x4e   :  { %14057 = dma.done.wait [#allocation3], 3200  }
  0x4f   :  { %14058 = vsyncadd [#allocation3], 4294964096 }
  0x50   :  { %14059 = dma.done.wait [#allocation6], 28800  }
  0x51   :  { %14060 = vsyncadd [#allocation6], 4294938496 }
  0x52   :  { %14061 = dma.done.wait [#allocation9], 51200  }
  0x53   :  { %14062 = vsyncadd [#allocation9], 4294916096 }
  0x54   :  { %14063 = dma.done.wait [#allocation12], 1600  }
  0x55   :  { %14064 = vsyncadd [#allocation12], 4294965696  ;;  %v14081_v0 = vmov 0   ;;  %s16390_s13 = sld [smem:[#allocation20_spill]]  ;;  %vm177_vm0 = vcmask 1042432   ;;  %vm173_vm1 = vcmask 48128   ;;  %v158_v58 = vlaneseq }
  0x56   :  { %216 = vmatprep.mubr.bf16.mxu0 %v14081_v0  ;;  %s16391_s22 = sld [smem:[#allocation19_spill]]  ;;  %vm399_vm2 = vcmask 1043456   ;;  %v12164_v36 = vld [vmem:[#allocation2 + $0x70] ss:$8 sps:$4 sm:$0xff]   ;;  %v12166_v37 = vld [vmem:[#allocation2 + $0x74] ss:$8 sps:$4 sm:$0xff]  }
  0x57   :  { %s16392_s7 = sld [smem:[#allocation22_spill]]  ;;  %v12169_v38 = vld [vmem:[#allocation2 + $0x64] ss:$8 sps:$4 sm:$0xff]   ;;  %v12167_v39 = vld [vmem:[#allocation2 + $0x60] ss:$8 sps:$4 sm:$0xff]   ;;  %v14308_v59 = vshrl.u32 %v158_v58, 7 }
  0x58   :  { %v12172_v40 = vld [vmem:[#allocation2 + $0x54] ss:$8 sps:$4 sm:$0xff]   ;;  %v12170_v41 = vld [vmem:[#allocation2 + $0x50] ss:$8 sps:$4 sm:$0xff]   ;;  %v12175_v42 = vld [vmem:[#allocation2 + $0x44] ss:$8 sps:$4 sm:$0xff]  }
  0x59   :  { %v12173_v43 = vld [vmem:[#allocation2 + $0x40] ss:$8 sps:$4 sm:$0xff]   ;;  %v12178_v44 = vld [vmem:[#allocation2 + $0x34] ss:$8 sps:$4 sm:$0xff]   ;;  %v12176_v45 = vld [vmem:[#allocation2 + $0x30] ss:$8 sps:$4 sm:$0xff]  }
  0x5a   :  { %v12181_v46 = vld [vmem:[#allocation2 + $0x24] ss:$8 sps:$4 sm:$0xff]   ;;  %v12179_v47 = vld [vmem:[#allocation2 + $0x20] ss:$8 sps:$4 sm:$0xff]   ;;  %v12184_v48 = vld [vmem:[#allocation2 + $0x14] ss:$8 sps:$4 sm:$0xff]  }
  0x5b   :  { %v155_v1 = vld [vmem:[%s16390_s13] sm:$0x77]  ;;  %v12187_v50 = vld [vmem:[#allocation2 + $0x4] ss:$8 sps:$4 sm:$0xff]   ;;  %v12185_v52 = vld [vmem:[#allocation2] ss:$8 sps:$4 sm:$0xff]  }
  0x5c   :  { %v152_v2 = vld [vmem:[%s16391_s22] sm:$0xff]  ;;  %v153_v3 = vld [vmem:[%s16391_s22 + $0x8] sm:$0xff]  ;;  %v10660_v4 = vcombine.high %v155_v1, %v155_v1  ;;  %v10659_v5 = vcombine.low %v155_v1, %v155_v1  ;;  %v479_v51 = vld [vmem:[#allocation2 + $0xc0] sm:$0xff]  ;;  %v14311_v60 = vsub.s32 1, %v14308_v59  ;;  %s16393_s2 = sld [smem:[#allocation21_spill]]  ;;  %v14317_v62 = vsub.s32 0, %v14308_v59 }
  0x5d   :  { %v12126_v6 = vld [vmem:[%s16392_s7 + $0x74] ss:$8 sps:$4 sm:$0xff]   ;;  %v12128_v7 = vld [vmem:[%s16392_s7 + $0x70] ss:$8 sps:$4 sm:$0xff]   ;;  %v154_v9 = vpack.c.bf16 %v153_v3, %v152_v2  ;;  %v12129_v10 = vld [vmem:[%s16392_s7 + $0x64] ss:$8 sps:$4 sm:$0xff]   ;;  %v10716_v53 = vcombine.high %v479_v51, %v479_v51  ;;  %v10715_v54 = vcombine.low %v479_v51, %v479_v51 }
  0x5e   :  { %10661 = vmatprep.subr.msk.bf16.mxu0 %vm177_vm0, %v10660_v4  ;;  %v179_v8 = vsel %vm177_vm0, %v10659_v5, 0  ;;  %406 = vmatprep.subr.bf16.mxu1 %v12126_v6  ;;  %v12131_v11 = vld [vmem:[%s16392_s7 + $0x60] ss:$8 sps:$4 sm:$0xff]   ;;  %v12132_v12 = vld [vmem:[%s16392_s7 + $0x54] ss:$8 sps:$4 sm:$0xff]   ;;  %vm395_vm3 = vcmask 588800  }
  0x5f   :  { %199 = vmatpush1.bf16.msra.mxu0 %v179_v8  ;;  %407 = vmatpush1.bf16.msra.mxu1 %v12128_v7  ;;  %v12134_v13 = vld [vmem:[%s16392_s7 + $0x50] ss:$8 sps:$4 sm:$0xff]   ;;  %v12135_v14 = vld [vmem:[%s16392_s7 + $0x44] ss:$8 sps:$4 sm:$0xff]   ;;  %v12137_v15 = vld [vmem:[%s16392_s7 + $0x40] ss:$8 sps:$4 sm:$0xff]  }
  0x60   :  { %408 = vmatprep.subr.bf16.mxu1 %v12129_v10  ;;  %v12138_v16 = vld [vmem:[%s16392_s7 + $0x34] ss:$8 sps:$4 sm:$0xff]   ;;  %v12140_v17 = vld [vmem:[%s16392_s7 + $0x30] ss:$8 sps:$4 sm:$0xff]   ;;  %v12141_v18 = vld [vmem:[%s16392_s7 + $0x24] ss:$8 sps:$4 sm:$0xff]   ;;  %626 = vmatprep.subr.bf16.mxu0 %v12166_v37 }
  0x61   :  { %v12143_v19 = vld [vmem:[%s16392_s7 + $0x20] ss:$8 sps:$4 sm:$0xff]   ;;  %v12144_v20 = vld [vmem:[%s16392_s7 + $0x14] ss:$8 sps:$4 sm:$0xff]   ;;  %v12146_v21 = vld [vmem:[%s16392_s7 + $0x10] ss:$8 sps:$4 sm:$0xff]  }
  0x62   :  { %10662 = vmatmul.mubr.msk.bf16.vlgmr.msra.gmra.mxu0 %vm173_vm1, %v154_v9  ;;  %v12147_v22 = vld [vmem:[%s16392_s7 + $0x4] ss:$8 sps:$4 sm:$0xff]   ;;  %v12149_v24 = vld [vmem:[%s16392_s7] ss:$8 sps:$4 sm:$0xff]   ;;  %v12152_v27 = vld [vmem:[%s16392_s7 + $0xb4] ss:$8 sps:$4 sm:$0xff]  }
  0x63   :  { %409 = vmatpush1.bf16.msra.mxu1 %v12131_v11  ;;  %v257_v23 = vld [vmem:[%s16392_s7 + $0xc0] sm:$0xff]  ;;  %v12154_v29 = vld [vmem:[%s16392_s7 + $0xb0] ss:$8 sps:$4 sm:$0xff]   ;;  %v12158_v32 = vld [vmem:[%s16392_s7 + $0x94] ss:$8 sps:$4 sm:$0xff]   ;;  %627 = vmatpush1.bf16.msra.mxu0 %v12164_v36  ;;  %v621_v56 = vsel %vm399_vm2, %v10715_v54, 0 }
  0x64   :  { %410 = vmatprep.subr.bf16.mxu1 %v12132_v12  ;;  %v10688_v25 = vcombine.high %v257_v23, %v257_v23  ;;  %v10687_v26 = vcombine.low %v257_v23, %v257_v23  ;;  %v12155_v30 = vld [vmem:[%s16392_s7 + $0xa4] ss:$8 sps:$4 sm:$0xff]   ;;  %v12157_v31 = vld [vmem:[%s16392_s7 + $0xa0] ss:$8 sps:$4 sm:$0xff]   ;;  %v12160_v33 = vld [vmem:[%s16392_s7 + $0x90] ss:$8 sps:$4 sm:$0xff]   ;;  %628 = vmatprep.subr.bf16.mxu0 %v12169_v38 }
  0x65   :  { %v12161_v34 = vld [vmem:[%s16392_s7 + $0x84] ss:$8 sps:$4 sm:$0xff]   ;;  %v12163_v35 = vld [vmem:[%s16392_s7 + $0x80] ss:$8 sps:$4 sm:$0xff]   ;;  %s16394_s3 = sld [smem:[#allocation23_spill]]  ;;  %vm2247_vm4 = vcmask 130048  }
  0x66   :  { %v401_v28 = vsel %vm399_vm2, %v10687_v26, 0  ;;  %v12182_v49 = vld [vmem:[#allocation2 + $0x10] ss:$8 sps:$4 sm:$0xff]   ;;  %v12192_v55 = vld [vmem:[#allocation2 + $0xb4] ss:$8 sps:$4 sm:$0xff]   ;;  %vm4849_vm5 = vcmask 261120  }
  0x67   :  { %411 = vmatpush1.bf16.msra.mxu1 %v12134_v13  ;;  %629 = vmatpush1.bf16.msra.mxu0 %v12167_v39  ;;  %v12190_v57 = vld [vmem:[#allocation2 + $0xb0] ss:$8 sps:$4 sm:$0xff]   ;;  %v12204_v23 = vld [vmem:[#allocation5 + $0xe4] ss:$16 sps:$4 sm:$0xff]   ;;  %vm14083_vm6 = vmmov 0  }
  0x68   :  { %412 = vmatprep.subr.bf16.mxu1 %v12135_v14  ;;  %630 = vmatprep.subr.bf16.mxu0 %v12172_v40  ;;  %v156_v61 = vld [vmem:[%s16393_s2] sm:$0x3]  ;;  %v12208_v26 = vld [vmem:[#allocation5 + $0xc0] ss:$16 sps:$4 sm:$0xff]   ;;  %v12246_v37 = vld [vmem:[#allocation5 + $0x4] ss:$16 sps:$4 sm:$0xff]  }
  0x69   :  { %v165_v63 = vrot.slane %v156_v61, %v14311_v60  ;;  %v161_v2 = vrot.slane %v156_v61, %v14317_v62  ;;  %v12238_v36 = vld [vmem:[#allocation5 + $0x20] ss:$16 sps:$4 sm:$0xff]   ;;  %v12205_v61 = vld [vmem:[#allocation5 + $0xe8] ss:$16 sps:$4 sm:$0xff]  }
  0x6a   :  { %v12244_v38 = vld [vmem:[#allocation5] ss:$16 sps:$4 sm:$0xff]  }
  0x6b   :  { %413 = vmatpush1.bf16.msra.mxu1 %v12137_v15  ;;  %631 = vmatpush1.bf16.msra.mxu0 %v12170_v41  ;;  %v723_v39 = vld [vmem:[#allocation5 + $0x180] sm:$0xff] }
  0x6c   :  { %414 = vmatprep.subr.bf16.mxu1 %v12138_v16  ;;  %632 = vmatprep.subr.bf16.mxu0 %v12175_v42  ;;  %v12195_v16 = vld [vmem:[#allocation2 + $0xa4] ss:$8 sps:$4 sm:$0xff]   ;;  %v10768_v40 = vcombine.high %v723_v39, %v723_v39  ;;  %v10767_v41 = vcombine.low %v723_v39, %v723_v39 }
  0x6e   :  { %v1001_v42 = vsel %vm399_vm2, %v10767_v41, 0 }
  0x6f   :  { %415 = vmatpush1.bf16.msra.mxu1 %v12140_v17  ;;  %633 = vmatpush1.bf16.msra.mxu0 %v12173_v43  ;;  %v12193_v17 = vld [vmem:[#allocation2 + $0xa0] ss:$8 sps:$4 sm:$0xff]   ;;  %v12256_v43 = vld [vmem:[#allocation5 + $0x164] ss:$16 sps:$4 sm:$0xff]  }
  0x70   :  { %416 = vmatprep.subr.bf16.mxu1 %v12141_v18  ;;  %634 = vmatprep.subr.bf16.mxu0 %v12178_v44  ;;  %v12198_v18 = vld [vmem:[#allocation2 + $0x94] ss:$8 sps:$4 sm:$0xff]   ;;  %v12254_v44 = vld [vmem:[#allocation5 + $0x160] ss:$16 sps:$4 sm:$0xff]  }
  0x73   :  { %417 = vmatpush1.bf16.msra.mxu1 %v12143_v19  ;;  %635 = vmatpush1.bf16.msra.mxu0 %v12176_v45  ;;  %v12196_v19 = vld [vmem:[#allocation2 + $0x90] ss:$8 sps:$4 sm:$0xff]  }
  0x74   :  { %418 = vmatprep.subr.bf16.mxu1 %v12144_v20  ;;  %636 = vmatprep.subr.bf16.mxu0 %v12181_v46  ;;  %v12201_v20 = vld [vmem:[#allocation2 + $0x84] ss:$8 sps:$4 sm:$0xff]   ;;  %v258_v45 = vld [vmem:[%s16394_s3] sm:$0x3]  ;;  %s14084_s3 = smov [#allocation13]  }
  0x75   :  { %s10644_s28 = sshll.u32 %s14084_s3, 4  ;;  %s10645_s28 = int_to_ptr.vmem [resolvable:$true] %s10644_s28 }
  0x76   :  { %s14037_s9 = scalar_lea.vmem %s10645_s28, 256  ;;  %p14042_p3 = scmp.lt.s32.totalorder %s10645_s28, %s10645_s28 }
  0x77   :  { %419 = vmatpush1.bf16.msra.mxu1 %v12146_v21  ;;  %637 = vmatpush1.bf16.msra.mxu0 %v12179_v47  ;;  %v12199_v21 = vld [vmem:[#allocation2 + $0x80] ss:$8 sps:$4 sm:$0xff]   ;;  %v267_v47 = vrot.slane %v258_v45, %v14311_v60  ;;  %p14038_p2 = scmp.ne.s32.totalorder %s10645_s28, %s14037_s9  ;;  %p14043_p4 = scmp.lt.s32.totalorder %s14037_s9, %s14037_s9 }
  0x78   :  { %420 = vmatprep.subr.bf16.mxu1 %v12147_v22  ;;  %638 = vmatprep.subr.bf16.mxu0 %v12184_v48  ;;  %v12202_v22 = vld [vmem:[#allocation5 + $0xe0] ss:$16 sps:$4 sm:$0xff]   ;;  %v263_v48 = vrot.slane %v258_v45, %v14317_v62 }
  0x79   :  { %p14044_p5 = por %p14043_p4, %p14042_p3 }
  0x7b   :  { %421 = vmatpush1.bf16.msra.mxu1 %v12149_v24  ;;  %639 = vmatpush1.bf16.msra.mxu0 %v12182_v49  ;;  %v12207_v24 = vld [vmem:[#allocation5 + $0xec] ss:$16 sps:$4 sm:$0xff]   ;;  %p14045_p6 = pnand %p14044_p5, %p14038_p2 }
  0x7c   :  { %10689 = vmatprep.subr.msk.bf16.mxu1 %vm399_vm2, %v10688_v25  ;;  %640 = vmatprep.subr.bf16.mxu0 %v12187_v50  ;;  %v12210_v25 = vld [vmem:[#allocation5 + $0xc4] ss:$16 sps:$4 sm:$0xff]  }
  0x7f   :  { %429 = vmatpush2.bf16.msra.mxu1 %v401_v28  ;;  %641 = vmatpush1.bf16.msra.mxu0 %v12185_v52  ;;  %v12214_v28 = vld [vmem:[#allocation5 + $0xa0] ss:$16 sps:$4 sm:$0xff]  }
  0x80   :  { %430 = vmatprep.subr.bf16.mxu1 %v12152_v27  ;;  %10717 = vmatprep.subr.msk.bf16.mxu0 %vm399_vm2, %v10716_v53  ;;  %v12216_v27 = vld [vmem:[#allocation5 + $0xa4] ss:$16 sps:$4 sm:$0xff]  }
  0x83   :  { %431 = vmatpush2.bf16.msra.mxu1 %v12154_v29  ;;  %649 = vmatpush2.bf16.msra.mxu0 %v621_v56  ;;  %v12222_v29 = vld [vmem:[#allocation5 + $0x84] ss:$16 sps:$4 sm:$0xff]  }
  0x84   :  { %432 = vmatprep.subr.bf16.mxu1 %v12155_v30  ;;  %650 = vmatprep.subr.bf16.mxu0 %v12192_v55  ;;  %v12220_v30 = vld [vmem:[#allocation5 + $0x80] ss:$16 sps:$4 sm:$0xff]  }
  0x87   :  { %433 = vmatpush2.bf16.msra.mxu1 %v12157_v31  ;;  %651 = vmatpush2.bf16.msra.mxu0 %v12190_v57  ;;  %v12228_v31 = vld [vmem:[#allocation5 + $0x64] ss:$16 sps:$4 sm:$0xff]  }
  0x88   :  { %434 = vmatprep.subr.bf16.mxu1 %v12158_v32  ;;  %652 = vmatprep.subr.bf16.mxu0 %v12195_v16  ;;  %v12226_v32 = vld [vmem:[#allocation5 + $0x60] ss:$16 sps:$4 sm:$0xff]   ;;  %v724_v16 = vld [vmem:[#allocation5 + $0x188] sm:$0xff] }
  0x8b   :  { %435 = vmatpush2.bf16.msra.mxu1 %v12160_v33  ;;  %653 = vmatpush2.bf16.msra.mxu0 %v12193_v17  ;;  %v12234_v33 = vld [vmem:[#allocation5 + $0x44] ss:$16 sps:$4 sm:$0xff]   ;;  %v12247_v17 = vld [vmem:[#allocation5 + $0x8] ss:$16 sps:$4 sm:$0xff]  }
  0x8c   :  { %436 = vmatprep.subr.bf16.mxu1 %v12161_v34  ;;  %654 = vmatprep.subr.bf16.mxu0 %v12198_v18  ;;  %v12232_v34 = vld [vmem:[#allocation5 + $0x40] ss:$16 sps:$4 sm:$0xff]   ;;  %v10770_v18 = vcombine.high %v724_v16, %v724_v16 }
  0x8f   :  { %437 = vmatpush2.bf16.msra.mxu1 %v12163_v35  ;;  %655 = vmatpush2.bf16.msra.mxu0 %v12196_v19  ;;  %v12240_v35 = vld [vmem:[#allocation5 + $0x24] ss:$16 sps:$4 sm:$0xff]   ;;  %v10769_v19 = vcombine.low %v724_v16, %v724_v16  ;;  %v12298_v16 = vld [vmem:[#allocation7 + $0x3c] ss:$28 sps:$4 sm:$0xff]  }
  0x90   :  { %656 = vmatprep.subr.bf16.mxu0 %v12201_v20  ;;  %1012 = vmatprep.subr.bf16.mxu1 %v12204_v23  ;;  %v12259_v20 = vld [vmem:[#allocation5 + $0x16c] ss:$16 sps:$4 sm:$0xff]   ;;  %v12262_v23 = vld [vmem:[#allocation5 + $0x144] ss:$16 sps:$4 sm:$0xff]  }
  0x93   :  { %657 = vmatpush2.bf16.msra.mxu0 %v12199_v21  ;;  %v1007_v21 = vsel %vm399_vm2, %v10769_v19, 0  ;;  %v12299_v19 = vld [vmem:[#allocation7] ss:$28 sps:$4 sm:$0xff]  }
  0x94   :  { %1055 = vmatprep.subr.bf16.mxu0 %v12207_v24  ;;  %v12265_v24 = vld [vmem:[#allocation5 + $0x14c] ss:$16 sps:$4 sm:$0xff]  }
 0x122   :  { %v218_v1 = vpop.f32.mrf.mxu0 }
 0x123   :  { %v219_v7 = vadd.f32 %v218_v1, %v161_v2  ;;  %v12213_v1 = vld [vmem:[#allocation5 + $0xcc] ss:$16 sps:$4 sm:$0xff]  }
 0x124   :  { %v220_v3 = vpop.f32.mrf.mxu0 }
 0x125   :  { %v221_v4 = vadd.f32 %v220_v3, %v165_v63  ;;  %v227_v13 = vmax.f32 %v219_v7, 0.0  ;;  %v12225_v7 = vld [vmem:[#allocation5 + $0x8c] ss:$16 sps:$4 sm:$0xff]  }
 0x126   :  { %v222_v5 = vpop.f32.mrf.mxu0 }
 0x127   :  { %v223_v6 = vadd.f32 %v222_v5, %v161_v2  ;;  %v228_v9 = vmax.f32 %v221_v4, 0.0  ;;  %v12211_v4 = vld [vmem:[#allocation5 + $0xc8] ss:$16 sps:$4 sm:$0xff]   ;;  %v12219_v5 = vld [vmem:[#allocation5 + $0xac] ss:$16 sps:$4 sm:$0xff]  }
 0x128   :  { %v224_v8 = vpop.f32.mrf.mxu0 }
 0x129   :  { %v225_v10 = vadd.f32 %v224_v8, %v165_v63  ;;  %v229_v11 = vmax.f32 %v223_v6, 0.0  ;;  %v12217_v6 = vld [vmem:[#allocation5 + $0xa8] ss:$16 sps:$4 sm:$0xff]  }
 0x12a   :  { %v12223_v8 = vld [vmem:[#allocation5 + $0x88] ss:$16 sps:$4 sm:$0xff]  }
 0x12b   :  { %v230_v12 = vmax.f32 %v225_v10, 0.0  ;;  %v231_v15 = vpack.c.bf16 %v229_v11, %v227_v13  ;;  %v12229_v10 = vld [vmem:[#allocation5 + $0x68] ss:$16 sps:$4 sm:$0xff]   ;;  %v12237_v11 = vld [vmem:[#allocation5 + $0x4c] ss:$16 sps:$4 sm:$0xff]  }
 0x12c   :  { %v12243_v13 = vld [vmem:[#allocation5 + $0x2c] ss:$16 sps:$4 sm:$0xff]  }
 0x12d   :  { %v232_v14 = vpack.c.bf16 %v230_v12, %v228_v9  ;;  %v12231_v9 = vld [vmem:[#allocation5 + $0x6c] ss:$16 sps:$4 sm:$0xff]   ;;  %v12235_v12 = vld [vmem:[#allocation5 + $0x48] ss:$16 sps:$4 sm:$0xff]  }
 0x12f   :  { %10690 = vmatprep.mubr.msk.bf16.mxu1 %vm395_vm3, %v232_v14  ;;  %v12241_v14 = vld [vmem:[#allocation5 + $0x28] ss:$16 sps:$4 sm:$0xff]  }
 0x130   :  { %439 = vmatmul.mubr.bf16.vlgmr.msra.gmra.mxu1 %v231_v15  ;;  %v12249_v15 = vld [vmem:[#allocation5 + $0xc] ss:$16 sps:$4 sm:$0xff]  }
 0x131   :  { %1013 = vmatpush1.bf16.msra.mxu1 %v12202_v22  ;;  %v12257_v22 = vld [vmem:[#allocation5 + $0x168] ss:$16 sps:$4 sm:$0xff]  }
 0x132   :  { %1014 = vmatprep.subr.bf16.mxu1 %v12210_v25  ;;  %v12260_v25 = vld [vmem:[#allocation5 + $0x140] ss:$16 sps:$4 sm:$0xff]  }
 0x135   :  { %1015 = vmatpush1.bf16.msra.mxu1 %v12208_v26  ;;  %v12263_v26 = vld [vmem:[#allocation5 + $0x148] ss:$16 sps:$4 sm:$0xff]  }
 0x136   :  { %1016 = vmatprep.subr.bf16.mxu1 %v12216_v27  ;;  %v12268_v27 = vld [vmem:[#allocation5 + $0x124] ss:$16 sps:$4 sm:$0xff]  }
 0x139   :  { %1017 = vmatpush1.bf16.msra.mxu1 %v12214_v28  ;;  %v12271_v28 = vld [vmem:[#allocation5 + $0x12c] ss:$16 sps:$4 sm:$0xff]  }
 0x13a   :  { %1018 = vmatprep.subr.bf16.mxu1 %v12222_v29  ;;  %v12266_v29 = vld [vmem:[#allocation5 + $0x120] ss:$16 sps:$4 sm:$0xff]  }
 0x13d   :  { %1019 = vmatpush1.bf16.msra.mxu1 %v12220_v30  ;;  %v12269_v30 = vld [vmem:[#allocation5 + $0x128] ss:$16 sps:$4 sm:$0xff]  }
 0x13e   :  { %1020 = vmatprep.subr.bf16.mxu1 %v12228_v31  ;;  %v12274_v31 = vld [vmem:[#allocation5 + $0x104] ss:$16 sps:$4 sm:$0xff]  }
 0x141   :  { %1021 = vmatpush1.bf16.msra.mxu1 %v12226_v32  ;;  %v12277_v32 = vld [vmem:[#allocation5 + $0x10c] ss:$16 sps:$4 sm:$0xff]  }
 0x142   :  { %1022 = vmatprep.subr.bf16.mxu1 %v12234_v33  ;;  %v12272_v33 = vld [vmem:[#allocation5 + $0x100] ss:$16 sps:$4 sm:$0xff]  }
 0x145   :  { %1023 = vmatpush1.bf16.msra.mxu1 %v12232_v34  ;;  %v12275_v34 = vld [vmem:[#allocation5 + $0x108] ss:$16 sps:$4 sm:$0xff]  }
 0x146   :  { %1024 = vmatprep.subr.bf16.mxu1 %v12240_v35  ;;  %v12280_v35 = vld [vmem:[#allocation7 + $0x18c] ss:$28 sps:$4 sm:$0xff]  }
 0x149   :  { %1025 = vmatpush1.bf16.msra.mxu1 %v12238_v36  ;;  %v12304_v36 = vld [vmem:[#allocation7 + $0x50c] ss:$28 sps:$4 sm:$0xff]  }
 0x14a   :  { %1026 = vmatprep.subr.bf16.mxu1 %v12246_v37  ;;  %v480_v37 = vld [vmem:[%s16365_s6] sm:$0x3] }
 0x14b   :  { %v489_v39 = vrot.slane %v480_v37, %v14311_v60 }
 0x14d   :  { %1027 = vmatpush1.bf16.msra.mxu1 %v12244_v38 }
 0x14e   :  { %10771 = vmatprep.subr.msk.bf16.mxu1 %vm399_vm2, %v10768_v40  ;;  %v485_v40 = vrot.slane %v480_v37, %v14317_v62  ;;  %v12344_v37 = vld [vmem:[#allocation7 + $0x380] ss:$28 sps:$4 sm:$0xff]  }
 0x151   :  { %1035 = vmatpush2.bf16.msra.mxu1 %v1001_v42 }
 0x152   :  { %1036 = vmatprep.subr.bf16.mxu1 %v12256_v43 }
 0x155   :  { %1037 = vmatpush2.bf16.msra.mxu1 %v12254_v44 }
 0x156   :  { %1038 = vmatprep.subr.bf16.mxu1 %v12262_v23  ;;  %v12311_v23 = vld [vmem:[#allocation7 + $0x310] ss:$28 sps:$4 sm:$0xff]  }
 0x159   :  { %1039 = vmatpush2.bf16.msra.mxu1 %v12260_v25  ;;  %v12317_v25 = vld [vmem:[#allocation7 + $0x2d8] ss:$28 sps:$4 sm:$0xff]  }
 0x15a   :  { %1040 = vmatprep.subr.bf16.mxu1 %v12268_v27  ;;  %v12323_v27 = vld [vmem:[#allocation7 + $0x2a0] ss:$28 sps:$4 sm:$0xff]  }
 0x15d   :  { %1041 = vmatpush2.bf16.msra.mxu1 %v12266_v29  ;;  %v12329_v29 = vld [vmem:[#allocation7 + $0x268] ss:$28 sps:$4 sm:$0xff]  }
 0x15e   :  { %1042 = vmatprep.subr.bf16.mxu1 %v12274_v31  ;;  %v12340_v31 = vld [vmem:[#allocation7 + $0x3bc] ss:$28 sps:$4 sm:$0xff]  }
 0x161   :  { %1043 = vmatpush2.bf16.msra.mxu1 %v12272_v33  ;;  %v12338_v33 = vld [vmem:[#allocation7 + $0x3b8] ss:$28 sps:$4 sm:$0xff]  }
 0x162   :  { %2251 = vmatprep.subr.bf16.mxu1 %v12280_v35  ;;  %v12346_v35 = vld [vmem:[#allocation7 + $0x384] ss:$28 sps:$4 sm:$0xff]  }
 0x1f0   :  { %v440_v46 = vpop.f32.mrf.mxu1 }
 0x1f1   :  { %v441_v53 = vadd.f32 %v440_v46, %v263_v48 }
 0x1f2   :  { %v442_v49 = vpop.f32.mrf.mxu1 }
 0x1f3   :  { %v443_v51 = vadd.f32 %v442_v49, %v267_v47  ;;  %v449_v63 = vmax.f32 %v441_v53, 0.0  ;;  %v12278_v53 = vld [vmem:[#allocation7 + $0x188] ss:$28 sps:$4 sm:$0xff]  }
 0x1f4   :  { %v444_v50 = vpop.f32.mrf.mxu1 }
 0x1f5   :  { %v445_v52 = vadd.f32 %v444_v50, %v263_v48  ;;  %v450_v57 = vmax.f32 %v443_v51, 0.0 }
 0x1f6   :  { %v446_v54 = vpop.f32.mrf.mxu1 }
 0x1f7   :  { %v447_v55 = vadd.f32 %v446_v54, %v267_v47  ;;  %v451_v56 = vmax.f32 %v445_v52, 0.0  ;;  %v12302_v54 = vld [vmem:[#allocation7 + $0x508] ss:$28 sps:$4 sm:$0xff]  }
 0x1f9   :  { %v452_v58 = vmax.f32 %v447_v55, 0.0  ;;  %v453_v3 = vpack.c.bf16 %v451_v56, %v449_v63  ;;  %v12283_v56 = vld [vmem:[#allocation7 + $0x154] ss:$28 sps:$4 sm:$0xff]   ;;  %v12286_v63 = vld [vmem:[#allocation7 + $0x11c] ss:$28 sps:$4 sm:$0xff]  }
 0x1fb   :  { %v454_v2 = vpack.c.bf16 %v452_v58, %v450_v57  ;;  %v12310_v57 = vld [vmem:[#allocation7 + $0x4d4] ss:$28 sps:$4 sm:$0xff]  }
 0x1fc   :  { %v12281_v58 = vld [vmem:[#allocation7 + $0x150] ss:$28 sps:$4 sm:$0xff]  }
 0x1fd   :  { %10718 = vmatprep.mubr.msk.bf16.mxu0 %vm395_vm3, %v454_v2  ;;  %v12284_v2 = vld [vmem:[#allocation7 + $0x118] ss:$28 sps:$4 sm:$0xff]  }
 0x1fe   :  { %659 = vmatmul.mubr.bf16.vlgmr.msra.gmra.mxu0 %v453_v3  ;;  %v12314_v3 = vld [vmem:[#allocation7 + $0x498] ss:$28 sps:$4 sm:$0xff]  }
 0x1ff   :  { %1056 = vmatpush1.bf16.msra.mxu0 %v12205_v61  ;;  %v12308_v61 = vld [vmem:[#allocation7 + $0x4d0] ss:$28 sps:$4 sm:$0xff]  }
 0x200   :  { %1057 = vmatprep.subr.bf16.mxu0 %v12213_v1  ;;  %v12316_v1 = vld [vmem:[#allocation7 + $0x49c] ss:$28 sps:$4 sm:$0xff]  }
 0x203   :  { %1058 = vmatpush1.bf16.msra.mxu0 %v12211_v4  ;;  %v12289_v4 = vld [vmem:[#allocation7 + $0xe4] ss:$28 sps:$4 sm:$0xff]  }
 0x204   :  { %1059 = vmatprep.subr.bf16.mxu0 %v12219_v5  ;;  %v12322_v5 = vld [vmem:[#allocation7 + $0x464] ss:$28 sps:$4 sm:$0xff]  }
 0x207   :  { %1060 = vmatpush1.bf16.msra.mxu0 %v12217_v6  ;;  %v12287_v6 = vld [vmem:[#allocation7 + $0xe0] ss:$28 sps:$4 sm:$0xff]  }
 0x208   :  { %1061 = vmatprep.subr.bf16.mxu0 %v12225_v7  ;;  %v12320_v7 = vld [vmem:[#allocation7 + $0x460] ss:$28 sps:$4 sm:$0xff]  }
 0x20b   :  { %1062 = vmatpush1.bf16.msra.mxu0 %v12223_v8  ;;  %v12292_v8 = vld [vmem:[#allocation7 + $0xac] ss:$28 sps:$4 sm:$0xff]  }
 0x20c   :  { %1063 = vmatprep.subr.bf16.mxu0 %v12231_v9  ;;  %v12328_v9 = vld [vmem:[#allocation7 + $0x42c] ss:$28 sps:$4 sm:$0xff]  }
 0x20f   :  { %1064 = vmatpush1.bf16.msra.mxu0 %v12229_v10  ;;  %v12290_v10 = vld [vmem:[#allocation7 + $0xa8] ss:$28 sps:$4 sm:$0xff]  }
 0x210   :  { %1065 = vmatprep.subr.bf16.mxu0 %v12237_v11  ;;  %v12326_v11 = vld [vmem:[#allocation7 + $0x428] ss:$28 sps:$4 sm:$0xff]  }
 0x213   :  { %1066 = vmatpush1.bf16.msra.mxu0 %v12235_v12  ;;  %v12295_v12 = vld [vmem:[#allocation7 + $0x74] ss:$28 sps:$4 sm:$0xff]  }
 0x214   :  { %1067 = vmatprep.subr.bf16.mxu0 %v12243_v13  ;;  %v12334_v13 = vld [vmem:[#allocation7 + $0x3f4] ss:$28 sps:$4 sm:$0xff]  }
 0x217   :  { %1068 = vmatpush1.bf16.msra.mxu0 %v12241_v14  ;;  %v12293_v14 = vld [vmem:[#allocation7 + $0x70] ss:$28 sps:$4 sm:$0xff]  }
 0x218   :  { %1069 = vmatprep.subr.bf16.mxu0 %v12249_v15  ;;  %v12332_v15 = vld [vmem:[#allocation7 + $0x3f0] ss:$28 sps:$4 sm:$0xff]  }
 0x21b   :  { %1070 = vmatpush1.bf16.msra.mxu0 %v12247_v17  ;;  %v12296_v17 = vld [vmem:[#allocation7 + $0x38] ss:$28 sps:$4 sm:$0xff]  }
 0x21c   :  { %10773 = vmatprep.subr.msk.bf16.mxu0 %vm399_vm2, %v10770_v18  ;;  %v12301_v18 = vld [vmem:[#allocation7 + $0x4] ss:$28 sps:$4 sm:$0xff]  }
 0x21f   :  { %1078 = vmatpush2.bf16.msra.mxu0 %v1007_v21  ;;  %v12305_v21 = vld [vmem:[#allocation7 + $0x348] ss:$28 sps:$4 sm:$0xff]  }
 0x220   :  { %1079 = vmatprep.subr.bf16.mxu0 %v12259_v20  ;;  %v12307_v20 = vld [vmem:[#allocation7 + $0x34c] ss:$28 sps:$4 sm:$0xff]  }
 0x223   :  { %1080 = vmatpush2.bf16.msra.mxu0 %v12257_v22  ;;  %v12313_v22 = vld [vmem:[#allocation7 + $0x314] ss:$28 sps:$4 sm:$0xff]  }
 0x224   :  { %1081 = vmatprep.subr.bf16.mxu0 %v12265_v24  ;;  %v12319_v24 = vld [vmem:[#allocation7 + $0x2dc] ss:$28 sps:$4 sm:$0xff]  }
 0x227   :  { %1082 = vmatpush2.bf16.msra.mxu0 %v12263_v26  ;;  %v12325_v26 = vld [vmem:[#allocation7 + $0x2a4] ss:$28 sps:$4 sm:$0xff]  }
 0x228   :  { %1083 = vmatprep.subr.bf16.mxu0 %v12271_v28  ;;  %v12331_v28 = vld [vmem:[#allocation7 + $0x26c] ss:$28 sps:$4 sm:$0xff]  }
 0x22b   :  { %1084 = vmatpush2.bf16.msra.mxu0 %v12269_v30  ;;  %v12337_v30 = vld [vmem:[#allocation7 + $0x234] ss:$28 sps:$4 sm:$0xff]  }
 0x22c   :  { %1085 = vmatprep.subr.bf16.mxu0 %v12277_v32  ;;  %v12335_v32 = vld [vmem:[#allocation7 + $0x230] ss:$28 sps:$4 sm:$0xff]  }
 0x22f   :  { %1086 = vmatpush2.bf16.msra.mxu0 %v12275_v34  ;;  %v12343_v34 = vld [vmem:[#allocation7 + $0x1fc] ss:$28 sps:$4 sm:$0xff]  }
 0x230   :  { %2294 = vmatprep.subr.bf16.mxu0 %v12304_v36  ;;  %v12341_v36 = vld [vmem:[#allocation7 + $0x1f8] ss:$28 sps:$4 sm:$0xff]  }
 0x2be   :  { %v660_v38 = vpop.f32.mrf.mxu0 }
 0x2bf   :  { %v661_v45 = vadd.f32 %v660_v38, %v485_v40  ;;  %v12349_v38 = vld [vmem:[#allocation7 + $0x1c4] ss:$28 sps:$4 sm:$0xff]  }
 0x2c0   :  { %v662_v41 = vpop.f32.mrf.mxu0 }
 0x2c1   :  { %v663_v43 = vadd.f32 %v662_v41, %v489_v39  ;;  %v669_v51 = vmax.f32 %v661_v45, 0.0  ;;  %v12350_v41 = vld [vmem:[#allocation7 + $0x540] ss:$28 sps:$4 sm:$0xff]   ;;  %v14343_v45 = vsub.s32 2, %v14308_v59 }
 0x2c2   :  { %v664_v42 = vpop.f32.mrf.mxu0 }
 0x2c3   :  { %v665_v44 = vadd.f32 %v664_v42, %v485_v40  ;;  %v670_v49 = vmax.f32 %v663_v43, 0.0  ;;  %v12347_v40 = vld [vmem:[#allocation7 + $0x1c0] ss:$28 sps:$4 sm:$0xff]   ;;  %v12355_v42 = vld [vmem:[#allocation7 + $0x194] ss:$28 sps:$4 sm:$0xff]  }
 0x2c4   :  { %v666_v46 = vpop.f32.mrf.mxu0  ;;  %v12358_v43 = vld [vmem:[#allocation7 + $0x514] ss:$28 sps:$4 sm:$0xff]  }
 0x2c5   :  { %v667_v47 = vadd.f32 %v666_v46, %v489_v39  ;;  %v671_v48 = vmax.f32 %v665_v44, 0.0  ;;  %v12352_v39 = vld [vmem:[#allocation7 + $0x544] ss:$28 sps:$4 sm:$0xff]   ;;  %v14340_v44 = vsub.s32 3, %v14308_v59  ;;  %v725_v46 = vld [vmem:[%s16367_s8] sm:$0xf] }
 0x2c7   :  { %v672_v50 = vmax.f32 %v667_v47, 0.0  ;;  %v673_v55 = vpack.c.bf16 %v671_v48, %v669_v51  ;;  %v730_v51 = vrot.slane %v725_v46, %v14317_v62 }
 0x2c9   :  { %v674_v52 = vpack.c.bf16 %v672_v50, %v670_v49  ;;  %v734_v49 = vrot.slane %v725_v46, %v14311_v60  ;;  %v742_v50 = vrot.slane %v725_v46, %v14340_v44 }
 0x2cb   :  { %10772 = vmatprep.mubr.msk.bf16.mxu1 %vm395_vm3, %v674_v52  ;;  %10774 = vmatprep.mubr.msk.bf16.mxu0 %vm395_vm3, %v674_v52  ;;  %v738_v52 = vrot.slane %v725_v46, %v14343_v45  ;;  %v12392_v46 = vld [vmem:[#allocation7 + $0x3c0] ss:$28 sps:$4 sm:$0xff]  }
 0x2cc   :  { %1045 = vmatmul.mubr.bf16.vlgmr.msra.gmra.mxu1 %v673_v55  ;;  %1088 = vmatmul.mubr.bf16.vlgmr.msra.gmra.mxu0 %v673_v55 }
 0x2cd   :  { %2252 = vmatpush1.bf16.msra.mxu1 %v12278_v53  ;;  %2295 = vmatpush1.bf16.msra.mxu0 %v12302_v54 }
 0x2ce   :  { %2253 = vmatprep.subr.bf16.mxu1 %v12283_v56  ;;  %2296 = vmatprep.subr.bf16.mxu0 %v12310_v57 }
 0x2d1   :  { %2254 = vmatpush1.bf16.msra.mxu1 %v12281_v58  ;;  %2297 = vmatpush1.bf16.msra.mxu0 %v12308_v61 }
 0x2d2   :  { %2255 = vmatprep.subr.bf16.mxu1 %v12286_v63  ;;  %2298 = vmatprep.subr.bf16.mxu0 %v12316_v1 }
 0x2d5   :  { %2256 = vmatpush1.bf16.msra.mxu1 %v12284_v2  ;;  %2299 = vmatpush1.bf16.msra.mxu0 %v12314_v3 }
 0x2d6   :  { %2257 = vmatprep.subr.bf16.mxu1 %v12289_v4  ;;  %2300 = vmatprep.subr.bf16.mxu0 %v12322_v5 }
 0x2d9   :  { %2258 = vmatpush1.bf16.msra.mxu1 %v12287_v6  ;;  %2301 = vmatpush1.bf16.msra.mxu0 %v12320_v7 }
 0x2da   :  { %2259 = vmatprep.subr.bf16.mxu1 %v12292_v8  ;;  %2302 = vmatprep.subr.bf16.mxu0 %v12328_v9 }
 0x2dd   :  { %2260 = vmatpush1.bf16.msra.mxu1 %v12290_v10  ;;  %2303 = vmatpush1.bf16.msra.mxu0 %v12326_v11 }
 0x2de   :  { %2261 = vmatprep.subr.bf16.mxu1 %v12295_v12  ;;  %2304 = vmatprep.subr.bf16.mxu0 %v12334_v13 }
 0x2e1   :  { %2262 = vmatpush1.bf16.msra.mxu1 %v12293_v14  ;;  %2305 = vmatpush1.bf16.msra.mxu0 %v12332_v15 }
 0x2e2   :  { %2263 = vmatprep.subr.bf16.mxu1 %v12298_v16  ;;  %2306 = vmatprep.subr.bf16.mxu0 %v12340_v31  ;;  %v12371_v31 = vld [vmem:[#allocation7 + $0xe8] ss:$28 sps:$4 sm:$0xff]  }
 0x2e5   :  { %2264 = vmatpush1.bf16.msra.mxu1 %v12296_v17  ;;  %2307 = vmatpush1.bf16.msra.mxu0 %v12338_v33  ;;  %v12353_v17 = vld [vmem:[#allocation7 + $0x190] ss:$28 sps:$4 sm:$0xff]  }
 0x2e6   :  { %2265 = vmatprep.subr.bf16.mxu1 %v12301_v18  ;;  %2308 = vmatprep.subr.bf16.mxu0 %v12346_v35  ;;  %v12356_v18 = vld [vmem:[#allocation7 + $0x510] ss:$28 sps:$4 sm:$0xff]  }
 0x2e7   :  { %v12379_v33 = vld [vmem:[#allocation7 + $0xb4] ss:$28 sps:$4 sm:$0xff]  }
 0x2e8   :  { %v12377_v35 = vld [vmem:[#allocation7 + $0xb0] ss:$28 sps:$4 sm:$0xff]  }
 0x2e9   :  { %2266 = vmatpush1.bf16.msra.mxu1 %v12299_v19  ;;  %2309 = vmatpush1.bf16.msra.mxu0 %v12344_v37  ;;  %v12385_v37 = vld [vmem:[#allocation7 + $0x7c] ss:$28 sps:$4 sm:$0xff]  }
 0x2ea   :  { %2267 = vmatprep.subr.bf16.mxu1 %v12307_v20  ;;  %2324 = vmatprep.subr.bf16.mxu0 %v12352_v39  ;;  %v12383_v39 = vld [vmem:[#allocation7 + $0x78] ss:$28 sps:$4 sm:$0xff]  }
 0x2ed   :  { %2268 = vmatpush2.bf16.msra.mxu1 %v12305_v21  ;;  %2325 = vmatpush2.bf16.msra.mxu0 %v12350_v41  ;;  %v12361_v21 = vld [vmem:[#allocation7 + $0x15c] ss:$28 sps:$4 sm:$0xff]   ;;  %v12391_v41 = vld [vmem:[#allocation7 + $0x44] ss:$28 sps:$4 sm:$0xff]  }
 0x2ee   :  { %2269 = vmatprep.subr.bf16.mxu1 %v12313_v22  ;;  %2337 = vmatprep.subr.bf16.mxu0 %v12355_v42  ;;  %v12364_v22 = vld [vmem:[#allocation7 + $0x4dc] ss:$28 sps:$4 sm:$0xff]   ;;  %v12394_v42 = vld [vmem:[#allocation7 + $0x3c4] ss:$28 sps:$4 sm:$0xff]  }
 0x2f1   :  { %2270 = vmatpush2.bf16.msra.mxu1 %v12311_v23  ;;  %v12359_v23 = vld [vmem:[#allocation7 + $0x158] ss:$28 sps:$4 sm:$0xff]  }
 0x2f2   :  { %2271 = vmatprep.subr.bf16.mxu1 %v12319_v24  ;;  %v12362_v24 = vld [vmem:[#allocation7 + $0x4d8] ss:$28 sps:$4 sm:$0xff]  }
 0x2f5   :  { %2272 = vmatpush2.bf16.msra.mxu1 %v12317_v25  ;;  %v12367_v25 = vld [vmem:[#allocation7 + $0x124] ss:$28 sps:$4 sm:$0xff]  }
 0x2f6   :  { %2273 = vmatprep.subr.bf16.mxu1 %v12325_v26  ;;  %v12370_v26 = vld [vmem:[#allocation7 + $0x4a4] ss:$28 sps:$4 sm:$0xff]  }
 0x2f9   :  { %2274 = vmatpush2.bf16.msra.mxu1 %v12323_v27  ;;  %v12365_v27 = vld [vmem:[#allocation7 + $0x120] ss:$28 sps:$4 sm:$0xff]  }
 0x2fa   :  { %2275 = vmatprep.subr.bf16.mxu1 %v12331_v28  ;;  %v12368_v28 = vld [vmem:[#allocation7 + $0x4a0] ss:$28 sps:$4 sm:$0xff]  }
 0x2fd   :  { %2276 = vmatpush2.bf16.msra.mxu1 %v12329_v29  ;;  %v12373_v29 = vld [vmem:[#allocation7 + $0xec] ss:$28 sps:$4 sm:$0xff]  }
 0x2fe   :  { %2277 = vmatprep.subr.bf16.mxu1 %v12337_v30  ;;  %v12376_v30 = vld [vmem:[#allocation7 + $0x46c] ss:$28 sps:$4 sm:$0xff]  }
 0x301   :  { %2278 = vmatpush2.bf16.msra.mxu1 %v12335_v32  ;;  %v12374_v32 = vld [vmem:[#allocation7 + $0x468] ss:$28 sps:$4 sm:$0xff]  }
 0x302   :  { %2279 = vmatprep.subr.bf16.mxu1 %v12343_v34  ;;  %v12382_v34 = vld [vmem:[#allocation7 + $0x434] ss:$28 sps:$4 sm:$0xff]  }
 0x305   :  { %2280 = vmatpush2.bf16.msra.mxu1 %v12341_v36  ;;  %v12380_v36 = vld [vmem:[#allocation7 + $0x430] ss:$28 sps:$4 sm:$0xff]  }
 0x306   :  { %2281 = vmatprep.subr.bf16.mxu1 %v12349_v38  ;;  %v12388_v38 = vld [vmem:[#allocation7 + $0x3fc] ss:$28 sps:$4 sm:$0xff]  }
 0x309   :  { %2282 = vmatpush2.bf16.msra.mxu1 %v12347_v40  ;;  %v12386_v40 = vld [vmem:[#allocation7 + $0x3f8] ss:$28 sps:$4 sm:$0xff]  }
 0x30a   :  { %2380 = vmatprep.subr.bf16.mxu1 %v12358_v43  ;;  %v12389_v43 = vld [vmem:[#allocation7 + $0x40] ss:$28 sps:$4 sm:$0xff]  }
 0x38c   :  { %v1046_v47 = vpop.f32.mrf.mxu1  ;;  %v1089_v48 = vpop.f32.mrf.mxu0 }
 0x38d   :  { %v1047_v1 = vadd.f32 %v1046_v47, %v730_v51  ;;  %v1090_v2 = vadd.f32 %v1089_v48, %v738_v52  ;;  %v12397_v47 = vld [vmem:[#allocation7 + $0xc] ss:$28 sps:$4 sm:$0xff]  }
 0x38e   :  { %v1048_v53 = vpop.f32.mrf.mxu1  ;;  %v1091_v54 = vpop.f32.mrf.mxu0  ;;  %v12400_v48 = vld [vmem:[#allocation7 + $0x38c] ss:$28 sps:$4 sm:$0xff]  }
 0x38f   :  { %v1049_v57 = vadd.f32 %v1048_v53, %v734_v49  ;;  %v1092_v58 = vadd.f32 %v1091_v54, %v742_v50  ;;  %v1098_v13 = vmax.f32 %v1047_v1, 0.0  ;;  %v1100_v14 = vmax.f32 %v1090_v2, 0.0  ;;  %v12401_v53 = vld [vmem:[#allocation7 + $0x350] ss:$28 sps:$4 sm:$0xff]   ;;  %v12404_v54 = vld [vmem:[#allocation7 + $0x548] ss:$28 sps:$4 sm:$0xff]  }
 0x390   :  { %v1050_v55 = vpop.f32.mrf.mxu1  ;;  %v1093_v56 = vpop.f32.mrf.mxu0  ;;  %v12413_v1 = vld [vmem:[#allocation7 + $0x2e0] ss:$28 sps:$4 sm:$0xff]  }
 0x391   :  { %v1051_v61 = vadd.f32 %v1050_v55, %v730_v51  ;;  %v1094_v63 = vadd.f32 %v1093_v56, %v738_v52  ;;  %v1099_v9 = vmax.f32 %v1049_v57, 0.0  ;;  %v1101_v10 = vmax.f32 %v1092_v58, 0.0  ;;  %v12403_v51 = vld [vmem:[#allocation7 + $0x354] ss:$28 sps:$4 sm:$0xff]   ;;  %v12406_v52 = vld [vmem:[#allocation7 + $0x54c] ss:$28 sps:$4 sm:$0xff]  }
 0x392   :  { %v1052_v3 = vpop.f32.mrf.mxu1  ;;  %v1095_v4 = vpop.f32.mrf.mxu0  ;;  %v12409_v55 = vld [vmem:[#allocation7 + $0x31c] ss:$28 sps:$4 sm:$0xff]  }
 0x393   :  { %v1053_v5 = vadd.f32 %v1052_v3, %v734_v49  ;;  %v1096_v6 = vadd.f32 %v1095_v4, %v742_v50  ;;  %v1102_v7 = vmax.f32 %v1051_v61, 0.0  ;;  %v1104_v8 = vmax.f32 %v1094_v63, 0.0  ;;  %v12395_v49 = vld [vmem:[#allocation7 + $0x8] ss:$28 sps:$4 sm:$0xff]   ;;  %v12412_v56 = vld [vmem:[#allocation7 + $0x19c] ss:$28 sps:$4 sm:$0xff]  }
 0x394   :  { %v12398_v50 = vld [vmem:[#allocation7 + $0x388] ss:$28 sps:$4 sm:$0xff]   ;;  %v12407_v57 = vld [vmem:[#allocation7 + $0x318] ss:$28 sps:$4 sm:$0xff]   ;;  %v12416_v2 = vld [vmem:[#allocation7 + $0x160] ss:$28 sps:$4 sm:$0xff]  }
 0x395   :  { %v1103_v11 = vmax.f32 %v1053_v5, 0.0  ;;  %v1105_v12 = vmax.f32 %v1096_v6, 0.0  ;;  %v14356_v19 = vpack.c.bf16 %v1102_v7, %v1098_v13  ;;  %v14358_v20 = vpack.c.bf16 %v1104_v8, %v1100_v14  ;;  %v12410_v58 = vld [vmem:[#allocation7 + $0x198] ss:$28 sps:$4 sm:$0xff]   ;;  %v12415_v61 = vld [vmem:[#allocation7 + $0x2e4] ss:$28 sps:$4 sm:$0xff]  }
 0x396   :  { %v12418_v63 = vld [vmem:[#allocation7 + $0x164] ss:$28 sps:$4 sm:$0xff]   ;;  %v12421_v3 = vld [vmem:[#allocation7 + $0x2ac] ss:$28 sps:$4 sm:$0xff]   ;;  %v12427_v7 = vld [vmem:[#allocation7 + $0x274] ss:$28 sps:$4 sm:$0xff]  }
 0x397   :  { %v14352_v15 = vpack.c.bf16 %v1103_v11, %v1099_v9  ;;  %v14354_v16 = vpack.c.bf16 %v1105_v12, %v1101_v10  ;;  %v12424_v4 = vld [vmem:[#allocation7 + $0x12c] ss:$28 sps:$4 sm:$0xff]   ;;  %v12430_v8 = vld [vmem:[#allocation7 + $0xf4] ss:$28 sps:$4 sm:$0xff]   ;;  %v12433_v11 = vld [vmem:[#allocation7 + $0x23c] ss:$28 sps:$4 sm:$0xff]  }
 0x398   :  { %v12419_v5 = vld [vmem:[#allocation7 + $0x2a8] ss:$28 sps:$4 sm:$0xff]   ;;  %v12425_v9 = vld [vmem:[#allocation7 + $0x270] ss:$28 sps:$4 sm:$0xff]   ;;  %v12436_v12 = vld [vmem:[#allocation7 + $0xbc] ss:$28 sps:$4 sm:$0xff]  }
 0x399   :  { %2283 = vmatprep.mubr.bf16.mxu1 %v14352_v15  ;;  %10950 = vmatprep.mubr.msk.bf16.mxu0 %vm2247_vm4, %v14354_v16  ;;  %v12422_v6 = vld [vmem:[#allocation7 + $0x128] ss:$28 sps:$4 sm:$0xff]   ;;  %v12428_v10 = vld [vmem:[#allocation7 + $0xf0] ss:$28 sps:$4 sm:$0xff]   ;;  %v12431_v13 = vld [vmem:[#allocation7 + $0x238] ss:$28 sps:$4 sm:$0xff]  }
 0x39a   :  { %2284 = vmatmul.mubr.bf16.vlgmr.msra.gmra.mxu1 %v14356_v19  ;;  %2327 = vmatmul.mubr.bf16.vlgmr.msra.gmra.mxu0 %v14358_v20  ;;  %v12434_v14 = vld [vmem:[#allocation7 + $0xb8] ss:$28 sps:$4 sm:$0xff]  }
 0x39b   :  { %2338 = vmatpush1.bf16.msra.mxu0 %v12353_v17  ;;  %2381 = vmatpush1.bf16.msra.mxu1 %v12356_v18  ;;  %v12439_v17 = vld [vmem:[#allocation7 + $0x204] ss:$28 sps:$4 sm:$0xff]  }
 0x39c   :  { %2369 = vmatprep.mubr.bf16.mxu0 %v14352_v15  ;;  %10951 = vmatprep.mubr.msk.bf16.mxu1 %vm2247_vm4, %v14354_v16  ;;  %v12442_v18 = vld [vmem:[#allocation7 + $0x84] ss:$28 sps:$4 sm:$0xff]  }
 0x39d   :  { %2339 = vmatprep.subr.bf16.mxu0 %v12361_v21  ;;  %2382 = vmatprep.subr.bf16.mxu1 %v12364_v22  ;;  %v12437_v21 = vld [vmem:[#allocation7 + $0x200] ss:$28 sps:$4 sm:$0xff]  }
 0x39e   :  { %v12440_v22 = vld [vmem:[#allocation7 + $0x80] ss:$28 sps:$4 sm:$0xff]  }
 0x39f   :  { %2340 = vmatpush1.bf16.msra.mxu0 %v12359_v23  ;;  %2383 = vmatpush1.bf16.msra.mxu1 %v12362_v24  ;;  %v12445_v23 = vld [vmem:[#allocation7 + $0x1cc] ss:$28 sps:$4 sm:$0xff]  }
 0x3a0   :  { %2341 = vmatprep.subr.bf16.mxu0 %v12367_v25  ;;  %2384 = vmatprep.subr.bf16.mxu1 %v12370_v26  ;;  %v12448_v24 = vld [vmem:[#allocation7 + $0x4c] ss:$28 sps:$4 sm:$0xff]  }
 0x3a1   :  { %v12443_v25 = vld [vmem:[#allocation7 + $0x1c8] ss:$28 sps:$4 sm:$0xff]  }
 0x3a2   :  { %v12446_v26 = vld [vmem:[#allocation7 + $0x48] ss:$28 sps:$4 sm:$0xff]  }
 0x3a3   :  { %2342 = vmatpush1.bf16.msra.mxu0 %v12365_v27  ;;  %2385 = vmatpush1.bf16.msra.mxu1 %v12368_v28  ;;  %v12451_v27 = vld [vmem:[#allocation7 + $0x14] ss:$28 sps:$4 sm:$0xff]   ;;  %v12454_v28 = vld [vmem:[#allocation7 + $0x51c] ss:$28 sps:$4 sm:$0xff]  }
 0x3a4   :  { %2343 = vmatprep.subr.bf16.mxu0 %v12373_v29  ;;  %2386 = vmatprep.subr.bf16.mxu1 %v12376_v30  ;;  %v12449_v29 = vld [vmem:[#allocation7 + $0x10] ss:$28 sps:$4 sm:$0xff]   ;;  %v12452_v30 = vld [vmem:[#allocation7 + $0x518] ss:$28 sps:$4 sm:$0xff]  }
 0x3a7   :  { %2344 = vmatpush1.bf16.msra.mxu0 %v12371_v31  ;;  %2387 = vmatpush1.bf16.msra.mxu1 %v12374_v32  ;;  %v12457_v31 = vld [vmem:[#allocation7 + $0x35c] ss:$28 sps:$4 sm:$0xff]   ;;  %v12460_v32 = vld [vmem:[#allocation7 + $0x4e4] ss:$28 sps:$4 sm:$0xff]  }
 0x3a8   :  { %2345 = vmatprep.subr.bf16.mxu0 %v12379_v33  ;;  %2388 = vmatprep.subr.bf16.mxu1 %v12382_v34  ;;  %v12455_v33 = vld [vmem:[#allocation7 + $0x358] ss:$28 sps:$4 sm:$0xff]   ;;  %v12458_v34 = vld [vmem:[#allocation7 + $0x4e0] ss:$28 sps:$4 sm:$0xff]  }
 0x3ab   :  { %2346 = vmatpush1.bf16.msra.mxu0 %v12377_v35  ;;  %2389 = vmatpush1.bf16.msra.mxu1 %v12380_v36  ;;  %v12463_v35 = vld [vmem:[#allocation7 + $0x324] ss:$28 sps:$4 sm:$0xff]   ;;  %v12466_v36 = vld [vmem:[#allocation7 + $0x4ac] ss:$28 sps:$4 sm:$0xff]  }
 0x3ac   :  { %2347 = vmatprep.subr.bf16.mxu0 %v12385_v37  ;;  %2390 = vmatprep.subr.bf16.mxu1 %v12388_v38  ;;  %v12461_v37 = vld [vmem:[#allocation7 + $0x320] ss:$28 sps:$4 sm:$0xff]   ;;  %v12464_v38 = vld [vmem:[#allocation7 + $0x4a8] ss:$28 sps:$4 sm:$0xff]  }
 0x3af   :  { %2348 = vmatpush1.bf16.msra.mxu0 %v12383_v39  ;;  %2391 = vmatpush1.bf16.msra.mxu1 %v12386_v40  ;;  %v12469_v39 = vld [vmem:[#allocation7 + $0x2ec] ss:$28 sps:$4 sm:$0xff]   ;;  %v12472_v40 = vld [vmem:[#allocation7 + $0x474] ss:$28 sps:$4 sm:$0xff]  }
 0x3b0   :  { %2349 = vmatprep.subr.bf16.mxu0 %v12391_v41  ;;  %2392 = vmatprep.subr.bf16.mxu1 %v12394_v42  ;;  %v12467_v41 = vld [vmem:[#allocation7 + $0x2e8] ss:$28 sps:$4 sm:$0xff]   ;;  %v12470_v42 = vld [vmem:[#allocation7 + $0x470] ss:$28 sps:$4 sm:$0xff]  }
 0x3b3   :  { %2350 = vmatpush1.bf16.msra.mxu0 %v12389_v43  ;;  %2393 = vmatpush1.bf16.msra.mxu1 %v12392_v46  ;;  %v12475_v43 = vld [vmem:[#allocation7 + $0x2b4] ss:$28 sps:$4 sm:$0xff]   ;;  %v12478_v46 = vld [vmem:[#allocation7 + $0x43c] ss:$28 sps:$4 sm:$0xff]  }
 0x3b4   :  { %2351 = vmatprep.subr.bf16.mxu0 %v12397_v47  ;;  %2394 = vmatprep.subr.bf16.mxu1 %v12400_v48  ;;  %v12473_v47 = vld [vmem:[#allocation7 + $0x2b0] ss:$28 sps:$4 sm:$0xff]   ;;  %v12476_v48 = vld [vmem:[#allocation7 + $0x438] ss:$28 sps:$4 sm:$0xff]  }
 0x3b7   :  { %2352 = vmatpush1.bf16.msra.mxu0 %v12395_v49  ;;  %2395 = vmatpush1.bf16.msra.mxu1 %v12398_v50  ;;  %v12481_v49 = vld [vmem:[#allocation7 + $0x27c] ss:$28 sps:$4 sm:$0xff]   ;;  %v12484_v50 = vld [vmem:[#allocation7 + $0x404] ss:$28 sps:$4 sm:$0xff]  }
 0x3b8   :  { %2353 = vmatprep.subr.bf16.mxu0 %v12403_v51  ;;  %2410 = vmatprep.subr.bf16.mxu1 %v12406_v52  ;;  %v12479_v51 = vld [vmem:[#allocation7 + $0x278] ss:$28 sps:$4 sm:$0xff]   ;;  %v12482_v52 = vld [vmem:[#allocation7 + $0x400] ss:$28 sps:$4 sm:$0xff]  }
 0x3bb   :  { %2354 = vmatpush2.bf16.msra.mxu0 %v12401_v53  ;;  %2411 = vmatpush2.bf16.msra.mxu1 %v12404_v54  ;;  %v12487_v53 = vld [vmem:[#allocation7 + $0x244] ss:$28 sps:$4 sm:$0xff]   ;;  %v12490_v54 = vld [vmem:[#allocation7 + $0x3cc] ss:$28 sps:$4 sm:$0xff]  }
 0x3bc   :  { %2355 = vmatprep.subr.bf16.mxu0 %v12409_v55  ;;  %2423 = vmatprep.subr.bf16.mxu1 %v12412_v56  ;;  %v12485_v55 = vld [vmem:[#allocation7 + $0x240] ss:$28 sps:$4 sm:$0xff]   ;;  %v12488_v56 = vld [vmem:[#allocation7 + $0x3c8] ss:$28 sps:$4 sm:$0xff]  }
 0x3be   :  { %2413 = vmatmul.mubr.bf16.vlgmr.msra.gmra.mxu1 %v14358_v20 }
 0x3bf   :  { %2356 = vmatpush2.bf16.msra.mxu0 %v12407_v57  ;;  %2424 = vmatpush1.bf16.msra.mxu1 %v12410_v58  ;;  %v12493_v57 = vld [vmem:[#allocation7 + $0x20c] ss:$28 sps:$4 sm:$0xff]   ;;  %v12496_v58 = vld [vmem:[#allocation7 + $0x394] ss:$28 sps:$4 sm:$0xff]  }
 0x3c0   :  { %2455 = vmatprep.mubr.bf16.mxu1 %v14352_v15  ;;  %2357 = vmatprep.subr.bf16.mxu0 %v12415_v61  ;;  %v12491_v61 = vld [vmem:[#allocation7 + $0x208] ss:$28 sps:$4 sm:$0xff]  }
 0x3c1   :  { %2425 = vmatprep.subr.bf16.mxu1 %v12418_v63  ;;  %v12494_v63 = vld [vmem:[#allocation7 + $0x390] ss:$28 sps:$4 sm:$0xff]  }
 0x3c3   :  { %2358 = vmatpush2.bf16.msra.mxu0 %v12413_v1  ;;  %2426 = vmatpush1.bf16.msra.mxu1 %v12416_v2  ;;  %v12499_v1 = vld [vmem:[#allocation7 + $0x1d4] ss:$28 sps:$4 sm:$0xff]  }
 0x3c4   :  { %2359 = vmatprep.subr.bf16.mxu0 %v12421_v3  ;;  %2427 = vmatprep.subr.bf16.mxu1 %v12424_v4  ;;  %v12502_v2 = vld [vmem:[#allocation7 + $0x554] ss:$28 sps:$4 sm:$0xff]  }
 0x3c5   :  { %v12497_v3 = vld [vmem:[#allocation7 + $0x1d0] ss:$28 sps:$4 sm:$0xff]  }
 0x3c6   :  { %v12500_v4 = vld [vmem:[#allocation7 + $0x550] ss:$28 sps:$4 sm:$0xff]  }
 0x3c7   :  { %2360 = vmatpush2.bf16.msra.mxu0 %v12419_v5  ;;  %2428 = vmatpush1.bf16.msra.mxu1 %v12422_v6  ;;  %v12503_v5 = vld [vmem:[#allocation7 + $0x360] ss:$28 sps:$4 sm:$0xff]  }
 0x3c8   :  { %2361 = vmatprep.subr.bf16.mxu0 %v12427_v7  ;;  %2429 = vmatprep.subr.bf16.mxu1 %v12430_v8  ;;  %v12504_v6 = vld [vmem:[#allocation7 + $0x1a0] ss:$28 sps:$4 sm:$0xff]   ;;  %v12506_v8 = vld [vmem:[#allocation7 + $0x328] ss:$28 sps:$4 sm:$0xff]  }
 0x3c9   :  { %v12505_v7 = vld [vmem:[#allocation7 + $0x520] ss:$28 sps:$4 sm:$0xff]  }
 0x3cb   :  { %2362 = vmatpush2.bf16.msra.mxu0 %v12425_v9  ;;  %2430 = vmatpush1.bf16.msra.mxu1 %v12428_v10  ;;  %v12507_v9 = vld [vmem:[#allocation7 + $0x168] ss:$28 sps:$4 sm:$0xff]  }
 0x3cc   :  { %2363 = vmatprep.subr.bf16.mxu0 %v12433_v11  ;;  %2431 = vmatprep.subr.bf16.mxu1 %v12436_v12  ;;  %v12508_v10 = vld [vmem:[#allocation7 + $0x4e8] ss:$28 sps:$4 sm:$0xff]   ;;  %v12509_v11 = vld [vmem:[#allocation7 + $0x2f0] ss:$28 sps:$4 sm:$0xff]  }
 0x3cd   :  { %v12510_v12 = vld [vmem:[#allocation7 + $0x130] ss:$28 sps:$4 sm:$0xff]  }
 0x3cf   :  { %2364 = vmatpush2.bf16.msra.mxu0 %v12431_v13  ;;  %2432 = vmatpush1.bf16.msra.mxu1 %v12434_v14  ;;  %v12511_v13 = vld [vmem:[#allocation7 + $0x4b0] ss:$28 sps:$4 sm:$0xff]   ;;  %v12512_v14 = vld [vmem:[#allocation7 + $0x2b8] ss:$28 sps:$4 sm:$0xff]  }
 0x3d0   :  { %2365 = vmatprep.subr.bf16.mxu0 %v12439_v17  ;;  %2433 = vmatprep.subr.bf16.mxu1 %v12442_v18  ;;  %v12514_v17 = vld [vmem:[#allocation7 + $0x478] ss:$28 sps:$4 sm:$0xff]   ;;  %v12515_v18 = vld [vmem:[#allocation7 + $0x280] ss:$28 sps:$4 sm:$0xff]  }
 0x3d3   :  { %2366 = vmatpush2.bf16.msra.mxu0 %v12437_v21  ;;  %2434 = vmatpush1.bf16.msra.mxu1 %v12440_v22  ;;  %v12517_v21 = vld [vmem:[#allocation7 + $0x440] ss:$28 sps:$4 sm:$0xff]   ;;  %v12518_v22 = vld [vmem:[#allocation7 + $0x248] ss:$28 sps:$4 sm:$0xff]  }
 0x3d4   :  { %2367 = vmatprep.subr.bf16.mxu0 %v12445_v23  ;;  %2435 = vmatprep.subr.bf16.mxu1 %v12448_v24  ;;  %v12519_v23 = vld [vmem:[#allocation7 + $0x88] ss:$28 sps:$4 sm:$0xff]  }
 0x3d5   :  { %v12520_v24 = vld [vmem:[#allocation7 + $0x408] ss:$28 sps:$4 sm:$0xff]  }
 0x3d7   :  { %2368 = vmatpush2.bf16.msra.mxu0 %v12443_v25  ;;  %2436 = vmatpush1.bf16.msra.mxu1 %v12446_v26  ;;  %v12521_v25 = vld [vmem:[#allocation7 + $0x210] ss:$28 sps:$4 sm:$0xff]  }
 0x3d8   :  { %2437 = vmatprep.subr.bf16.mxu1 %v12451_v27  ;;  %2466 = vmatprep.subr.bf16.mxu0 %v12454_v28  ;;  %v12522_v26 = vld [vmem:[#allocation7 + $0x50] ss:$28 sps:$4 sm:$0xff]   ;;  %v12524_v28 = vld [vmem:[#allocation7 + $0x1d8] ss:$28 sps:$4 sm:$0xff]  }
 0x3d9   :  { %v12523_v27 = vld [vmem:[#allocation7 + $0x3d0] ss:$28 sps:$4 sm:$0xff]  }
 0x3da   :  { %2370 = vmatmul.mubr.bf16.vlgmr.msra.gmra.mxu0 %v14356_v19 }
 0x3db   :  { %2438 = vmatpush1.bf16.msra.mxu1 %v12449_v29  ;;  %2467 = vmatpush1.bf16.msra.mxu0 %v12452_v30  ;;  %v12525_v29 = vld [vmem:[#allocation7 + $0x18] ss:$28 sps:$4 sm:$0xff]  }
 0x3dc   :  { %10952 = vmatprep.mubr.msk.bf16.mxu0 %vm2247_vm4, %v14354_v16  ;;  %2439 = vmatprep.subr.bf16.mxu1 %v12457_v31  ;;  %v12526_v30 = vld [vmem:[#allocation7 + $0x398] ss:$28 sps:$4 sm:$0xff]   ;;  %v12530_v31 = vld [vmem:[%s16370_s11 + $0x18c] ss:$28 sps:$4 sm:$0xff]  }
 0x3dd   :  { %2468 = vmatprep.subr.bf16.mxu0 %v12460_v32  ;;  %v12528_v32 = vld [vmem:[%s16370_s11 + $0x188] ss:$28 sps:$4 sm:$0xff]  }
 0x3df   :  { %2440 = vmatpush2.bf16.msra.mxu1 %v12455_v33  ;;  %2469 = vmatpush1.bf16.msra.mxu0 %v12458_v34  ;;  %v12527_v33 = vld [vmem:[#allocation7 + $0x558] ss:$28 sps:$4 sm:$0xff]   ;;  %v12533_v34 = vld [vmem:[%s16370_s11 + $0x154] ss:$28 sps:$4 sm:$0xff]  }
 0x3e0   :  { %2441 = vmatprep.subr.bf16.mxu1 %v12463_v35  ;;  %2470 = vmatprep.subr.bf16.mxu0 %v12466_v36  ;;  %v12578_v35 = vld [vmem:[%s16370_s11 + $0x50c] ss:$28 sps:$4 sm:$0xff]  }
 0x3e1   :  { %v12531_v36 = vld [vmem:[%s16370_s11 + $0x150] ss:$28 sps:$4 sm:$0xff]  }
 0x3e3   :  { %2442 = vmatpush2.bf16.msra.mxu1 %v12461_v37  ;;  %2471 = vmatpush1.bf16.msra.mxu0 %v12464_v38  ;;  %v12536_v37 = vld [vmem:[%s16370_s11 + $0x11c] ss:$28 sps:$4 sm:$0xff]   ;;  %v12576_v38 = vld [vmem:[%s16370_s11 + $0x508] ss:$28 sps:$4 sm:$0xff]  }
 0x3e4   :  { %2443 = vmatprep.subr.bf16.mxu1 %v12469_v39  ;;  %2472 = vmatprep.subr.bf16.mxu0 %v12472_v40  ;;  %v12534_v39 = vld [vmem:[%s16370_s11 + $0x118] ss:$28 sps:$4 sm:$0xff]   ;;  %v12539_v40 = vld [vmem:[%s16370_s11 + $0xe4] ss:$28 sps:$4 sm:$0xff]  }
 0x3e7   :  { %2444 = vmatpush2.bf16.msra.mxu1 %v12467_v41  ;;  %2473 = vmatpush1.bf16.msra.mxu0 %v12470_v42  ;;  %v12579_v41 = vld [vmem:[%s16370_s11 + $0x4d0] ss:$28 sps:$4 sm:$0xff]   ;;  %v12537_v42 = vld [vmem:[%s16370_s11 + $0xe0] ss:$28 sps:$4 sm:$0xff]  }
 0x3e8   :  { %2445 = vmatprep.subr.bf16.mxu1 %v12475_v43  ;;  %2474 = vmatprep.subr.bf16.mxu0 %v12478_v46  ;;  %v12542_v43 = vld [vmem:[%s16370_s11 + $0xac] ss:$28 sps:$4 sm:$0xff]   ;;  %v12582_v46 = vld [vmem:[%s16370_s11 + $0x498] ss:$28 sps:$4 sm:$0xff]  }
 0x3eb   :  { %2446 = vmatpush2.bf16.msra.mxu1 %v12473_v47  ;;  %2475 = vmatpush1.bf16.msra.mxu0 %v12476_v48  ;;  %v12587_v47 = vld [vmem:[%s16370_s11 + $0x464] ss:$28 sps:$4 sm:$0xff]  }
 0x3ec   :  { %2447 = vmatprep.subr.bf16.mxu1 %v12481_v49  ;;  %2476 = vmatprep.subr.bf16.mxu0 %v12484_v50  ;;  %v12540_v48 = vld [vmem:[%s16370_s11 + $0xa8] ss:$28 sps:$4 sm:$0xff]   ;;  %v12545_v49 = vld [vmem:[%s16370_s11 + $0x74] ss:$28 sps:$4 sm:$0xff]   ;;  %v12585_v50 = vld [vmem:[%s16370_s11 + $0x460] ss:$28 sps:$4 sm:$0xff]  }
 0x3ef   :  { %2448 = vmatpush2.bf16.msra.mxu1 %v12479_v51  ;;  %2477 = vmatpush1.bf16.msra.mxu0 %v12482_v52  ;;  %v12590_v51 = vld [vmem:[%s16370_s11 + $0x42c] ss:$28 sps:$4 sm:$0xff]  }
 0x3f0   :  { %2449 = vmatprep.subr.bf16.mxu1 %v12487_v53  ;;  %2478 = vmatprep.subr.bf16.mxu0 %v12490_v54  ;;  %v12543_v52 = vld [vmem:[%s16370_s11 + $0x70] ss:$28 sps:$4 sm:$0xff]   ;;  %v12548_v53 = vld [vmem:[%s16370_s11 + $0x3c] ss:$28 sps:$4 sm:$0xff]   ;;  %v12588_v54 = vld [vmem:[%s16370_s11 + $0x428] ss:$28 sps:$4 sm:$0xff]  }
 0x3f3   :  { %2450 = vmatpush2.bf16.msra.mxu1 %v12485_v55  ;;  %2479 = vmatpush1.bf16.msra.mxu0 %v12488_v56  ;;  %v12593_v55 = vld [vmem:[%s16370_s11 + $0x3f4] ss:$28 sps:$4 sm:$0xff]  }
 0x3f4   :  { %2451 = vmatprep.subr.bf16.mxu1 %v12493_v57  ;;  %2480 = vmatprep.subr.bf16.mxu0 %v12496_v58  ;;  %v12546_v56 = vld [vmem:[%s16370_s11 + $0x38] ss:$28 sps:$4 sm:$0xff]   ;;  %v12551_v57 = vld [vmem:[%s16370_s11 + $0x4] ss:$28 sps:$4 sm:$0xff]   ;;  %v12591_v58 = vld [vmem:[%s16370_s11 + $0x3f0] ss:$28 sps:$4 sm:$0xff]  }
 0x3f7   :  { %2452 = vmatpush2.bf16.msra.mxu1 %v12491_v61  ;;  %2481 = vmatpush1.bf16.msra.mxu0 %v12494_v63  ;;  %v12596_v61 = vld [vmem:[%s16370_s11 + $0x3bc] ss:$28 sps:$4 sm:$0xff]  }
 0x3f8   :  { %2453 = vmatprep.subr.bf16.mxu1 %v12499_v1  ;;  %2496 = vmatprep.subr.bf16.mxu0 %v12502_v2  ;;  %v12549_v63 = vld [vmem:[%s16370_s11] ss:$28 sps:$4 sm:$0xff]   ;;  %v12554_v1 = vld [vmem:[%s16370_s11 + $0x34c] ss:$28 sps:$4 sm:$0xff]   ;;  %v12594_v2 = vld [vmem:[%s16370_s11 + $0x3b8] ss:$28 sps:$4 sm:$0xff]  }
 0x3fb   :  { %2454 = vmatpush2.bf16.msra.mxu1 %v12497_v3  ;;  %2497 = vmatpush2.bf16.msra.mxu0 %v12500_v4  ;;  %v12599_v3 = vld [vmem:[%s16370_s11 + $0x384] ss:$28 sps:$4 sm:$0xff]  }
 0x3fc   :  { %11930 = vmatprep.subr.bf16.mxu0 %v12503_v5  ;;  %2550 = vmatprep.subr.bf16.mxu1 %v14081_v0  ;;  %v12552_v4 = vld [vmem:[%s16370_s11 + $0x348] ss:$28 sps:$4 sm:$0xff]   ;;  %v12557_v5 = vld [vmem:[%s16370_s11 + $0x314] ss:$28 sps:$4 sm:$0xff]  }
 0x3fe   :  { %2456 = vmatmul.mubr.bf16.vlgmr.msra.gmra.mxu1 %v14356_v19  ;;  %2499 = vmatmul.mubr.bf16.vlgmr.msra.gmra.mxu0 %v14358_v20 }
 0x3ff   :  { %11931 = vmatpush3.bf16.msra.mxu0 %v12504_v6  ;;  %2541 = vmatprep.mubr.bf16.mxu0 %v14352_v15  ;;  %v12513_v15 = vld [vmem:[#allocation7 + $0xf8] ss:$28 sps:$4 sm:$0xff]  }
 0x400   :  { %2551 = vmatpush1.bf16.msra.mxu1 %v12505_v7  ;;  %10953 = vmatprep.mubr.msk.bf16.mxu1 %vm2247_vm4, %v14354_v16  ;;  %v12516_v16 = vld [vmem:[#allocation7 + $0xc0] ss:$28 sps:$4 sm:$0xff]   ;;  %v12597_v6 = vld [vmem:[%s16370_s11 + $0x380] ss:$28 sps:$4 sm:$0xff]  }
 0x401   :  { %11932 = vmatprep.subr.bf16.mxu0 %v12506_v8  ;;  %2552 = vmatprep.subr.bf16.mxu1 %v14081_v0  ;;  %v12602_v7 = vld [vmem:[%s16370_s11 + $0x6cc] ss:$28 sps:$4 sm:$0xff]  }
 0x402   :  { %v12555_v8 = vld [vmem:[%s16370_s11 + $0x310] ss:$28 sps:$4 sm:$0xff]  }
 0x403   :  { %11933 = vmatpush3.bf16.msra.mxu0 %v12507_v9  ;;  %v12560_v9 = vld [vmem:[%s16370_s11 + $0x2dc] ss:$28 sps:$4 sm:$0xff]  }
 0x404   :  { %2553 = vmatpush1.bf16.msra.mxu1 %v12508_v10  ;;  %11934 = vmatprep.subr.bf16.mxu0 %v12509_v11  ;;  %v12600_v10 = vld [vmem:[%s16370_s11 + $0x6c8] ss:$28 sps:$4 sm:$0xff]   ;;  %v12605_v11 = vld [vmem:[%s16370_s11 + $0x694] ss:$28 sps:$4 sm:$0xff]  }
 0x405   :  { %2554 = vmatprep.subr.bf16.mxu1 %v14081_v0 }
 0x407   :  { %11935 = vmatpush3.bf16.msra.mxu0 %v12510_v12  ;;  %v12558_v12 = vld [vmem:[%s16370_s11 + $0x2d8] ss:$28 sps:$4 sm:$0xff]  }
 0x408   :  { %2555 = vmatpush1.bf16.msra.mxu1 %v12511_v13  ;;  %11936 = vmatprep.subr.bf16.mxu0 %v12512_v14  ;;  %v12563_v13 = vld [vmem:[%s16370_s11 + $0x2a4] ss:$28 sps:$4 sm:$0xff]   ;;  %v12603_v14 = vld [vmem:[%s16370_s11 + $0x690] ss:$28 sps:$4 sm:$0xff]  }
 0x409   :  { %2556 = vmatprep.subr.bf16.mxu1 %v14081_v0 }
 0x40b   :  { %11937 = vmatpush3.bf16.msra.mxu0 %v12513_v15  ;;  %v12611_v15 = vld [vmem:[%s16370_s11 + $0x65c] ss:$28 sps:$4 sm:$0xff]  }
 0x40c   :  { %2557 = vmatpush1.bf16.msra.mxu1 %v12514_v17  ;;  %11938 = vmatprep.subr.bf16.mxu0 %v12515_v18  ;;  %v12561_v17 = vld [vmem:[%s16370_s11 + $0x2a0] ss:$28 sps:$4 sm:$0xff]   ;;  %v12566_v18 = vld [vmem:[%s16370_s11 + $0x26c] ss:$28 sps:$4 sm:$0xff]  }
 0x40d   :  { %2558 = vmatprep.subr.bf16.mxu1 %v14081_v0 }
 0x40f   :  { %11939 = vmatpush3.bf16.msra.mxu0 %v12516_v16  ;;  %v12609_v16 = vld [vmem:[%s16370_s11 + $0x658] ss:$28 sps:$4 sm:$0xff]  }
 0x410   :  { %2559 = vmatpush1.bf16.msra.mxu1 %v12517_v21  ;;  %11940 = vmatprep.subr.bf16.mxu0 %v12518_v22  ;;  %v12617_v21 = vld [vmem:[%s16370_s11 + $0x624] ss:$28 sps:$4 sm:$0xff]  }
 0x411   :  { %2560 = vmatprep.subr.bf16.mxu1 %v14081_v0  ;;  %v12564_v22 = vld [vmem:[%s16370_s11 + $0x268] ss:$28 sps:$4 sm:$0xff]  }
 0x413   :  { %11941 = vmatpush3.bf16.msra.mxu0 %v12519_v23  ;;  %v12569_v23 = vld [vmem:[%s16370_s11 + $0x234] ss:$28 sps:$4 sm:$0xff]  }
 0x414   :  { %2561 = vmatpush1.bf16.msra.mxu1 %v12520_v24  ;;  %11942 = vmatprep.subr.bf16.mxu0 %v12521_v25  ;;  %v12615_v24 = vld [vmem:[%s16370_s11 + $0x620] ss:$28 sps:$4 sm:$0xff]   ;;  %v12623_v25 = vld [vmem:[%s16370_s11 + $0x5ec] ss:$28 sps:$4 sm:$0xff]  }
 0x415   :  { %2562 = vmatprep.subr.bf16.mxu1 %v14081_v0 }
 0x417   :  { %11943 = vmatpush3.bf16.msra.mxu0 %v12522_v26  ;;  %v12567_v26 = vld [vmem:[%s16370_s11 + $0x230] ss:$28 sps:$4 sm:$0xff]  }
 0x418   :  { %2563 = vmatpush1.bf16.msra.mxu1 %v12523_v27  ;;  %11944 = vmatprep.subr.bf16.mxu0 %v12524_v28  ;;  %v12572_v27 = vld [vmem:[%s16370_s11 + $0x1fc] ss:$28 sps:$4 sm:$0xff]   ;;  %v12621_v28 = vld [vmem:[%s16370_s11 + $0x5e8] ss:$28 sps:$4 sm:$0xff]  }
 0x419   :  { %2564 = vmatprep.subr.bf16.mxu1 %v14081_v0 }
 0x41b   :  { %11945 = vmatpush3.bf16.msra.mxu0 %v12525_v29  ;;  %v12629_v29 = vld [vmem:[%s16370_s11 + $0x5b4] ss:$28 sps:$4 sm:$0xff]  }
 0x41c   :  { %2565 = vmatpush1.bf16.msra.mxu1 %v12526_v30  ;;  %4853 = vmatprep.subr.bf16.mxu0 %v12530_v31  ;;  %v12570_v30 = vld [vmem:[%s16370_s11 + $0x1f8] ss:$28 sps:$4 sm:$0xff]   ;;  %v12575_v31 = vld [vmem:[%s16370_s11 + $0x1c4] ss:$28 sps:$4 sm:$0xff]  }
 0x41d   :  { %2580 = vmatprep.subr.bf16.mxu1 %v14081_v0 }
 0x41e   :  { %2542 = vmatmul.mubr.bf16.vlgmr.msra.gmra.mxu0 %v14356_v19  ;;  %v12581_v19 = vld [vmem:[%s16370_s11 + $0x4d4] ss:$28 sps:$4 sm:$0xff]  }
 0x41f   :  { %4854 = vmatpush1.bf16.msra.mxu0 %v12528_v32  ;;  %v12627_v32 = vld [vmem:[%s16370_s11 + $0x5b0] ss:$28 sps:$4 sm:$0xff]  }
 0x420   :  { %2581 = vmatpush2.bf16.msra.mxu1 %v12527_v33  ;;  %4855 = vmatprep.subr.bf16.mxu0 %v12533_v34  ;;  %v12635_v33 = vld [vmem:[%s16370_s11 + $0x57c] ss:$28 sps:$4 sm:$0xff]   ;;  %v14572_v34 = vld [vmem:[%s16369_s10] sm:$0x7f] }
 0x421   :  { %4896 = vmatprep.subr.bf16.mxu1 %v12578_v35  ;;  %v12573_v35 = vld [vmem:[%s16370_s11 + $0x1c0] ss:$28 sps:$4 sm:$0xff]  }
 0x423   :  { %2583 = vmatmul.mubr.bf16.vlgmr.msra.gmra.mxu1 %v14358_v20  ;;  %4856 = vmatpush1.bf16.msra.mxu0 %v12531_v36  ;;  %v12584_v20 = vld [vmem:[%s16370_s11 + $0x49c] ss:$28 sps:$4 sm:$0xff]   ;;  %v12608_v36 = vld [vmem:[%s16370_s11 + $0x88c] ss:$28 sps:$4 sm:$0xff]  }
 0x424   :  { %4857 = vmatprep.subr.bf16.mxu0 %v12536_v37  ;;  %4897 = vmatpush1.bf16.msra.mxu1 %v12576_v38  ;;  %v12633_v37 = vld [vmem:[%s16370_s11 + $0x578] ss:$28 sps:$4 sm:$0xff]   ;;  %v1319_v38 = vrot.slane %v14572_v34, %v14311_v60 }
 0x425   :  { %4898 = vmatprep.subr.bf16.mxu1 %v12581_v19  ;;  %v12641_v19 = vld [vmem:[%s16370_s11 + $0x544] ss:$28 sps:$4 sm:$0xff]  }
 0x427   :  { %4858 = vmatpush1.bf16.msra.mxu0 %v12534_v39  ;;  %v1315_v39 = vrot.slane %v14572_v34, %v14317_v62 }
 0x428   :  { %4859 = vmatprep.subr.bf16.mxu0 %v12539_v40  ;;  %4899 = vmatpush1.bf16.msra.mxu1 %v12579_v41 }
 0x429   :  { %4900 = vmatprep.subr.bf16.mxu1 %v12584_v20 }
 0x42b   :  { %4860 = vmatpush1.bf16.msra.mxu0 %v12537_v42 }
 0x42c   :  { %4861 = vmatprep.subr.bf16.mxu0 %v12542_v43  ;;  %4901 = vmatpush1.bf16.msra.mxu1 %v12582_v46  ;;  %v12639_v43 = vld [vmem:[%s16370_s11 + $0x540] ss:$28 sps:$4 sm:$0xff]  }
 0x42d   :  { %4902 = vmatprep.subr.bf16.mxu1 %v12587_v47  ;;  %v12647_v47 = vld [vmem:[%s16370_s11 + $0x194] ss:$28 sps:$4 sm:$0xff]  }
 0x42f   :  { %4862 = vmatpush1.bf16.msra.mxu0 %v12540_v48 }
 0x430   :  { %4863 = vmatprep.subr.bf16.mxu0 %v12545_v49  ;;  %4903 = vmatpush1.bf16.msra.mxu1 %v12585_v50 }
 0x431   :  { %4904 = vmatprep.subr.bf16.mxu1 %v12590_v51 }
 0x433   :  { %4864 = vmatpush1.bf16.msra.mxu0 %v12543_v52 }
 0x434   :  { %4865 = vmatprep.subr.bf16.mxu0 %v12548_v53  ;;  %4905 = vmatpush1.bf16.msra.mxu1 %v12588_v54 }
 0x435   :  { %4906 = vmatprep.subr.bf16.mxu1 %v12593_v55 }
 0x437   :  { %4866 = vmatpush1.bf16.msra.mxu0 %v12546_v56 }
 0x438   :  { %4867 = vmatprep.subr.bf16.mxu0 %v12551_v57  ;;  %4907 = vmatpush1.bf16.msra.mxu1 %v12591_v58 }
 0x439   :  { %4908 = vmatprep.subr.bf16.mxu1 %v12596_v61 }
 0x43b   :  { %4868 = vmatpush1.bf16.msra.mxu0 %v12549_v63 }
 0x43c   :  { %4869 = vmatprep.subr.bf16.mxu0 %v12554_v1  ;;  %4909 = vmatpush1.bf16.msra.mxu1 %v12594_v2 }
 0x43d   :  { %4910 = vmatprep.subr.bf16.mxu1 %v12599_v3 }
 0x43f   :  { %4870 = vmatpush2.bf16.msra.mxu0 %v12552_v4  ;;  %v12606_v4 = vld [vmem:[%s16370_s11 + $0x888] ss:$28 sps:$4 sm:$0xff]  }
 0x440   :  { %4871 = vmatprep.subr.bf16.mxu0 %v12557_v5  ;;  %4911 = vmatpush1.bf16.msra.mxu1 %v12597_v6  ;;  %v12614_v6 = vld [vmem:[%s16370_s11 + $0x854] ss:$28 sps:$4 sm:$0xff]  }
 0x441   :  { %4912 = vmatprep.subr.bf16.mxu1 %v12602_v7  ;;  %v12612_v7 = vld [vmem:[%s16370_s11 + $0x850] ss:$28 sps:$4 sm:$0xff]  }
 0x443   :  { %4872 = vmatpush2.bf16.msra.mxu0 %v12555_v8  ;;  %v12620_v8 = vld [vmem:[%s16370_s11 + $0x81c] ss:$28 sps:$4 sm:$0xff]  }
 0x444   :  { %4873 = vmatprep.subr.bf16.mxu0 %v12560_v9  ;;  %4913 = vmatpush2.bf16.msra.mxu1 %v12600_v10  ;;  %v12618_v9 = vld [vmem:[%s16370_s11 + $0x818] ss:$28 sps:$4 sm:$0xff]   ;;  %v12626_v10 = vld [vmem:[%s16370_s11 + $0x7e4] ss:$28 sps:$4 sm:$0xff]  }
 0x445   :  { %4914 = vmatprep.subr.bf16.mxu1 %v12605_v11  ;;  %v12624_v11 = vld [vmem:[%s16370_s11 + $0x7e0] ss:$28 sps:$4 sm:$0xff]  }
 0x447   :  { %4874 = vmatpush2.bf16.msra.mxu0 %v12558_v12  ;;  %v12632_v12 = vld [vmem:[%s16370_s11 + $0x7ac] ss:$28 sps:$4 sm:$0xff]  }
 0x448   :  { %4875 = vmatprep.subr.bf16.mxu0 %v12563_v13  ;;  %4915 = vmatpush2.bf16.msra.mxu1 %v12603_v14  ;;  %v12630_v13 = vld [vmem:[%s16370_s11 + $0x7a8] ss:$28 sps:$4 sm:$0xff]   ;;  %v12638_v14 = vld [vmem:[%s16370_s11 + $0x774] ss:$28 sps:$4 sm:$0xff]  }
 0x449   :  { %4916 = vmatprep.subr.bf16.mxu1 %v12611_v15  ;;  %v12636_v15 = vld [vmem:[%s16370_s11 + $0x770] ss:$28 sps:$4 sm:$0xff]  }
 0x44b   :  { %4876 = vmatpush2.bf16.msra.mxu0 %v12561_v17  ;;  %v12644_v17 = vld [vmem:[%s16370_s11 + $0x73c] ss:$28 sps:$4 sm:$0xff]  }
 0x44c   :  { %4877 = vmatprep.subr.bf16.mxu0 %v12566_v18  ;;  %4917 = vmatpush2.bf16.msra.mxu1 %v12609_v16  ;;  %v12642_v18 = vld [vmem:[%s16370_s11 + $0x738] ss:$28 sps:$4 sm:$0xff]   ;;  %v12650_v16 = vld [vmem:[%s16370_s11 + $0x704] ss:$28 sps:$4 sm:$0xff]  }
 0x44d   :  { %4918 = vmatprep.subr.bf16.mxu1 %v12617_v21  ;;  %v12648_v21 = vld [vmem:[%s16370_s11 + $0x700] ss:$28 sps:$4 sm:$0xff]  }
 0x44f   :  { %4878 = vmatpush2.bf16.msra.mxu0 %v12564_v22  ;;  %v12656_v22 = vld [vmem:[%s16370_s11 + $0xa4c] ss:$28 sps:$4 sm:$0xff]  }
 0x450   :  { %4879 = vmatprep.subr.bf16.mxu0 %v12569_v23  ;;  %4919 = vmatpush2.bf16.msra.mxu1 %v12615_v24  ;;  %v12654_v23 = vld [vmem:[%s16370_s11 + $0xa48] ss:$28 sps:$4 sm:$0xff]   ;;  %v12662_v24 = vld [vmem:[%s16370_s11 + $0xa14] ss:$28 sps:$4 sm:$0xff]  }
 0x451   :  { %4920 = vmatprep.subr.bf16.mxu1 %v12623_v25  ;;  %v12660_v25 = vld [vmem:[%s16370_s11 + $0xa10] ss:$28 sps:$4 sm:$0xff]  }
 0x453   :  { %4880 = vmatpush2.bf16.msra.mxu0 %v12567_v26  ;;  %v12668_v26 = vld [vmem:[%s16370_s11 + $0x9dc] ss:$28 sps:$4 sm:$0xff]  }
 0x454   :  { %4881 = vmatprep.subr.bf16.mxu0 %v12572_v27  ;;  %4921 = vmatpush2.bf16.msra.mxu1 %v12621_v28  ;;  %v12666_v27 = vld [vmem:[%s16370_s11 + $0x9d8] ss:$28 sps:$4 sm:$0xff]   ;;  %v12674_v28 = vld [vmem:[%s16370_s11 + $0x9a4] ss:$28 sps:$4 sm:$0xff]  }
 0x455   :  { %4922 = vmatprep.subr.bf16.mxu1 %v12629_v29  ;;  %v12672_v29 = vld [vmem:[%s16370_s11 + $0x9a0] ss:$28 sps:$4 sm:$0xff]  }
 0x457   :  { %4882 = vmatpush2.bf16.msra.mxu0 %v12570_v30  ;;  %v12680_v30 = vld [vmem:[%s16370_s11 + $0x96c] ss:$28 sps:$4 sm:$0xff]  }
 0x458   :  { %4883 = vmatprep.subr.bf16.mxu0 %v12575_v31  ;;  %4923 = vmatpush2.bf16.msra.mxu1 %v12627_v32  ;;  %v12678_v32 = vld [vmem:[%s16370_s11 + $0x968] ss:$28 sps:$4 sm:$0xff]  }
 0x459   :  { %4924 = vmatprep.subr.bf16.mxu1 %v12635_v33  ;;  %v12686_v33 = vld [vmem:[%s16370_s11 + $0x934] ss:$28 sps:$4 sm:$0xff]  }
 0x45a   :  { %v2285_v40 = vpop.f32.mrf.mxu1  ;;  %v2328_v41 = vpop.f32.mrf.mxu0 }
 0x45b   :  { %4884 = vmatpush2.bf16.msra.mxu0 %v12573_v35  ;;  %v2286_v48 = vadd.f32 %v2285_v40, %v1315_v39  ;;  %v1327_v35 = vrot.slane %v14572_v34, %v14340_v44  ;;  %v12692_v40 = vld [vmem:[%s16370_s11 + $0x8fc] ss:$28 sps:$4 sm:$0xff]  }
 0x45c   :  { %v2287_v20 = vpop.f32.mrf.mxu1  ;;  %v2330_v42 = vpop.f32.mrf.mxu0  ;;  %4939 = vmatprep.subr.bf16.mxu0 %v12608_v36  ;;  %4925 = vmatpush2.bf16.msra.mxu1 %v12633_v37  ;;  %v1323_v37 = vrot.slane %v14572_v34, %v14343_v45 }
 0x45d   :  { %v2288_v46 = vadd.f32 %v2287_v20, %v1319_v38  ;;  %4926 = vmatprep.subr.bf16.mxu1 %v12641_v19  ;;  %v2329_v56 = vadd.f32 %v2328_v41, %v2286_v48  ;;  %v12684_v19 = vld [vmem:[%s16370_s11 + $0x930] ss:$28 sps:$4 sm:$0xff]  }
 0x45e   :  { %v2289_v49 = vpop.f32.mrf.mxu1  ;;  %v2332_v50 = vpop.f32.mrf.mxu0 }
 0x45f   :  { %v2290_v51 = vadd.f32 %v2289_v49, %v1315_v39  ;;  %v2331_v53 = vadd.f32 %v2330_v42, %v2288_v46  ;;  %v2591_v2 = vmax.f32 %v2329_v56, 0.0  ;;  %v12698_v49 = vld [vmem:[%s16370_s11 + $0x8c4] ss:$28 sps:$4 sm:$0xff]  }
 0x460   :  { %v2291_v52 = vpop.f32.mrf.mxu1  ;;  %4927 = vmatpush2.bf16.msra.mxu1 %v12639_v43  ;;  %v2334_v57 = vpop.f32.mrf.mxu0  ;;  %v12696_v56 = vld [vmem:[%s16370_s11 + $0x8c0] ss:$28 sps:$4 sm:$0xff]  }
 0x461   :  { %v2333_v54 = vadd.f32 %v2332_v50, %v2290_v51  ;;  %v2292_v55 = vadd.f32 %v2291_v52, %v1319_v38  ;;  %5025 = vmatprep.subr.bf16.mxu1 %v12647_v47  ;;  %v2592_v63 = vmax.f32 %v2331_v53, 0.0  ;;  %v12690_v47 = vld [vmem:[%s16370_s11 + $0x8f8] ss:$28 sps:$4 sm:$0xff]  }
 0x463   :  { %v2335_v58 = vadd.f32 %v2334_v57, %v2292_v55  ;;  %v2598_v61 = vmax.f32 %v2333_v54, 0.0 }
 0x465   :  { %v2599_v1 = vmax.f32 %v2335_v58, 0.0  ;;  %v14601_v5 = vpack.c.bf16 %v2598_v61, %v2591_v2  ;;  %v12722_v58 = vld [vmem:[%s16370_s11 + $0xabc] ss:$28 sps:$4 sm:$0xff]  }
 0x467   :  { %v14596_v3 = vpack.c.bf16 %v2599_v1, %v2592_v63 }
 0x469   :  { %4885 = vmatprep.mubr.bf16.mxu0 %v14596_v3 }
 0x46a   :  { %4886 = vmatmul.mubr.bf16.vlgmr.msra.gmra.mxu0 %v14601_v5 }
 0x46b   :  { %4940 = vmatpush1.bf16.msra.mxu0 %v12606_v4  ;;  %v12645_v4 = vld [vmem:[%s16370_s11 + $0x190] ss:$28 sps:$4 sm:$0xff]  }
 0x46c   :  { %4941 = vmatprep.subr.bf16.mxu0 %v12614_v6 }
 0x46f   :  { %4942 = vmatpush1.bf16.msra.mxu0 %v12612_v7  ;;  %v12653_v7 = vld [vmem:[%s16370_s11 + $0x15c] ss:$28 sps:$4 sm:$0xff]  }
 0x470   :  { %4943 = vmatprep.subr.bf16.mxu0 %v12620_v8  ;;  %v12651_v8 = vld [vmem:[%s16370_s11 + $0x158] ss:$28 sps:$4 sm:$0xff]  }
 0x473   :  { %4944 = vmatpush1.bf16.msra.mxu0 %v12618_v9  ;;  %v12659_v9 = vld [vmem:[%s16370_s11 + $0x124] ss:$28 sps:$4 sm:$0xff]  }
 0x474   :  { %4945 = vmatprep.subr.bf16.mxu0 %v12626_v10  ;;  %v12657_v10 = vld [vmem:[%s16370_s11 + $0x120] ss:$28 sps:$4 sm:$0xff]  }
 0x477   :  { %4946 = vmatpush1.bf16.msra.mxu0 %v12624_v11  ;;  %v12665_v11 = vld [vmem:[%s16370_s11 + $0xec] ss:$28 sps:$4 sm:$0xff]  }
 0x478   :  { %4947 = vmatprep.subr.bf16.mxu0 %v12632_v12  ;;  %v12663_v12 = vld [vmem:[%s16370_s11 + $0xe8] ss:$28 sps:$4 sm:$0xff]  }
 0x47b   :  { %4948 = vmatpush1.bf16.msra.mxu0 %v12630_v13  ;;  %v12671_v13 = vld [vmem:[%s16370_s11 + $0xb4] ss:$28 sps:$4 sm:$0xff]  }
 0x47c   :  { %4949 = vmatprep.subr.bf16.mxu0 %v12638_v14  ;;  %v12669_v14 = vld [vmem:[%s16370_s11 + $0xb0] ss:$28 sps:$4 sm:$0xff]  }
 0x47e   :  { %v2414_v31 = vpop.f32.mrf.mxu1 }
 0x47f   :  { %4950 = vmatpush1.bf16.msra.mxu0 %v12636_v15  ;;  %v12677_v15 = vld [vmem:[%s16370_s11 + $0x7c] ss:$28 sps:$4 sm:$0xff]  }
 0x480   :  { %4951 = vmatprep.subr.bf16.mxu0 %v12644_v17  ;;  %v2416_v36 = vpop.f32.mrf.mxu1  ;;  %v14740_v17 = vsub.s32 5, %v14308_v59 }
 0x482   :  { %v2418_v20 = vpop.f32.mrf.mxu1 }
 0x483   :  { %4952 = vmatpush1.bf16.msra.mxu0 %v12642_v18  ;;  %v14743_v18 = vsub.s32 4, %v14308_v59 }
 0x484   :  { %4953 = vmatprep.subr.bf16.mxu0 %v12650_v16  ;;  %v2420_v53 = vpop.f32.mrf.mxu1  ;;  %v12675_v16 = vld [vmem:[%s16370_s11 + $0x78] ss:$28 sps:$4 sm:$0xff]  }
 0x487   :  { %4954 = vmatpush1.bf16.msra.mxu0 %v12648_v21  ;;  %v12683_v21 = vld [vmem:[%s16370_s11 + $0x44] ss:$28 sps:$4 sm:$0xff]  }
 0x488   :  { %4955 = vmatprep.subr.bf16.mxu0 %v12656_v22  ;;  %v1335_v22 = vrot.slane %v14572_v34, %v14740_v17 }
 0x48b   :  { %4956 = vmatpush2.bf16.msra.mxu0 %v12654_v23  ;;  %v1331_v23 = vrot.slane %v14572_v34, %v14743_v18 }
 0x48c   :  { %4957 = vmatprep.subr.bf16.mxu0 %v12662_v24 }
 0x48f   :  { %4958 = vmatpush2.bf16.msra.mxu0 %v12660_v25 }
 0x490   :  { %4959 = vmatprep.subr.bf16.mxu0 %v12668_v26  ;;  %v12681_v26 = vld [vmem:[%s16370_s11 + $0x40] ss:$28 sps:$4 sm:$0xff]  }
 0x493   :  { %4960 = vmatpush2.bf16.msra.mxu0 %v12666_v27 }
 0x494   :  { %4961 = vmatprep.subr.bf16.mxu0 %v12674_v28 }
 0x497   :  { %4962 = vmatpush2.bf16.msra.mxu0 %v12672_v29  ;;  %v12689_v29 = vld [vmem:[%s16370_s11 + $0xc] ss:$28 sps:$4 sm:$0xff]  }
 0x498   :  { %4963 = vmatprep.subr.bf16.mxu0 %v12680_v30 }
 0x49a   :  { %v2371_v38 = vpop.f32.mrf.mxu0 }
 0x49b   :  { %4964 = vmatpush2.bf16.msra.mxu0 %v12678_v32  ;;  %v2372_v42 = vadd.f32 %v2371_v38, %v1323_v37  ;;  %v12695_v38 = vld [vmem:[%s16370_s11 + $0x354] ss:$28 sps:$4 sm:$0xff]  }
 0x49c   :  { %v2373_v39 = vpop.f32.mrf.mxu0  ;;  %4965 = vmatprep.subr.bf16.mxu0 %v12686_v33 }
 0x49d   :  { %v2374_v41 = vadd.f32 %v2373_v39, %v1327_v35  ;;  %v2415_v54 = vadd.f32 %v2414_v31, %v2372_v42 }
 0x49e   :  { %v2375_v43 = vpop.f32.mrf.mxu0 }
 0x49f   :  { %v2376_v46 = vadd.f32 %v2375_v43, %v1323_v37  ;;  %4966 = vmatpush2.bf16.msra.mxu0 %v12684_v19  ;;  %v2417_v50 = vadd.f32 %v2416_v36, %v2374_v41  ;;  %v2593_v1 = vmax.f32 %v2415_v54, 0.0  ;;  %v12687_v36 = vld [vmem:[%s16370_s11 + $0x8] ss:$28 sps:$4 sm:$0xff]   ;;  %v12693_v43 = vld [vmem:[%s16370_s11 + $0x350] ss:$28 sps:$4 sm:$0xff]  }
 0x4a0   :  { %v2377_v48 = vpop.f32.mrf.mxu0  ;;  %4967 = vmatprep.subr.bf16.mxu0 %v12692_v40 }
 0x4a1   :  { %v2419_v51 = vadd.f32 %v2418_v20, %v2376_v46  ;;  %v2378_v52 = vadd.f32 %v2377_v48, %v1327_v35  ;;  %v2594_v61 = vmax.f32 %v2417_v50, 0.0 }
 0x4a3   :  { %v2421_v55 = vadd.f32 %v2420_v53, %v2378_v52  ;;  %4968 = vmatpush2.bf16.msra.mxu0 %v12690_v47  ;;  %v2600_v57 = vmax.f32 %v2419_v51, 0.0  ;;  %v12701_v47 = vld [vmem:[%s16370_s11 + $0x31c] ss:$28 sps:$4 sm:$0xff]  }
 0x4a4   :  { %4969 = vmatprep.subr.bf16.mxu0 %v12698_v49  ;;  %v12699_v52 = vld [vmem:[%s16370_s11 + $0x318] ss:$28 sps:$4 sm:$0xff]  }
 0x4a5   :  { %v2601_v63 = vmax.f32 %v2421_v55, 0.0  ;;  %v14707_v6 = vpack.c.bf16 %v2600_v57, %v2593_v1  ;;  %v12720_v53 = vld [vmem:[%s16370_s11 + $0xab8] ss:$28 sps:$4 sm:$0xff]   ;;  %v12704_v55 = vld [vmem:[%s16370_s11 + $0x2e4] ss:$28 sps:$4 sm:$0xff]  }
 0x4a6   :  { %v12702_v57 = vld [vmem:[%s16370_s11 + $0x2e0] ss:$28 sps:$4 sm:$0xff]   ;;  %v12705_v1 = vld [vmem:[%s16370_s11 + $0x2a8] ss:$28 sps:$4 sm:$0xff]  }
 0x4a7   :  { %v14702_v2 = vpack.c.bf16 %v2601_v63, %v2594_v61  ;;  %4970 = vmatpush2.bf16.msra.mxu0 %v12696_v56  ;;  %v12728_v56 = vld [vmem:[%s16370_s11 + $0xa84] ss:$28 sps:$4 sm:$0xff]   ;;  %v12707_v61 = vld [vmem:[%s16370_s11 + $0x2ac] ss:$28 sps:$4 sm:$0xff]   ;;  %v12734_v63 = vld [vmem:[%s16370_s11 + $0x514] ss:$28 sps:$4 sm:$0xff]  }
 0x4a8   :  { %4994 = vmatprep.subr.bf16.mxu0 %v12722_v58  ;;  %v12726_v58 = vld [vmem:[%s16370_s11 + $0xa80] ss:$28 sps:$4 sm:$0xff]  }
 0x4a9   :  { %4928 = vmatprep.mubr.bf16.mxu1 %v14702_v2 }
 0x4aa   :  { %4929 = vmatmul.mubr.bf16.vlgmr.msra.gmra.mxu1 %v14707_v6 }
 0x4ab   :  { %5026 = vmatpush1.bf16.msra.mxu1 %v12645_v4  ;;  %5057 = vmatprep.mubr.bf16.mxu1 %v14596_v3  ;;  %v12710_v4 = vld [vmem:[%s16370_s11 + $0x274] ss:$28 sps:$4 sm:$0xff]  }
 0x4ac   :  { %5027 = vmatprep.subr.bf16.mxu1 %v12653_v7  ;;  %v12708_v7 = vld [vmem:[%s16370_s11 + $0x270] ss:$28 sps:$4 sm:$0xff]  }
 0x4af   :  { %5028 = vmatpush1.bf16.msra.mxu1 %v12651_v8  ;;  %v12713_v8 = vld [vmem:[%s16370_s11 + $0x23c] ss:$28 sps:$4 sm:$0xff]  }
 0x4b0   :  { %5029 = vmatprep.subr.bf16.mxu1 %v12659_v9  ;;  %v12711_v9 = vld [vmem:[%s16370_s11 + $0x238] ss:$28 sps:$4 sm:$0xff]  }
 0x4b3   :  { %5030 = vmatpush1.bf16.msra.mxu1 %v12657_v10  ;;  %v14820_v10 = vsub.s32 6, %v14308_v59  ;;  %v12719_v59 = vld [vmem:[%s16370_s11 + $0x1cc] ss:$28 sps:$4 sm:$0xff]  }
 0x4b4   :  { %5031 = vmatprep.subr.bf16.mxu1 %v12665_v11  ;;  %v12716_v11 = vld [vmem:[%s16370_s11 + $0x204] ss:$28 sps:$4 sm:$0xff]  }
 0x4b7   :  { %5032 = vmatpush1.bf16.msra.mxu1 %v12663_v12 }
 0x4b8   :  { %5033 = vmatprep.subr.bf16.mxu1 %v12671_v13  ;;  %v12714_v13 = vld [vmem:[%s16370_s11 + $0x200] ss:$28 sps:$4 sm:$0xff]  }
 0x4bb   :  { %5034 = vmatpush1.bf16.msra.mxu1 %v12669_v14  ;;  %v1339_v14 = vrot.slane %v14572_v34, %v14820_v10  ;;  %v12725_v34 = vld [vmem:[%s16370_s11 + $0x894] ss:$28 sps:$4 sm:$0xff]  }
 0x4bc   :  { %5035 = vmatprep.subr.bf16.mxu1 %v12677_v15 }
 0x4be   :  { %v2457_v24 = vpop.f32.mrf.mxu1  ;;  %v2500_v25 = vpop.f32.mrf.mxu0 }
 0x4bf   :  { %5036 = vmatpush1.bf16.msra.mxu1 %v12675_v16  ;;  %v2458_v31 = vadd.f32 %v2457_v24, %v1331_v23  ;;  %v12717_v24 = vld [vmem:[%s16370_s11 + $0x1c8] ss:$28 sps:$4 sm:$0xff]  }
 0x4c0   :  { %v2459_v27 = vpop.f32.mrf.mxu1  ;;  %v2502_v28 = vpop.f32.mrf.mxu0  ;;  %5037 = vmatprep.subr.bf16.mxu1 %v12683_v21 }
 0x4c1   :  { %v2460_v30 = vadd.f32 %v2459_v27, %v1335_v22  ;;  %v2501_v41 = vadd.f32 %v2500_v25, %v2458_v31  ;;  %v12723_v31 = vld [vmem:[%s16370_s11 + $0x890] ss:$28 sps:$4 sm:$0xff]  }
 0x4c2   :  { %v2461_v32 = vpop.f32.mrf.mxu1  ;;  %v2504_v33 = vpop.f32.mrf.mxu0 }
 0x4c3   :  { %v2462_v35 = vadd.f32 %v2461_v32, %v1331_v23  ;;  %5038 = vmatpush1.bf16.msra.mxu1 %v12681_v26  ;;  %v2503_v19 = vadd.f32 %v2502_v28, %v2460_v30  ;;  %v2595_v50 = vmax.f32 %v2501_v41, 0.0  ;;  %v12731_v32 = vld [vmem:[%s16370_s11 + $0x85c] ss:$28 sps:$4 sm:$0xff]  }
 0x4c4   :  { %v2463_v37 = vpop.f32.mrf.mxu1  ;;  %5039 = vmatprep.subr.bf16.mxu1 %v12689_v29  ;;  %v2506_v20 = vpop.f32.mrf.mxu0  ;;  %v12740_v41 = vld [vmem:[%s16370_s11 + $0x4dc] ss:$28 sps:$4 sm:$0xff]  }
 0x4c5   :  { %v2505_v39 = vadd.f32 %v2504_v33, %v2462_v35  ;;  %v2464_v40 = vadd.f32 %v2463_v37, %v1335_v22  ;;  %v2596_v48 = vmax.f32 %v2503_v19, 0.0  ;;  %v12732_v19 = vld [vmem:[%s16370_s11 + $0x510] ss:$28 sps:$4 sm:$0xff]  }
 0x4c7   :  { %v2507_v42 = vadd.f32 %v2506_v20, %v2464_v40  ;;  %5040 = vmatpush1.bf16.msra.mxu1 %v12687_v36  ;;  %v2602_v46 = vmax.f32 %v2505_v39, 0.0  ;;  %v12737_v40 = vld [vmem:[%s16370_s11 + $0x824] ss:$28 sps:$4 sm:$0xff]  }
 0x4c8   :  { %5041 = vmatprep.subr.bf16.mxu1 %v12695_v38  ;;  %v12729_v38 = vld [vmem:[%s16370_s11 + $0x858] ss:$28 sps:$4 sm:$0xff]   ;;  %v12735_v20 = vld [vmem:[%s16370_s11 + $0x820] ss:$28 sps:$4 sm:$0xff]  }
 0x4c9   :  { %v2603_v49 = vmax.f32 %v2507_v42, 0.0  ;;  %v14781_v54 = vpack.c.bf16 %v2602_v46, %v2595_v50  ;;  %v12738_v42 = vld [vmem:[%s16370_s11 + $0x4d8] ss:$28 sps:$4 sm:$0xff]   ;;  %v12746_v46 = vld [vmem:[%s16370_s11 + $0x4a4] ss:$28 sps:$4 sm:$0xff]  }
 0x4ca   :  { %v12752_v50 = vld [vmem:[%s16370_s11 + $0x46c] ss:$28 sps:$4 sm:$0xff]  }
 0x4cb   :  { %v14773_v51 = vpack.c.bf16 %v2603_v49, %v2596_v48  ;;  %5042 = vmatpush2.bf16.msra.mxu1 %v12693_v43  ;;  %v12743_v43 = vld [vmem:[%s16370_s11 + $0x7ec] ss:$28 sps:$4 sm:$0xff]   ;;  %v12744_v48 = vld [vmem:[%s16370_s11 + $0x4a0] ss:$28 sps:$4 sm:$0xff]   ;;  %v12749_v49 = vld [vmem:[%s16370_s11 + $0x7b4] ss:$28 sps:$4 sm:$0xff]  }
 0x4cc   :  { %5043 = vmatprep.subr.bf16.mxu1 %v12701_v47  ;;  %v12741_v47 = vld [vmem:[%s16370_s11 + $0x7e8] ss:$28 sps:$4 sm:$0xff]  }
 0x4cd   :  { %4971 = vmatprep.mubr.bf16.mxu0 %v14773_v51 }
 0x4ce   :  { %4972 = vmatmul.mubr.bf16.vlgmr.msra.gmra.mxu0 %v14781_v54 }
 0x4cf   :  { %5044 = vmatpush2.bf16.msra.mxu1 %v12699_v52  ;;  %4995 = vmatpush1.bf16.msra.mxu0 %v12720_v53  ;;  %v12747_v52 = vld [vmem:[%s16370_s11 + $0x7b0] ss:$28 sps:$4 sm:$0xff]   ;;  %v12750_v53 = vld [vmem:[%s16370_s11 + $0x468] ss:$28 sps:$4 sm:$0xff]  }
 0x4d0   :  { %5045 = vmatprep.subr.bf16.mxu1 %v12704_v55  ;;  %4996 = vmatprep.subr.bf16.mxu0 %v12728_v56  ;;  %v12755_v55 = vld [vmem:[%s16370_s11 + $0x77c] ss:$28 sps:$4 sm:$0xff]   ;;  %v12758_v56 = vld [vmem:[%s16370_s11 + $0x434] ss:$28 sps:$4 sm:$0xff]  }
 0x4d1   :  { %5014 = vmatprep.mubr.bf16.mxu0 %v14081_v0 }
 0x4d3   :  { %5046 = vmatpush2.bf16.msra.mxu1 %v12702_v57  ;;  %4997 = vmatpush1.bf16.msra.mxu0 %v12726_v58  ;;  %v12753_v57 = vld [vmem:[%s16370_s11 + $0x778] ss:$28 sps:$4 sm:$0xff]   ;;  %v12756_v58 = vld [vmem:[%s16370_s11 + $0x430] ss:$28 sps:$4 sm:$0xff]  }
 0x4d4   :  { %5047 = vmatprep.subr.bf16.mxu1 %v12707_v61  ;;  %5068 = vmatprep.subr.bf16.mxu0 %v12734_v63  ;;  %v12761_v61 = vld [vmem:[%s16370_s11 + $0x744] ss:$28 sps:$4 sm:$0xff]   ;;  %v12764_v63 = vld [vmem:[%s16370_s11 + $0x3fc] ss:$28 sps:$4 sm:$0xff]  }
 0x4d7   :  { %5048 = vmatpush2.bf16.msra.mxu1 %v12705_v1  ;;  %v12759_v1 = vld [vmem:[%s16370_s11 + $0x740] ss:$28 sps:$4 sm:$0xff]  }
 0x4d8   :  { %5049 = vmatprep.subr.bf16.mxu1 %v12710_v4  ;;  %v12762_v4 = vld [vmem:[%s16370_s11 + $0x3f8] ss:$28 sps:$4 sm:$0xff]  }
 0x4db   :  { %5050 = vmatpush2.bf16.msra.mxu1 %v12708_v7  ;;  %v12767_v7 = vld [vmem:[%s16370_s11 + $0x70c] ss:$28 sps:$4 sm:$0xff]  }
 0x4dc   :  { %5051 = vmatprep.subr.bf16.mxu1 %v12713_v8  ;;  %v12770_v8 = vld [vmem:[%s16370_s11 + $0x3c4] ss:$28 sps:$4 sm:$0xff]  }
 0x4de   :  { %v11946_v12 = vpop.f32.mrf.mxu0 }
 0x4df   :  { %5052 = vmatpush2.bf16.msra.mxu1 %v12711_v9  ;;  %v12765_v9 = vld [vmem:[%s16370_s11 + $0x708] ss:$28 sps:$4 sm:$0xff]  }
 0x4e0   :  { %v11947_v15 = vpop.f32.mrf.mxu0  ;;  %5053 = vmatprep.subr.bf16.mxu1 %v12716_v11  ;;  %v12768_v11 = vld [vmem:[%s16370_s11 + $0x3c0] ss:$28 sps:$4 sm:$0xff]  }
 0x4e1   :  { %v11948_v16 = vadd.f32 %v11947_v15, %v11946_v12  ;;  %v12773_v12 = vld [vmem:[%s16370_s11 + $0xa54] ss:$28 sps:$4 sm:$0xff]   ;;  %v12774_v15 = vld [vmem:[%s16370_s11 + $0x388] ss:$28 sps:$4 sm:$0xff]  }
 0x4e2   :  { %v11949_v21 = vpop.f32.mrf.mxu0 }
 0x4e3   :  { %v2544_v22 = vadd.f32 %v11948_v16, %v1339_v14  ;;  %v2584_v23 = vpop.f32.mrf.mxu1  ;;  %5054 = vmatpush2.bf16.msra.mxu1 %v12714_v13  ;;  %v12776_v13 = vld [vmem:[%s16370_s11 + $0x38c] ss:$28 sps:$4 sm:$0xff]   ;;  %v12782_v16 = vld [vmem:[%s16370_s11 + $0x6d4] ss:$28 sps:$4 sm:$0xff]  }
 0x4e4   :  { %v11950_v25 = vpop.f32.mrf.mxu0  ;;  %5055 = vmatprep.subr.bf16.mxu1 %v12719_v59  ;;  %v12779_v59 = vld [vmem:[%s16370_s11 + $0xa1c] ss:$28 sps:$4 sm:$0xff]  }
 0x4e5   :  { %v11951_v26 = vadd.f32 %v11950_v25, %v11949_v21  ;;  %v2586_v27 = vpop.f32.mrf.mxu1  ;;  %v2585_v28 = vadd.f32 %v2584_v23, %v2544_v22  ;;  %v12777_v21 = vld [vmem:[%s16370_s11 + $0xa18] ss:$28 sps:$4 sm:$0xff]   ;;  %v12780_v22 = vld [vmem:[%s16370_s11 + $0x6d0] ss:$28 sps:$4 sm:$0xff]   ;;  %v12785_v23 = vld [vmem:[%s16370_s11 + $0x9e4] ss:$28 sps:$4 sm:$0xff]  }
 0x4e6   :  { %v12783_v25 = vld [vmem:[%s16370_s11 + $0x9e0] ss:$28 sps:$4 sm:$0xff]  }
 0x4e7   :  { %v2547_v29 = vadd.f32 %v11951_v26, %v1339_v14  ;;  %v2587_v30 = vpop.f32.mrf.mxu1  ;;  %5056 = vmatpush2.bf16.msra.mxu1 %v12717_v24  ;;  %v2597_v36 = vmax.f32 %v2585_v28, 0.0  ;;  %v12771_v14 = vld [vmem:[%s16370_s11 + $0xa50] ss:$28 sps:$4 sm:$0xff]   ;;  %v12788_v24 = vld [vmem:[%s16370_s11 + $0x69c] ss:$28 sps:$4 sm:$0xff]  }
 0x4e8   :  { %5111 = vmatprep.subr.bf16.mxu1 %v12725_v34  ;;  %v12786_v34 = vld [vmem:[%s16370_s11 + $0x698] ss:$28 sps:$4 sm:$0xff]   ;;  %v12791_v26 = vld [vmem:[%s16370_s11 + $0x9ac] ss:$28 sps:$4 sm:$0xff]   ;;  %v12794_v27 = vld [vmem:[%s16370_s11 + $0x664] ss:$28 sps:$4 sm:$0xff]  }
 0x4e9   :  { %v2588_v33 = vadd.f32 %v2587_v30, %v2547_v29  ;;  %v2589_v35 = vpop.f32.mrf.mxu1  ;;  %v12789_v28 = vld [vmem:[%s16370_s11 + $0x9a8] ss:$28 sps:$4 sm:$0xff]   ;;  %v12792_v29 = vld [vmem:[%s16370_s11 + $0x660] ss:$28 sps:$4 sm:$0xff]   ;;  %v12797_v30 = vld [vmem:[%s16370_s11 + $0x974] ss:$28 sps:$4 sm:$0xff]  }
 0x4ea   :  { %5058 = vmatmul.mubr.bf16.vlgmr.msra.gmra.mxu1 %v14601_v5  ;;  %v12803_v35 = vld [vmem:[%s16370_s11 + $0x93c] ss:$28 sps:$4 sm:$0xff]  }
 0x4eb   :  { %v2604_v37 = vmax.f32 %v2588_v33, 0.0  ;;  %5112 = vmatpush1.bf16.msra.mxu1 %v12723_v31  ;;  %5143 = vmatprep.mubr.bf16.mxu1 %v14773_v51  ;;  %v12800_v31 = vld [vmem:[%s16370_s11 + $0x62c] ss:$28 sps:$4 sm:$0xff]  }
 0x4ec   :  { %5113 = vmatprep.subr.bf16.mxu1 %v12731_v32  ;;  %v12795_v32 = vld [vmem:[%s16370_s11 + $0x970] ss:$28 sps:$4 sm:$0xff]   ;;  %v12798_v33 = vld [vmem:[%s16370_s11 + $0x628] ss:$28 sps:$4 sm:$0xff]  }
 0x4ed   :  { %v14853_v39 = vpack.c.bf16 %v2604_v37, %v2597_v36  ;;  %v12806_v36 = vld [vmem:[%s16370_s11 + $0x5f4] ss:$28 sps:$4 sm:$0xff]  }
 0x4ee   :  { %v12801_v37 = vld [vmem:[%s16370_s11 + $0x938] ss:$28 sps:$4 sm:$0xff]  }
 0x4ef   :  { %5114 = vmatpush1.bf16.msra.mxu1 %v12729_v38  ;;  %11304 = vmatmul.mubr.msk.bf16.vlgmr.msra.gmra.mxu0 %vm4849_vm5, %v14853_v39  ;;  %v12804_v38 = vld [vmem:[%s16370_s11 + $0x5f0] ss:$28 sps:$4 sm:$0xff]  }
 0x4f0   :  { %5069 = vmatpush1.bf16.msra.mxu0 %v12732_v19  ;;  %5100 = vmatprep.mubr.bf16.mxu0 %v14702_v2  ;;  %v12809_v19 = vld [vmem:[%s16370_s11 + $0x904] ss:$28 sps:$4 sm:$0xff]  }
 0x4f1   :  { %5115 = vmatprep.subr.bf16.mxu1 %v12737_v40  ;;  %5070 = vmatprep.subr.bf16.mxu0 %v12740_v41  ;;  %v12812_v40 = vld [vmem:[%s16370_s11 + $0x5bc] ss:$28 sps:$4 sm:$0xff]  }
 0x4f2   :  { %v12807_v41 = vld [vmem:[%s16370_s11 + $0x900] ss:$28 sps:$4 sm:$0xff]  }
 0x4f3   :  { %5116 = vmatpush1.bf16.msra.mxu1 %v12735_v20  ;;  %v12810_v20 = vld [vmem:[%s16370_s11 + $0x5b8] ss:$28 sps:$4 sm:$0xff]  }
 0x4f4   :  { %5071 = vmatpush1.bf16.msra.mxu0 %v12738_v42  ;;  %5117 = vmatprep.subr.bf16.mxu1 %v12743_v43  ;;  %v12815_v42 = vld [vmem:[%s16370_s11 + $0x8cc] ss:$28 sps:$4 sm:$0xff]   ;;  %v12818_v43 = vld [vmem:[%s16370_s11 + $0x584] ss:$28 sps:$4 sm:$0xff]  }
 0x4f5   :  { %5072 = vmatprep.subr.bf16.mxu0 %v12746_v46  ;;  %v12813_v46 = vld [vmem:[%s16370_s11 + $0x8c8] ss:$28 sps:$4 sm:$0xff]  }
 0x4f7   :  { %5118 = vmatpush1.bf16.msra.mxu1 %v12741_v47  ;;  %v12816_v47 = vld [vmem:[%s16370_s11 + $0x580] ss:$28 sps:$4 sm:$0xff]  }
 0x4f8   :  { %5073 = vmatpush1.bf16.msra.mxu0 %v12744_v48  ;;  %5119 = vmatprep.subr.bf16.mxu1 %v12749_v49  ;;  %v12821_v48 = vld [vmem:[%s16370_s11 + $0x51c] ss:$28 sps:$4 sm:$0xff]   ;;  %v12824_v49 = vld [vmem:[%s16370_s11 + $0x54c] ss:$28 sps:$4 sm:$0xff]  }
 0x4f9   :  { %5074 = vmatprep.subr.bf16.mxu0 %v12752_v50  ;;  %v12819_v50 = vld [vmem:[%s16370_s11 + $0x518] ss:$28 sps:$4 sm:$0xff]  }
 0x4fb   :  { %5120 = vmatpush1.bf16.msra.mxu1 %v12747_v52  ;;  %v12822_v52 = vld [vmem:[%s16370_s11 + $0x548] ss:$28 sps:$4 sm:$0xff]  }
 0x4fc   :  { %5075 = vmatpush1.bf16.msra.mxu0 %v12750_v53  ;;  %5121 = vmatprep.subr.bf16.mxu1 %v12755_v55  ;;  %v12827_v53 = vld [vmem:[%s16370_s11 + $0x4e4] ss:$28 sps:$4 sm:$0xff]  }
 0x4fd   :  { %5076 = vmatprep.subr.bf16.mxu0 %v12758_v56  ;;  %v12830_v55 = vld [vmem:[%s16370_s11 + $0xac4] ss:$28 sps:$4 sm:$0xff]  }
 0x4fe   :  { %v12825_v56 = vld [vmem:[%s16370_s11 + $0x4e0] ss:$28 sps:$4 sm:$0xff]  }
 0x4ff   :  { %5122 = vmatpush1.bf16.msra.mxu1 %v12753_v57  ;;  %v12828_v57 = vld [vmem:[%s16370_s11 + $0xac0] ss:$28 sps:$4 sm:$0xff]  }
 0x500   :  { %5077 = vmatpush1.bf16.msra.mxu0 %v12756_v58  ;;  %5123 = vmatprep.subr.bf16.mxu1 %v12761_v61  ;;  %v12833_v58 = vld [vmem:[%s16370_s11 + $0x4ac] ss:$28 sps:$4 sm:$0xff]  }
 0x501   :  { %5078 = vmatprep.subr.bf16.mxu0 %v12764_v63  ;;  %v12836_v61 = vld [vmem:[%s16370_s11 + $0xa8c] ss:$28 sps:$4 sm:$0xff]  }
 0x502   :  { %v12831_v63 = vld [vmem:[%s16370_s11 + $0x4a8] ss:$28 sps:$4 sm:$0xff]  }
 0x503   :  { %5124 = vmatpush1.bf16.msra.mxu1 %v12759_v1  ;;  %v12834_v1 = vld [vmem:[%s16370_s11 + $0xa88] ss:$28 sps:$4 sm:$0xff]  }
 0x504   :  { %5079 = vmatpush1.bf16.msra.mxu0 %v12762_v4  ;;  %5125 = vmatprep.subr.bf16.mxu1 %v12767_v7  ;;  %v12839_v4 = vld [vmem:[%s16370_s11 + $0x474] ss:$28 sps:$4 sm:$0xff]   ;;  %v12842_v7 = vld [vmem:[%s16370_s11 + $0x19c] ss:$28 sps:$4 sm:$0xff]  }
 0x505   :  { %5080 = vmatprep.subr.bf16.mxu0 %v12770_v8  ;;  %v12837_v8 = vld [vmem:[%s16370_s11 + $0x470] ss:$28 sps:$4 sm:$0xff]  }
 0x507   :  { %5126 = vmatpush1.bf16.msra.mxu1 %v12765_v9  ;;  %v12840_v9 = vld [vmem:[%s16370_s11 + $0x198] ss:$28 sps:$4 sm:$0xff]  }
 0x508   :  { %5081 = vmatpush1.bf16.msra.mxu0 %v12768_v11  ;;  %5127 = vmatprep.subr.bf16.mxu1 %v12773_v12  ;;  %v12845_v11 = vld [vmem:[%s16370_s11 + $0x43c] ss:$28 sps:$4 sm:$0xff]   ;;  %v12848_v12 = vld [vmem:[%s16370_s11 + $0x164] ss:$28 sps:$4 sm:$0xff]  }
 0x509   :  { %5082 = vmatprep.subr.bf16.mxu0 %v12776_v13  ;;  %v12843_v13 = vld [vmem:[%s16370_s11 + $0x438] ss:$28 sps:$4 sm:$0xff]  }
 0x50b   :  { %5128 = vmatpush2.bf16.msra.mxu1 %v12771_v14  ;;  %v12846_v14 = vld [vmem:[%s16370_s11 + $0x160] ss:$28 sps:$4 sm:$0xff]  }
 0x50c   :  { %5083 = vmatpush1.bf16.msra.mxu0 %v12774_v15  ;;  %5129 = vmatprep.subr.bf16.mxu1 %v12779_v59  ;;  %v12851_v15 = vld [vmem:[%s16370_s11 + $0x404] ss:$28 sps:$4 sm:$0xff]   ;;  %v12854_v59 = vld [vmem:[%s16370_s11 + $0x12c] ss:$28 sps:$4 sm:$0xff]  }
 0x50d   :  { %5084 = vmatprep.subr.bf16.mxu0 %v12782_v16  ;;  %v12849_v16 = vld [vmem:[%s16370_s11 + $0x400] ss:$28 sps:$4 sm:$0xff]  }
 0x50f   :  { %5130 = vmatpush2.bf16.msra.mxu1 %v12777_v21  ;;  %v12852_v21 = vld [vmem:[%s16370_s11 + $0x128] ss:$28 sps:$4 sm:$0xff]  }
 0x510   :  { %5085 = vmatpush2.bf16.msra.mxu0 %v12780_v22  ;;  %5131 = vmatprep.subr.bf16.mxu1 %v12785_v23  ;;  %v12857_v22 = vld [vmem:[%s16370_s11 + $0x3cc] ss:$28 sps:$4 sm:$0xff]   ;;  %v12860_v23 = vld [vmem:[%s16370_s11 + $0xf4] ss:$28 sps:$4 sm:$0xff]  }
 0x511   :  { %5086 = vmatprep.subr.bf16.mxu0 %v12788_v24  ;;  %v12855_v24 = vld [vmem:[%s16370_s11 + $0x3c8] ss:$28 sps:$4 sm:$0xff]  }
 0x513   :  { %5132 = vmatpush2.bf16.msra.mxu1 %v12783_v25  ;;  %v12858_v25 = vld [vmem:[%s16370_s11 + $0xf0] ss:$28 sps:$4 sm:$0xff]  }
 0x514   :  { %5087 = vmatpush2.bf16.msra.mxu0 %v12786_v34  ;;  %5133 = vmatprep.subr.bf16.mxu1 %v12791_v26  ;;  %v12863_v34 = vld [vmem:[%s16370_s11 + $0x394] ss:$28 sps:$4 sm:$0xff]   ;;  %v12866_v26 = vld [vmem:[%s16370_s11 + $0xbc] ss:$28 sps:$4 sm:$0xff]  }
 0x515   :  { %5088 = vmatprep.subr.bf16.mxu0 %v12794_v27  ;;  %v12861_v27 = vld [vmem:[%s16370_s11 + $0x390] ss:$28 sps:$4 sm:$0xff]  }
 0x517   :  { %5134 = vmatpush2.bf16.msra.mxu1 %v12789_v28  ;;  %v12864_v28 = vld [vmem:[%s16370_s11 + $0xb8] ss:$28 sps:$4 sm:$0xff]  }
 0x518   :  { %5089 = vmatpush2.bf16.msra.mxu0 %v12792_v29  ;;  %5135 = vmatprep.subr.bf16.mxu1 %v12797_v30  ;;  %v12869_v29 = vld [vmem:[%s16370_s11 + $0x6dc] ss:$28 sps:$4 sm:$0xff]   ;;  %v12872_v30 = vld [vmem:[%s16370_s11 + $0x84] ss:$28 sps:$4 sm:$0xff]  }
 0x519   :  { %5090 = vmatprep.subr.bf16.mxu0 %v12800_v31  ;;  %v12867_v31 = vld [vmem:[%s16370_s11 + $0x6d8] ss:$28 sps:$4 sm:$0xff]  }
 0x51b   :  { %5136 = vmatpush2.bf16.msra.mxu1 %v12795_v32  ;;  %v12870_v32 = vld [vmem:[%s16370_s11 + $0x80] ss:$28 sps:$4 sm:$0xff]  }
 0x51c   :  { %5091 = vmatpush2.bf16.msra.mxu0 %v12798_v33  ;;  %5137 = vmatprep.subr.bf16.mxu1 %v12803_v35  ;;  %v12875_v33 = vld [vmem:[%s16370_s11 + $0x6a4] ss:$28 sps:$4 sm:$0xff]   ;;  %v12878_v35 = vld [vmem:[%s16370_s11 + $0x4c] ss:$28 sps:$4 sm:$0xff]  }
 0x51d   :  { %5092 = vmatprep.subr.bf16.mxu0 %v12806_v36  ;;  %v12873_v36 = vld [vmem:[%s16370_s11 + $0x6a0] ss:$28 sps:$4 sm:$0xff]  }
 0x51f   :  { %5138 = vmatpush2.bf16.msra.mxu1 %v12801_v37  ;;  %v12876_v37 = vld [vmem:[%s16370_s11 + $0x48] ss:$28 sps:$4 sm:$0xff]  }
 0x520   :  { %5093 = vmatpush2.bf16.msra.mxu0 %v12804_v38  ;;  %5139 = vmatprep.subr.bf16.mxu1 %v12809_v19  ;;  %v12881_v38 = vld [vmem:[%s16370_s11 + $0x66c] ss:$28 sps:$4 sm:$0xff]   ;;  %v12884_v19 = vld [vmem:[%s16370_s11 + $0x14] ss:$28 sps:$4 sm:$0xff]  }
 0x521   :  { %5094 = vmatprep.subr.bf16.mxu0 %v12812_v40  ;;  %v12879_v40 = vld [vmem:[%s16370_s11 + $0x668] ss:$28 sps:$4 sm:$0xff]  }
 0x523   :  { %5140 = vmatpush2.bf16.msra.mxu1 %v12807_v41  ;;  %v12882_v41 = vld [vmem:[%s16370_s11 + $0x10] ss:$28 sps:$4 sm:$0xff]  }
 0x524   :  { %5095 = vmatpush2.bf16.msra.mxu0 %v12810_v20  ;;  %5141 = vmatprep.subr.bf16.mxu1 %v12815_v42  ;;  %v12887_v20 = vld [vmem:[%s16370_s11 + $0x634] ss:$28 sps:$4 sm:$0xff]   ;;  %v12890_v42 = vld [vmem:[%s16370_s11 + $0x35c] ss:$28 sps:$4 sm:$0xff]  }
 0x525   :  { %5096 = vmatprep.subr.bf16.mxu0 %v12818_v43  ;;  %v12885_v43 = vld [vmem:[%s16370_s11 + $0x630] ss:$28 sps:$4 sm:$0xff]  }
 0x527   :  { %5142 = vmatpush2.bf16.msra.mxu1 %v12813_v46  ;;  %v12888_v46 = vld [vmem:[%s16370_s11 + $0x358] ss:$28 sps:$4 sm:$0xff]  }
 0x528   :  { %5097 = vmatpush2.bf16.msra.mxu0 %v12816_v47  ;;  %5240 = vmatprep.subr.bf16.mxu1 %v12821_v48  ;;  %v12893_v47 = vld [vmem:[%s16370_s11 + $0x5fc] ss:$28 sps:$4 sm:$0xff]   ;;  %v12896_v48 = vld [vmem:[%s16370_s11 + $0x324] ss:$28 sps:$4 sm:$0xff]  }
 0x529   :  { %5098 = vmatprep.subr.bf16.mxu0 %v12824_v49  ;;  %v12891_v49 = vld [vmem:[%s16370_s11 + $0x5f8] ss:$28 sps:$4 sm:$0xff]  }
 0x52a   :  { %5144 = vmatmul.mubr.bf16.vlgmr.msra.gmra.mxu1 %v14781_v54 }
 0x52b   :  { %5241 = vmatpush1.bf16.msra.mxu1 %v12819_v50  ;;  %5272 = vmatprep.mubr.bf16.mxu1 %v14702_v2  ;;  %v12894_v50 = vld [vmem:[%s16370_s11 + $0x320] ss:$28 sps:$4 sm:$0xff]  }
 0x52c   :  { %5099 = vmatpush2.bf16.msra.mxu0 %v12822_v52  ;;  %5242 = vmatprep.subr.bf16.mxu1 %v12827_v53  ;;  %v12899_v52 = vld [vmem:[%s16370_s11 + $0x5c4] ss:$28 sps:$4 sm:$0xff]   ;;  %v12902_v53 = vld [vmem:[%s16370_s11 + $0x2ec] ss:$28 sps:$4 sm:$0xff]  }
 0x52d   :  { %5166 = vmatprep.subr.bf16.mxu0 %v12830_v55  ;;  %v12897_v55 = vld [vmem:[%s16370_s11 + $0x5c0] ss:$28 sps:$4 sm:$0xff]  }
 0x52f   :  { %5101 = vmatmul.mubr.bf16.vlgmr.msra.gmra.mxu0 %v14707_v6  ;;  %5243 = vmatpush1.bf16.msra.mxu1 %v12825_v56  ;;  %v12900_v56 = vld [vmem:[%s16370_s11 + $0x2e8] ss:$28 sps:$4 sm:$0xff]  }
 0x530   :  { %5167 = vmatpush1.bf16.msra.mxu0 %v12828_v57  ;;  %5244 = vmatprep.subr.bf16.mxu1 %v12833_v58  ;;  %v12905_v57 = vld [vmem:[%s16370_s11 + $0x58c] ss:$28 sps:$4 sm:$0xff]   ;;  %v12908_v58 = vld [vmem:[%s16370_s11 + $0x2b4] ss:$28 sps:$4 sm:$0xff]  }
 0x531   :  { %5168 = vmatprep.subr.bf16.mxu0 %v12836_v61  ;;  %5186 = vmatprep.mubr.bf16.mxu0 %v14081_v0  ;;  %v12903_v61 = vld [vmem:[%s16370_s11 + $0x588] ss:$28 sps:$4 sm:$0xff]  }
 0x533   :  { %5245 = vmatpush1.bf16.msra.mxu1 %v12831_v63  ;;  %v12906_v63 = vld [vmem:[%s16370_s11 + $0x2b0] ss:$28 sps:$4 sm:$0xff]  }
 0x534   :  { %5169 = vmatpush1.bf16.msra.mxu0 %v12834_v1  ;;  %5246 = vmatprep.subr.bf16.mxu1 %v12839_v4  ;;  %v12911_v1 = vld [vmem:[%s16370_s11 + $0x554] ss:$28 sps:$4 sm:$0xff]   ;;  %v12914_v4 = vld [vmem:[%s16370_s11 + $0x27c] ss:$28 sps:$4 sm:$0xff]  }
 0x535   :  { %5197 = vmatprep.subr.bf16.mxu0 %v12842_v7  ;;  %v12909_v7 = vld [vmem:[%s16370_s11 + $0x550] ss:$28 sps:$4 sm:$0xff]  }
 0x537   :  { %11305 = vmatmul.mubr.msk.bf16.vlgmr.msra.gmra.mxu0 %vm4849_vm5, %v14853_v39  ;;  %5247 = vmatpush1.bf16.msra.mxu1 %v12837_v8  ;;  %v12912_v8 = vld [vmem:[%s16370_s11 + $0x278] ss:$28 sps:$4 sm:$0xff]  }
 0x538   :  { %5198 = vmatpush1.bf16.msra.mxu0 %v12840_v9  ;;  %5229 = vmatprep.mubr.bf16.mxu0 %v14596_v3  ;;  %v12915_v9 = vld [vmem:[%s16370_s11 + $0x360] ss:$28 sps:$4 sm:$0xff]  }
 0x539   :  { %5248 = vmatprep.subr.bf16.mxu1 %v12845_v11  ;;  %5199 = vmatprep.subr.bf16.mxu0 %v12848_v12  ;;  %v12918_v11 = vld [vmem:[%s16370_s11 + $0x244] ss:$28 sps:$4 sm:$0xff]  }
 0x53a   :  { %v12919_v12 = vld [vmem:[%s16370_s11 + $0x1a0] ss:$28 sps:$4 sm:$0xff]  }
 0x53b   :  { %5249 = vmatpush1.bf16.msra.mxu1 %v12843_v13  ;;  %v12916_v13 = vld [vmem:[%s16370_s11 + $0x240] ss:$28 sps:$4 sm:$0xff]  }
 0x53c   :  { %5200 = vmatpush1.bf16.msra.mxu0 %v12846_v14  ;;  %5250 = vmatprep.subr.bf16.mxu1 %v12851_v15  ;;  %v12920_v14 = vld [vmem:[%s16370_s11 + $0x328] ss:$28 sps:$4 sm:$0xff]  }
 0x53d   :  { %5201 = vmatprep.subr.bf16.mxu0 %v12854_v59  ;;  %v12923_v15 = vld [vmem:[%s16370_s11 + $0x20c] ss:$28 sps:$4 sm:$0xff]  }
 0x53e   :  { %v12924_v59 = vld [vmem:[%s16370_s11 + $0x168] ss:$28 sps:$4 sm:$0xff]  }
 0x53f   :  { %5251 = vmatpush1.bf16.msra.mxu1 %v12849_v16  ;;  %v12921_v16 = vld [vmem:[%s16370_s11 + $0x208] ss:$28 sps:$4 sm:$0xff]  }
 0x540   :  { %5202 = vmatpush1.bf16.msra.mxu0 %v12852_v21  ;;  %5252 = vmatprep.subr.bf16.mxu1 %v12857_v22  ;;  %v12925_v21 = vld [vmem:[%s16370_s11 + $0x2f0] ss:$28 sps:$4 sm:$0xff]  }
 0x541   :  { %5203 = vmatprep.subr.bf16.mxu0 %v12860_v23  ;;  %v12928_v22 = vld [vmem:[%s16370_s11 + $0x1d4] ss:$28 sps:$4 sm:$0xff]  }
 0x542   :  { %v12926_v23 = vld [vmem:[%s16370_s11 + $0x1d0] ss:$28 sps:$4 sm:$0xff]  }
 0x543   :  { %5253 = vmatpush1.bf16.msra.mxu1 %v12855_v24  ;;  %v12930_v24 = vld [vmem:[%s16370_s11 + $0x2b8] ss:$28 sps:$4 sm:$0xff]  }
 0x544   :  { %5204 = vmatpush1.bf16.msra.mxu0 %v12858_v25  ;;  %5254 = vmatprep.subr.bf16.mxu1 %v12863_v34  ;;  %v12933_v25 = vld [vmem:[%s16370_s11 + $0x89c] ss:$28 sps:$4 sm:$0xff]  }
 0x545   :  { %5205 = vmatprep.subr.bf16.mxu0 %v12866_v26  ;;  %v12934_v34 = vld [vmem:[%s16370_s11 + $0xf8] ss:$28 sps:$4 sm:$0xff]  }
 0x546   :  { %v12931_v26 = vld [vmem:[%s16370_s11 + $0x898] ss:$28 sps:$4 sm:$0xff]  }
 0x547   :  { %5255 = vmatpush1.bf16.msra.mxu1 %v12861_v27  ;;  %v12935_v27 = vld [vmem:[%s16370_s11 + $0x280] ss:$28 sps:$4 sm:$0xff]  }
 0x548   :  { %5206 = vmatpush1.bf16.msra.mxu0 %v12864_v28  ;;  %5256 = vmatprep.subr.bf16.mxu1 %v12869_v29  ;;  %v12938_v28 = vld [vmem:[%s16370_s11 + $0x864] ss:$28 sps:$4 sm:$0xff]  }
 0x549   :  { %5207 = vmatprep.subr.bf16.mxu0 %v12872_v30  ;;  %v12939_v29 = vld [vmem:[%s16370_s11 + $0xc0] ss:$28 sps:$4 sm:$0xff]  }
 0x54a   :  { %v12936_v30 = vld [vmem:[%s16370_s11 + $0x860] ss:$28 sps:$4 sm:$0xff]  }
 0x54b   :  { %5257 = vmatpush2.bf16.msra.mxu1 %v12867_v31  ;;  %v12940_v31 = vld [vmem:[%s16370_s11 + $0x248] ss:$28 sps:$4 sm:$0xff]  }
 0x54c   :  { %5208 = vmatpush1.bf16.msra.mxu0 %v12870_v32  ;;  %5258 = vmatprep.subr.bf16.mxu1 %v12875_v33  ;;  %v12943_v32 = vld [vmem:[%s16370_s11 + $0x82c] ss:$28 sps:$4 sm:$0xff]  }
 0x54d   :  { %5209 = vmatprep.subr.bf16.mxu0 %v12878_v35  ;;  %v12944_v33 = vld [vmem:[%s16370_s11 + $0x88] ss:$28 sps:$4 sm:$0xff]  }
 0x54e   :  { %v12941_v35 = vld [vmem:[%s16370_s11 + $0x828] ss:$28 sps:$4 sm:$0xff]  }
 0x54f   :  { %5259 = vmatpush2.bf16.msra.mxu1 %v12873_v36  ;;  %v12945_v36 = vld [vmem:[%s16370_s11 + $0x210] ss:$28 sps:$4 sm:$0xff]  }
 0x550   :  { %5210 = vmatpush1.bf16.msra.mxu0 %v12876_v37  ;;  %5260 = vmatprep.subr.bf16.mxu1 %v12881_v38  ;;  %v12948_v37 = vld [vmem:[%s16370_s11 + $0x7f4] ss:$28 sps:$4 sm:$0xff]  }
 0x551   :  { %5211 = vmatprep.subr.bf16.mxu0 %v12884_v19  ;;  %v12949_v38 = vld [vmem:[%s16370_s11 + $0x50] ss:$28 sps:$4 sm:$0xff]  }
 0x552   :  { %v12946_v19 = vld [vmem:[%s16370_s11 + $0x7f0] ss:$28 sps:$4 sm:$0xff]  }
 0x553   :  { %5261 = vmatpush2.bf16.msra.mxu1 %v12879_v40  ;;  %v12950_v40 = vld [vmem:[%s16370_s11 + $0x1d8] ss:$28 sps:$4 sm:$0xff]  }
 0x554   :  { %5212 = vmatpush1.bf16.msra.mxu0 %v12882_v41  ;;  %5262 = vmatprep.subr.bf16.mxu1 %v12887_v20  ;;  %v12953_v41 = vld [vmem:[%s16370_s11 + $0x7bc] ss:$28 sps:$4 sm:$0xff]  }
 0x555   :  { %5213 = vmatprep.subr.bf16.mxu0 %v12890_v42  ;;  %v12954_v20 = vld [vmem:[%s16370_s11 + $0x18] ss:$28 sps:$4 sm:$0xff]  }
 0x556   :  { %v12951_v42 = vld [vmem:[%s16370_s11 + $0x7b8] ss:$28 sps:$4 sm:$0xff]  }
 0x557   :  { %5263 = vmatpush2.bf16.msra.mxu1 %v12885_v43  ;;  %v12955_v43 = vld [vmem:[%s16370_s11 + $0xa60] ss:$28 sps:$4 sm:$0xff]  }
 0x558   :  { %5214 = vmatpush2.bf16.msra.mxu0 %v12888_v46  ;;  %5264 = vmatprep.subr.bf16.mxu1 %v12893_v47  ;;  %v12958_v46 = vld [vmem:[%s16370_s11 + $0x784] ss:$28 sps:$4 sm:$0xff]  }
 0x559   :  { %5215 = vmatprep.subr.bf16.mxu0 %v12896_v48  ;;  %v12959_v47 = vld [vmem:[%s16370_s11 + $0x8a0] ss:$28 sps:$4 sm:$0xff]  }
 0x55a   :  { %v12956_v48 = vld [vmem:[%s16370_s11 + $0x780] ss:$28 sps:$4 sm:$0xff]  }
 0x55b   :  { %5265 = vmatpush2.bf16.msra.mxu1 %v12891_v49  ;;  %v12960_v49 = vld [vmem:[%s16370_s11 + $0xa28] ss:$28 sps:$4 sm:$0xff]  }
 0x55c   :  { %5216 = vmatpush2.bf16.msra.mxu0 %v12894_v50  ;;  %5266 = vmatprep.subr.bf16.mxu1 %v12899_v52  ;;  %v12963_v50 = vld [vmem:[%s16370_s11 + $0x74c] ss:$28 sps:$4 sm:$0xff]  }
 0x55d   :  { %5217 = vmatprep.subr.bf16.mxu0 %v12902_v53  ;;  %v12964_v52 = vld [vmem:[%s16370_s11 + $0x868] ss:$28 sps:$4 sm:$0xff]  }
 0x55e   :  { %v12961_v53 = vld [vmem:[%s16370_s11 + $0x748] ss:$28 sps:$4 sm:$0xff]  }
 0x55f   :  { %5267 = vmatpush2.bf16.msra.mxu1 %v12897_v55  ;;  %v12965_v55 = vld [vmem:[%s16370_s11 + $0x9f0] ss:$28 sps:$4 sm:$0xff]  }
 0x560   :  { %5218 = vmatpush2.bf16.msra.mxu0 %v12900_v56  ;;  %5268 = vmatprep.subr.bf16.mxu1 %v12905_v57  ;;  %v12966_v56 = vld [vmem:[%s16370_s11 + $0x710] ss:$28 sps:$4 sm:$0xff]   ;;  %v12970_v57 = vld [vmem:[%s16370_s11 + $0x9b8] ss:$28 sps:$4 sm:$0xff]  }
 0x561   :  { %5219 = vmatprep.subr.bf16.mxu0 %v12908_v58  ;;  %v12973_v58 = vld [vmem:[%s16370_s11 + $0xa5c] ss:$28 sps:$4 sm:$0xff]  }
 0x563   :  { %5269 = vmatpush2.bf16.msra.mxu1 %v12903_v61  ;;  %v15369_v61 = vpop.f32.mrf.mxu0 }
 0x564   :  { %5220 = vmatpush2.bf16.msra.mxu0 %v12906_v63  ;;  %5270 = vmatprep.subr.bf16.mxu1 %v12911_v1  ;;  %v12974_v63 = vld [vmem:[%s16370_s11 + $0x7f8] ss:$28 sps:$4 sm:$0xff]  }
 0x565   :  { %5221 = vmatprep.subr.bf16.mxu0 %v12914_v4  ;;  %v12971_v1 = vld [vmem:[%s16370_s11 + $0xa58] ss:$28 sps:$4 sm:$0xff]   ;;  %v12975_v4 = vld [vmem:[%s16370_s11 + $0x980] ss:$28 sps:$4 sm:$0xff]  }
 0x567   :  { %5271 = vmatpush2.bf16.msra.mxu1 %v12909_v7  ;;  %v12978_v7 = vld [vmem:[%s16370_s11 + $0xa24] ss:$28 sps:$4 sm:$0xff]  }
 0x568   :  { %5222 = vmatpush2.bf16.msra.mxu0 %v12912_v8  ;;  %11952 = vmatprep.subr.bf16.mxu1 %v12915_v9  ;;  %v4889_v8 = vpop.f32.mrf.mxu0  ;;  %v12979_v9 = vld [vmem:[%s16370_s11 + $0x7c0] ss:$28 sps:$4 sm:$0xff]  }
 0x569   :  { %5223 = vmatprep.subr.bf16.mxu0 %v12918_v11  ;;  %v12976_v11 = vld [vmem:[%s16370_s11 + $0xa20] ss:$28 sps:$4 sm:$0xff]  }
 0x56a   :  { %5273 = vmatmul.mubr.bf16.vlgmr.msra.gmra.mxu1 %v14707_v6 }
 0x56b   :  { %11953 = vmatpush3.bf16.msra.mxu1 %v12919_v12  ;;  %5401 = vmatprep.mubr.bf16.mxu1 %v14596_v3  ;;  %v12929_v3 = vld [vmem:[%s16370_s11 + $0x130] ss:$28 sps:$4 sm:$0xff]   ;;  %v12980_v12 = vld [vmem:[%s16370_s11 + $0x948] ss:$28 sps:$4 sm:$0xff]  }
 0x56c   :  { %5224 = vmatpush2.bf16.msra.mxu0 %v12916_v13  ;;  %11954 = vmatprep.subr.bf16.mxu1 %v12920_v14  ;;  %v12983_v13 = vld [vmem:[%s16370_s11 + $0x9ec] ss:$28 sps:$4 sm:$0xff]   ;;  %v15395_v14 = vpop.f32.mrf.mxu0 }
 0x56d   :  { %5225 = vmatprep.subr.bf16.mxu0 %v12923_v15  ;;  %v12984_v15 = vld [vmem:[%s16370_s11 + $0x788] ss:$28 sps:$4 sm:$0xff]  }
 0x56f   :  { %11955 = vmatpush3.bf16.msra.mxu1 %v12924_v59  ;;  %v12981_v59 = vld [vmem:[%s16370_s11 + $0x9e8] ss:$28 sps:$4 sm:$0xff]  }
 0x570   :  { %5226 = vmatpush2.bf16.msra.mxu0 %v12921_v16  ;;  %11956 = vmatprep.subr.bf16.mxu1 %v12925_v21  ;;  %v12985_v16 = vld [vmem:[%s16370_s11 + $0x910] ss:$28 sps:$4 sm:$0xff]  }
 0x571   :  { %5227 = vmatprep.subr.bf16.mxu0 %v12928_v22  ;;  %v12988_v21 = vld [vmem:[%s16370_s11 + $0x9b4] ss:$28 sps:$4 sm:$0xff]   ;;  %v4893_v22 = vpop.f32.mrf.mxu0 }
 0x573   :  { %11957 = vmatpush3.bf16.msra.mxu1 %v12929_v3  ;;  %v12989_v3 = vld [vmem:[%s16370_s11 + $0x750] ss:$28 sps:$4 sm:$0xff]  }
 0x574   :  { %5228 = vmatpush2.bf16.msra.mxu0 %v12926_v23  ;;  %11958 = vmatprep.subr.bf16.mxu1 %v12930_v24  ;;  %v12986_v23 = vld [vmem:[%s16370_s11 + $0x9b0] ss:$28 sps:$4 sm:$0xff]   ;;  %v12990_v24 = vld [vmem:[%s16370_s11 + $0x8d8] ss:$28 sps:$4 sm:$0xff]  }
 0x575   :  { %5283 = vmatprep.subr.bf16.mxu0 %v12933_v25 }
 0x577   :  { %5230 = vmatmul.mubr.bf16.vlgmr.msra.gmra.mxu0 %v14601_v5  ;;  %11959 = vmatpush3.bf16.msra.mxu1 %v12934_v34  ;;  %v12993_v34 = vld [vmem:[%s16370_s11 + $0x97c] ss:$28 sps:$4 sm:$0xff]  }
 0x578   :  { %5284 = vmatpush1.bf16.msra.mxu0 %v12931_v26  ;;  %5315 = vmatprep.mubr.bf16.mxu0 %v14773_v51  ;;  %v15423_v26 = vpop.f32.mrf.mxu1 }
 0x579   :  { %11960 = vmatprep.subr.bf16.mxu1 %v12935_v27  ;;  %5285 = vmatprep.subr.bf16.mxu0 %v12938_v28  ;;  %v12994_v27 = vld [vmem:[%s16370_s11 + $0x718] ss:$28 sps:$4 sm:$0xff]  }
 0x57a   :  { %v12991_v28 = vld [vmem:[%s16370_s11 + $0x978] ss:$28 sps:$4 sm:$0xff]  }
 0x57b   :  { %11961 = vmatpush3.bf16.msra.mxu1 %v12939_v29  ;;  %v12997_v29 = vld [vmem:[#allocation8 + $0x18c] ss:$28 sps:$4 sm:$0xff]  }
 0x57c   :  { %5286 = vmatpush1.bf16.msra.mxu0 %v12936_v30  ;;  %11962 = vmatprep.subr.bf16.mxu1 %v12940_v31  ;;  %v13000_v31 = vld [vmem:[%s16370_s11 + $0x944] ss:$28 sps:$4 sm:$0xff]  }
 0x57d   :  { %5287 = vmatprep.subr.bf16.mxu0 %v12943_v32  ;;  %v4932_v32 = vpop.f32.mrf.mxu1 }
 0x57f   :  { %11963 = vmatpush3.bf16.msra.mxu1 %v12944_v33  ;;  %v12995_v33 = vld [vmem:[#allocation8 + $0x188] ss:$28 sps:$4 sm:$0xff]  }
 0x580   :  { %5288 = vmatpush1.bf16.msra.mxu0 %v12941_v35  ;;  %11964 = vmatprep.subr.bf16.mxu1 %v12945_v36  ;;  %v12998_v35 = vld [vmem:[%s16370_s11 + $0x940] ss:$28 sps:$4 sm:$0xff]   ;;  %v13003_v36 = vld [vmem:[#allocation8 + $0x154] ss:$28 sps:$4 sm:$0xff]  }
 0x581   :  { %5289 = vmatprep.subr.bf16.mxu0 %v12948_v37  ;;  %v15440_v37 = vld [vmem:[%s16371_s12] sm:$0x7f] }
 0x583   :  { %11965 = vmatpush3.bf16.msra.mxu1 %v12949_v38 }
 0x584   :  { %5290 = vmatpush1.bf16.msra.mxu0 %v12946_v19  ;;  %11966 = vmatprep.subr.bf16.mxu1 %v12950_v40  ;;  %v13006_v19 = vld [vmem:[%s16370_s11 + $0x90c] ss:$28 sps:$4 sm:$0xff]   ;;  %v3021_v40 = vrot.slane %v15440_v37, %v14311_v60 }
 0x585   :  { %5291 = vmatprep.subr.bf16.mxu0 %v12953_v41  ;;  %v15450_v41 = vpop.f32.mrf.mxu1 }
 0x587   :  { %11967 = vmatpush3.bf16.msra.mxu1 %v12954_v20  ;;  %v13001_v20 = vld [vmem:[#allocation8 + $0x150] ss:$28 sps:$4 sm:$0xff]  }
 0x588   :  { %5292 = vmatpush1.bf16.msra.mxu0 %v12951_v42  ;;  %11996 = vmatprep.subr.bf16.mxu1 %v12955_v43  ;;  %v13004_v42 = vld [vmem:[%s16370_s11 + $0x908] ss:$28 sps:$4 sm:$0xff]   ;;  %v13009_v43 = vld [vmem:[#allocation8 + $0x11c] ss:$28 sps:$4 sm:$0xff]  }
 0x589   :  { %5293 = vmatprep.subr.bf16.mxu0 %v12958_v46 }
 0x58a   :  { %5402 = vmatmul.mubr.bf16.vlgmr.msra.gmra.mxu1 %v14601_v5  ;;  %v12968_v5 = vld [vmem:[%s16370_s11 + $0x714] ss:$28 sps:$4 sm:$0xff]  }
 0x58b   :  { %11997 = vmatpush3.bf16.msra.mxu1 %v12959_v47  ;;  %5483 = vmatprep.mubr.bf16.mxu1 %v14773_v51  ;;  %v12969_v51 = vld [vmem:[%s16370_s11 + $0x830] ss:$28 sps:$4 sm:$0xff]  }
 0x58c   :  { %5294 = vmatpush1.bf16.msra.mxu0 %v12956_v48  ;;  %11998 = vmatprep.subr.bf16.mxu1 %v12960_v49  ;;  %v13012_v47 = vld [vmem:[%s16370_s11 + $0x8d4] ss:$28 sps:$4 sm:$0xff]   ;;  %v4890_v48 = vadd.f32 %v4889_v8, %v3021_v40  ;;  %v4936_v49 = vpop.f32.mrf.mxu1 }
 0x58d   :  { %5295 = vmatprep.subr.bf16.mxu0 %v12963_v50 }
 0x58e   :  { %v15418_v25 = vpop.f32.mrf.mxu0 }
 0x58f   :  { %11999 = vmatpush3.bf16.msra.mxu1 %v12964_v52  ;;  %v13007_v52 = vld [vmem:[#allocation8 + $0x118] ss:$28 sps:$4 sm:$0xff]  }
 0x590   :  { %5296 = vmatpush1.bf16.msra.mxu0 %v12961_v53  ;;  %12000 = vmatprep.subr.bf16.mxu1 %v12965_v55  ;;  %v4975_v30 = vpop.f32.mrf.mxu0  ;;  %v4894_v53 = vadd.f32 %v4893_v22, %v3021_v40  ;;  %v4933_v55 = vadd.f32 %v4932_v32, %v4890_v48  ;;  %v13022_v22 = vld [vmem:[%s16370_s11 + $0xa90] ss:$28 sps:$4 sm:$0xff]   ;;  %v13044_v40 = vld [vmem:[%s16370_s11 + $0x478] ss:$28 sps:$4 sm:$0xff]   ;;  %v13053_v48 = vld [vmem:[%s16370_s11 + $0x5c8] ss:$28 sps:$4 sm:$0xff]  }
 0x591   :  { %5297 = vmatprep.subr.bf16.mxu0 %v12968_v5  ;;  %v13010_v5 = vld [vmem:[%s16370_s11 + $0x8d0] ss:$28 sps:$4 sm:$0xff]  }
 0x592   :  { %v15442_v38 = vpop.f32.mrf.mxu0  ;;  %v13038_v32 = vld [vmem:[%s16370_s11 + $0x670] ss:$28 sps:$4 sm:$0xff]  }
 0x593   :  { %12001 = vmatpush3.bf16.msra.mxu1 %v12969_v51  ;;  %v13015_v51 = vld [vmem:[#allocation8 + $0xe4] ss:$28 sps:$4 sm:$0xff]  }
 0x594   :  { %5298 = vmatpush1.bf16.msra.mxu0 %v12966_v56  ;;  %12002 = vmatprep.subr.bf16.mxu1 %v12970_v57  ;;  %v4979_v46 = vpop.f32.mrf.mxu0  ;;  %v13018_v57 = vld [vmem:[%s16370_s11 + $0xacc] ss:$28 sps:$4 sm:$0xff]  }
 0x595   :  { %5299 = vmatprep.subr.bf16.mxu0 %v12973_v58  ;;  %v4937_v58 = vadd.f32 %v4936_v49, %v4894_v53  ;;  %v13050_v49 = vld [vmem:[#allocation8 + $0x2d8] ss:$28 sps:$4 sm:$0xff]   ;;  %v13057_v53 = vld [vmem:[#allocation8 + $0x2a4] ss:$28 sps:$4 sm:$0xff]  }
 0x597   :  { %12003 = vmatpush3.bf16.msra.mxu1 %v12974_v63  ;;  %v4976_v63 = vadd.f32 %v4975_v30, %v4933_v55  ;;  %v13034_v30 = vld [vmem:[%s16370_s11 + $0x4e8] ss:$28 sps:$4 sm:$0xff]   ;;  %v13058_v55 = vld [vmem:[%s16370_s11 + $0x590] ss:$28 sps:$4 sm:$0xff]  }
 0x598   :  { %5300 = vmatpush2.bf16.msra.mxu0 %v12971_v1  ;;  %12004 = vmatprep.subr.bf16.mxu1 %v12975_v4  ;;  %v13013_v4 = vld [vmem:[#allocation8 + $0xe0] ss:$28 sps:$4 sm:$0xff]  }
 0x599   :  { %5301 = vmatprep.subr.bf16.mxu0 %v12978_v7  ;;  %v4980_v7 = vadd.f32 %v4979_v46, %v4937_v58  ;;  %v13049_v46 = vld [vmem:[%s16370_s11 + $0x440] ss:$28 sps:$4 sm:$0xff]   ;;  %v13060_v58 = vld [vmem:[#allocation8 + $0x268] ss:$28 sps:$4 sm:$0xff]  }
 0x59b   :  { %12005 = vmatpush3.bf16.msra.mxu1 %v12979_v9  ;;  %v13016_v9 = vld [vmem:[%s16370_s11 + $0xac8] ss:$28 sps:$4 sm:$0xff]  }
 0x59c   :  { %5302 = vmatpush2.bf16.msra.mxu0 %v12976_v11  ;;  %12006 = vmatprep.subr.bf16.mxu1 %v12980_v12  ;;  %v13021_v11 = vld [vmem:[#allocation8 + $0xac] ss:$28 sps:$4 sm:$0xff]  }
 0x59d   :  { %5303 = vmatprep.subr.bf16.mxu0 %v12983_v13  ;;  %v13024_v13 = vld [vmem:[%s16370_s11 + $0xa94] ss:$28 sps:$4 sm:$0xff]  }
 0x59f   :  { %12007 = vmatpush3.bf16.msra.mxu1 %v12984_v15 }
 0x5a0   :  { %5304 = vmatpush2.bf16.msra.mxu0 %v12981_v59  ;;  %12008 = vmatprep.subr.bf16.mxu1 %v12985_v16  ;;  %v13019_v59 = vld [vmem:[#allocation8 + $0xa8] ss:$28 sps:$4 sm:$0xff]  }
 0x5a1   :  { %5305 = vmatprep.subr.bf16.mxu0 %v12988_v21 }
 0x5a3   :  { %12009 = vmatpush3.bf16.msra.mxu1 %v12989_v3  ;;  %v13027_v3 = vld [vmem:[#allocation8 + $0x74] ss:$28 sps:$4 sm:$0xff]  }
 0x5a4   :  { %5306 = vmatpush2.bf16.msra.mxu0 %v12986_v23  ;;  %12010 = vmatprep.subr.bf16.mxu1 %v12990_v24  ;;  %v13028_v23 = vld [vmem:[%s16370_s11 + $0x6e0] ss:$28 sps:$4 sm:$0xff]  }
 0x5a5   :  { %5307 = vmatprep.subr.bf16.mxu0 %v12993_v34  ;;  %v13029_v34 = vld [vmem:[%s16370_s11 + $0x520] ss:$28 sps:$4 sm:$0xff]  }
 0x5a7   :  { %12011 = vmatpush3.bf16.msra.mxu1 %v12994_v27  ;;  %v13032_v27 = vld [vmem:[#allocation8 + $0x3c] ss:$28 sps:$4 sm:$0xff]  }
 0x5a8   :  { %5308 = vmatpush2.bf16.msra.mxu0 %v12991_v28  ;;  %7794 = vmatprep.subr.bf16.mxu1 %v12997_v29  ;;  %v13033_v28 = vld [vmem:[%s16370_s11 + $0x6a8] ss:$28 sps:$4 sm:$0xff]   ;;  %v13030_v29 = vld [vmem:[#allocation8 + $0x38] ss:$28 sps:$4 sm:$0xff]  }
 0x5a9   :  { %5309 = vmatprep.subr.bf16.mxu0 %v13000_v31  ;;  %v13037_v31 = vld [vmem:[#allocation8 + $0x4] ss:$28 sps:$4 sm:$0xff]  }
 0x5aa   :  { %5484 = vmatmul.mubr.bf16.vlgmr.msra.gmra.mxu1 %v14781_v54 }
 0x5ab   :  { %7795 = vmatpush1.bf16.msra.mxu1 %v12995_v33  ;;  %v13035_v33 = vld [vmem:[#allocation8] ss:$28 sps:$4 sm:$0xff]  }
 0x5ac   :  { %5310 = vmatpush2.bf16.msra.mxu0 %v12998_v35  ;;  %7796 = vmatprep.subr.bf16.mxu1 %v13003_v36  ;;  %v13039_v35 = vld [vmem:[%s16370_s11 + $0x4b0] ss:$28 sps:$4 sm:$0xff]   ;;  %v13043_v36 = vld [vmem:[%s16370_s11 + $0x638] ss:$28 sps:$4 sm:$0xff]  }
 0x5ad   :  { %5311 = vmatprep.subr.bf16.mxu0 %v13006_v19  ;;  %v13040_v19 = vld [vmem:[#allocation8 + $0x348] ss:$28 sps:$4 sm:$0xff]  }
 0x5af   :  { %7797 = vmatpush1.bf16.msra.mxu1 %v13001_v20  ;;  %v15458_v50 = vpop.f32.mrf.mxu0  ;;  %v13047_v20 = vld [vmem:[#allocation8 + $0x314] ss:$28 sps:$4 sm:$0xff]  }
 0x5b0   :  { %5312 = vmatpush2.bf16.msra.mxu0 %v13004_v42  ;;  %7798 = vmatprep.subr.bf16.mxu1 %v13009_v43  ;;  %v13048_v42 = vld [vmem:[%s16370_s11 + $0x600] ss:$28 sps:$4 sm:$0xff]   ;;  %v13045_v43 = vld [vmem:[#allocation8 + $0x310] ss:$28 sps:$4 sm:$0xff]  }
 0x5b1   :  { %v5018_v56 = vpop.f32.mrf.mxu0  ;;  %5313 = vmatprep.subr.bf16.mxu0 %v13012_v47  ;;  %v13052_v47 = vld [vmem:[#allocation8 + $0x2dc] ss:$28 sps:$4 sm:$0xff]  }
 0x5b2   :  { %v5019_v8 = vadd.f32 %v5018_v56, %v4976_v63  ;;  %v13062_v56 = vld [vmem:[#allocation8 + $0x26c] ss:$28 sps:$4 sm:$0xff]   ;;  %v3017_v63 = vrot.slane %v15440_v37, %v14317_v62 }
 0x5b3   :  { %7799 = vmatpush1.bf16.msra.mxu1 %v13007_v52  ;;  %v15466_v1 = vpop.f32.mrf.mxu0  ;;  %v13054_v52 = vld [vmem:[%s16370_s11 + $0x408] ss:$28 sps:$4 sm:$0xff]  }
 0x5b4   :  { %5314 = vmatpush2.bf16.msra.mxu0 %v13010_v5  ;;  %7800 = vmatprep.subr.bf16.mxu1 %v13015_v51  ;;  %v5534_v16 = vmax.f32 %v5019_v8, 0.0  ;;  %v13055_v5 = vld [vmem:[#allocation8 + $0x2a0] ss:$28 sps:$4 sm:$0xff]   ;;  %v13059_v51 = vld [vmem:[%s16370_s11 + $0x3d0] ss:$28 sps:$4 sm:$0xff]   ;;  %v4892_v8 = vadd.f32 %v15395_v14, %v3017_v63 }
 0x5b5   :  { %v5022_v12 = vpop.f32.mrf.mxu0  ;;  %5338 = vmatprep.subr.bf16.mxu0 %v13018_v57  ;;  %v13063_v57 = vld [vmem:[%s16370_s11 + $0x558] ss:$28 sps:$4 sm:$0xff]  }
 0x5b6   :  { %v5023_v15 = vadd.f32 %v5022_v12, %v4980_v7  ;;  %v13067_v7 = vld [vmem:[#allocation8 + $0x234] ss:$28 sps:$4 sm:$0xff]   ;;  %v4935_v12 = vadd.f32 %v15450_v41, %v4892_v8 }
 0x5b7   :  { %5316 = vmatmul.mubr.bf16.vlgmr.msra.gmra.mxu0 %v14781_v54  ;;  %7801 = vmatpush1.bf16.msra.mxu1 %v13013_v4  ;;  %v13025_v54 = vld [vmem:[#allocation8 + $0x70] ss:$28 sps:$4 sm:$0xff]   ;;  %v13064_v4 = vld [vmem:[%s16370_s11 + $0x398] ss:$28 sps:$4 sm:$0xff]  }
 0x5b8   :  { %v5541_v21 = vmax.f32 %v5023_v15, 0.0  ;;  %5339 = vmatpush1.bf16.msra.mxu0 %v13016_v9  ;;  %7802 = vmatprep.subr.bf16.mxu1 %v13021_v11  ;;  %v13065_v9 = vld [vmem:[#allocation8 + $0x230] ss:$28 sps:$4 sm:$0xff]   ;;  %v4888_v11 = vadd.f32 %v15369_v61, %v3017_v63  ;;  %v13071_v15 = vld [vmem:[#allocation8 + $0x1fc] ss:$28 sps:$4 sm:$0xff]   ;;  %v4978_v14 = vadd.f32 %v15442_v38, %v4935_v12 }
 0x5b9   :  { %5340 = vmatprep.subr.bf16.mxu0 %v13024_v13  ;;  %5358 = vmatprep.mubr.bf16.mxu0 %v14081_v0  ;;  %v13068_v13 = vld [vmem:[%s16370_s11 + $0xad0] ss:$28 sps:$4 sm:$0xff]   ;;  %v13069_v61 = vld [vmem:[#allocation8 + $0x1f8] ss:$28 sps:$4 sm:$0xff]  }
 0x5ba   :  { %v15482_v24 = vpack.c.bf16 %v5541_v21, %v5534_v16  ;;  %v4931_v16 = vadd.f32 %v15423_v26, %v4888_v11  ;;  %v5021_v21 = vadd.f32 %v15466_v1, %v4978_v14  ;;  %v13073_v26 = vld [vmem:[#allocation8 + $0x1c0] ss:$28 sps:$4 sm:$0xff]   ;;  %v13076_v1 = vld [vmem:[#allocation8 + $0x508] ss:$28 sps:$4 sm:$0xff]   ;;  %v13091_v12 = vld [vmem:[#allocation8 + $0x3f0] ss:$28 sps:$4 sm:$0xff]  }
 0x5bb   :  { %7803 = vmatpush1.bf16.msra.mxu1 %v13019_v59  ;;  %v14082_v59 = vmov 0.0  }
 0x5bc   :  { %5341 = vmatpush1.bf16.msra.mxu0 %v13022_v22  ;;  %7826 = vmatprep.mubr.bf16.mxu1 %v15482_v24  ;;  %v4974_v41 = vadd.f32 %v15418_v25, %v4931_v16  ;;  %v13072_v22 = vld [vmem:[%s16370_s11 + $0xa98] ss:$28 sps:$4 sm:$0xff]   ;;  %v5540_v38 = vmax.f32 %v5021_v21, 0.0  ;;  %v13139_v21 = vld [vmem:[#allocation8 + $0x770] ss:$28 sps:$4 sm:$0xff]  }
 0x5bd   :  { %7804 = vmatprep.subr.bf16.mxu1 %v13027_v3  ;;  %11974 = vmatprep.subr.bf16.mxu0 %v13028_v23  ;;  %v13075_v3 = vld [vmem:[#allocation8 + $0x1c4] ss:$28 sps:$4 sm:$0xff]   ;;  %v15550_v23 = vpop.f32.mrf.mxu1  ;;  %v13096_v16 = vld [vmem:[#allocation8 + $0x3bc] ss:$28 sps:$4 sm:$0xff]  }
 0x5be   :  { %v5017_v25 = vadd.f32 %v15458_v50, %v4974_v41  ;;  %v13079_v50 = vld [vmem:[#allocation8 + $0x4d0] ss:$28 sps:$4 sm:$0xff]  }
 0x5bf   :  { %11306 = vmatmul.mubr.msk.bf16.vlgmr.msra.gmra.mxu0 %vm4849_vm5, %v14853_v39  ;;  %7805 = vmatpush1.bf16.msra.mxu1 %v13025_v54  ;;  %v13126_v54 = vld [vmem:[#allocation8 + $0x88c] ss:$28 sps:$4 sm:$0xff]  }
 0x5c0   :  { %11975 = vmatpush3.bf16.msra.mxu0 %v13029_v34  ;;  %5442 = vmatprep.mubr.bf16.mxu0 %v14702_v2  ;;  %v13042_v2 = vld [vmem:[#allocation8 + $0x34c] ss:$28 sps:$4 sm:$0xff]   ;;  %v5061_v34 = vpop.f32.mrf.mxu1 }
 0x5c1   :  { %7806 = vmatprep.subr.bf16.mxu1 %v13032_v27  ;;  %11976 = vmatprep.subr.bf16.mxu0 %v13033_v28  ;;  %v13081_v27 = vld [vmem:[#allocation8 + $0x4d4] ss:$28 sps:$4 sm:$0xff]   ;;  %v5533_v28 = vmax.f32 %v5017_v25, 0.0  ;;  %v13144_v25 = vld [vmem:[#allocation8 + $0x73c] ss:$28 sps:$4 sm:$0xff]  }
 0x5c3   :  { %7807 = vmatpush1.bf16.msra.mxu1 %v13030_v29  ;;  %v13124_v29 = vld [vmem:[#allocation8 + $0x888] ss:$28 sps:$4 sm:$0xff]  }
 0x5c4   :  { %11977 = vmatpush3.bf16.msra.mxu0 %v13034_v30  ;;  %7808 = vmatprep.subr.bf16.mxu1 %v13037_v31  ;;  %v15558_v30 = vpack.c.bf16 %v5540_v38, %v5533_v28  ;;  %v13129_v31 = vld [vmem:[#allocation8 + $0x854] ss:$28 sps:$4 sm:$0xff]   ;;  %v13099_v38 = vld [vmem:[#allocation8 + $0x384] ss:$28 sps:$4 sm:$0xff]  }
 0x5c5   :  { %11978 = vmatprep.subr.bf16.mxu0 %v13038_v32  ;;  %v15560_v32 = vpop.f32.mrf.mxu1  ;;  %v13097_v28 = vld [vmem:[#allocation8 + $0x380] ss:$28 sps:$4 sm:$0xff]  }
 0x5c7   :  { %7809 = vmatpush1.bf16.msra.mxu1 %v13035_v33  ;;  %v13084_v33 = vld [vmem:[#allocation8 + $0x49c] ss:$28 sps:$4 sm:$0xff]  }
 0x5c8   :  { %11979 = vmatpush3.bf16.msra.mxu0 %v13039_v35  ;;  %7810 = vmatprep.subr.bf16.mxu1 %v13042_v2  ;;  %v13127_v35 = vld [vmem:[#allocation8 + $0x850] ss:$28 sps:$4 sm:$0xff]   ;;  %v13082_v2 = vld [vmem:[#allocation8 + $0x498] ss:$28 sps:$4 sm:$0xff]  }
 0x5c9   :  { %11980 = vmatprep.subr.bf16.mxu0 %v13043_v36  ;;  %v5065_v36 = vpop.f32.mrf.mxu1 }
 0x5cb   :  { %7811 = vmatpush2.bf16.msra.mxu1 %v13040_v19  ;;  %v13087_v19 = vld [vmem:[#allocation8 + $0x464] ss:$28 sps:$4 sm:$0xff]  }
 0x5cc   :  { %11981 = vmatpush3.bf16.msra.mxu0 %v13044_v40  ;;  %7812 = vmatprep.subr.bf16.mxu1 %v13047_v20 }
 0x5cd   :  { %11982 = vmatprep.subr.bf16.mxu0 %v13048_v42  ;;  %v13130_v42 = vld [vmem:[#allocation8 + $0x818] ss:$28 sps:$4 sm:$0xff]  }
 0x5cf   :  { %7813 = vmatpush2.bf16.msra.mxu1 %v13045_v43  ;;  %v3029_v43 = vrot.slane %v15440_v37, %v14340_v44 }
 0x5d0   :  { %11983 = vmatpush3.bf16.msra.mxu0 %v13049_v46  ;;  %7814 = vmatprep.subr.bf16.mxu1 %v13052_v47  ;;  %v13085_v46 = vld [vmem:[#allocation8 + $0x460] ss:$28 sps:$4 sm:$0xff]  }
 0x5d1   :  { %11984 = vmatprep.subr.bf16.mxu0 %v13053_v48  ;;  %v13135_v47 = vld [vmem:[#allocation8 + $0x7e4] ss:$28 sps:$4 sm:$0xff]   ;;  %v5066_v63 = vadd.f32 %v5065_v36, %v3029_v43 }
 0x5d2   :  { %v13148_v36 = vld [vmem:[#allocation8 + $0xa48] ss:$28 sps:$4 sm:$0xff]  }
 0x5d3   :  { %7815 = vmatpush2.bf16.msra.mxu1 %v13050_v49  ;;  %v13090_v49 = vld [vmem:[#allocation8 + $0x42c] ss:$28 sps:$4 sm:$0xff]  }
 0x5d4   :  { %11985 = vmatpush3.bf16.msra.mxu0 %v13054_v52  ;;  %7816 = vmatprep.subr.bf16.mxu1 %v13057_v53 }
 0x5d5   :  { %11986 = vmatprep.subr.bf16.mxu0 %v13058_v55  ;;  %v13133_v55 = vld [vmem:[#allocation8 + $0x7e0] ss:$28 sps:$4 sm:$0xff]  }
 0x5d7   :  { %7817 = vmatpush2.bf16.msra.mxu1 %v13055_v5  ;;  %v5062_v5 = vadd.f32 %v5061_v34, %v3029_v43  ;;  %v13108_v43 = vld [vmem:[#allocation8 + $0x65c] ss:$28 sps:$4 sm:$0xff]  }
 0x5d8   :  { %11987 = vmatpush3.bf16.msra.mxu0 %v13059_v51  ;;  %7818 = vmatprep.subr.bf16.mxu1 %v13062_v56  ;;  %v13088_v51 = vld [vmem:[#allocation8 + $0x428] ss:$28 sps:$4 sm:$0xff]  }
 0x5d9   :  { %11988 = vmatprep.subr.bf16.mxu0 %v13063_v57  ;;  %v13138_v56 = vld [vmem:[#allocation8 + $0x7ac] ss:$28 sps:$4 sm:$0xff]  }
 0x5db   :  { %7819 = vmatpush2.bf16.msra.mxu1 %v13060_v58  ;;  %v13093_v58 = vld [vmem:[#allocation8 + $0x3f4] ss:$28 sps:$4 sm:$0xff]  }
 0x5dc   :  { %11989 = vmatpush3.bf16.msra.mxu0 %v13064_v4  ;;  %7820 = vmatprep.subr.bf16.mxu1 %v13067_v7 }
 0x5dd   :  { %12090 = vmatprep.subr.bf16.mxu0 %v14082_v59 }
 0x5df   :  { %5443 = vmatmul.mubr.bf16.vlgmr.msra.gmra.mxu0 %v14707_v6  ;;  %7821 = vmatpush2.bf16.msra.mxu1 %v13065_v9  ;;  %v13078_v6 = vld [vmem:[#allocation8 + $0x50c] ss:$28 sps:$4 sm:$0xff]  }
 0x5e0   :  { %12091 = vmatpush3.bf16.msra.mxu0 %v13068_v13  ;;  %7822 = vmatprep.subr.bf16.mxu1 %v13071_v15  ;;  %v13136_v9 = vld [vmem:[#allocation8 + $0x7a8] ss:$28 sps:$4 sm:$0xff]   ;;  %v13141_v13 = vld [vmem:[#allocation8 + $0x774] ss:$28 sps:$4 sm:$0xff]  }
 0x5e1   :  { %12092 = vmatprep.subr.bf16.mxu0 %v14082_v59  ;;  %12094 = vmatprep.mubr.msk.bf16.mxu0 %vm14083_vm6, %v14082_v59 }
 0x5e3   :  { %7823 = vmatpush2.bf16.msra.mxu1 %v13069_v61 }
 0x5e4   :  { %12093 = vmatpush3.bf16.msra.mxu0 %v13072_v22  ;;  %7824 = vmatprep.subr.bf16.mxu1 %v13075_v3 }
 0x5e5   :  { %7837 = vmatprep.subr.bf16.mxu0 %v13078_v6  ;;  %v13094_v6 = vld [vmem:[#allocation8 + $0x3b8] ss:$28 sps:$4 sm:$0xff]  }
 0x5e7   :  { %12095 = vmatmul.mubr.msk.bf16.vlgmr.msra.gmra.mxu0 %vm4849_vm5, %v14853_v39  ;;  %7825 = vmatpush2.bf16.msra.mxu1 %v13073_v26  ;;  %v13132_v39 = vld [vmem:[#allocation8 + $0x81c] ss:$28 sps:$4 sm:$0xff]  }
 0x5e8   :  { %7838 = vmatpush1.bf16.msra.mxu0 %v13076_v1  ;;  %7880 = vmatprep.subr.bf16.mxu1 %v13126_v54  ;;  %v13142_v54 = vld [vmem:[#allocation8 + $0x738] ss:$28 sps:$4 sm:$0xff]  }
 0x5e9   :  { %7839 = vmatprep.subr.bf16.mxu0 %v13081_v27 }
 0x5ea   :  { %7827 = vmatmul.mubr.bf16.vlgmr.msra.gmra.mxu1 %v15558_v30  ;;  %v15563_v40 = vpop.f32.mrf.mxu1 }
 0x5eb   :  { %7881 = vmatpush1.bf16.msra.mxu1 %v13124_v29  ;;  %v13102_v29 = vld [vmem:[#allocation8 + $0x6cc] ss:$28 sps:$4 sm:$0xff]  }
 0x5ec   :  { %7840 = vmatpush1.bf16.msra.mxu0 %v13079_v50  ;;  %7882 = vmatprep.subr.bf16.mxu1 %v13129_v31  ;;  %v5147_v52 = vpop.f32.mrf.mxu1  ;;  %v13147_v50 = vld [vmem:[#allocation8 + $0x704] ss:$28 sps:$4 sm:$0xff]  }
 0x5ed   :  { %7841 = vmatprep.subr.bf16.mxu0 %v13084_v33  ;;  %v13145_v33 = vld [vmem:[#allocation8 + $0x700] ss:$28 sps:$4 sm:$0xff]  }
 0x5ee   :  { %v15571_v7 = vpop.f32.mrf.mxu1 }
 0x5ef   :  { %v15565_v20 = vpop.f32.mrf.mxu0  ;;  %7883 = vmatpush1.bf16.msra.mxu1 %v13127_v35  ;;  %v13100_v35 = vld [vmem:[#allocation8 + $0x6c8] ss:$28 sps:$4 sm:$0xff]  }
 0x5f0   :  { %7842 = vmatpush1.bf16.msra.mxu0 %v13082_v2  ;;  %7884 = vmatprep.subr.bf16.mxu1 %v13132_v39  ;;  %v5151_v61 = vpop.f32.mrf.mxu1  ;;  %v13150_v2 = vld [vmem:[#allocation8 + $0xa4c] ss:$28 sps:$4 sm:$0xff]   ;;  %v13105_v39 = vld [vmem:[#allocation8 + $0x694] ss:$28 sps:$4 sm:$0xff]  }
 0x5f1   :  { %v5104_v48 = vpop.f32.mrf.mxu0  ;;  %7843 = vmatprep.subr.bf16.mxu0 %v13087_v19  ;;  %v13103_v19 = vld [vmem:[#allocation8 + $0x690] ss:$28 sps:$4 sm:$0xff]  }
 0x5f2   :  { %v5105_v4 = vadd.f32 %v5104_v48, %v5062_v5  ;;  %v13156_v48 = vld [vmem:[#allocation8 + $0x9dc] ss:$28 sps:$4 sm:$0xff]   ;;  %v13159_v5 = vld [vmem:[#allocation8 + $0x9a4] ss:$28 sps:$4 sm:$0xff]  }
 0x5f3   :  { %v15569_v53 = vpop.f32.mrf.mxu0  ;;  %7885 = vmatpush1.bf16.msra.mxu1 %v13130_v42  ;;  %v13153_v42 = vld [vmem:[#allocation8 + $0xa14] ss:$28 sps:$4 sm:$0xff]  }
 0x5f4   :  { %7844 = vmatpush1.bf16.msra.mxu0 %v13085_v46  ;;  %7886 = vmatprep.subr.bf16.mxu1 %v13135_v47  ;;  %v5148_v14 = vadd.f32 %v5147_v52, %v5105_v4  ;;  %v13151_v46 = vld [vmem:[#allocation8 + $0xa10] ss:$28 sps:$4 sm:$0xff]   ;;  %v13106_v47 = vld [vmem:[#allocation8 + $0x658] ss:$28 sps:$4 sm:$0xff]  }
 0x5f5   :  { %v5108_v57 = vpop.f32.mrf.mxu0  ;;  %7845 = vmatprep.subr.bf16.mxu0 %v13090_v49  ;;  %v13111_v49 = vld [vmem:[#allocation8 + $0x624] ss:$28 sps:$4 sm:$0xff]   ;;  %v13154_v52 = vld [vmem:[#allocation8 + $0x9d8] ss:$28 sps:$4 sm:$0xff]  }
 0x5f6   :  { %v5109_v11 = vadd.f32 %v5108_v57, %v5066_v63  ;;  %v13157_v57 = vld [vmem:[#allocation8 + $0x9a0] ss:$28 sps:$4 sm:$0xff]   ;;  %v13162_v63 = vld [vmem:[#allocation8 + $0x96c] ss:$28 sps:$4 sm:$0xff]  }
 0x5f7   :  { %v15573_v8 = vpop.f32.mrf.mxu0  ;;  %7887 = vmatpush1.bf16.msra.mxu1 %v13133_v55  ;;  %v13109_v55 = vld [vmem:[#allocation8 + $0x620] ss:$28 sps:$4 sm:$0xff]  }
 0x5f8   :  { %7846 = vmatpush1.bf16.msra.mxu0 %v13088_v51  ;;  %7888 = vmatprep.subr.bf16.mxu1 %v13138_v56  ;;  %v5152_v3 = vadd.f32 %v5151_v61, %v5109_v11  ;;  %v13114_v51 = vld [vmem:[#allocation8 + $0x5ec] ss:$28 sps:$4 sm:$0xff]   ;;  %v3025_v56 = vrot.slane %v15440_v37, %v14343_v45  ;;  %v13120_v61 = vld [vmem:[#allocation8 + $0x57c] ss:$28 sps:$4 sm:$0xff]  }
 0x5f9   :  { %v5190_v15 = vpop.f32.mrf.mxu0  ;;  %7847 = vmatprep.subr.bf16.mxu0 %v13093_v58  ;;  %v13112_v58 = vld [vmem:[#allocation8 + $0x5e8] ss:$28 sps:$4 sm:$0xff]  }
 0x5fa   :  { %v5191_v22 = vadd.f32 %v5190_v15, %v5148_v14  ;;  %v5064_v4 = vadd.f32 %v15560_v32, %v3025_v56  ;;  %v5060_v11 = vadd.f32 %v15550_v23, %v3025_v56  ;;  %v13115_v15 = vld [vmem:[#allocation8 + $0x5b0] ss:$28 sps:$4 sm:$0xff]   ;;  %v13168_v23 = vld [vmem:[#allocation8 + $0x8fc] ss:$28 sps:$4 sm:$0xff]  }
 0x5fb   :  { %v15575_v41 = vpop.f32.mrf.mxu0  ;;  %7889 = vmatpush1.bf16.msra.mxu1 %v13136_v9  ;;  %v13117_v9 = vld [vmem:[#allocation8 + $0x5b4] ss:$28 sps:$4 sm:$0xff]  }
 0x5fc   :  { %7848 = vmatpush1.bf16.msra.mxu0 %v13091_v12  ;;  %7890 = vmatprep.subr.bf16.mxu1 %v13141_v13  ;;  %v5536_v34 = vmax.f32 %v5191_v22, 0.0  ;;  %v5107_v12 = vadd.f32 %v15569_v53, %v5064_v4  ;;  %v13160_v13 = vld [vmem:[#allocation8 + $0x968] ss:$28 sps:$4 sm:$0xff]   ;;  %v5103_v14 = vadd.f32 %v15565_v20, %v5060_v11  ;;  %v13163_v32 = vld [vmem:[#allocation8 + $0x930] ss:$28 sps:$4 sm:$0xff]  }
 0x5fd   :  { %v5194_v26 = vpop.f32.mrf.mxu0  ;;  %7849 = vmatprep.subr.bf16.mxu0 %v13096_v16  ;;  %v13165_v16 = vld [vmem:[#allocation8 + $0x934] ss:$28 sps:$4 sm:$0xff]  }
 0x5fe   :  { %v5195_v1 = vadd.f32 %v5194_v26, %v5152_v3  ;;  %v13118_v22 = vld [vmem:[#allocation8 + $0x578] ss:$28 sps:$4 sm:$0xff]   ;;  %v5146_v53 = vadd.f32 %v15563_v40, %v5103_v14  ;;  %v13121_v26 = vld [vmem:[#allocation8 + $0x540] ss:$28 sps:$4 sm:$0xff]  }
 0x5ff   :  { %7891 = vmatpush1.bf16.msra.mxu1 %v13139_v21  ;;  %v5150_v21 = vadd.f32 %v15571_v7, %v5107_v12  ;;  %v13166_v20 = vld [vmem:[#allocation8 + $0x8f8] ss:$28 sps:$4 sm:$0xff]   ;;  %v13171_v7 = vld [vmem:[#allocation8 + $0x8c4] ss:$28 sps:$4 sm:$0xff]  }
 0x600   :  { %v5543_v27 = vmax.f32 %v5195_v1, 0.0  ;;  %7850 = vmatpush1.bf16.msra.mxu0 %v13094_v6  ;;  %7892 = vmatprep.subr.bf16.mxu1 %v13144_v25  ;;  %v13123_v6 = vld [vmem:[#allocation8 + $0x544] ss:$28 sps:$4 sm:$0xff]   ;;  %v5189_v25 = vadd.f32 %v15573_v8, %v5146_v53  ;;  %v13174_v40 = vld [vmem:[#allocation8 + $0x514] ss:$28 sps:$4 sm:$0xff]  }
 0x601   :  { %7851 = vmatprep.subr.bf16.mxu0 %v13099_v38  ;;  %v5193_v3 = vadd.f32 %v15575_v41, %v5150_v21  ;;  %v13198_v8 = vld [vmem:[#allocation8 + $0xabc] ss:$28 sps:$4 sm:$0xff]  }
 0x602   :  { %v15577_v31 = vpack.c.bf16 %v5543_v27, %v5536_v34  ;;  %v5535_v1 = vmax.f32 %v5189_v25, 0.0  ;;  %v13196_v41 = vld [vmem:[#allocation8 + $0xab8] ss:$28 sps:$4 sm:$0xff]   ;;  %v13204_v27 = vld [vmem:[#allocation8 + $0xa84] ss:$28 sps:$4 sm:$0xff]  }
 0x603   :  { %7893 = vmatpush1.bf16.msra.mxu1 %v13142_v54  ;;  %v5542_v38 = vmax.f32 %v5193_v3, 0.0  ;;  %v13169_v54 = vld [vmem:[#allocation8 + $0x8c0] ss:$28 sps:$4 sm:$0xff]  }
 0x604   :  { %7852 = vmatpush1.bf16.msra.mxu0 %v13097_v28  ;;  %7869 = vmatprep.mubr.bf16.mxu0 %v15577_v31  ;;  %v13202_v28 = vld [vmem:[#allocation8 + $0xa80] ss:$28 sps:$4 sm:$0xff]  }
 0x605   :  { %7853 = vmatprep.subr.bf16.mxu0 %v13102_v29  ;;  %7894 = vmatprep.subr.bf16.mxu1 %v13147_v50  ;;  %v15590_v34 = vpack.c.bf16 %v5542_v38, %v5535_v1  ;;  %v13210_v29 = vld [vmem:[#allocation8 + $0x194] ss:$28 sps:$4 sm:$0xff]   ;;  %v13177_v1 = vld [vmem:[#allocation8 + $0x4dc] ss:$28 sps:$4 sm:$0xff]  }
 0x607   :  { %7895 = vmatpush1.bf16.msra.mxu1 %v13145_v33 }
 0x608   :  { %7854 = vmatpush2.bf16.msra.mxu0 %v13100_v35  ;;  %7896 = vmatprep.subr.bf16.mxu1 %v13150_v2 }
 0x609   :  { %7855 = vmatprep.subr.bf16.mxu0 %v13105_v39 }
 0x60b   :  { %7897 = vmatpush2.bf16.msra.mxu1 %v13148_v36 }
 0x60c   :  { %7856 = vmatpush2.bf16.msra.mxu0 %v13103_v19  ;;  %7898 = vmatprep.subr.bf16.mxu1 %v13153_v42  ;;  %v3037_v19 = vrot.slane %v15440_v37, %v14740_v17 }
 0x60d   :  { %7857 = vmatprep.subr.bf16.mxu0 %v13108_v43  ;;  %v3033_v43 = vrot.slane %v15440_v37, %v14743_v18 }
 0x60f   :  { %7899 = vmatpush2.bf16.msra.mxu1 %v13151_v46 }
 0x610   :  { %7858 = vmatpush2.bf16.msra.mxu0 %v13106_v47  ;;  %7900 = vmatprep.subr.bf16.mxu1 %v13156_v48 }
 0x611   :  { %7859 = vmatprep.subr.bf16.mxu0 %v13111_v49 }
 0x613   :  { %7901 = vmatpush2.bf16.msra.mxu1 %v13154_v52 }
 0x614   :  { %7860 = vmatpush2.bf16.msra.mxu0 %v13109_v55  ;;  %7902 = vmatprep.subr.bf16.mxu1 %v13159_v5 }
 0x615   :  { %7861 = vmatprep.subr.bf16.mxu0 %v13114_v51 }
 0x617   :  { %7903 = vmatpush2.bf16.msra.mxu1 %v13157_v57 }
 0x618   :  { %7862 = vmatpush2.bf16.msra.mxu0 %v13112_v58  ;;  %7904 = vmatprep.subr.bf16.mxu1 %v13162_v63 }
 0x619   :  { %7863 = vmatprep.subr.bf16.mxu0 %v13117_v9 }
 0x61b   :  { %7905 = vmatpush2.bf16.msra.mxu1 %v13160_v13 }
 0x61c   :  { %7864 = vmatpush2.bf16.msra.mxu0 %v13115_v15  ;;  %7906 = vmatprep.subr.bf16.mxu1 %v13165_v16 }
 0x61d   :  { %7865 = vmatprep.subr.bf16.mxu0 %v13120_v61 }
 0x61f   :  { %7907 = vmatpush2.bf16.msra.mxu1 %v13163_v32 }
 0x620   :  { %7866 = vmatpush2.bf16.msra.mxu0 %v13118_v22  ;;  %7908 = vmatprep.subr.bf16.mxu1 %v13168_v23 }
 0x621   :  { %7867 = vmatprep.subr.bf16.mxu0 %v13123_v6 }
 0x623   :  { %7909 = vmatpush2.bf16.msra.mxu1 %v13166_v20 }
 0x624   :  { %7868 = vmatpush2.bf16.msra.mxu0 %v13121_v26  ;;  %7910 = vmatprep.subr.bf16.mxu1 %v13171_v7  ;;  %v13172_v26 = vld [vmem:[#allocation8 + $0x510] ss:$28 sps:$4 sm:$0xff]  }
 0x625   :  { %7935 = vmatprep.subr.bf16.mxu0 %v13198_v8  ;;  %v13180_v8 = vld [vmem:[#allocation8 + $0x4a4] ss:$28 sps:$4 sm:$0xff]  }
 0x627   :  { %7870 = vmatmul.mubr.bf16.vlgmr.msra.gmra.mxu0 %v15590_v34  ;;  %7911 = vmatpush2.bf16.msra.mxu1 %v13169_v54  ;;  %v13175_v54 = vld [vmem:[#allocation8 + $0x4d8] ss:$28 sps:$4 sm:$0xff]  }
 0x628   :  { %8009 = vmatprep.subr.bf16.mxu1 %v13174_v40  ;;  %7955 = vmatprep.mubr.bf16.mxu0 %v14081_v0 }
 0x629   :  { %7936 = vmatpush1.bf16.msra.mxu0 %v13196_v41  ;;  %v13178_v41 = vld [vmem:[#allocation8 + $0x4a0] ss:$28 sps:$4 sm:$0xff]  }
 0x62a   :  { %7937 = vmatprep.subr.bf16.mxu0 %v13204_v27  ;;  %v5274_v2 = vpop.f32.mrf.mxu1 }
 0x62c   :  { %v5276_v42 = vpop.f32.mrf.mxu1 }
 0x62d   :  { %7938 = vmatpush1.bf16.msra.mxu0 %v13202_v28  ;;  %v13183_v28 = vld [vmem:[#allocation8 + $0x46c] ss:$28 sps:$4 sm:$0xff]  }
 0x62e   :  { %7966 = vmatprep.subr.bf16.mxu0 %v13210_v29  ;;  %v5278_v52 = vpop.f32.mrf.mxu1  ;;  %v13181_v29 = vld [vmem:[#allocation8 + $0x468] ss:$28 sps:$4 sm:$0xff]  }
 0x630   :  { %v5280_v63 = vpop.f32.mrf.mxu1 }
 0x637   :  { %v5231_v50 = vpop.f32.mrf.mxu0 }
 0x638   :  { %v5232_v55 = vadd.f32 %v5231_v50, %v3033_v43 }
 0x639   :  { %v5233_v33 = vpop.f32.mrf.mxu0 }
 0x63a   :  { %v5234_v48 = vadd.f32 %v5233_v33, %v3037_v19  ;;  %v5275_v4 = vadd.f32 %v5274_v2, %v5232_v55  ;;  %v13186_v33 = vld [vmem:[#allocation8 + $0x434] ss:$28 sps:$4 sm:$0xff]  }
 0x63b   :  { %v5235_v35 = vpop.f32.mrf.mxu0  ;;  %v13184_v2 = vld [vmem:[#allocation8 + $0x430] ss:$28 sps:$4 sm:$0xff]  }
 0x63c   :  { %v5236_v49 = vadd.f32 %v5235_v35, %v3033_v43  ;;  %v5277_v57 = vadd.f32 %v5276_v42, %v5234_v48  ;;  %v13187_v43 = vld [vmem:[#allocation8 + $0x3f8] ss:$28 sps:$4 sm:$0xff]  }
 0x63d   :  { %v5237_v39 = vpop.f32.mrf.mxu0 }
 0x63e   :  { %v5238_v51 = vadd.f32 %v5237_v39, %v3037_v19  ;;  %v5279_v58 = vadd.f32 %v5278_v52, %v5236_v49  ;;  %v13189_v39 = vld [vmem:[#allocation8 + $0x3fc] ss:$28 sps:$4 sm:$0xff]   ;;  %v3041_v19 = vrot.slane %v15440_v37, %v14820_v10 }
 0x640   :  { %v5281_v13 = vadd.f32 %v5280_v63, %v5238_v51  ;;  %v13190_v51 = vld [vmem:[#allocation8 + $0x3c0] ss:$28 sps:$4 sm:$0xff]  }
 0x64a   :  { %v11968_v7 = vpop.f32.mrf.mxu1 }
 0x64c   :  { %v11969_v40 = vpop.f32.mrf.mxu1 }
 0x64d   :  { %v11970_v42 = vadd.f32 %v11969_v40, %v11968_v7 }
 0x64e   :  { %v11971_v27 = vpop.f32.mrf.mxu1 }
 0x64f   :  { %v5404_v52 = vadd.f32 %v11970_v42, %v3041_v19  ;;  %v13231_v42 = vld [vmem:[#allocation8 + $0x5bc] ss:$28 sps:$4 sm:$0xff]  }
 0x650   :  { %v11972_v50 = vpop.f32.mrf.mxu1 }
 0x651   :  { %v11973_v55 = vadd.f32 %v11972_v50, %v11971_v27  ;;  %v13211_v27 = vld [vmem:[#allocation8 + $0x660] ss:$28 sps:$4 sm:$0xff]  }
 0x652   :  { %v13222_v50 = vld [vmem:[#allocation8 + $0x124] ss:$28 sps:$4 sm:$0xff]  }
 0x66a   :  { %v12012_v35 = vpop.f32.mrf.mxu1 }
 0x677   :  { %v5317_v36 = vpop.f32.mrf.mxu0 }
 0x678   :  { %v5318_v15 = vadd.f32 %v5317_v36, %v5275_v4  ;;  %v12013_v36 = vpop.f32.mrf.mxu1 }
 0x679   :  { %v5319_v46 = vpop.f32.mrf.mxu0 }
 0x67a   :  { %v5320_v11 = vadd.f32 %v5319_v46, %v5277_v57  ;;  %v12015_v48 = vpop.f32.mrf.mxu1  ;;  %v13195_v57 = vld [vmem:[#allocation8 + $0x38c] ss:$28 sps:$4 sm:$0xff]  }
 0x67b   :  { %v5321_v47 = vpop.f32.mrf.mxu0 }
 0x67c   :  { %v5322_v12 = vadd.f32 %v5321_v47, %v5279_v58  ;;  %v13192_v47 = vld [vmem:[#allocation8 + $0x3c4] ss:$28 sps:$4 sm:$0xff]   ;;  %v12014_v58 = vadd.f32 %v12013_v36, %v12012_v35  ;;  %v12016_v4 = vpop.f32.mrf.mxu1  ;;  %v13223_v36 = vld [vmem:[#allocation8 + $0x5f0] ss:$28 sps:$4 sm:$0xff]  }
 0x67d   :  { %v5323_v5 = vpop.f32.mrf.mxu0  ;;  %v13220_v35 = vld [vmem:[#allocation8 + $0x120] ss:$28 sps:$4 sm:$0xff]  }
 0x67e   :  { %v5324_v14 = vadd.f32 %v5323_v5, %v5281_v13  ;;  %v13193_v13 = vld [vmem:[#allocation8 + $0x388] ss:$28 sps:$4 sm:$0xff]  }
 0x67f   :  { %v5360_v56 = vpop.f32.mrf.mxu0 }
 0x680   :  { %v5361_v32 = vadd.f32 %v5360_v56, %v5318_v15 }
 0x681   :  { %v5362_v9 = vpop.f32.mrf.mxu0 }
 0x682   :  { %v5363_v61 = vadd.f32 %v5362_v9, %v5320_v11  ;;  %v5537_v25 = vmax.f32 %v5361_v32, 0.0  ;;  %v5407_v9 = vadd.f32 %v11973_v55, %v3041_v19  ;;  %v13226_v19 = vld [vmem:[#allocation8 + $0xe8] ss:$28 sps:$4 sm:$0xff]   ;;  %v13238_v55 = vld [vmem:[#allocation8 + $0x78] ss:$28 sps:$4 sm:$0xff]  }
 0x683   :  { %v5364_v16 = vpop.f32.mrf.mxu0 }
 0x684   :  { %v5365_v21 = vadd.f32 %v5364_v16, %v5322_v12  ;;  %v5538_v3 = vmax.f32 %v5363_v61, 0.0  ;;  %v13201_v16 = vld [vmem:[#allocation8 + $0x6d4] ss:$28 sps:$4 sm:$0xff]  }
 0x685   :  { %v5366_v22 = vpop.f32.mrf.mxu0 }
 0x686   :  { %v5367_v23 = vadd.f32 %v5366_v22, %v5324_v14  ;;  %v5544_v53 = vmax.f32 %v5365_v21, 0.0  ;;  %v12017_v14 = vadd.f32 %v12016_v4, %v12015_v48  ;;  %v13237_v48 = vld [vmem:[#allocation8 + $0x584] ss:$28 sps:$4 sm:$0xff]  }
 0x687   :  { %v13247_v4 = vld [vmem:[#allocation8 + $0xac0] ss:$28 sps:$4 sm:$0xff]  }
 0x688   :  { %v5545_v6 = vmax.f32 %v5367_v23, 0.0  ;;  %v15600_v38 = vpack.c.bf16 %v5544_v53, %v5537_v25  ;;  %v13199_v23 = vld [vmem:[#allocation8 + $0x6d0] ss:$28 sps:$4 sm:$0xff]  }
 0x68a   :  { %v15598_v20 = vpack.c.bf16 %v5545_v6, %v5538_v3  ;;  %v13207_v3 = vld [vmem:[#allocation8 + $0x69c] ss:$28 sps:$4 sm:$0xff]  }
 0x68c   :  { %7912 = vmatprep.mubr.bf16.mxu1 %v15598_v20 }
 0x68d   :  { %7913 = vmatmul.mubr.bf16.vlgmr.msra.gmra.mxu1 %v15600_v38 }
 0x68e   :  { %8010 = vmatpush1.bf16.msra.mxu1 %v13172_v26  ;;  %8041 = vmatprep.mubr.bf16.mxu1 %v15577_v31 }
 0x68f   :  { %8011 = vmatprep.subr.bf16.mxu1 %v13177_v1  ;;  %v13205_v1 = vld [vmem:[#allocation8 + $0x698] ss:$28 sps:$4 sm:$0xff]  }
 0x692   :  { %8012 = vmatpush1.bf16.msra.mxu1 %v13175_v54  ;;  %v13208_v54 = vld [vmem:[#allocation8 + $0x190] ss:$28 sps:$4 sm:$0xff]  }
 0x693   :  { %8013 = vmatprep.subr.bf16.mxu1 %v13180_v8  ;;  %v13213_v8 = vld [vmem:[#allocation8 + $0x664] ss:$28 sps:$4 sm:$0xff]  }
 0x696   :  { %8014 = vmatpush1.bf16.msra.mxu1 %v13178_v41  ;;  %v13216_v41 = vld [vmem:[#allocation8 + $0x15c] ss:$28 sps:$4 sm:$0xff]  }
 0x697   :  { %8015 = vmatprep.subr.bf16.mxu1 %v13183_v28  ;;  %v13214_v28 = vld [vmem:[#allocation8 + $0x158] ss:$28 sps:$4 sm:$0xff]  }
 0x69a   :  { %8016 = vmatpush1.bf16.msra.mxu1 %v13181_v29  ;;  %v13219_v29 = vld [vmem:[#allocation8 + $0x62c] ss:$28 sps:$4 sm:$0xff]  }
 0x69b   :  { %8017 = vmatprep.subr.bf16.mxu1 %v13186_v33  ;;  %v13217_v33 = vld [vmem:[#allocation8 + $0x628] ss:$28 sps:$4 sm:$0xff]  }
 0x69e   :  { %8018 = vmatpush1.bf16.msra.mxu1 %v13184_v2  ;;  %v13225_v2 = vld [vmem:[#allocation8 + $0x5f4] ss:$28 sps:$4 sm:$0xff]  }
 0x69f   :  { %v11990_v46 = vpop.f32.mrf.mxu0  ;;  %8019 = vmatprep.subr.bf16.mxu1 %v13189_v39  ;;  %v13228_v39 = vld [vmem:[#allocation8 + $0xec] ss:$28 sps:$4 sm:$0xff]  }
 0x6a1   :  { %v11991_v49 = vpop.f32.mrf.mxu0 }
 0x6a2   :  { %v11992_v5 = vadd.f32 %v11991_v49, %v11990_v46  ;;  %8020 = vmatpush1.bf16.msra.mxu1 %v13187_v43  ;;  %v13234_v43 = vld [vmem:[#allocation8 + $0xb4] ss:$28 sps:$4 sm:$0xff]   ;;  %v13240_v49 = vld [vmem:[#allocation8 + $0x7c] ss:$28 sps:$4 sm:$0xff]  }
 0x6a3   :  { %v11993_v56 = vpop.f32.mrf.mxu0  ;;  %8021 = vmatprep.subr.bf16.mxu1 %v13192_v47  ;;  %v13229_v46 = vld [vmem:[#allocation8 + $0x5b8] ss:$28 sps:$4 sm:$0xff]   ;;  %v13232_v47 = vld [vmem:[#allocation8 + $0xb0] ss:$28 sps:$4 sm:$0xff]  }
 0x6a4   :  { %v5445_v63 = vadd.f32 %v11992_v5, %v5404_v52  ;;  %v13235_v52 = vld [vmem:[#allocation8 + $0x580] ss:$28 sps:$4 sm:$0xff]   ;;  %v13243_v5 = vld [vmem:[#allocation8 + $0x54c] ss:$28 sps:$4 sm:$0xff]  }
 0x6a5   :  { %v11994_v37 = vpop.f32.mrf.mxu0 }
 0x6a6   :  { %v11995_v11 = vadd.f32 %v11994_v37, %v11993_v56  ;;  %8022 = vmatpush1.bf16.msra.mxu1 %v13190_v51  ;;  %v5486_v12 = vadd.f32 %v12014_v58, %v5445_v63  ;;  %v13246_v51 = vld [vmem:[#allocation8 + $0x44] ss:$28 sps:$4 sm:$0xff]   ;;  %v13252_v63 = vld [vmem:[#allocation8 + $0xc] ss:$28 sps:$4 sm:$0xff]  }
 0x6a7   :  { %v5526_v15 = vpop.f32.mrf.mxu0  ;;  %8023 = vmatprep.subr.bf16.mxu1 %v13195_v57  ;;  %v13241_v56 = vld [vmem:[#allocation8 + $0x548] ss:$28 sps:$4 sm:$0xff]   ;;  %v13244_v57 = vld [vmem:[#allocation8 + $0x40] ss:$28 sps:$4 sm:$0xff]  }
 0x6a8   :  { %v5448_v61 = vadd.f32 %v11995_v11, %v5407_v9  ;;  %v5527_v32 = vadd.f32 %v5526_v15, %v5486_v12  ;;  %v13249_v58 = vld [vmem:[#allocation8 + $0xac4] ss:$28 sps:$4 sm:$0xff]   ;;  %v13255_v9 = vld [vmem:[#allocation8 + $0xa8c] ss:$28 sps:$4 sm:$0xff]   ;;  %v13258_v11 = vld [vmem:[#allocation8 + $0x354] ss:$28 sps:$4 sm:$0xff]  }
 0x6a9   :  { %v12096_v21 = vpop.f32.mrf.mxu0  ;;  %v13250_v37 = vld [vmem:[#allocation8 + $0x8] ss:$28 sps:$4 sm:$0xff]   ;;  %v13261_v15 = vld [vmem:[#allocation8 + $0x19c] ss:$28 sps:$4 sm:$0xff]  }
 0x6aa   :  { %8024 = vmatpush1.bf16.msra.mxu1 %v13193_v13  ;;  %v5489_v22 = vadd.f32 %v12017_v14, %v5448_v61  ;;  %v5539_v26 = vmax.f32 %v5527_v32, 0.0  ;;  %v13253_v12 = vld [vmem:[#allocation8 + $0xa88] ss:$28 sps:$4 sm:$0xff]   ;;  %v13256_v13 = vld [vmem:[#allocation8 + $0x350] ss:$28 sps:$4 sm:$0xff]  }
 0x6ab   :  { %v5529_v53 = vpop.f32.mrf.mxu0  ;;  %8025 = vmatprep.subr.bf16.mxu1 %v13201_v16  ;;  %v13264_v16 = vld [vmem:[#allocation8 + $0x31c] ss:$28 sps:$4 sm:$0xff]   ;;  %v13267_v21 = vld [vmem:[#allocation8 + $0x164] ss:$28 sps:$4 sm:$0xff]  }
 0x6ac   :  { %v5530_v6 = vadd.f32 %v5529_v53, %v5489_v22  ;;  %v13259_v14 = vld [vmem:[#allocation8 + $0x198] ss:$28 sps:$4 sm:$0xff]   ;;  %v13270_v32 = vld [vmem:[#allocation8 + $0x2e4] ss:$28 sps:$4 sm:$0xff]   ;;  %v13273_v53 = vld [vmem:[#allocation8 + $0x12c] ss:$28 sps:$4 sm:$0xff]  }
 0x6ad   :  { %v12097_v25 = vpop.f32.mrf.mxu0  ;;  %v13262_v61 = vld [vmem:[#allocation8 + $0x318] ss:$28 sps:$4 sm:$0xff]   ;;  %v13265_v22 = vld [vmem:[#allocation8 + $0x160] ss:$28 sps:$4 sm:$0xff]  }
 0x6ae   :  { %v5546_v7 = vmax.f32 %v5530_v6, 0.0  ;;  %8026 = vmatpush2.bf16.msra.mxu1 %v13199_v23  ;;  %v13268_v23 = vld [vmem:[#allocation8 + $0x2e0] ss:$28 sps:$4 sm:$0xff]   ;;  %v13271_v6 = vld [vmem:[#allocation8 + $0x128] ss:$28 sps:$4 sm:$0xff]  }
 0x6af   :  { %8027 = vmatprep.subr.bf16.mxu1 %v13207_v3  ;;  %v13276_v3 = vld [vmem:[#allocation8 + $0x2ac] ss:$28 sps:$4 sm:$0xff]  }
 0x6b0   :  { %v15607_v40 = vpack.c.bf16 %v5546_v7, %v5539_v26  ;;  %v13274_v25 = vld [vmem:[#allocation8 + $0x2a8] ss:$28 sps:$4 sm:$0xff]   ;;  %v13279_v26 = vld [vmem:[#allocation8 + $0xf4] ss:$28 sps:$4 sm:$0xff]  }
 0x6b1   :  { %v13282_v7 = vld [vmem:[#allocation8 + $0x274] ss:$28 sps:$4 sm:$0xff]  }
 0x6b2   :  { %8028 = vmatpush2.bf16.msra.mxu1 %v13205_v1  ;;  %11658 = vmatmul.mubr.msk.bf16.vlgmr.msra.gmra.mxu0 %vm4849_vm5, %v15607_v40  ;;  %v13277_v1 = vld [vmem:[#allocation8 + $0xf0] ss:$28 sps:$4 sm:$0xff]  }
 0x6b3   :  { %7967 = vmatpush1.bf16.msra.mxu0 %v13208_v54  ;;  %7998 = vmatprep.mubr.bf16.mxu0 %v15482_v24  ;;  %v15620_v54 = vld [vmem:[%s16373_s14] sm:$0x7f] }
 0x6b4   :  { %8029 = vmatprep.subr.bf16.mxu1 %v13213_v8  ;;  %7968 = vmatprep.subr.bf16.mxu0 %v13216_v41  ;;  %v7828_v8 = vpop.f32.mrf.mxu1  ;;  %v13280_v41 = vld [vmem:[#allocation8 + $0x270] ss:$28 sps:$4 sm:$0xff]  }
 0x6b6   :  { %8030 = vmatpush2.bf16.msra.mxu1 %v13211_v27  ;;  %v13285_v27 = vld [vmem:[#allocation8 + $0xbc] ss:$28 sps:$4 sm:$0xff]  }
 0x6b7   :  { %7969 = vmatpush1.bf16.msra.mxu0 %v13214_v28  ;;  %8031 = vmatprep.subr.bf16.mxu1 %v13219_v29  ;;  %v13288_v28 = vld [vmem:[#allocation8 + $0x23c] ss:$28 sps:$4 sm:$0xff]   ;;  %v5959_v29 = vrot.slane %v15620_v54, %v14317_v62 }
 0x6b8   :  { %7970 = vmatprep.subr.bf16.mxu0 %v13222_v50  ;;  %v13283_v50 = vld [vmem:[#allocation8 + $0xb8] ss:$28 sps:$4 sm:$0xff]  }
 0x6ba   :  { %8032 = vmatpush2.bf16.msra.mxu1 %v13217_v33  ;;  %v15624_v33 = vpop.f32.mrf.mxu1 }
 0x6bb   :  { %7971 = vmatpush1.bf16.msra.mxu0 %v13220_v35  ;;  %8033 = vmatprep.subr.bf16.mxu1 %v13225_v2  ;;  %v13286_v35 = vld [vmem:[#allocation8 + $0x238] ss:$28 sps:$4 sm:$0xff]   ;;  %v13291_v2 = vld [vmem:[#allocation8 + $0x84] ss:$28 sps:$4 sm:$0xff]  }
 0x6bc   :  { %7972 = vmatprep.subr.bf16.mxu0 %v13228_v39  ;;  %v13294_v39 = vld [vmem:[#allocation8 + $0x204] ss:$28 sps:$4 sm:$0xff]  }
 0x6be   :  { %8034 = vmatpush2.bf16.msra.mxu1 %v13223_v36  ;;  %v7829_v36 = vadd.f32 %v7828_v8, %v5959_v29  ;;  %v13334_v8 = vld [vmem:[#allocation8 + $0x778] ss:$28 sps:$4 sm:$0xff]  }
 0x6bf   :  { %7973 = vmatpush1.bf16.msra.mxu0 %v13226_v19  ;;  %8035 = vmatprep.subr.bf16.mxu1 %v13231_v42  ;;  %v13289_v19 = vld [vmem:[#allocation8 + $0x80] ss:$28 sps:$4 sm:$0xff]   ;;  %v7832_v42 = vpop.f32.mrf.mxu1 }
 0x6c0   :  { %7974 = vmatprep.subr.bf16.mxu0 %v13234_v43 }
 0x6c2   :  { %8036 = vmatpush2.bf16.msra.mxu1 %v13229_v46  ;;  %v13292_v46 = vld [vmem:[#allocation8 + $0x200] ss:$28 sps:$4 sm:$0xff]  }
 0x6c3   :  { %7975 = vmatpush1.bf16.msra.mxu0 %v13232_v47  ;;  %8037 = vmatprep.subr.bf16.mxu1 %v13237_v48  ;;  %v13297_v47 = vld [vmem:[#allocation8 + $0x4c] ss:$28 sps:$4 sm:$0xff]  }
 0x6c4   :  { %7976 = vmatprep.subr.bf16.mxu0 %v13240_v49  ;;  %v13300_v49 = vld [vmem:[#allocation8 + $0x1cc] ss:$28 sps:$4 sm:$0xff]  }
 0x6c6   :  { %8038 = vmatpush2.bf16.msra.mxu1 %v13235_v52 }
 0x6c7   :  { %7977 = vmatpush1.bf16.msra.mxu0 %v13238_v55  ;;  %8039 = vmatprep.subr.bf16.mxu1 %v13243_v5  ;;  %v7833_v55 = vadd.f32 %v7832_v42, %v5959_v29  ;;  %v13295_v5 = vld [vmem:[#allocation8 + $0x48] ss:$28 sps:$4 sm:$0xff]   ;;  %v13340_v29 = vld [vmem:[#allocation8 + $0x740] ss:$28 sps:$4 sm:$0xff]   ;;  %v13349_v42 = vld [vmem:[#allocation8 + $0x1d0] ss:$28 sps:$4 sm:$0xff]  }
 0x6c8   :  { %7978 = vmatprep.subr.bf16.mxu0 %v13246_v51 }
 0x6ca   :  { %8040 = vmatpush2.bf16.msra.mxu1 %v13241_v56  ;;  %v13298_v56 = vld [vmem:[#allocation8 + $0x1c8] ss:$28 sps:$4 sm:$0xff]  }
 0x6cb   :  { %7979 = vmatpush1.bf16.msra.mxu0 %v13244_v57  ;;  %8107 = vmatprep.subr.bf16.mxu1 %v13249_v58  ;;  %v13303_v57 = vld [vmem:[#allocation8 + $0x14] ss:$28 sps:$4 sm:$0xff]  }
 0x6cc   :  { %7980 = vmatprep.subr.bf16.mxu0 %v13252_v63  ;;  %v13306_v63 = vld [vmem:[#allocation8 + $0x894] ss:$28 sps:$4 sm:$0xff]  }
 0x6cd   :  { %8042 = vmatmul.mubr.bf16.vlgmr.msra.gmra.mxu1 %v15590_v34 }
 0x6ce   :  { %8108 = vmatpush1.bf16.msra.mxu1 %v13247_v4  ;;  %8127 = vmatprep.mubr.bf16.mxu1 %v14081_v0  ;;  %v13301_v4 = vld [vmem:[#allocation8 + $0x10] ss:$28 sps:$4 sm:$0xff]  }
 0x6cf   :  { %7981 = vmatpush1.bf16.msra.mxu0 %v13250_v37  ;;  %8109 = vmatprep.subr.bf16.mxu1 %v13255_v9  ;;  %v13304_v37 = vld [vmem:[#allocation8 + $0x890] ss:$28 sps:$4 sm:$0xff]   ;;  %v13309_v9 = vld [vmem:[#allocation8 + $0x35c] ss:$28 sps:$4 sm:$0xff]  }
 0x6d0   :  { %7982 = vmatprep.subr.bf16.mxu0 %v13258_v11  ;;  %v13312_v11 = vld [vmem:[#allocation8 + $0x85c] ss:$28 sps:$4 sm:$0xff]  }
 0x6d2   :  { %8110 = vmatpush1.bf16.msra.mxu1 %v13253_v12  ;;  %v13307_v12 = vld [vmem:[#allocation8 + $0x358] ss:$28 sps:$4 sm:$0xff]  }
 0x6d3   :  { %7983 = vmatpush2.bf16.msra.mxu0 %v13256_v13  ;;  %8138 = vmatprep.subr.bf16.mxu1 %v13261_v15  ;;  %v13310_v13 = vld [vmem:[#allocation8 + $0x858] ss:$28 sps:$4 sm:$0xff]   ;;  %v13315_v15 = vld [vmem:[#allocation8 + $0x324] ss:$28 sps:$4 sm:$0xff]  }
 0x6d4   :  { %7984 = vmatprep.subr.bf16.mxu0 %v13264_v16  ;;  %v13318_v16 = vld [vmem:[#allocation8 + $0x824] ss:$28 sps:$4 sm:$0xff]  }
 0x6d5   :  { %11659 = vmatmul.mubr.msk.bf16.vlgmr.msra.gmra.mxu1 %vm4849_vm5, %v15607_v40 }
 0x6d6   :  { %8139 = vmatpush1.bf16.msra.mxu1 %v13259_v14  ;;  %8170 = vmatprep.mubr.bf16.mxu1 %v15482_v24  ;;  %v13313_v14 = vld [vmem:[#allocation8 + $0x320] ss:$28 sps:$4 sm:$0xff]  }
 0x6d7   :  { %7985 = vmatpush2.bf16.msra.mxu0 %v13262_v61  ;;  %8140 = vmatprep.subr.bf16.mxu1 %v13267_v21  ;;  %v13316_v61 = vld [vmem:[#allocation8 + $0x820] ss:$28 sps:$4 sm:$0xff]   ;;  %v13321_v21 = vld [vmem:[#allocation8 + $0x2ec] ss:$28 sps:$4 sm:$0xff]  }
 0x6d8   :  { %7986 = vmatprep.subr.bf16.mxu0 %v13270_v32  ;;  %v13324_v32 = vld [vmem:[#allocation8 + $0x7ec] ss:$28 sps:$4 sm:$0xff]  }
 0x6da   :  { %8141 = vmatpush1.bf16.msra.mxu1 %v13265_v22  ;;  %v13319_v22 = vld [vmem:[#allocation8 + $0x2e8] ss:$28 sps:$4 sm:$0xff]  }
 0x6db   :  { %7987 = vmatpush2.bf16.msra.mxu0 %v13268_v23  ;;  %8142 = vmatprep.subr.bf16.mxu1 %v13273_v53  ;;  %v13322_v23 = vld [vmem:[#allocation8 + $0x7e8] ss:$28 sps:$4 sm:$0xff]   ;;  %v13327_v53 = vld [vmem:[#allocation8 + $0x2b4] ss:$28 sps:$4 sm:$0xff]  }
 0x6dc   :  { %7988 = vmatprep.subr.bf16.mxu0 %v13276_v3  ;;  %v13330_v3 = vld [vmem:[#allocation8 + $0x7b4] ss:$28 sps:$4 sm:$0xff]  }
 0x6de   :  { %8143 = vmatpush1.bf16.msra.mxu1 %v13271_v6  ;;  %v13325_v6 = vld [vmem:[#allocation8 + $0x2b0] ss:$28 sps:$4 sm:$0xff]  }
 0x6df   :  { %7989 = vmatpush2.bf16.msra.mxu0 %v13274_v25  ;;  %8144 = vmatprep.subr.bf16.mxu1 %v13279_v26  ;;  %v13328_v25 = vld [vmem:[#allocation8 + $0x7b0] ss:$28 sps:$4 sm:$0xff]   ;;  %v13333_v26 = vld [vmem:[#allocation8 + $0x27c] ss:$28 sps:$4 sm:$0xff]  }
 0x6e0   :  { %7990 = vmatprep.subr.bf16.mxu0 %v13282_v7  ;;  %v13336_v7 = vld [vmem:[#allocation8 + $0x77c] ss:$28 sps:$4 sm:$0xff]  }
 0x6e2   :  { %8145 = vmatpush1.bf16.msra.mxu1 %v13277_v1  ;;  %v13331_v1 = vld [vmem:[#allocation8 + $0x278] ss:$28 sps:$4 sm:$0xff]  }
 0x6e3   :  { %7991 = vmatpush2.bf16.msra.mxu0 %v13280_v41  ;;  %8146 = vmatprep.subr.bf16.mxu1 %v13285_v27  ;;  %v13339_v41 = vld [vmem:[#allocation8 + $0x244] ss:$28 sps:$4 sm:$0xff]  }
 0x6e4   :  { %7992 = vmatprep.subr.bf16.mxu0 %v13288_v28  ;;  %v13342_v27 = vld [vmem:[#allocation8 + $0x744] ss:$28 sps:$4 sm:$0xff]  }
 0x6e5   :  { %v13337_v28 = vld [vmem:[#allocation8 + $0x240] ss:$28 sps:$4 sm:$0xff]  }
 0x6e6   :  { %8147 = vmatpush1.bf16.msra.mxu1 %v13283_v50  ;;  %v13345_v50 = vld [vmem:[#allocation8 + $0x20c] ss:$28 sps:$4 sm:$0xff]  }
 0x6e7   :  { %7993 = vmatpush2.bf16.msra.mxu0 %v13286_v35  ;;  %v7871_v43 = vpop.f32.mrf.mxu0  ;;  %8148 = vmatprep.subr.bf16.mxu1 %v13291_v2  ;;  %v13348_v35 = vld [vmem:[#allocation8 + $0x70c] ss:$28 sps:$4 sm:$0xff]  }
 0x6e8   :  { %v15626_v48 = vadd.f32 %v7871_v43, %v7829_v36  ;;  %7994 = vmatprep.subr.bf16.mxu0 %v13294_v39  ;;  %v13343_v2 = vld [vmem:[#allocation8 + $0x208] ss:$28 sps:$4 sm:$0xff]   ;;  %v13351_v36 = vld [vmem:[#allocation8 + $0x1d4] ss:$28 sps:$4 sm:$0xff]  }
 0x6e9   :  { %v15628_v52 = vpop.f32.mrf.mxu0  ;;  %v13346_v39 = vld [vmem:[#allocation8 + $0x708] ss:$28 sps:$4 sm:$0xff]   ;;  %v13352_v43 = vld [vmem:[#allocation8 + $0xa50] ss:$28 sps:$4 sm:$0xff]  }
 0x6ea   :  { %8149 = vmatpush1.bf16.msra.mxu1 %v13289_v19  ;;  %v13354_v19 = vld [vmem:[#allocation8 + $0xa54] ss:$28 sps:$4 sm:$0xff]  }
 0x6eb   :  { %7995 = vmatpush2.bf16.msra.mxu0 %v13292_v46  ;;  %v7875_v51 = vpop.f32.mrf.mxu0  ;;  %8150 = vmatprep.subr.bf16.mxu1 %v13297_v47  ;;  %v13357_v46 = vld [vmem:[#allocation8 + $0x89c] ss:$28 sps:$4 sm:$0xff]  }
 0x6ec   :  { %v15630_v58 = vadd.f32 %v7875_v51, %v7833_v55  ;;  %7996 = vmatprep.subr.bf16.mxu0 %v13300_v49  ;;  %v13360_v47 = vld [vmem:[#allocation8 + $0xa1c] ss:$28 sps:$4 sm:$0xff]   ;;  %v13366_v51 = vld [vmem:[#allocation8 + $0x9e4] ss:$28 sps:$4 sm:$0xff]  }
 0x6ed   :  { %v13355_v49 = vld [vmem:[#allocation8 + $0x898] ss:$28 sps:$4 sm:$0xff]  }
 0x6ee   :  { %8151 = vmatpush1.bf16.msra.mxu1 %v13295_v5  ;;  %v13358_v55 = vld [vmem:[#allocation8 + $0xa18] ss:$28 sps:$4 sm:$0xff]   ;;  %v13363_v5 = vld [vmem:[#allocation8 + $0x864] ss:$28 sps:$4 sm:$0xff]  }
 0x6ef   :  { %7997 = vmatpush2.bf16.msra.mxu0 %v13298_v56  ;;  %8152 = vmatprep.subr.bf16.mxu1 %v13303_v57  ;;  %v13361_v56 = vld [vmem:[#allocation8 + $0x860] ss:$28 sps:$4 sm:$0xff]  }
 0x6f0   :  { %8052 = vmatprep.subr.bf16.mxu0 %v13306_v63  ;;  %v13364_v57 = vld [vmem:[#allocation8 + $0x9e0] ss:$28 sps:$4 sm:$0xff]   ;;  %v13369_v63 = vld [vmem:[#allocation8 + $0x82c] ss:$28 sps:$4 sm:$0xff]  }
 0x6f2   :  { %7999 = vmatmul.mubr.bf16.vlgmr.msra.gmra.mxu0 %v15558_v30  ;;  %8153 = vmatpush1.bf16.msra.mxu1 %v13301_v4  ;;  %v13372_v4 = vld [vmem:[#allocation8 + $0x9ac] ss:$28 sps:$4 sm:$0xff]  }
 0x6f3   :  { %8053 = vmatpush1.bf16.msra.mxu0 %v13304_v37  ;;  %8084 = vmatprep.mubr.bf16.mxu0 %v15598_v20  ;;  %v13367_v37 = vld [vmem:[#allocation8 + $0x828] ss:$28 sps:$4 sm:$0xff]  }
 0x6f4   :  { %8154 = vmatprep.subr.bf16.mxu1 %v13309_v9  ;;  %8054 = vmatprep.subr.bf16.mxu0 %v13312_v11  ;;  %v13370_v9 = vld [vmem:[#allocation8 + $0x9a8] ss:$28 sps:$4 sm:$0xff]   ;;  %v13375_v11 = vld [vmem:[#allocation8 + $0x7f4] ss:$28 sps:$4 sm:$0xff]  }
 0x6f6   :  { %8155 = vmatpush2.bf16.msra.mxu1 %v13307_v12  ;;  %v13378_v12 = vld [vmem:[#allocation8 + $0x974] ss:$28 sps:$4 sm:$0xff]  }
 0x6f7   :  { %8055 = vmatpush1.bf16.msra.mxu0 %v13310_v13  ;;  %8156 = vmatprep.subr.bf16.mxu1 %v13315_v15  ;;  %v13373_v13 = vld [vmem:[#allocation8 + $0x7f0] ss:$28 sps:$4 sm:$0xff]  }
 0x6f8   :  { %8056 = vmatprep.subr.bf16.mxu0 %v13318_v16  ;;  %v13376_v15 = vld [vmem:[#allocation8 + $0x970] ss:$28 sps:$4 sm:$0xff]   ;;  %v13381_v16 = vld [vmem:[#allocation8 + $0x7bc] ss:$28 sps:$4 sm:$0xff]  }
 0x6fa   :  { %8157 = vmatpush2.bf16.msra.mxu1 %v13313_v14  ;;  %v13384_v14 = vld [vmem:[#allocation8 + $0x93c] ss:$28 sps:$4 sm:$0xff]  }
 0x6fb   :  { %8057 = vmatpush1.bf16.msra.mxu0 %v13316_v61  ;;  %8158 = vmatprep.subr.bf16.mxu1 %v13321_v21  ;;  %v13379_v61 = vld [vmem:[#allocation8 + $0x7b8] ss:$28 sps:$4 sm:$0xff]  }
 0x6fc   :  { %8058 = vmatprep.subr.bf16.mxu0 %v13324_v32  ;;  %v13382_v21 = vld [vmem:[#allocation8 + $0x938] ss:$28 sps:$4 sm:$0xff]   ;;  %v13387_v32 = vld [vmem:[#allocation8 + $0x784] ss:$28 sps:$4 sm:$0xff]  }
 0x6fe   :  { %8159 = vmatpush2.bf16.msra.mxu1 %v13319_v22  ;;  %v13390_v22 = vld [vmem:[#allocation8 + $0x904] ss:$28 sps:$4 sm:$0xff]  }
 0x6ff   :  { %8059 = vmatpush1.bf16.msra.mxu0 %v13322_v23  ;;  %8160 = vmatprep.subr.bf16.mxu1 %v13327_v53  ;;  %v13385_v23 = vld [vmem:[#allocation8 + $0x780] ss:$28 sps:$4 sm:$0xff]  }
 0x700   :  { %8060 = vmatprep.subr.bf16.mxu0 %v13330_v3  ;;  %v13388_v53 = vld [vmem:[#allocation8 + $0x900] ss:$28 sps:$4 sm:$0xff]   ;;  %v13393_v3 = vld [vmem:[#allocation8 + $0x74c] ss:$28 sps:$4 sm:$0xff]  }
 0x702   :  { %8161 = vmatpush2.bf16.msra.mxu1 %v13325_v6  ;;  %v13396_v6 = vld [vmem:[#allocation8 + $0x8cc] ss:$28 sps:$4 sm:$0xff]  }
 0x703   :  { %8061 = vmatpush1.bf16.msra.mxu0 %v13328_v25  ;;  %8162 = vmatprep.subr.bf16.mxu1 %v13333_v26  ;;  %v13391_v25 = vld [vmem:[#allocation8 + $0x748] ss:$28 sps:$4 sm:$0xff]  }
 0x704   :  { %8062 = vmatprep.subr.bf16.mxu0 %v13336_v7  ;;  %v13394_v26 = vld [vmem:[#allocation8 + $0x8c8] ss:$28 sps:$4 sm:$0xff]   ;;  %v13399_v7 = vld [vmem:[#allocation8 + $0x714] ss:$28 sps:$4 sm:$0xff]  }
 0x706   :  { %8163 = vmatpush2.bf16.msra.mxu1 %v13331_v1  ;;  %v13402_v1 = vld [vmem:[#allocation8 + $0x51c] ss:$28 sps:$4 sm:$0xff]  }
 0x707   :  { %8063 = vmatpush1.bf16.msra.mxu0 %v13334_v8  ;;  %8164 = vmatprep.subr.bf16.mxu1 %v13339_v41  ;;  %v13397_v8 = vld [vmem:[#allocation8 + $0x710] ss:$28 sps:$4 sm:$0xff]   ;;  %v13400_v41 = vld [vmem:[#allocation8 + $0x518] ss:$28 sps:$4 sm:$0xff]  }
 0x708   :  { %8064 = vmatprep.subr.bf16.mxu0 %v13342_v27  ;;  %v13405_v27 = vld [vmem:[#allocation8 + $0xa5c] ss:$28 sps:$4 sm:$0xff]  }
 0x70a   :  { %8165 = vmatpush2.bf16.msra.mxu1 %v13337_v28  ;;  %v13408_v28 = vld [vmem:[#allocation8 + $0x4e4] ss:$28 sps:$4 sm:$0xff]  }
 0x70b   :  { %8065 = vmatpush1.bf16.msra.mxu0 %v13340_v29  ;;  %8166 = vmatprep.subr.bf16.mxu1 %v13345_v50  ;;  %v13403_v29 = vld [vmem:[#allocation8 + $0xa58] ss:$28 sps:$4 sm:$0xff]   ;;  %v13406_v50 = vld [vmem:[#allocation8 + $0x4e0] ss:$28 sps:$4 sm:$0xff]  }
 0x70c   :  { %8066 = vmatprep.subr.bf16.mxu0 %v13348_v35  ;;  %v13411_v35 = vld [vmem:[#allocation8 + $0xa24] ss:$28 sps:$4 sm:$0xff]  }
 0x70e   :  { %8167 = vmatpush2.bf16.msra.mxu1 %v13343_v2  ;;  %v13414_v2 = vld [vmem:[#allocation8 + $0x4ac] ss:$28 sps:$4 sm:$0xff]  }
 0x70f   :  { %8067 = vmatpush1.bf16.msra.mxu0 %v13346_v39  ;;  %8168 = vmatprep.subr.bf16.mxu1 %v13351_v36  ;;  %v13409_v39 = vld [vmem:[#allocation8 + $0xa20] ss:$28 sps:$4 sm:$0xff]   ;;  %v13412_v36 = vld [vmem:[#allocation8 + $0x4a8] ss:$28 sps:$4 sm:$0xff]  }
 0x710   :  { %8068 = vmatprep.subr.bf16.mxu0 %v13354_v19  ;;  %v13417_v19 = vld [vmem:[#allocation8 + $0x9ec] ss:$28 sps:$4 sm:$0xff]  }
 0x712   :  { %8169 = vmatpush2.bf16.msra.mxu1 %v13349_v42  ;;  %v13420_v42 = vld [vmem:[#allocation8 + $0x474] ss:$28 sps:$4 sm:$0xff]  }
 0x713   :  { %8069 = vmatpush2.bf16.msra.mxu0 %v13352_v43  ;;  %8224 = vmatprep.subr.bf16.mxu1 %v13357_v46  ;;  %v13415_v43 = vld [vmem:[#allocation8 + $0x9e8] ss:$28 sps:$4 sm:$0xff]   ;;  %v13418_v46 = vld [vmem:[#allocation8 + $0x470] ss:$28 sps:$4 sm:$0xff]  }
 0x714   :  { %8070 = vmatprep.subr.bf16.mxu0 %v13360_v47  ;;  %v13423_v47 = vld [vmem:[#allocation8 + $0x9b4] ss:$28 sps:$4 sm:$0xff]  }
 0x715   :  { %8171 = vmatmul.mubr.bf16.vlgmr.msra.gmra.mxu1 %v15558_v30 }
 0x716   :  { %8225 = vmatpush1.bf16.msra.mxu1 %v13355_v49  ;;  %8256 = vmatprep.mubr.bf16.mxu1 %v15598_v20  ;;  %v13426_v49 = vld [vmem:[#allocation8 + $0x43c] ss:$28 sps:$4 sm:$0xff]  }
 0x717   :  { %8071 = vmatpush2.bf16.msra.mxu0 %v13358_v55  ;;  %8226 = vmatprep.subr.bf16.mxu1 %v13363_v5  ;;  %v13421_v55 = vld [vmem:[#allocation8 + $0x9b0] ss:$28 sps:$4 sm:$0xff]   ;;  %v13424_v5 = vld [vmem:[#allocation8 + $0x438] ss:$28 sps:$4 sm:$0xff]  }
 0x718   :  { %8072 = vmatprep.subr.bf16.mxu0 %v13366_v51  ;;  %v13429_v51 = vld [vmem:[#allocation8 + $0x97c] ss:$28 sps:$4 sm:$0xff]  }
 0x71a   :  { %8227 = vmatpush1.bf16.msra.mxu1 %v13361_v56  ;;  %v13432_v56 = vld [vmem:[#allocation8 + $0x404] ss:$28 sps:$4 sm:$0xff]  }
 0x71b   :  { %8073 = vmatpush2.bf16.msra.mxu0 %v13364_v57  ;;  %8228 = vmatprep.subr.bf16.mxu1 %v13369_v63  ;;  %v13427_v57 = vld [vmem:[#allocation8 + $0x978] ss:$28 sps:$4 sm:$0xff]   ;;  %v13430_v63 = vld [vmem:[#allocation8 + $0x400] ss:$28 sps:$4 sm:$0xff]  }
 0x71c   :  { %8074 = vmatprep.subr.bf16.mxu0 %v13372_v4  ;;  %v13435_v4 = vld [vmem:[#allocation8 + $0x944] ss:$28 sps:$4 sm:$0xff]  }
 0x71e   :  { %8229 = vmatpush1.bf16.msra.mxu1 %v13367_v37  ;;  %v13438_v37 = vld [vmem:[#allocation8 + $0x3cc] ss:$28 sps:$4 sm:$0xff]  }
 0x71f   :  { %8075 = vmatpush2.bf16.msra.mxu0 %v13370_v9  ;;  %8230 = vmatprep.subr.bf16.mxu1 %v13375_v11  ;;  %v13433_v9 = vld [vmem:[#allocation8 + $0x940] ss:$28 sps:$4 sm:$0xff]   ;;  %v13436_v11 = vld [vmem:[#allocation8 + $0x3c8] ss:$28 sps:$4 sm:$0xff]  }
 0x720   :  { %8076 = vmatprep.subr.bf16.mxu0 %v13378_v12  ;;  %v13441_v12 = vld [vmem:[#allocation8 + $0x90c] ss:$28 sps:$4 sm:$0xff]  }
 0x722   :  { %8231 = vmatpush1.bf16.msra.mxu1 %v13373_v13  ;;  %v13444_v13 = vld [vmem:[#allocation8 + $0x394] ss:$28 sps:$4 sm:$0xff]  }
 0x723   :  { %8077 = vmatpush2.bf16.msra.mxu0 %v13376_v15  ;;  %8232 = vmatprep.subr.bf16.mxu1 %v13381_v16  ;;  %v13439_v15 = vld [vmem:[#allocation8 + $0x908] ss:$28 sps:$4 sm:$0xff]   ;;  %v15638_v16 = vpop.f32.mrf.mxu1 }
 0x724   :  { %8078 = vmatprep.subr.bf16.mxu0 %v13384_v14  ;;  %v13442_v14 = vld [vmem:[#allocation8 + $0x390] ss:$28 sps:$4 sm:$0xff]  }
 0x726   :  { %8233 = vmatpush1.bf16.msra.mxu1 %v13379_v61  ;;  %v13447_v61 = vld [vmem:[#allocation8 + $0x8d4] ss:$28 sps:$4 sm:$0xff]  }
 0x727   :  { %8079 = vmatpush2.bf16.msra.mxu0 %v13382_v21  ;;  %8234 = vmatprep.subr.bf16.mxu1 %v13387_v32  ;;  %v13450_v21 = vld [vmem:[#allocation8 + $0x6dc] ss:$28 sps:$4 sm:$0xff]  }
 0x728   :  { %8080 = vmatprep.subr.bf16.mxu0 %v13390_v22 }
 0x72a   :  { %8235 = vmatpush1.bf16.msra.mxu1 %v13385_v23  ;;  %v13445_v23 = vld [vmem:[#allocation8 + $0x8d0] ss:$28 sps:$4 sm:$0xff]  }
 0x72b   :  { %8081 = vmatpush2.bf16.msra.mxu0 %v13388_v53  ;;  %8236 = vmatprep.subr.bf16.mxu1 %v13393_v3  ;;  %v13448_v3 = vld [vmem:[#allocation8 + $0x6d8] ss:$28 sps:$4 sm:$0xff]  }
 0x72c   :  { %8082 = vmatprep.subr.bf16.mxu0 %v13396_v6  ;;  %v13451_v6 = vld [vmem:[#allocation8 + $0xa60] ss:$28 sps:$4 sm:$0xff]  }
 0x72e   :  { %8237 = vmatpush1.bf16.msra.mxu1 %v13391_v25  ;;  %v13454_v25 = vld [vmem:[#allocation8 + $0x6a4] ss:$28 sps:$4 sm:$0xff]  }
 0x72f   :  { %8083 = vmatpush2.bf16.msra.mxu0 %v13394_v26  ;;  %8238 = vmatprep.subr.bf16.mxu1 %v13399_v7 }
 0x730   :  { %8181 = vmatprep.subr.bf16.mxu0 %v13402_v1  ;;  %v13455_v1 = vld [vmem:[#allocation8 + $0x8a0] ss:$28 sps:$4 sm:$0xff]  }
 0x732   :  { %8085 = vmatmul.mubr.bf16.vlgmr.msra.gmra.mxu0 %v15600_v38  ;;  %8239 = vmatpush1.bf16.msra.mxu1 %v13397_v8  ;;  %v13456_v8 = vld [vmem:[#allocation8 + $0xa28] ss:$28 sps:$4 sm:$0xff]  }
 0x733   :  { %8182 = vmatpush1.bf16.msra.mxu0 %v13400_v41  ;;  %8213 = vmatprep.mubr.bf16.mxu0 %v15577_v31  ;;  %v13459_v41 = vld [vmem:[#allocation8 + $0x66c] ss:$28 sps:$4 sm:$0xff]  }
 0x734   :  { %8240 = vmatprep.subr.bf16.mxu1 %v13405_v27  ;;  %8183 = vmatprep.subr.bf16.mxu0 %v13408_v28  ;;  %v13460_v27 = vld [vmem:[#allocation8 + $0x868] ss:$28 sps:$4 sm:$0xff]  }
 0x735   :  { %v13457_v28 = vld [vmem:[#allocation8 + $0x668] ss:$28 sps:$4 sm:$0xff]  }
 0x736   :  { %8241 = vmatpush2.bf16.msra.mxu1 %v13403_v29  ;;  %v13461_v29 = vld [vmem:[#allocation8 + $0x9f0] ss:$28 sps:$4 sm:$0xff]  }
 0x737   :  { %8184 = vmatpush1.bf16.msra.mxu0 %v13406_v50  ;;  %8242 = vmatprep.subr.bf16.mxu1 %v13411_v35  ;;  %v13465_v50 = vld [vmem:[#allocation8 + $0x830] ss:$28 sps:$4 sm:$0xff]  }
 0x738   :  { %8185 = vmatprep.subr.bf16.mxu0 %v13414_v2  ;;  %v13462_v35 = vld [vmem:[#allocation8 + $0x630] ss:$28 sps:$4 sm:$0xff]   ;;  %v13466_v2 = vld [vmem:[#allocation8 + $0x9b8] ss:$28 sps:$4 sm:$0xff]  }
 0x73a   :  { %8243 = vmatpush2.bf16.msra.mxu1 %v13409_v39  ;;  %v13469_v39 = vld [vmem:[#allocation8 + $0x5fc] ss:$28 sps:$4 sm:$0xff]  }
 0x73b   :  { %8186 = vmatpush1.bf16.msra.mxu0 %v13412_v36  ;;  %8244 = vmatprep.subr.bf16.mxu1 %v13417_v19  ;;  %v13470_v36 = vld [vmem:[#allocation8 + $0x7f8] ss:$28 sps:$4 sm:$0xff]   ;;  %v13471_v19 = vld [vmem:[#allocation8 + $0x980] ss:$28 sps:$4 sm:$0xff]  }
 0x73c   :  { %8187 = vmatprep.subr.bf16.mxu0 %v13420_v42  ;;  %v13474_v42 = vld [vmem:[#allocation8 + $0x5c4] ss:$28 sps:$4 sm:$0xff]  }
 0x73e   :  { %8245 = vmatpush2.bf16.msra.mxu1 %v13415_v43  ;;  %v13475_v43 = vld [vmem:[#allocation8 + $0x7c0] ss:$28 sps:$4 sm:$0xff]  }
 0x73f   :  { %8188 = vmatpush1.bf16.msra.mxu0 %v13418_v46  ;;  %8246 = vmatprep.subr.bf16.mxu1 %v13423_v47  ;;  %v13472_v46 = vld [vmem:[#allocation8 + $0x5c0] ss:$28 sps:$4 sm:$0xff]   ;;  %v13476_v47 = vld [vmem:[#allocation8 + $0x948] ss:$28 sps:$4 sm:$0xff]  }
 0x740   :  { %8189 = vmatprep.subr.bf16.mxu0 %v13426_v49  ;;  %v13479_v49 = vld [vmem:[#allocation8 + $0x58c] ss:$28 sps:$4 sm:$0xff]  }
 0x742   :  { %8247 = vmatpush2.bf16.msra.mxu1 %v13421_v55  ;;  %v13480_v55 = vld [vmem:[#allocation8 + $0x788] ss:$28 sps:$4 sm:$0xff]  }
 0x743   :  { %8190 = vmatpush1.bf16.msra.mxu0 %v13424_v5  ;;  %8248 = vmatprep.subr.bf16.mxu1 %v13429_v51  ;;  %v13477_v5 = vld [vmem:[#allocation8 + $0x588] ss:$28 sps:$4 sm:$0xff]   ;;  %v13481_v51 = vld [vmem:[#allocation8 + $0x910] ss:$28 sps:$4 sm:$0xff]  }
 0x744   :  { %8191 = vmatprep.subr.bf16.mxu0 %v13432_v56  ;;  %v13484_v56 = vld [vmem:[#allocation8 + $0x554] ss:$28 sps:$4 sm:$0xff]  }
 0x746   :  { %8249 = vmatpush2.bf16.msra.mxu1 %v13427_v57  ;;  %v13485_v57 = vld [vmem:[#allocation8 + $0x750] ss:$28 sps:$4 sm:$0xff]  }
 0x747   :  { %8192 = vmatpush1.bf16.msra.mxu0 %v13430_v63  ;;  %8250 = vmatprep.subr.bf16.mxu1 %v13435_v4  ;;  %v13482_v63 = vld [vmem:[#allocation8 + $0x550] ss:$28 sps:$4 sm:$0xff]   ;;  %v13486_v4 = vld [vmem:[#allocation8 + $0x8d8] ss:$28 sps:$4 sm:$0xff]  }
 0x748   :  { %8193 = vmatprep.subr.bf16.mxu0 %v13438_v37  ;;  %v13489_v37 = vld [vmem:[#allocation8 + $0xacc] ss:$28 sps:$4 sm:$0xff]  }
 0x74a   :  { %8251 = vmatpush2.bf16.msra.mxu1 %v13433_v9  ;;  %v13490_v9 = vld [vmem:[#allocation8 + $0x718] ss:$28 sps:$4 sm:$0xff]  }
 0x74b   :  { %8194 = vmatpush1.bf16.msra.mxu0 %v13436_v11  ;;  %8252 = vmatprep.subr.bf16.mxu1 %v13441_v12  ;;  %v13487_v11 = vld [vmem:[#allocation8 + $0xac8] ss:$28 sps:$4 sm:$0xff]   ;;  %v15650_v12 = vpop.f32.mrf.mxu0 }
 0x74c   :  { %8195 = vmatprep.subr.bf16.mxu0 %v13444_v13  ;;  %v13493_v13 = vld [vmem:[#allocation8 + $0xa94] ss:$28 sps:$4 sm:$0xff]  }
 0x74d   :  { %v7914_v32 = vpop.f32.mrf.mxu1 }
 0x74e   :  { %v15641_v22 = vadd.f32 %v7914_v32, %v15626_v48  ;;  %8253 = vmatpush2.bf16.msra.mxu1 %v13439_v15  ;;  %v13452_v48 = vld [vmem:[#allocation8 + $0x6a0] ss:$28 sps:$4 sm:$0xff]   ;;  %v13533_v15 = vld [vmem:[%s16374_s15 + $0x2e4] ss:$16 sps:$4 sm:$0xff]   ;;  %v13491_v32 = vld [vmem:[#allocation8 + $0xa90] ss:$28 sps:$4 sm:$0xff]  }
 0x74f   :  { %8196 = vmatpush1.bf16.msra.mxu0 %v13442_v14  ;;  %v15643_v53 = vpop.f32.mrf.mxu1  ;;  %8254 = vmatprep.subr.bf16.mxu1 %v13447_v61  ;;  %v13531_v61 = vld [vmem:[%s16374_s15 + $0x2e0] ss:$16 sps:$4 sm:$0xff]  }
 0x750   :  { %8197 = vmatprep.subr.bf16.mxu0 %v13450_v21 }
 0x751   :  { %v7918_v26 = vpop.f32.mrf.mxu1 }
 0x752   :  { %v15646_v7 = vadd.f32 %v7918_v26, %v15630_v58  ;;  %8255 = vmatpush2.bf16.msra.mxu1 %v13445_v23  ;;  %v13464_v58 = vld [vmem:[#allocation8 + $0x634] ss:$28 sps:$4 sm:$0xff]  }
 0x753   :  { %8198 = vmatpush2.bf16.msra.mxu0 %v13448_v3  ;;  %12065 = vmatprep.subr.bf16.mxu1 %v13451_v6  ;;  %v13539_v23 = vld [vmem:[%s16374_s15 + $0x2c4] ss:$16 sps:$4 sm:$0xff]   ;;  %v13494_v6 = vld [vmem:[#allocation8 + $0x360] ss:$28 sps:$4 sm:$0xff]  }
 0x754   :  { %8199 = vmatprep.subr.bf16.mxu0 %v13454_v25 }
 0x755   :  { %8257 = vmatmul.mubr.bf16.vlgmr.msra.gmra.mxu1 %v15600_v38 }
 0x756   :  { %12066 = vmatpush3.bf16.msra.mxu1 %v13455_v1  ;;  %8424 = vmatprep.mubr.bf16.mxu1 %v15598_v20  ;;  %v13467_v20 = vld [vmem:[#allocation8 + $0x5f8] ss:$28 sps:$4 sm:$0xff]   ;;  %v13495_v1 = vld [vmem:[#allocation8 + $0x1a0] ss:$28 sps:$4 sm:$0xff]  }
 0x757   :  { %8200 = vmatpush2.bf16.msra.mxu0 %v13452_v48  ;;  %12067 = vmatprep.subr.bf16.mxu1 %v13456_v8  ;;  %v13496_v48 = vld [vmem:[#allocation8 + $0x328] ss:$28 sps:$4 sm:$0xff]  }
 0x758   :  { %8201 = vmatprep.subr.bf16.mxu0 %v13459_v41  ;;  %v13545_v8 = vld [vmem:[%s16374_s15 + $0x2a4] ss:$16 sps:$4 sm:$0xff]  }
 0x75a   :  { %12068 = vmatpush3.bf16.msra.mxu1 %v13460_v27 }
 0x75b   :  { %8202 = vmatpush2.bf16.msra.mxu0 %v13457_v28  ;;  %12069 = vmatprep.subr.bf16.mxu1 %v13461_v29  ;;  %v13497_v28 = vld [vmem:[#allocation8 + $0x168] ss:$28 sps:$4 sm:$0xff]  }
 0x75c   :  { %8203 = vmatprep.subr.bf16.mxu0 %v13464_v58  ;;  %v13551_v29 = vld [vmem:[%s16374_s15 + $0x284] ss:$16 sps:$4 sm:$0xff]   ;;  %v13498_v58 = vld [vmem:[#allocation8 + $0x2f0] ss:$28 sps:$4 sm:$0xff]  }
 0x75e   :  { %12070 = vmatpush3.bf16.msra.mxu1 %v13465_v50  ;;  %v13549_v50 = vld [vmem:[%s16374_s15 + $0x280] ss:$16 sps:$4 sm:$0xff]  }
 0x75f   :  { %8204 = vmatpush2.bf16.msra.mxu0 %v13462_v35  ;;  %12071 = vmatprep.subr.bf16.mxu1 %v13466_v2  ;;  %v13499_v35 = vld [vmem:[#allocation8 + $0x130] ss:$28 sps:$4 sm:$0xff]   ;;  %v13500_v2 = vld [vmem:[#allocation8 + $0x2b8] ss:$28 sps:$4 sm:$0xff]  }
 0x760   :  { %8205 = vmatprep.subr.bf16.mxu0 %v13469_v39  ;;  %v13555_v39 = vld [vmem:[%s16374_s15 + $0x260] ss:$16 sps:$4 sm:$0xff]  }
 0x762   :  { %12072 = vmatpush3.bf16.msra.mxu1 %v13470_v36  ;;  %v13501_v36 = vld [vmem:[#allocation8 + $0xf8] ss:$28 sps:$4 sm:$0xff]  }
 0x763   :  { %8206 = vmatpush2.bf16.msra.mxu0 %v13467_v20  ;;  %12073 = vmatprep.subr.bf16.mxu1 %v13471_v19  ;;  %v13563_v20 = vld [vmem:[%s16374_s15 + $0x244] ss:$16 sps:$4 sm:$0xff]   ;;  %v13502_v19 = vld [vmem:[#allocation8 + $0x280] ss:$28 sps:$4 sm:$0xff]  }
 0x764   :  { %8207 = vmatprep.subr.bf16.mxu0 %v13474_v42  ;;  %v13561_v42 = vld [vmem:[%s16374_s15 + $0x240] ss:$16 sps:$4 sm:$0xff]  }
 0x766   :  { %12074 = vmatpush3.bf16.msra.mxu1 %v13475_v43  ;;  %v13503_v43 = vld [vmem:[#allocation8 + $0xc0] ss:$28 sps:$4 sm:$0xff]  }
 0x767   :  { %8208 = vmatpush2.bf16.msra.mxu0 %v13472_v46  ;;  %12075 = vmatprep.subr.bf16.mxu1 %v13476_v47  ;;  %v13569_v46 = vld [vmem:[%s16374_s15 + $0x224] ss:$16 sps:$4 sm:$0xff]  }
 0x768   :  { %8209 = vmatprep.subr.bf16.mxu0 %v13479_v49  ;;  %v13504_v47 = vld [vmem:[#allocation8 + $0x248] ss:$28 sps:$4 sm:$0xff]   ;;  %v13567_v49 = vld [vmem:[%s16374_s15 + $0x220] ss:$16 sps:$4 sm:$0xff]  }
 0x76a   :  { %12076 = vmatpush3.bf16.msra.mxu1 %v13480_v55  ;;  %v13505_v55 = vld [vmem:[#allocation8 + $0x88] ss:$28 sps:$4 sm:$0xff]  }
 0x76b   :  { %8210 = vmatpush2.bf16.msra.mxu0 %v13477_v5  ;;  %12077 = vmatprep.subr.bf16.mxu1 %v13481_v51  ;;  %v13575_v5 = vld [vmem:[%s16374_s15 + $0x204] ss:$16 sps:$4 sm:$0xff]   ;;  %v13506_v51 = vld [vmem:[#allocation8 + $0x210] ss:$28 sps:$4 sm:$0xff]  }
 0x76c   :  { %8211 = vmatprep.subr.bf16.mxu0 %v13484_v56  ;;  %v13573_v56 = vld [vmem:[%s16374_s15 + $0x200] ss:$16 sps:$4 sm:$0xff]  }
 0x76e   :  { %12078 = vmatpush3.bf16.msra.mxu1 %v13485_v57  ;;  %v13507_v57 = vld [vmem:[#allocation8 + $0x50] ss:$28 sps:$4 sm:$0xff]  }
 0x76f   :  { %8212 = vmatpush2.bf16.msra.mxu0 %v13482_v63  ;;  %12079 = vmatprep.subr.bf16.mxu1 %v13486_v4  ;;  %v13581_v63 = vld [vmem:[%s16374_s15 + $0x3e4] ss:$16 sps:$4 sm:$0xff]  }
 0x770   :  { %8279 = vmatprep.subr.bf16.mxu0 %v13489_v37  ;;  %v13508_v4 = vld [vmem:[#allocation8 + $0x1d8] ss:$28 sps:$4 sm:$0xff]   ;;  %v13579_v37 = vld [vmem:[%s16374_s15 + $0x3e0] ss:$16 sps:$4 sm:$0xff]  }
 0x772   :  { %8214 = vmatmul.mubr.bf16.vlgmr.msra.gmra.mxu0 %v15590_v34  ;;  %12080 = vmatpush3.bf16.msra.mxu1 %v13490_v9  ;;  %v7957_v14 = vpop.f32.mrf.mxu0  ;;  %v13509_v9 = vld [vmem:[#allocation8 + $0x18] ss:$28 sps:$4 sm:$0xff]  }
 0x773   :  { %v7958_v21 = vadd.f32 %v7957_v14, %v15641_v22  ;;  %8280 = vmatpush1.bf16.msra.mxu0 %v13487_v11  ;;  %8299 = vmatprep.mubr.bf16.mxu0 %v14081_v0  ;;  %v13537_v22 = vld [vmem:[%s16374_s15 + $0x2c0] ss:$16 sps:$4 sm:$0xff]   ;;  %v13587_v11 = vld [vmem:[%s16374_s15 + $0x3c4] ss:$16 sps:$4 sm:$0xff]  }
 0x774   :  { %v15664_v3 = vpop.f32.mrf.mxu0  ;;  %8281 = vmatprep.subr.bf16.mxu0 %v13493_v13  ;;  %9763 = vmatprep.subr.bf16.mxu1 %v13533_v15  ;;  %v13510_v13 = vld [vmem:[#allocation8 + $0x6e0] ss:$28 sps:$4 sm:$0xff]  }
 0x775   :  { %8425 = vmatmul.mubr.bf16.vlgmr.msra.gmra.mxu1 %v15600_v38  ;;  %v8474_v41 = vmax.f32 %v7958_v21, 0.0  ;;  %v13543_v38 = vld [vmem:[%s16374_s15 + $0x2a0] ss:$16 sps:$4 sm:$0xff]   ;;  %v13593_v21 = vld [vmem:[%s16374_s15 + $0x3a4] ss:$16 sps:$4 sm:$0xff]  }
 0x776   :  { %v7961_v25 = vpop.f32.mrf.mxu0  ;;  %9764 = vmatpush1.bf16.msra.mxu1 %v13531_v61  ;;  %v13585_v15 = vld [vmem:[%s16374_s15 + $0x3c0] ss:$16 sps:$4 sm:$0xff]   ;;  %v13512_v61 = vld [vmem:[#allocation8 + $0x6a8] ss:$28 sps:$4 sm:$0xff]  }
 0x777   :  { %v7962_v26 = vadd.f32 %v7961_v25, %v15646_v7  ;;  %8282 = vmatpush1.bf16.msra.mxu0 %v13491_v32  ;;  %9765 = vmatprep.subr.bf16.mxu1 %v13539_v23  ;;  %v13511_v14 = vld [vmem:[#allocation8 + $0x520] ss:$28 sps:$4 sm:$0xff]   ;;  %v13513_v23 = vld [vmem:[#allocation8 + $0x4e8] ss:$28 sps:$4 sm:$0xff]   ;;  %v13514_v25 = vld [vmem:[#allocation8 + $0x670] ss:$28 sps:$4 sm:$0xff]  }
 0x778   :  { %12021 = vmatprep.subr.bf16.mxu0 %v13494_v6  ;;  %v13591_v32 = vld [vmem:[%s16374_s15 + $0x3a0] ss:$16 sps:$4 sm:$0xff]   ;;  %v13599_v6 = vld [vmem:[%s16374_s15 + $0x384] ss:$16 sps:$4 sm:$0xff]  }
 0x779   :  { %v8481_v27 = vmax.f32 %v7962_v26, 0.0  ;;  %v13516_v26 = vld [vmem:[#allocation8 + $0x638] ss:$28 sps:$4 sm:$0xff]  }
 0x77a   :  { %11660 = vmatmul.mubr.msk.bf16.vlgmr.msra.gmra.mxu0 %vm4849_vm5, %v15607_v40  ;;  %9766 = vmatpush1.bf16.msra.mxu1 %v13537_v22  ;;  %v13515_v22 = vld [vmem:[#allocation8 + $0x4b0] ss:$28 sps:$4 sm:$0xff]  }
 0x77b   :  { %v15679_v7 = vpack.c.bf16 %v8481_v27, %v8474_v41  ;;  %12022 = vmatpush3.bf16.msra.mxu0 %v13495_v1  ;;  %8342 = vmatprep.mubr.bf16.mxu0 %v15482_v24  ;;  %v13557_v24 = vld [vmem:[%s16374_s15 + $0x264] ss:$16 sps:$4 sm:$0xff]   ;;  %v13603_v1 = vld [vmem:[%s16374_s15 + $0x360] ss:$16 sps:$4 sm:$0xff]  }
 0x77c   :  { %12023 = vmatprep.subr.bf16.mxu0 %v13496_v48  ;;  %9767 = vmatprep.subr.bf16.mxu1 %v13545_v8  ;;  %v13517_v48 = vld [vmem:[#allocation8 + $0x478] ss:$28 sps:$4 sm:$0xff]   ;;  %v13518_v41 = vld [vmem:[#allocation8 + $0x600] ss:$28 sps:$4 sm:$0xff]  }
 0x77d   :  { %v13611_v8 = vld [vmem:[%s16374_s15 + $0x344] ss:$16 sps:$4 sm:$0xff]   ;;  %v13609_v27 = vld [vmem:[%s16374_s15 + $0x340] ss:$16 sps:$4 sm:$0xff]  }
 0x77e   :  { %9768 = vmatpush1.bf16.msra.mxu1 %v13543_v38  ;;  %v13519_v38 = vld [vmem:[#allocation8 + $0x440] ss:$28 sps:$4 sm:$0xff]  }
 0x77f   :  { %12024 = vmatpush3.bf16.msra.mxu0 %v13497_v28  ;;  %9769 = vmatprep.subr.bf16.mxu1 %v13551_v29  ;;  %v13617_v28 = vld [vmem:[%s16374_s15 + $0x324] ss:$16 sps:$4 sm:$0xff]  }
 0x780   :  { %12025 = vmatprep.subr.bf16.mxu0 %v13498_v58  ;;  %v13520_v29 = vld [vmem:[#allocation8 + $0x5c8] ss:$28 sps:$4 sm:$0xff]   ;;  %v13615_v58 = vld [vmem:[%s16374_s15 + $0x320] ss:$16 sps:$4 sm:$0xff]  }
 0x782   :  { %9770 = vmatpush1.bf16.msra.mxu1 %v13549_v50  ;;  %v13521_v50 = vld [vmem:[#allocation8 + $0x408] ss:$28 sps:$4 sm:$0xff]  }
 0x783   :  { %12026 = vmatpush3.bf16.msra.mxu0 %v13499_v35  ;;  %9771 = vmatprep.subr.bf16.mxu1 %v13557_v24  ;;  %v13623_v35 = vld [vmem:[%s16374_s15 + $0x304] ss:$16 sps:$4 sm:$0xff]   ;;  %v13522_v24 = vld [vmem:[#allocation8 + $0x590] ss:$28 sps:$4 sm:$0xff]  }
 0x784   :  { %12027 = vmatprep.subr.bf16.mxu0 %v13500_v2  ;;  %v13621_v2 = vld [vmem:[%s16374_s15 + $0x300] ss:$16 sps:$4 sm:$0xff]  }
 0x786   :  { %9772 = vmatpush1.bf16.msra.mxu1 %v13555_v39  ;;  %v13523_v39 = vld [vmem:[#allocation8 + $0x3d0] ss:$28 sps:$4 sm:$0xff]  }
 0x787   :  { %12028 = vmatpush3.bf16.msra.mxu0 %v13501_v36  ;;  %9773 = vmatprep.subr.bf16.mxu1 %v13563_v20  ;;  %v13524_v36 = vld [vmem:[#allocation8 + $0x558] ss:$28 sps:$4 sm:$0xff]   ;;  %v5963_v20 = vrot.slane %v15620_v54, %v14311_v60 }
 0x788   :  { %12029 = vmatprep.subr.bf16.mxu0 %v13502_v19 }
 0x789   :  { %v7835_v19 = vadd.f32 %v15638_v16, %v5963_v20 }
 0x78a   :  { %9774 = vmatpush1.bf16.msra.mxu1 %v13561_v42  ;;  %v13525_v42 = vld [vmem:[#allocation8 + $0x398] ss:$28 sps:$4 sm:$0xff]  }
 0x78b   :  { %12030 = vmatpush3.bf16.msra.mxu0 %v13503_v43  ;;  %9775 = vmatprep.subr.bf16.mxu1 %v13569_v46  ;;  %v7920_v43 = vpop.f32.mrf.mxu1  ;;  %v7831_v46 = vadd.f32 %v15624_v33, %v5963_v20  ;;  %v13530_v33 = vld [vmem:[%s16374_s15 + $0xe4] ss:$16 sps:$4 sm:$0xff]  }
 0x78c   :  { %12031 = vmatprep.subr.bf16.mxu0 %v13504_v47  ;;  %v7878_v47 = vadd.f32 %v15650_v12, %v7835_v19 }
 0x78e   :  { %9776 = vmatpush1.bf16.msra.mxu1 %v13567_v49  ;;  %v7963_v49 = vpop.f32.mrf.mxu0 }
 0x78f   :  { %12032 = vmatpush3.bf16.msra.mxu0 %v13505_v55  ;;  %9777 = vmatprep.subr.bf16.mxu1 %v13575_v5  ;;  %v7874_v55 = vadd.f32 %v15628_v52, %v7831_v46  ;;  %v7921_v5 = vadd.f32 %v7920_v43, %v7878_v47 }
 0x790   :  { %12033 = vmatprep.subr.bf16.mxu0 %v13506_v51  ;;  %v13526_v51 = vld [vmem:[#allocation8 + $0xad0] ss:$28 sps:$4 sm:$0xff]  }
 0x791   :  { %v7917_v54 = vadd.f32 %v15643_v53, %v7874_v55  ;;  %v13536_v53 = vld [vmem:[%s16374_s15 + $0xc4] ss:$16 sps:$4 sm:$0xff]  }
 0x792   :  { %9778 = vmatpush1.bf16.msra.mxu1 %v13573_v56  ;;  %v7964_v56 = vadd.f32 %v7963_v49, %v7921_v5  ;;  %v13606_v5 = vld [vmem:[%s16374_s15 + $0x140] ss:$16 sps:$4 sm:$0xff]  }
 0x793   :  { %12034 = vmatpush3.bf16.msra.mxu0 %v13507_v57  ;;  %9779 = vmatprep.subr.bf16.mxu1 %v13581_v63  ;;  %v7960_v16 = vadd.f32 %v15664_v3, %v7917_v54  ;;  %v13527_v57 = vld [vmem:[#allocation8 + $0xa98] ss:$28 sps:$4 sm:$0xff]  }
 0x794   :  { %12035 = vmatprep.subr.bf16.mxu0 %v13508_v4  ;;  %v8482_v52 = vmax.f32 %v7964_v56, 0.0  ;;  %v13542_v63 = vld [vmem:[%s16374_s15 + $0xa4] ss:$16 sps:$4 sm:$0xff]   ;;  %v13540_v4 = vld [vmem:[%s16374_s15 + $0xa0] ss:$16 sps:$4 sm:$0xff]  }
 0x795   :  { %v8475_v12 = vmax.f32 %v7960_v16, 0.0  ;;  %v13614_v56 = vld [vmem:[%s16374_s15 + $0x124] ss:$16 sps:$4 sm:$0xff]  }
 0x796   :  { %9780 = vmatpush2.bf16.msra.mxu1 %v13579_v37  ;;  %v13546_v37 = vld [vmem:[%s16374_s15 + $0x80] ss:$16 sps:$4 sm:$0xff]  }
 0x797   :  { %12036 = vmatpush3.bf16.msra.mxu0 %v13509_v9  ;;  %9781 = vmatprep.subr.bf16.mxu1 %v13587_v11  ;;  %v15784_v3 = vpack.c.bf16 %v8482_v52, %v8475_v12  ;;  %v13554_v9 = vld [vmem:[%s16374_s15 + $0x64] ss:$16 sps:$4 sm:$0xff]   ;;  %v13552_v11 = vld [vmem:[%s16374_s15 + $0x60] ss:$16 sps:$4 sm:$0xff]  }
 0x798   :  { %12043 = vmatprep.subr.bf16.mxu0 %v13510_v13  ;;  %v13560_v13 = vld [vmem:[%s16374_s15 + $0x44] ss:$16 sps:$4 sm:$0xff]  }
 0x79a   :  { %8343 = vmatmul.mubr.bf16.vlgmr.msra.gmra.mxu0 %v15558_v30  ;;  %9782 = vmatpush2.bf16.msra.mxu1 %v13585_v15  ;;  %v13597_v30 = vld [vmem:[%s16374_s15 + $0x380] ss:$16 sps:$4 sm:$0xff]  }
 0x79b   :  { %12044 = vmatpush3.bf16.msra.mxu0 %v13511_v14  ;;  %8383 = vmatprep.mubr.bf16.mxu0 %v15577_v31  ;;  %v13605_v31 = vld [vmem:[%s16374_s15 + $0x364] ss:$16 sps:$4 sm:$0xff]   ;;  %v13558_v15 = vld [vmem:[%s16374_s15 + $0x40] ss:$16 sps:$4 sm:$0xff]  }
 0x79c   :  { %12045 = vmatprep.subr.bf16.mxu0 %v13512_v61  ;;  %9783 = vmatprep.subr.bf16.mxu1 %v13593_v21  ;;  %v13566_v14 = vld [vmem:[%s16374_s15 + $0x24] ss:$16 sps:$4 sm:$0xff]   ;;  %v13564_v61 = vld [vmem:[%s16374_s15 + $0x20] ss:$16 sps:$4 sm:$0xff]  }
 0x79d   :  { %v13572_v21 = vld [vmem:[%s16374_s15 + $0x4] ss:$16 sps:$4 sm:$0xff]  }
 0x79e   :  { %9784 = vmatpush2.bf16.msra.mxu1 %v13591_v32  ;;  %v13570_v32 = vld [vmem:[%s16374_s15] ss:$16 sps:$4 sm:$0xff]  }
 0x79f   :  { %12046 = vmatpush3.bf16.msra.mxu0 %v13513_v23  ;;  %9785 = vmatprep.subr.bf16.mxu1 %v13599_v6  ;;  %v13578_v23 = vld [vmem:[%s16374_s15 + $0x1e4] ss:$16 sps:$4 sm:$0xff]   ;;  %v8043_v6 = vpop.f32.mrf.mxu1 }
 0x7a0   :  { %12047 = vmatprep.subr.bf16.mxu0 %v13514_v25  ;;  %v13576_v25 = vld [vmem:[%s16374_s15 + $0x1e0] ss:$16 sps:$4 sm:$0xff]  }
 0x7a2   :  { %9786 = vmatpush2.bf16.msra.mxu1 %v13597_v30  ;;  %v13584_v30 = vld [vmem:[%s16374_s15 + $0x1c4] ss:$16 sps:$4 sm:$0xff]  }
 0x7a3   :  { %12048 = vmatpush3.bf16.msra.mxu0 %v13515_v22  ;;  %9787 = vmatprep.subr.bf16.mxu1 %v13605_v31  ;;  %v8045_v22 = vpop.f32.mrf.mxu1  ;;  %v13582_v31 = vld [vmem:[%s16374_s15 + $0x1c0] ss:$16 sps:$4 sm:$0xff]  }
 0x7a4   :  { %12049 = vmatprep.subr.bf16.mxu0 %v13516_v26 }
 0x7a6   :  { %9788 = vmatpush2.bf16.msra.mxu1 %v13603_v1  ;;  %v13590_v1 = vld [vmem:[%s16374_s15 + $0x1a4] ss:$16 sps:$4 sm:$0xff]  }
 0x7a7   :  { %12050 = vmatpush3.bf16.msra.mxu0 %v13517_v48  ;;  %9789 = vmatprep.subr.bf16.mxu1 %v13611_v8  ;;  %v8047_v48 = vpop.f32.mrf.mxu1  ;;  %v13588_v8 = vld [vmem:[%s16374_s15 + $0x1a0] ss:$16 sps:$4 sm:$0xff]  }
 0x7a8   :  { %12051 = vmatprep.subr.bf16.mxu0 %v13518_v41 }
 0x7aa   :  { %9790 = vmatpush2.bf16.msra.mxu1 %v13609_v27  ;;  %v13596_v27 = vld [vmem:[%s16374_s15 + $0x184] ss:$16 sps:$4 sm:$0xff]  }
 0x7ab   :  { %12052 = vmatpush3.bf16.msra.mxu0 %v13519_v38  ;;  %9791 = vmatprep.subr.bf16.mxu1 %v13617_v28  ;;  %v8049_v38 = vpop.f32.mrf.mxu1  ;;  %v15852_v28 = vld [vmem:[%s16373_s14] sm:$0x7f] }
 0x7ac   :  { %12053 = vmatprep.subr.bf16.mxu0 %v13520_v29  ;;  %v5971_v29 = vrot.slane %v15852_v28, %v14340_v44 }
 0x7ae   :  { %9792 = vmatpush2.bf16.msra.mxu1 %v13615_v58  ;;  %v13594_v58 = vld [vmem:[%s16374_s15 + $0x180] ss:$16 sps:$4 sm:$0xff]  }
 0x7af   :  { %12054 = vmatpush3.bf16.msra.mxu0 %v13521_v50  ;;  %9793 = vmatprep.subr.bf16.mxu1 %v13623_v35  ;;  %v5967_v50 = vrot.slane %v15852_v28, %v14343_v45 }
 0x7b0   :  { %12055 = vmatprep.subr.bf16.mxu0 %v13522_v24  ;;  %v13602_v24 = vld [vmem:[%s16374_s15 + $0x164] ss:$16 sps:$4 sm:$0xff]  }
 0x7b2   :  { %9794 = vmatpush2.bf16.msra.mxu1 %v13621_v2  ;;  %v8000_v26 = vpop.f32.mrf.mxu0  ;;  %v8129_v2 = vpop.f32.mrf.mxu1 }
 0x7b3   :  { %12056 = vmatpush3.bf16.msra.mxu0 %v13523_v39  ;;  %v8001_v20 = vadd.f32 %v8000_v26, %v5967_v50  ;;  %v13627_v26 = vld [vmem:[%s16374_s15 + $0x4c0] ss:$16 sps:$4 sm:$0xff]  }
 0x7b4   :  { %12057 = vmatprep.subr.bf16.mxu0 %v13524_v36  ;;  %v8002_v41 = vpop.f32.mrf.mxu0  ;;  %v13600_v36 = vld [vmem:[%s16374_s15 + $0x160] ss:$16 sps:$4 sm:$0xff]   ;;  %v8131_v46 = vpop.f32.mrf.mxu1 }
 0x7b5   :  { %v8003_v39 = vadd.f32 %v8002_v41, %v5971_v29  ;;  %v13630_v41 = vld [vmem:[%s16374_s15 + $0x4a0] ss:$16 sps:$4 sm:$0xff]  }
 0x7b6   :  { %v8004_v35 = vpop.f32.mrf.mxu0 }
 0x7b7   :  { %12058 = vmatpush3.bf16.msra.mxu0 %v13525_v42  ;;  %v13608_v42 = vld [vmem:[%s16374_s15 + $0x144] ss:$16 sps:$4 sm:$0xff]   ;;  %v8005_v43 = vadd.f32 %v8004_v35, %v5967_v50  ;;  %v8046_v55 = vadd.f32 %v8045_v22, %v8003_v39  ;;  %v13734_v50 = vld [vmem:[%s16374_s15 + $0xec] ss:$16 sps:$4 sm:$0xff]   ;;  %v13639_v39 = vld [vmem:[%s16374_s15 + $0x440] ss:$16 sps:$4 sm:$0xff]  }
 0x7b8   :  { %12098 = vmatprep.subr.bf16.mxu0 %v14082_v59  ;;  %v8006_v19 = vpop.f32.mrf.mxu0  ;;  %v13638_v35 = vld [vmem:[%s16374_s15 + $0x464] ss:$16 sps:$4 sm:$0xff]  }
 0x7b9   :  { %v8007_v49 = vadd.f32 %v8006_v19, %v5971_v29  ;;  %v13726_v29 = vld [vmem:[%s16374_s15 + $0x600] ss:$16 sps:$4 sm:$0xff]   ;;  %v13647_v19 = vld [vmem:[%s16374_s15 + $0x404] ss:$16 sps:$4 sm:$0xff]  }
 0x7ba   :  { %8384 = vmatmul.mubr.bf16.vlgmr.msra.gmra.mxu0 %v15590_v34  ;;  %v13528_v34 = vld [vmem:[%s16374_s15 + $0xe0] ss:$16 sps:$4 sm:$0xff]  }
 0x7bb   :  { %12099 = vmatpush3.bf16.msra.mxu0 %v13526_v51  ;;  %12102 = vmatprep.mubr.msk.bf16.mxu0 %vm14083_vm6, %v14082_v59  ;;  %v8044_v51 = vadd.f32 %v8043_v6, %v8001_v20  ;;  %v13642_v20 = vld [vmem:[%s16374_s15 + $0x420] ss:$16 sps:$4 sm:$0xff]  }
 0x7bc   :  { %12100 = vmatprep.subr.bf16.mxu0 %v14082_v59  ;;  %v13534_v59 = vld [vmem:[%s16374_s15 + $0xc0] ss:$16 sps:$4 sm:$0xff]  }
 0x7bf   :  { %12101 = vmatpush3.bf16.msra.mxu0 %v13527_v57  ;;  %v8048_v57 = vadd.f32 %v8047_v48, %v8005_v43  ;;  %v13632_v48 = vld [vmem:[%s16374_s15 + $0x4a4] ss:$16 sps:$4 sm:$0xff]  }
 0x7c0   :  { %9720 = vmatprep.subr.bf16.mxu0 %v13530_v33  ;;  %v8133_v33 = vpop.f32.mrf.mxu1  ;;  %v13650_v43 = vld [vmem:[%s16374_s15 + $0x5e4] ss:$16 sps:$4 sm:$0xff]  }
 0x7c2   :  { %12103 = vmatmul.mubr.msk.bf16.vlgmr.msra.gmra.mxu0 %vm4849_vm5, %v15607_v40  ;;  %v13548_v40 = vld [vmem:[%s16374_s15 + $0x84] ss:$16 sps:$4 sm:$0xff]  }
 0x7c3   :  { %9721 = vmatpush1.bf16.msra.mxu0 %v13528_v34  ;;  %9752 = vmatprep.mubr.bf16.mxu0 %v15784_v3 }
 0x7c4   :  { %9722 = vmatprep.subr.bf16.mxu0 %v13536_v53  ;;  %v8050_v53 = vadd.f32 %v8049_v38, %v8007_v49  ;;  %v13635_v38 = vld [vmem:[%s16374_s15 + $0x484] ss:$16 sps:$4 sm:$0xff]   ;;  %v13651_v49 = vld [vmem:[%s16374_s15 + $0x5c0] ss:$16 sps:$4 sm:$0xff]  }
 0x7c7   :  { %9723 = vmatpush1.bf16.msra.mxu0 %v13534_v59  ;;  %v13612_v59 = vld [vmem:[%s16374_s15 + $0x120] ss:$16 sps:$4 sm:$0xff]  }
 0x7c8   :  { %9724 = vmatprep.subr.bf16.mxu0 %v13542_v63 }
 0x7cb   :  { %9725 = vmatpush1.bf16.msra.mxu0 %v13540_v4  ;;  %v13620_v4 = vld [vmem:[%s16374_s15 + $0x104] ss:$16 sps:$4 sm:$0xff]  }
 0x7cc   :  { %9726 = vmatprep.subr.bf16.mxu0 %v13548_v40 }
 0x7cf   :  { %9727 = vmatpush1.bf16.msra.mxu0 %v13546_v37 }
 0x7d0   :  { %9728 = vmatprep.subr.bf16.mxu0 %v13554_v9 }
 0x7d3   :  { %9729 = vmatpush1.bf16.msra.mxu0 %v13552_v11  ;;  %v8135_v11 = vpop.f32.mrf.mxu1 }
 0x7d4   :  { %9730 = vmatprep.subr.bf16.mxu0 %v13560_v13 }
 0x7d7   :  { %9731 = vmatpush1.bf16.msra.mxu0 %v13558_v15 }
 0x7d8   :  { %9732 = vmatprep.subr.bf16.mxu0 %v13566_v14  ;;  %v13618_v14 = vld [vmem:[%s16374_s15 + $0x100] ss:$16 sps:$4 sm:$0xff]  }
 0x7db   :  { %9733 = vmatpush1.bf16.msra.mxu0 %v13564_v61 }
 0x7dc   :  { %9734 = vmatprep.subr.bf16.mxu0 %v13572_v21  ;;  %v13626_v21 = vld [vmem:[%s16374_s15 + $0x4e4] ss:$16 sps:$4 sm:$0xff]  }
 0x7df   :  { %9735 = vmatpush1.bf16.msra.mxu0 %v13570_v32 }
 0x7e0   :  { %9736 = vmatprep.subr.bf16.mxu0 %v13578_v23 }
 0x7e3   :  { %9737 = vmatpush2.bf16.msra.mxu0 %v13576_v25 }
 0x7e4   :  { %9738 = vmatprep.subr.bf16.mxu0 %v13584_v30  ;;  %v13624_v30 = vld [vmem:[%s16374_s15 + $0x4e0] ss:$16 sps:$4 sm:$0xff]  }
 0x7e7   :  { %9739 = vmatpush2.bf16.msra.mxu0 %v13582_v31  ;;  %v13629_v31 = vld [vmem:[%s16374_s15 + $0x4c4] ss:$16 sps:$4 sm:$0xff]  }
 0x7e8   :  { %9740 = vmatprep.subr.bf16.mxu0 %v13590_v1  ;;  %v13722_v1 = vld [vmem:[%s16374_s15 + $0x624] ss:$16 sps:$4 sm:$0xff]  }
 0x7e9   :  { %9861 = vmatprep.subr.bf16.mxu1 %v13722_v1 }
 0x7eb   :  { %9741 = vmatpush2.bf16.msra.mxu0 %v13588_v8  ;;  %v13720_v8 = vld [vmem:[%s16374_s15 + $0x620] ss:$16 sps:$4 sm:$0xff]  }
 0x7ec   :  { %9742 = vmatprep.subr.bf16.mxu0 %v13596_v27  ;;  %v13728_v27 = vld [vmem:[%s16374_s15 + $0x604] ss:$16 sps:$4 sm:$0xff]  }
 0x7ef   :  { %9743 = vmatpush2.bf16.msra.mxu0 %v13594_v58  ;;  %v13633_v58 = vld [vmem:[%s16374_s15 + $0x480] ss:$16 sps:$4 sm:$0xff]  }
 0x7f0   :  { %9744 = vmatprep.subr.bf16.mxu0 %v13602_v24  ;;  %v13636_v24 = vld [vmem:[%s16374_s15 + $0x460] ss:$16 sps:$4 sm:$0xff]  }
 0x7f2   :  { %v8086_v47 = vpop.f32.mrf.mxu0 }
 0x7f3   :  { %9745 = vmatpush2.bf16.msra.mxu0 %v13600_v36  ;;  %v8087_v52 = vadd.f32 %v8086_v47, %v8044_v51  ;;  %v13644_v36 = vld [vmem:[%s16374_s15 + $0x424] ss:$16 sps:$4 sm:$0xff]   ;;  %v13654_v51 = vld [vmem:[%s16374_s15 + $0x5a0] ss:$16 sps:$4 sm:$0xff]  }
 0x7f4   :  { %v8088_v54 = vpop.f32.mrf.mxu0  ;;  %9746 = vmatprep.subr.bf16.mxu0 %v13608_v42  ;;  %v13645_v42 = vld [vmem:[%s16374_s15 + $0x400] ss:$16 sps:$4 sm:$0xff]   ;;  %v13653_v47 = vld [vmem:[%s16374_s15 + $0x5c4] ss:$16 sps:$4 sm:$0xff]  }
 0x7f5   :  { %v8089_v16 = vadd.f32 %v8088_v54, %v8046_v55  ;;  %v8130_v13 = vadd.f32 %v8129_v2, %v8087_v52  ;;  %v13641_v2 = vld [vmem:[%s16374_s15 + $0x444] ss:$16 sps:$4 sm:$0xff]   ;;  %v8172_v55 = vpop.f32.mrf.mxu1  ;;  %v13660_v52 = vld [vmem:[%s16374_s15 + $0x560] ss:$16 sps:$4 sm:$0xff]  }
 0x7f6   :  { %v8090_v12 = vpop.f32.mrf.mxu0 }
 0x7f7   :  { %v8091_v34 = vadd.f32 %v8090_v12, %v8048_v57  ;;  %9747 = vmatpush2.bf16.msra.mxu0 %v13606_v5  ;;  %v8132_v40 = vadd.f32 %v8131_v46, %v8089_v16  ;;  %v8476_v6 = vmax.f32 %v8130_v13, 0.0  ;;  %v13648_v46 = vld [vmem:[%s16374_s15 + $0x5e0] ss:$16 sps:$4 sm:$0xff]   ;;  %v13656_v5 = vld [vmem:[%s16374_s15 + $0x5a4] ss:$16 sps:$4 sm:$0xff]   ;;  %v8174_v54 = vpop.f32.mrf.mxu1 }
 0x7f8   :  { %v8092_v63 = vpop.f32.mrf.mxu0  ;;  %9748 = vmatprep.subr.bf16.mxu0 %v13614_v56  ;;  %v13659_v56 = vld [vmem:[%s16374_s15 + $0x584] ss:$16 sps:$4 sm:$0xff]   ;;  %v13657_v16 = vld [vmem:[%s16374_s15 + $0x580] ss:$16 sps:$4 sm:$0xff]  }
 0x7f9   :  { %v8134_v37 = vadd.f32 %v8133_v33, %v8091_v34  ;;  %v8093_v9 = vadd.f32 %v8092_v63, %v8050_v53  ;;  %v8477_v32 = vmax.f32 %v8132_v40, 0.0  ;;  %v8176_v57 = vpop.f32.mrf.mxu1  ;;  %v13662_v33 = vld [vmem:[%s16374_s15 + $0x564] ss:$16 sps:$4 sm:$0xff]   ;;  %v5979_v63 = vrot.slane %v15852_v28, %v14740_v17  ;;  %v13666_v17 = vld [vmem:[%s16374_s15 + $0x520] ss:$16 sps:$4 sm:$0xff]  }
 0x7fa   :  { %v13665_v34 = vld [vmem:[%s16374_s15 + $0x544] ss:$16 sps:$4 sm:$0xff]   ;;  %v5975_v40 = vrot.slane %v15852_v28, %v14743_v18 }
 0x7fb   :  { %v8136_v15 = vadd.f32 %v8135_v11, %v8093_v9  ;;  %9749 = vmatpush2.bf16.msra.mxu0 %v13612_v59  ;;  %v8483_v61 = vmax.f32 %v8134_v37, 0.0  ;;  %v8178_v12 = vpop.f32.mrf.mxu1  ;;  %v13668_v9 = vld [vmem:[%s16374_s15 + $0x524] ss:$16 sps:$4 sm:$0xff]  }
 0x7fc   :  { %9750 = vmatprep.subr.bf16.mxu0 %v13620_v4  ;;  %v13663_v4 = vld [vmem:[%s16374_s15 + $0x540] ss:$16 sps:$4 sm:$0xff]   ;;  %v13671_v18 = vld [vmem:[%s16374_s15 + $0x504] ss:$16 sps:$4 sm:$0xff]  }
 0x7fd   :  { %v8484_v23 = vmax.f32 %v8136_v15, 0.0  ;;  %v15893_v22 = vpack.c.bf16 %v8483_v61, %v8476_v6  ;;  %v8175_v15 = vadd.f32 %v8174_v54, %v5979_v63  ;;  %v8173_v61 = vadd.f32 %v8172_v55, %v5975_v40  ;;  %v13680_v54 = vld [vmem:[%s16374_s15 + $0x2ac] ss:$16 sps:$4 sm:$0xff]  }
 0x7ff   :  { %9751 = vmatpush2.bf16.msra.mxu0 %v13618_v14  ;;  %v15888_v25 = vpack.c.bf16 %v8484_v23, %v8477_v32  ;;  %v8177_v14 = vadd.f32 %v8176_v57, %v5975_v40  ;;  %v8179_v32 = vadd.f32 %v8178_v12, %v5979_v63  ;;  %v13686_v57 = vld [vmem:[%s16374_s15 + $0x26c] ss:$16 sps:$4 sm:$0xff]   ;;  %v13687_v12 = vld [vmem:[%s16374_s15 + $0x248] ss:$16 sps:$4 sm:$0xff]  }
 0x800   :  { %9806 = vmatprep.subr.bf16.mxu0 %v13626_v21  ;;  %v13693_v63 = vld [vmem:[%s16374_s15 + $0x208] ss:$16 sps:$4 sm:$0xff]  }
 0x801   :  { %9795 = vmatprep.mubr.bf16.mxu1 %v15888_v25  ;;  %v13696_v40 = vld [vmem:[%s16374_s15 + $0x3e8] ss:$16 sps:$4 sm:$0xff]  }
 0x802   :  { %9753 = vmatmul.mubr.bf16.vlgmr.msra.gmra.mxu0 %v15679_v7  ;;  %9796 = vmatmul.mubr.bf16.vlgmr.msra.gmra.mxu1 %v15893_v22 }
 0x803   :  { %9807 = vmatpush1.bf16.msra.mxu0 %v13624_v30  ;;  %9881 = vmatprep.mubr.bf16.mxu1 %v14081_v0 }
 0x804   :  { %9808 = vmatprep.subr.bf16.mxu0 %v13629_v31  ;;  %9862 = vmatpush1.bf16.msra.mxu1 %v13720_v8 }
 0x805   :  { %9863 = vmatprep.subr.bf16.mxu1 %v13728_v27 }
 0x807   :  { %9809 = vmatpush1.bf16.msra.mxu0 %v13627_v26 }
 0x808   :  { %9810 = vmatprep.subr.bf16.mxu0 %v13632_v48  ;;  %9864 = vmatpush1.bf16.msra.mxu1 %v13726_v29  ;;  %v13669_v48 = vld [vmem:[%s16374_s15 + $0x500] ss:$16 sps:$4 sm:$0xff]  }
 0x809   :  { %9892 = vmatprep.subr.bf16.mxu1 %v13734_v50 }
 0x80b   :  { %9811 = vmatpush1.bf16.msra.mxu0 %v13630_v41  ;;  %v13674_v41 = vld [vmem:[%s16374_s15 + $0x2ec] ss:$16 sps:$4 sm:$0xff]  }
 0x80c   :  { %9812 = vmatprep.subr.bf16.mxu0 %v13635_v38 }
 0x80f   :  { %9813 = vmatpush1.bf16.msra.mxu0 %v13633_v58 }
 0x810   :  { %9814 = vmatprep.subr.bf16.mxu0 %v13638_v35 }
 0x813   :  { %9815 = vmatpush1.bf16.msra.mxu0 %v13636_v24 }
 0x814   :  { %9816 = vmatprep.subr.bf16.mxu0 %v13641_v2 }
 0x815   :  { %v8258_v53 = vpop.f32.mrf.mxu1 }
 0x817   :  { %9817 = vmatpush1.bf16.msra.mxu0 %v13639_v39  ;;  %v8260_v11 = vpop.f32.mrf.mxu1 }
 0x818   :  { %9818 = vmatprep.subr.bf16.mxu0 %v13644_v36 }
 0x819   :  { %v8262_v30 = vpop.f32.mrf.mxu1 }
 0x81b   :  { %9819 = vmatpush1.bf16.msra.mxu0 %v13642_v20  ;;  %v8264_v29 = vpop.f32.mrf.mxu1 }
 0x81c   :  { %9820 = vmatprep.subr.bf16.mxu0 %v13647_v19 }
 0x81f   :  { %9821 = vmatpush1.bf16.msra.mxu0 %v13645_v42 }
 0x820   :  { %9822 = vmatprep.subr.bf16.mxu0 %v13650_v43 }
 0x823   :  { %9823 = vmatpush2.bf16.msra.mxu0 %v13648_v46 }
 0x824   :  { %9824 = vmatprep.subr.bf16.mxu0 %v13653_v47 }
 0x827   :  { %9825 = vmatpush2.bf16.msra.mxu0 %v13651_v49  ;;  %v13672_v49 = vld [vmem:[%s16374_s15 + $0x2e8] ss:$16 sps:$4 sm:$0xff]  }
 0x828   :  { %9826 = vmatprep.subr.bf16.mxu0 %v13656_v5  ;;  %v13677_v5 = vld [vmem:[%s16374_s15 + $0x2cc] ss:$16 sps:$4 sm:$0xff]  }
 0x82b   :  { %9827 = vmatpush2.bf16.msra.mxu0 %v13654_v51  ;;  %v13675_v51 = vld [vmem:[%s16374_s15 + $0x2c8] ss:$16 sps:$4 sm:$0xff]  }
 0x82c   :  { %9828 = vmatprep.subr.bf16.mxu0 %v13659_v56  ;;  %v13678_v56 = vld [vmem:[%s16374_s15 + $0x2a8] ss:$16 sps:$4 sm:$0xff]  }
 0x82f   :  { %9829 = vmatpush2.bf16.msra.mxu0 %v13657_v16  ;;  %v13683_v16 = vld [vmem:[%s16374_s15 + $0x28c] ss:$16 sps:$4 sm:$0xff]  }
 0x830   :  { %9830 = vmatprep.subr.bf16.mxu0 %v13662_v33  ;;  %v13684_v33 = vld [vmem:[%s16374_s15 + $0x268] ss:$16 sps:$4 sm:$0xff]  }
 0x832   :  { %v8215_v59 = vpop.f32.mrf.mxu0 }
 0x833   :  { %9831 = vmatpush2.bf16.msra.mxu0 %v13660_v52  ;;  %v8216_v31 = vadd.f32 %v8215_v59, %v8173_v61  ;;  %v13689_v52 = vld [vmem:[%s16374_s15 + $0x24c] ss:$16 sps:$4 sm:$0xff]   ;;  %v13705_v61 = vld [vmem:[%s16374_s15 + $0x388] ss:$16 sps:$4 sm:$0xff]  }
 0x834   :  { %v8217_v37 = vpop.f32.mrf.mxu0  ;;  %9832 = vmatprep.subr.bf16.mxu0 %v13665_v34  ;;  %v13692_v34 = vld [vmem:[%s16374_s15 + $0x22c] ss:$16 sps:$4 sm:$0xff]  }
 0x835   :  { %v8218_v23 = vadd.f32 %v8217_v37, %v8175_v15  ;;  %v8259_v58 = vadd.f32 %v8258_v53, %v8216_v31  ;;  %v13690_v53 = vld [vmem:[%s16374_s15 + $0x228] ss:$16 sps:$4 sm:$0xff]   ;;  %v13695_v59 = vld [vmem:[%s16374_s15 + $0x20c] ss:$16 sps:$4 sm:$0xff]  }
 0x836   :  { %v8219_v13 = vpop.f32.mrf.mxu0  ;;  %v13701_v37 = vld [vmem:[%s16374_s15 + $0x3cc] ss:$16 sps:$4 sm:$0xff]   ;;  %v13702_v15 = vld [vmem:[%s16374_s15 + $0x3a8] ss:$16 sps:$4 sm:$0xff]  }
 0x837   :  { %9833 = vmatpush2.bf16.msra.mxu0 %v13663_v4  ;;  %v8220_v6 = vadd.f32 %v8219_v13, %v8177_v14  ;;  %v8261_v27 = vadd.f32 %v8260_v11, %v8218_v23  ;;  %v13698_v4 = vld [vmem:[%s16374_s15 + $0x3ec] ss:$16 sps:$4 sm:$0xff]   ;;  %v13708_v23 = vld [vmem:[%s16374_s15 + $0x368] ss:$16 sps:$4 sm:$0xff]  }
 0x838   :  { %v8221_v21 = vpop.f32.mrf.mxu0  ;;  %9834 = vmatprep.subr.bf16.mxu0 %v13668_v9  ;;  %v13699_v9 = vld [vmem:[%s16374_s15 + $0x3c8] ss:$16 sps:$4 sm:$0xff]   ;;  %v13704_v11 = vld [vmem:[%s16374_s15 + $0x3ac] ss:$16 sps:$4 sm:$0xff]  }
 0x839   :  { %v8222_v1 = vadd.f32 %v8221_v21, %v8179_v32  ;;  %v8263_v38 = vadd.f32 %v8262_v30, %v8220_v6  ;;  %v13707_v14 = vld [vmem:[%s16374_s15 + $0x38c] ss:$16 sps:$4 sm:$0xff]  }
 0x83a   :  { %v8301_v26 = vpop.f32.mrf.mxu0  ;;  %v13710_v21 = vld [vmem:[%s16374_s15 + $0x36c] ss:$16 sps:$4 sm:$0xff]  }
 0x83b   :  { %9835 = vmatpush2.bf16.msra.mxu0 %v13666_v17  ;;  %v8265_v2 = vadd.f32 %v8264_v29, %v8222_v1  ;;  %v8302_v39 = vadd.f32 %v8301_v26, %v8259_v58  ;;  %v13713_v6 = vld [vmem:[%s16374_s15 + $0x34c] ss:$16 sps:$4 sm:$0xff]   ;;  %v5983_v26 = vrot.slane %v15852_v28, %v14820_v10  ;;  %v13714_v10 = vld [vmem:[%s16374_s15 + $0x328] ss:$16 sps:$4 sm:$0xff]  }
 0x83c   :  { %v8303_v8 = vpop.f32.mrf.mxu0  ;;  %9836 = vmatprep.subr.bf16.mxu0 %v13671_v18  ;;  %v12081_v18 = vpop.f32.mrf.mxu1 }
 0x83d   :  { %v8304_v35 = vadd.f32 %v8303_v8, %v8261_v27  ;;  %v8478_v46 = vmax.f32 %v8302_v39, 0.0 }
 0x83e   :  { %v8305_v50 = vpop.f32.mrf.mxu0  ;;  %v12082_v30 = vpop.f32.mrf.mxu1 }
 0x83f   :  { %v8306_v24 = vadd.f32 %v8305_v50, %v8263_v38  ;;  %9837 = vmatpush2.bf16.msra.mxu0 %v13669_v48  ;;  %v8479_v42 = vmax.f32 %v8304_v35, 0.0  ;;  %v13711_v48 = vld [vmem:[%s16374_s15 + $0x348] ss:$16 sps:$4 sm:$0xff]   ;;  %v13719_v35 = vld [vmem:[%s16374_s15 + $0x30c] ss:$16 sps:$4 sm:$0xff]  }
 0x840   :  { %v8307_v36 = vpop.f32.mrf.mxu0  ;;  %9935 = vmatprep.subr.bf16.mxu0 %v13674_v41  ;;  %v13716_v41 = vld [vmem:[%s16374_s15 + $0x32c] ss:$16 sps:$4 sm:$0xff]   ;;  %v12084_v27 = vpop.f32.mrf.mxu1 }
 0x841   :  { %v8308_v20 = vadd.f32 %v8307_v36, %v8265_v2  ;;  %v8485_v19 = vmax.f32 %v8306_v24, 0.0  ;;  %v12083_v24 = vadd.f32 %v12082_v30, %v12081_v18  ;;  %v13746_v18 = vld [vmem:[%s16374_s15 + $0x6c] ss:$16 sps:$4 sm:$0xff]  }
 0x842   :  { %v12085_v39 = vpop.f32.mrf.mxu1  ;;  %v13749_v30 = vld [vmem:[%s16374_s15 + $0x4c] ss:$16 sps:$4 sm:$0xff]  }
 0x843   :  { %v8486_v43 = vmax.f32 %v8308_v20, 0.0  ;;  %v16016_v55 = vpack.c.bf16 %v8485_v19, %v8478_v46 }
 0x845   :  { %v16011_v47 = vpack.c.bf16 %v8486_v43, %v8479_v42  ;;  %v13717_v43 = vld [vmem:[%s16374_s15 + $0x308] ss:$16 sps:$4 sm:$0xff]  }
 0x847   :  { %9838 = vmatprep.mubr.bf16.mxu0 %v16011_v47 }
 0x848   :  { %9839 = vmatmul.mubr.bf16.vlgmr.msra.gmra.mxu0 %v16016_v55 }
 0x849   :  { %9936 = vmatpush1.bf16.msra.mxu0 %v13672_v49  ;;  %9967 = vmatprep.mubr.bf16.mxu0 %v15888_v25  ;;  %v13681_v25 = vld [vmem:[%s16374_s15 + $0x288] ss:$16 sps:$4 sm:$0xff]   ;;  %v13725_v49 = vld [vmem:[%s16374_s15 + $0x62c] ss:$16 sps:$4 sm:$0xff]  }
 0x84a   :  { %9937 = vmatprep.subr.bf16.mxu0 %v13677_v5  ;;  %v12086_v5 = vadd.f32 %v12085_v39, %v12084_v27  ;;  %v13843_v27 = vld [vmem:[#allocation10 + $0x20] ss:$8 sps:$4 sm:$0xff]   ;;  %v13854_v39 = vld [vmem:[#allocation10 + $0xf4] ss:$8 sps:$4 sm:$0xff]  }
 0x84d   :  { %9938 = vmatpush1.bf16.msra.mxu0 %v13675_v51 }
 0x84e   :  { %9939 = vmatprep.subr.bf16.mxu0 %v13680_v54 }
 0x851   :  { %9940 = vmatpush1.bf16.msra.mxu0 %v13678_v56 }
 0x852   :  { %9941 = vmatprep.subr.bf16.mxu0 %v13683_v16 }
 0x855   :  { %9942 = vmatpush1.bf16.msra.mxu0 %v13681_v25  ;;  %v13723_v25 = vld [vmem:[%s16374_s15 + $0x628] ss:$16 sps:$4 sm:$0xff]  }
 0x856   :  { %9943 = vmatprep.subr.bf16.mxu0 %v13686_v57 }
 0x859   :  { %9944 = vmatpush1.bf16.msra.mxu0 %v13684_v33  ;;  %v13731_v33 = vld [vmem:[%s16374_s15 + $0x60c] ss:$16 sps:$4 sm:$0xff]  }
 0x85a   :  { %9945 = vmatprep.subr.bf16.mxu0 %v13689_v52  ;;  %v12037_v13 = vpop.f32.mrf.mxu0 }
 0x85c   :  { %v12038_v17 = vpop.f32.mrf.mxu0 }
 0x85d   :  { %9946 = vmatpush1.bf16.msra.mxu0 %v13687_v12  ;;  %v12039_v1 = vadd.f32 %v12038_v17, %v12037_v13  ;;  %v13833_v13 = vld [vmem:[#allocation10 + $0x64] ss:$8 sps:$4 sm:$0xff]   ;;  %v13836_v17 = vld [vmem:[#allocation10 + $0x54] ss:$8 sps:$4 sm:$0xff]  }
 0x85e   :  { %9947 = vmatprep.subr.bf16.mxu0 %v13692_v34  ;;  %v12040_v32 = vpop.f32.mrf.mxu0 }
 0x85f   :  { %v8345_v29 = vadd.f32 %v12039_v1, %v5983_v26  ;;  %v13840_v1 = vld [vmem:[#allocation10 + $0x30] ss:$8 sps:$4 sm:$0xff]  }
 0x860   :  { %v12041_v31 = vpop.f32.mrf.mxu0 }
 0x861   :  { %9948 = vmatpush1.bf16.msra.mxu0 %v13690_v53  ;;  %v12042_v58 = vadd.f32 %v12041_v31, %v12040_v32  ;;  %v13839_v32 = vld [vmem:[#allocation10 + $0x44] ss:$8 sps:$4 sm:$0xff]   ;;  %v13842_v31 = vld [vmem:[#allocation10 + $0x34] ss:$8 sps:$4 sm:$0xff]  }
 0x862   :  { %9949 = vmatprep.subr.bf16.mxu0 %v13695_v59  ;;  %v13729_v59 = vld [vmem:[%s16374_s15 + $0x608] ss:$16 sps:$4 sm:$0xff]  }
 0x863   :  { %v8348_v20 = vadd.f32 %v12042_v58, %v5983_v26  ;;  %v13747_v26 = vld [vmem:[%s16374_s15 + $0x48] ss:$16 sps:$4 sm:$0xff]  }
 0x864   :  { %v13753_v58 = vld [vmem:[%s16374_s15 + $0x8] ss:$16 sps:$4 sm:$0xff]  }
 0x865   :  { %9950 = vmatpush1.bf16.msra.mxu0 %v13693_v63  ;;  %v13732_v63 = vld [vmem:[%s16374_s15 + $0xe8] ss:$16 sps:$4 sm:$0xff]  }
 0x866   :  { %9951 = vmatprep.subr.bf16.mxu0 %v13698_v4 }
 0x869   :  { %9952 = vmatpush2.bf16.msra.mxu0 %v13696_v40  ;;  %v13735_v40 = vld [vmem:[%s16374_s15 + $0xc8] ss:$16 sps:$4 sm:$0xff]  }
 0x86a   :  { %9953 = vmatprep.subr.bf16.mxu0 %v13701_v37  ;;  %v13740_v37 = vld [vmem:[%s16374_s15 + $0xac] ss:$16 sps:$4 sm:$0xff]  }
 0x86d   :  { %9954 = vmatpush2.bf16.msra.mxu0 %v13699_v9  ;;  %v13828_v9 = vld [vmem:[#allocation10 + $0x70] ss:$8 sps:$4 sm:$0xff]  }
 0x86e   :  { %9955 = vmatprep.subr.bf16.mxu0 %v13704_v11  ;;  %v13830_v11 = vld [vmem:[#allocation10 + $0x74] ss:$8 sps:$4 sm:$0xff]  }
 0x871   :  { %9956 = vmatpush2.bf16.msra.mxu0 %v13702_v15  ;;  %v13831_v15 = vld [vmem:[#allocation10 + $0x60] ss:$8 sps:$4 sm:$0xff]  }
 0x872   :  { %9957 = vmatprep.subr.bf16.mxu0 %v13707_v14  ;;  %v13743_v14 = vld [vmem:[%s16374_s15 + $0x8c] ss:$16 sps:$4 sm:$0xff]  }
 0x875   :  { %9958 = vmatpush2.bf16.msra.mxu0 %v13705_v61  ;;  %v13741_v61 = vld [vmem:[%s16374_s15 + $0x88] ss:$16 sps:$4 sm:$0xff]  }
 0x876   :  { %9959 = vmatprep.subr.bf16.mxu0 %v13710_v21  ;;  %v13834_v21 = vld [vmem:[#allocation10 + $0x50] ss:$8 sps:$4 sm:$0xff]  }
 0x879   :  { %9960 = vmatpush2.bf16.msra.mxu0 %v13708_v23  ;;  %v13744_v23 = vld [vmem:[%s16374_s15 + $0x68] ss:$16 sps:$4 sm:$0xff]  }
 0x87a   :  { %v12059_v8 = vpop.f32.mrf.mxu0  ;;  %9961 = vmatprep.subr.bf16.mxu0 %v13713_v6  ;;  %v13837_v6 = vld [vmem:[#allocation10 + $0x40] ss:$8 sps:$4 sm:$0xff]  }
 0x87c   :  { %v12060_v38 = vpop.f32.mrf.mxu0 }
 0x87d   :  { %v12061_v50 = vadd.f32 %v12060_v38, %v12059_v8  ;;  %9962 = vmatpush2.bf16.msra.mxu0 %v13711_v48  ;;  %v13752_v48 = vld [vmem:[%s16374_s15 + $0x2c] ss:$16 sps:$4 sm:$0xff]  }
 0x87e   :  { %v12062_v28 = vpop.f32.mrf.mxu0  ;;  %9963 = vmatprep.subr.bf16.mxu0 %v13716_v41  ;;  %v13845_v8 = vld [vmem:[#allocation10 + $0x24] ss:$8 sps:$4 sm:$0xff]   ;;  %v13750_v41 = vld [vmem:[%s16374_s15 + $0x28] ss:$16 sps:$4 sm:$0xff]  }
 0x87f   :  { %v8386_v2 = vadd.f32 %v12061_v50, %v8345_v29  ;;  %v13755_v38 = vld [vmem:[%s16374_s15 + $0xc] ss:$16 sps:$4 sm:$0xff]   ;;  %v13846_v50 = vld [vmem:[#allocation10 + $0x10] ss:$8 sps:$4 sm:$0xff]  }
 0x880   :  { %v12063_v36 = vpop.f32.mrf.mxu0  ;;  %v13848_v29 = vld [vmem:[#allocation10 + $0x14] ss:$8 sps:$4 sm:$0xff]  }
 0x881   :  { %v12064_v19 = vadd.f32 %v12063_v36, %v12062_v28  ;;  %9964 = vmatpush2.bf16.msra.mxu0 %v13714_v10  ;;  %v8427_v42 = vadd.f32 %v12083_v24, %v8386_v2  ;;  %v13758_v10 = vld [vmem:[%s16374_s15 + $0x1ec] ss:$16 sps:$4 sm:$0xff]   ;;  %v13849_v24 = vld [vmem:[#allocation10] ss:$8 sps:$4 sm:$0xff]  }
 0x882   :  { %v8467_v46 = vpop.f32.mrf.mxu0  ;;  %9965 = vmatprep.subr.bf16.mxu0 %v13719_v35  ;;  %v13851_v28 = vld [vmem:[#allocation10 + $0x4] ss:$8 sps:$4 sm:$0xff]   ;;  %v13756_v35 = vld [vmem:[%s16374_s15 + $0x1e8] ss:$16 sps:$4 sm:$0xff]  }
 0x883   :  { %v8389_v51 = vadd.f32 %v12064_v19, %v8348_v20  ;;  %v8468_v56 = vadd.f32 %v8467_v46, %v8427_v42  ;;  %v13761_v2 = vld [vmem:[%s16374_s15 + $0x1cc] ss:$16 sps:$4 sm:$0xff]   ;;  %v13759_v36 = vld [vmem:[%s16374_s15 + $0x1c8] ss:$16 sps:$4 sm:$0xff]  }
 0x884   :  { %v12104_v54 = vpop.f32.mrf.mxu0  ;;  %v13852_v20 = vld [vmem:[#allocation10 + $0xf0] ss:$8 sps:$4 sm:$0xff]   ;;  %v13764_v19 = vld [vmem:[%s16374_s15 + $0x1ac] ss:$16 sps:$4 sm:$0xff]   ;;  %v13855_v46 = vld [vmem:[#allocation10 + $0xe0] ss:$8 sps:$4 sm:$0xff]  }
 0x885   :  { %9966 = vmatpush2.bf16.msra.mxu0 %v13717_v43  ;;  %v8430_v16 = vadd.f32 %v12086_v5, %v8389_v51  ;;  %v8480_v34 = vmax.f32 %v8468_v56, 0.0  ;;  %v13857_v42 = vld [vmem:[#allocation10 + $0xe4] ss:$8 sps:$4 sm:$0xff]   ;;  %v13762_v43 = vld [vmem:[%s16374_s15 + $0x1a8] ss:$16 sps:$4 sm:$0xff]  }
 0x886   :  { %v8470_v57 = vpop.f32.mrf.mxu0  ;;  %10033 = vmatprep.subr.bf16.mxu0 %v13725_v49  ;;  %v13767_v49 = vld [vmem:[%s16374_s15 + $0x18c] ss:$16 sps:$4 sm:$0xff]   ;;  %v13765_v51 = vld [vmem:[%s16374_s15 + $0x188] ss:$16 sps:$4 sm:$0xff]  }
 0x887   :  { %v8471_v52 = vadd.f32 %v8470_v57, %v8430_v16  ;;  %v13860_v5 = vld [vmem:[#allocation10 + $0xd4] ss:$8 sps:$4 sm:$0xff]   ;;  %v13858_v54 = vld [vmem:[#allocation10 + $0xd0] ss:$8 sps:$4 sm:$0xff]  }
 0x888   :  { %9968 = vmatmul.mubr.bf16.vlgmr.msra.gmra.mxu0 %v15893_v22  ;;  %v12105_v12 = vpop.f32.mrf.mxu0  ;;  %v13737_v22 = vld [vmem:[%s16374_s15 + $0xcc] ss:$16 sps:$4 sm:$0xff]   ;;  %v13768_v16 = vld [vmem:[%s16374_s15 + $0x168] ss:$16 sps:$4 sm:$0xff]  }
 0x889   :  { %v8487_v53 = vmax.f32 %v8471_v52, 0.0  ;;  %10034 = vmatpush1.bf16.msra.mxu0 %v13723_v25  ;;  %10053 = vmatprep.mubr.bf16.mxu0 %v14081_v0  ;;  %v13770_v56 = vld [vmem:[%s16374_s15 + $0x16c] ss:$16 sps:$4 sm:$0xff]   ;;  %v13771_v57 = vld [vmem:[%s16374_s15 + $0x148] ss:$16 sps:$4 sm:$0xff]  }
 0x88a   :  { %10035 = vmatprep.subr.bf16.mxu0 %v13731_v33  ;;  %v13773_v25 = vld [vmem:[%s16374_s15 + $0x14c] ss:$16 sps:$4 sm:$0xff]   ;;  %v13774_v52 = vld [vmem:[%s16374_s15 + $0x128] ss:$16 sps:$4 sm:$0xff]  }
 0x88b   :  { %v8494_v4 = vpack.c.bf16 %v8487_v53, %v8480_v34  ;;  %v13776_v33 = vld [vmem:[%s16374_s15 + $0x12c] ss:$16 sps:$4 sm:$0xff]   ;;  %v13777_v34 = vld [vmem:[%s16374_s15 + $0x108] ss:$16 sps:$4 sm:$0xff]  }
 0x88c   :  { %v13779_v12 = vld [vmem:[%s16374_s15 + $0x10c] ss:$16 sps:$4 sm:$0xff]  }
 0x88d   :  { %10036 = vmatpush1.bf16.msra.mxu0 %v13729_v59  ;;  %11862 = vmatmul.mubr.msk.bf16.vlgmr.msra.gmra.mxu1 %vm4849_vm5, %v8494_v4  ;;  %v13863_v53 = vld [vmem:[#allocation10 + $0xc4] ss:$8 sps:$4 sm:$0xff]  }
 0x88e   :  { %9893 = vmatpush1.bf16.msra.mxu1 %v13732_v63  ;;  %9924 = vmatprep.mubr.bf16.mxu1 %v15784_v3  ;;  %v13738_v3 = vld [vmem:[%s16374_s15 + $0xa8] ss:$16 sps:$4 sm:$0xff]   ;;  %v13782_v59 = vld [vmem:[%s16374_s15 + $0x4ec] ss:$16 sps:$4 sm:$0xff]  }
 0x88f   :  { %9894 = vmatprep.subr.bf16.mxu1 %v13737_v22  ;;  %10391 = vmatprep.subr.bf16.mxu0 %v13830_v11  ;;  %v13861_v63 = vld [vmem:[#allocation10 + $0xc0] ss:$8 sps:$4 sm:$0xff]   ;;  %v13866_v22 = vld [vmem:[#allocation10 + $0xb4] ss:$8 sps:$4 sm:$0xff]   ;;  %v13869_v11 = vld [vmem:[#allocation10 + $0xa4] ss:$8 sps:$4 sm:$0xff]  }
 0x890   :  { %11863 = vmatmul.mubr.msk.bf16.vlgmr.msra.gmra.mxu0 %vm4849_vm5, %v8494_v4  ;;  %v13780_v4 = vld [vmem:[%s16374_s15 + $0x4e8] ss:$16 sps:$4 sm:$0xff]  }
 0x891   :  { %10392 = vmatpush1.bf16.msra.mxu0 %v13828_v9  ;;  %v13783_v9 = vld [vmem:[%s16374_s15 + $0x4c8] ss:$16 sps:$4 sm:$0xff]  }
 0x892   :  { %9895 = vmatpush1.bf16.msra.mxu1 %v13735_v40  ;;  %10393 = vmatprep.subr.bf16.mxu0 %v13833_v13  ;;  %v13785_v40 = vld [vmem:[%s16374_s15 + $0x4cc] ss:$16 sps:$4 sm:$0xff]  }
 0x893   :  { %9896 = vmatprep.subr.bf16.mxu1 %v13740_v37  ;;  %v13864_v37 = vld [vmem:[#allocation10 + $0xb0] ss:$8 sps:$4 sm:$0xff]   ;;  %v13788_v13 = vld [vmem:[%s16374_s15 + $0x4ac] ss:$16 sps:$4 sm:$0xff]  }
 0x895   :  { %10394 = vmatpush1.bf16.msra.mxu0 %v13831_v15  ;;  %v13872_v15 = vld [vmem:[#allocation10 + $0x94] ss:$8 sps:$4 sm:$0xff]  }
 0x896   :  { %9897 = vmatpush1.bf16.msra.mxu1 %v13738_v3  ;;  %10395 = vmatprep.subr.bf16.mxu0 %v13836_v17  ;;  %v13867_v3 = vld [vmem:[#allocation10 + $0xa0] ss:$8 sps:$4 sm:$0xff]  }
 0x897   :  { %9898 = vmatprep.subr.bf16.mxu1 %v13743_v14  ;;  %v13870_v14 = vld [vmem:[#allocation10 + $0x90] ss:$8 sps:$4 sm:$0xff]  }
 0x898   :  { %v13789_v17 = vld [vmem:[%s16374_s15 + $0x488] ss:$16 sps:$4 sm:$0xff]  }
 0x899   :  { %10396 = vmatpush1.bf16.msra.mxu0 %v13834_v21  ;;  %v13794_v21 = vld [vmem:[%s16374_s15 + $0x46c] ss:$16 sps:$4 sm:$0xff]  }
 0x89a   :  { %9899 = vmatpush1.bf16.msra.mxu1 %v13741_v61  ;;  %10397 = vmatprep.subr.bf16.mxu0 %v13839_v32  ;;  %v13875_v61 = vld [vmem:[#allocation10 + $0x84] ss:$8 sps:$4 sm:$0xff]   ;;  %v13792_v32 = vld [vmem:[%s16374_s15 + $0x468] ss:$16 sps:$4 sm:$0xff]  }
 0x89b   :  { %9900 = vmatprep.subr.bf16.mxu1 %v13746_v18  ;;  %v13873_v18 = vld [vmem:[#allocation10 + $0x80] ss:$8 sps:$4 sm:$0xff]  }
 0x89d   :  { %10398 = vmatpush1.bf16.msra.mxu0 %v13837_v6  ;;  %v13795_v6 = vld [vmem:[%s16374_s15 + $0x448] ss:$16 sps:$4 sm:$0xff]  }
 0x89e   :  { %9901 = vmatpush1.bf16.msra.mxu1 %v13744_v23  ;;  %10399 = vmatprep.subr.bf16.mxu0 %v13842_v31  ;;  %v13797_v23 = vld [vmem:[%s16374_s15 + $0x44c] ss:$16 sps:$4 sm:$0xff]   ;;  %v13798_v31 = vld [vmem:[%s16374_s15 + $0x428] ss:$16 sps:$4 sm:$0xff]  }
 0x89f   :  { %9902 = vmatprep.subr.bf16.mxu1 %v13749_v30  ;;  %v13800_v30 = vld [vmem:[%s16374_s15 + $0x42c] ss:$16 sps:$4 sm:$0xff]  }
 0x8a1   :  { %10400 = vmatpush1.bf16.msra.mxu0 %v13840_v1  ;;  %v13801_v1 = vld [vmem:[%s16374_s15 + $0x408] ss:$16 sps:$4 sm:$0xff]  }
 0x8a2   :  { %9903 = vmatpush1.bf16.msra.mxu1 %v13747_v26  ;;  %10401 = vmatprep.subr.bf16.mxu0 %v13845_v8  ;;  %v13803_v26 = vld [vmem:[%s16374_s15 + $0x40c] ss:$16 sps:$4 sm:$0xff]   ;;  %v13804_v8 = vld [vmem:[%s16374_s15 + $0x5e8] ss:$16 sps:$4 sm:$0xff]  }
 0x8a3   :  { %9904 = vmatprep.subr.bf16.mxu1 %v13752_v48  ;;  %v13806_v48 = vld [vmem:[%s16374_s15 + $0x5ec] ss:$16 sps:$4 sm:$0xff]  }
 0x8a5   :  { %10402 = vmatpush1.bf16.msra.mxu0 %v13843_v27  ;;  %v13807_v27 = vld [vmem:[%s16374_s15 + $0x5c8] ss:$16 sps:$4 sm:$0xff]  }
 0x8a6   :  { %9905 = vmatpush1.bf16.msra.mxu1 %v13750_v41  ;;  %10403 = vmatprep.subr.bf16.mxu0 %v13848_v29  ;;  %v13809_v41 = vld [vmem:[%s16374_s15 + $0x5cc] ss:$16 sps:$4 sm:$0xff]   ;;  %v13810_v29 = vld [vmem:[%s16374_s15 + $0x5a8] ss:$16 sps:$4 sm:$0xff]  }
 0x8a7   :  { %9906 = vmatprep.subr.bf16.mxu1 %v13755_v38  ;;  %v13812_v38 = vld [vmem:[%s16374_s15 + $0x5ac] ss:$16 sps:$4 sm:$0xff]  }
 0x8a9   :  { %10404 = vmatpush1.bf16.msra.mxu0 %v13846_v50  ;;  %v13813_v50 = vld [vmem:[%s16374_s15 + $0x588] ss:$16 sps:$4 sm:$0xff]  }
 0x8aa   :  { %9907 = vmatpush1.bf16.msra.mxu1 %v13753_v58  ;;  %10405 = vmatprep.subr.bf16.mxu0 %v13851_v28  ;;  %v13815_v58 = vld [vmem:[%s16374_s15 + $0x58c] ss:$16 sps:$4 sm:$0xff]   ;;  %v13816_v28 = vld [vmem:[%s16374_s15 + $0x568] ss:$16 sps:$4 sm:$0xff]  }
 0x8ab   :  { %9908 = vmatprep.subr.bf16.mxu1 %v13758_v10  ;;  %v13818_v10 = vld [vmem:[%s16374_s15 + $0x56c] ss:$16 sps:$4 sm:$0xff]  }
 0x8ad   :  { %10406 = vmatpush1.bf16.msra.mxu0 %v13849_v24  ;;  %v13819_v24 = vld [vmem:[%s16374_s15 + $0x548] ss:$16 sps:$4 sm:$0xff]  }
 0x8ae   :  { %9909 = vmatpush2.bf16.msra.mxu1 %v13756_v35  ;;  %10407 = vmatprep.subr.bf16.mxu0 %v13854_v39  ;;  %v13821_v35 = vld [vmem:[%s16374_s15 + $0x54c] ss:$16 sps:$4 sm:$0xff]   ;;  %v13822_v39 = vld [vmem:[%s16374_s15 + $0x528] ss:$16 sps:$4 sm:$0xff]  }
 0x8af   :  { %9910 = vmatprep.subr.bf16.mxu1 %v13761_v2  ;;  %v13824_v2 = vld [vmem:[%s16374_s15 + $0x52c] ss:$16 sps:$4 sm:$0xff]  }
 0x8b1   :  { %10408 = vmatpush2.bf16.msra.mxu0 %v13852_v20  ;;  %v13825_v20 = vld [vmem:[%s16374_s15 + $0x508] ss:$16 sps:$4 sm:$0xff]  }
 0x8b2   :  { %9911 = vmatpush2.bf16.msra.mxu1 %v13759_v36  ;;  %10409 = vmatprep.subr.bf16.mxu0 %v13857_v42  ;;  %v13827_v36 = vld [vmem:[%s16374_s15 + $0x50c] ss:$16 sps:$4 sm:$0xff]  }
 0x8b3   :  { %9912 = vmatprep.subr.bf16.mxu1 %v13764_v19  ;;  %v13876_v19 = vld [vmem:[#allocation10 + $0x170] ss:$8 sps:$4 sm:$0xff]   ;;  %v13878_v42 = vld [vmem:[#allocation10 + $0x174] ss:$8 sps:$4 sm:$0xff]  }
 0x8b5   :  { %10410 = vmatpush2.bf16.msra.mxu0 %v13855_v46  ;;  %v13879_v46 = vld [vmem:[#allocation10 + $0x160] ss:$8 sps:$4 sm:$0xff]  }
 0x8b6   :  { %9913 = vmatpush2.bf16.msra.mxu1 %v13762_v43  ;;  %10411 = vmatprep.subr.bf16.mxu0 %v13860_v5  ;;  %v13881_v43 = vld [vmem:[#allocation10 + $0x164] ss:$8 sps:$4 sm:$0xff]   ;;  %v13882_v5 = vld [vmem:[#allocation10 + $0x150] ss:$8 sps:$4 sm:$0xff]  }
 0x8b7   :  { %9914 = vmatprep.subr.bf16.mxu1 %v13767_v49  ;;  %v13884_v49 = vld [vmem:[#allocation10 + $0x154] ss:$8 sps:$4 sm:$0xff]  }
 0x8b9   :  { %10412 = vmatpush2.bf16.msra.mxu0 %v13858_v54  ;;  %v13885_v54 = vld [vmem:[#allocation10 + $0x140] ss:$8 sps:$4 sm:$0xff]  }
 0x8ba   :  { %9915 = vmatpush2.bf16.msra.mxu1 %v13765_v51  ;;  %10413 = vmatprep.subr.bf16.mxu0 %v13863_v53  ;;  %v13887_v51 = vld [vmem:[#allocation10 + $0x144] ss:$8 sps:$4 sm:$0xff]   ;;  %v8695_v53 = vld [vmem:[%s16375_s16] sm:$0xf] }
 0x8bb   :  { %9916 = vmatprep.subr.bf16.mxu1 %v13770_v56  ;;  %v13890_v56 = vld [vmem:[#allocation10 + $0x134] ss:$8 sps:$4 sm:$0xff]  }
 0x8bd   :  { %10414 = vmatpush2.bf16.msra.mxu0 %v13861_v63  ;;  %v8700_v63 = vrot.slane %v8695_v53, %v14317_v62 }
 0x8be   :  { %9917 = vmatpush2.bf16.msra.mxu1 %v13768_v16  ;;  %10415 = vmatprep.subr.bf16.mxu0 %v13866_v22  ;;  %v13888_v16 = vld [vmem:[#allocation10 + $0x130] ss:$8 sps:$4 sm:$0xff]  }
 0x8bf   :  { %9918 = vmatprep.subr.bf16.mxu1 %v13773_v25 }
 0x8c1   :  { %10416 = vmatpush2.bf16.msra.mxu0 %v13864_v37 }
 0x8c2   :  { %9919 = vmatpush2.bf16.msra.mxu1 %v13771_v57  ;;  %10417 = vmatprep.subr.bf16.mxu0 %v13869_v11 }
 0x8c3   :  { %9920 = vmatprep.subr.bf16.mxu1 %v13776_v33  ;;  %v9797_v33 = vpop.f32.mrf.mxu1 }
 0x8c5   :  { %10418 = vmatpush2.bf16.msra.mxu0 %v13867_v3  ;;  %v13893_v3 = vld [vmem:[#allocation10 + $0x124] ss:$8 sps:$4 sm:$0xff]  }
 0x8c6   :  { %9921 = vmatpush2.bf16.msra.mxu1 %v13774_v52  ;;  %10419 = vmatprep.subr.bf16.mxu0 %v13872_v15  ;;  %v13891_v15 = vld [vmem:[#allocation10 + $0x120] ss:$8 sps:$4 sm:$0xff]  }
 0x8c7   :  { %9922 = vmatprep.subr.bf16.mxu1 %v13779_v12  ;;  %v9799_v12 = vpop.f32.mrf.mxu1 }
 0x8c9   :  { %10420 = vmatpush2.bf16.msra.mxu0 %v13870_v14 }
 0x8ca   :  { %9923 = vmatpush2.bf16.msra.mxu1 %v13777_v34  ;;  %10421 = vmatprep.subr.bf16.mxu0 %v13875_v61 }
 0x8cb   :  { %9978 = vmatprep.subr.bf16.mxu1 %v13782_v59  ;;  %v8704_v59 = vrot.slane %v8695_v53, %v14311_v60 }
 0x8cd   :  { %9925 = vmatmul.mubr.bf16.vlgmr.msra.gmra.mxu1 %v15679_v7  ;;  %v13786_v7 = vld [vmem:[%s16374_s15 + $0x4a8] ss:$16 sps:$4 sm:$0xff]   ;;  %10422 = vmatpush2.bf16.msra.mxu0 %v13873_v18 }
 0x8ce   :  { %9979 = vmatpush1.bf16.msra.mxu1 %v13780_v4  ;;  %10010 = vmatprep.mubr.bf16.mxu1 %v16011_v47  ;;  %v13791_v47 = vld [vmem:[%s16374_s15 + $0x48c] ss:$16 sps:$4 sm:$0xff]   ;;  %v9801_v4 = vpop.f32.mrf.mxu1 }
 0x8cf   :  { %9980 = vmatprep.subr.bf16.mxu1 %v13785_v40 }
 0x8d0   :  { %v9803_v11 = vpop.f32.mrf.mxu1 }
 0x8d2   :  { %9981 = vmatpush1.bf16.msra.mxu1 %v13783_v9 }
 0x8d3   :  { %9982 = vmatprep.subr.bf16.mxu1 %v13788_v13 }
 0x8d6   :  { %9983 = vmatpush1.bf16.msra.mxu1 %v13786_v7 }
 0x8d7   :  { %9984 = vmatprep.subr.bf16.mxu1 %v13791_v47 }
 0x8da   :  { %9985 = vmatpush1.bf16.msra.mxu1 %v13789_v17 }
 0x8db   :  { %9986 = vmatprep.subr.bf16.mxu1 %v13794_v21 }
 0x8de   :  { %9987 = vmatpush1.bf16.msra.mxu1 %v13792_v32  ;;  %v13896_v32 = vld [vmem:[#allocation10 + $0x114] ss:$8 sps:$4 sm:$0xff]  }
 0x8df   :  { %9988 = vmatprep.subr.bf16.mxu1 %v13797_v23 }
 0x8e2   :  { %9989 = vmatpush1.bf16.msra.mxu1 %v13795_v6 }
 0x8e3   :  { %9990 = vmatprep.subr.bf16.mxu1 %v13800_v30 }
 0x8e6   :  { %9991 = vmatpush1.bf16.msra.mxu1 %v13798_v31  ;;  %v13894_v31 = vld [vmem:[#allocation10 + $0x110] ss:$8 sps:$4 sm:$0xff]  }
 0x8e7   :  { %9992 = vmatprep.subr.bf16.mxu1 %v13803_v26 }
 0x8ea   :  { %9993 = vmatpush1.bf16.msra.mxu1 %v13801_v1 }
 0x8eb   :  { %9994 = vmatprep.subr.bf16.mxu1 %v13806_v48 }
 0x8ee   :  { %9995 = vmatpush2.bf16.msra.mxu1 %v13804_v8 }
 0x8ef   :  { %9996 = vmatprep.subr.bf16.mxu1 %v13809_v41 }
 0x8f2   :  { %9997 = vmatpush2.bf16.msra.mxu1 %v13807_v27 }
 0x8f3   :  { %9998 = vmatprep.subr.bf16.mxu1 %v13812_v38 }
 0x8f6   :  { %9999 = vmatpush2.bf16.msra.mxu1 %v13810_v29  ;;  %v13899_v29 = vld [vmem:[#allocation10 + $0x104] ss:$8 sps:$4 sm:$0xff]  }
 0x8f7   :  { %10000 = vmatprep.subr.bf16.mxu1 %v13815_v58 }
 0x8fa   :  { %10001 = vmatpush2.bf16.msra.mxu1 %v13813_v50  ;;  %v13897_v50 = vld [vmem:[#allocation10 + $0x100] ss:$8 sps:$4 sm:$0xff]  }
 0x8fb   :  { %10002 = vmatprep.subr.bf16.mxu1 %v13818_v10 }
 0x8fe   :  { %10003 = vmatpush2.bf16.msra.mxu1 %v13816_v28 }
 0x8ff   :  { %10004 = vmatprep.subr.bf16.mxu1 %v13821_v35 }
 0x902   :  { %10005 = vmatpush2.bf16.msra.mxu1 %v13819_v24 }
 0x903   :  { %10006 = vmatprep.subr.bf16.mxu1 %v13824_v2  ;;  %v13902_v2 = vld [vmem:[#allocation10 + $0x184] ss:$8 sps:$4 sm:$0xff]  }
 0x906   :  { %10007 = vmatpush2.bf16.msra.mxu1 %v13822_v39 }
 0x907   :  { %10008 = vmatprep.subr.bf16.mxu1 %v13827_v36  ;;  %v13900_v36 = vld [vmem:[#allocation10 + $0x180] ss:$8 sps:$4 sm:$0xff]  }
 0x90a   :  { %10009 = vmatpush2.bf16.msra.mxu1 %v13825_v20 }
 0x90b   :  { %10434 = vmatprep.subr.bf16.mxu1 %v13878_v42 }
 0x90d   :  { %10011 = vmatmul.mubr.bf16.vlgmr.msra.gmra.mxu1 %v16016_v55  ;;  %v9754_v55 = vpop.f32.mrf.mxu0 }
 0x90e   :  { %10435 = vmatpush1.bf16.msra.mxu1 %v13876_v19  ;;  %v9755_v9 = vadd.f32 %v9754_v55, %v8700_v63 }
 0x90f   :  { %10436 = vmatprep.subr.bf16.mxu1 %v13881_v43  ;;  %v9756_v25 = vpop.f32.mrf.mxu0 }
 0x910   :  { %v9757_v40 = vadd.f32 %v9756_v25, %v8704_v59  ;;  %v9798_v61 = vadd.f32 %v9797_v33, %v9755_v9 }
 0x911   :  { %v9758_v57 = vpop.f32.mrf.mxu0 }
 0x912   :  { %10437 = vmatpush1.bf16.msra.mxu1 %v13879_v46  ;;  %v9759_v37 = vadd.f32 %v9758_v57, %v8700_v63  ;;  %v9800_v14 = vadd.f32 %v9799_v12, %v9757_v40 }
 0x913   :  { %10438 = vmatprep.subr.bf16.mxu1 %v13884_v49  ;;  %v9760_v52 = vpop.f32.mrf.mxu0 }
 0x914   :  { %v9761_v7 = vadd.f32 %v9760_v52, %v8704_v59  ;;  %v9802_v17 = vadd.f32 %v9801_v4, %v9759_v37 }
 0x915   :  { %v9840_v34 = vpop.f32.mrf.mxu0 }
 0x916   :  { %10439 = vmatpush1.bf16.msra.mxu1 %v13882_v5  ;;  %v9804_v23 = vadd.f32 %v9803_v11, %v9761_v7  ;;  %v9841_v26 = vadd.f32 %v9840_v34, %v9798_v61 }
 0x917   :  { %10440 = vmatprep.subr.bf16.mxu1 %v13887_v51  ;;  %v9842_v22 = vpop.f32.mrf.mxu0  ;;  %v8712_v51 = vrot.slane %v8695_v53, %v14340_v44 }
 0x918   :  { %v9843_v6 = vadd.f32 %v9842_v22, %v9800_v14 }
 0x919   :  { %v9844_v13 = vpop.f32.mrf.mxu0 }
 0x91a   :  { %10441 = vmatpush1.bf16.msra.mxu1 %v13885_v54  ;;  %v9845_v30 = vadd.f32 %v9844_v13, %v9802_v17  ;;  %v8708_v54 = vrot.slane %v8695_v53, %v14343_v45 }
 0x91b   :  { %10442 = vmatprep.subr.bf16.mxu1 %v13890_v56  ;;  %v9846_v21 = vpop.f32.mrf.mxu0 }
 0x91c   :  { %v9847_v48 = vadd.f32 %v9846_v21, %v9804_v23  ;;  %v13903_v23 = vld [vmem:[#allocation11 + $0x38] sm:$0xff]  }
 0x91e   :  { %10443 = vmatpush1.bf16.msra.mxu1 %v13888_v16 }
 0x91f   :  { %10444 = vmatprep.subr.bf16.mxu1 %v13893_v3 }
 0x922   :  { %10445 = vmatpush1.bf16.msra.mxu1 %v13891_v15 }
 0x923   :  { %10446 = vmatprep.subr.bf16.mxu1 %v13896_v32 }
 0x926   :  { %10447 = vmatpush1.bf16.msra.mxu1 %v13894_v31  ;;  %v13905_v31 = vld [vmem:[#allocation11 + $0x28] sm:$0xff]  }
 0x927   :  { %10448 = vmatprep.subr.bf16.mxu1 %v13899_v29  ;;  %v13912_v29 = vld [vmem:[#allocation11 + $0x58] sm:$0xff]  }
 0x92a   :  { %10449 = vmatpush1.bf16.msra.mxu1 %v13897_v50  ;;  %v13914_v50 = vld [vmem:[#allocation11 + $0x48] sm:$0xff]  }
 0x92b   :  { %10464 = vmatprep.subr.bf16.mxu1 %v13902_v2 }
 0x92e   :  { %10465 = vmatpush2.bf16.msra.mxu1 %v13900_v36 }
 0x92f   :  { %10596 = vmatprep.subr.bf16.mxu1 %v14081_v0 }
 0x948   :  { %v9969_v19 = vpop.f32.mrf.mxu0 }
 0x94a   :  { %v9971_v42 = vpop.f32.mrf.mxu0 }
 0x94c   :  { %v9973_v46 = vpop.f32.mrf.mxu0 }
 0x94d   :  { %v9883_v47 = vpop.f32.mrf.mxu1 }
 0x94e   :  { %v9884_v27 = vadd.f32 %v9883_v47, %v9841_v26  ;;  %v9975_v5 = vpop.f32.mrf.mxu0  ;;  %v13906_v26 = vld [vmem:[#allocation11 + $0x20] sm:$0xff]  }
 0x94f   :  { %v9885_v18 = vpop.f32.mrf.mxu1 }
 0x950   :  { %v9886_v8 = vadd.f32 %v9885_v18, %v9843_v6  ;;  %v10064_v24 = vmax.f32 %v9884_v27, 0.0  ;;  %v10055_v16 = vpop.f32.mrf.mxu0  ;;  %v13911_v27 = vld [vmem:[#allocation11 + $0x60] ss:$0 sps:$4 sm:$0xff]  }
 0x951   :  { %v9887_v1 = vpop.f32.mrf.mxu1 }
 0x952   :  { %v9888_v41 = vadd.f32 %v9887_v1, %v9845_v30  ;;  %v10065_v28 = vmax.f32 %v9886_v8, 0.0  ;;  %v10057_v52 = vpop.f32.mrf.mxu0  ;;  %v13904_v30 = vld [vmem:[#allocation11 + $0x30] sm:$0xff]   ;;  %v13907_v1 = vld [vmem:[#allocation11 + $0x18] sm:$0xff]   ;;  %v13909_v8 = vld [vmem:[#allocation11 + $0x8] sm:$0xff]  }
 0x953   :  { %v9889_v38 = vpop.f32.mrf.mxu1 }
 0x954   :  { %v9890_v58 = vadd.f32 %v9889_v38, %v9847_v48  ;;  %v10068_v10 = vmax.f32 %v9888_v41, 0.0  ;;  %v10059_v37 = vpop.f32.mrf.mxu0  ;;  %v13908_v48 = vld [vmem:[#allocation11 + $0x10] sm:$0xff]   ;;  %v13910_v41 = vld [vmem:[#allocation11] sm:$0xff]   ;;  %v10594_v38 = vsel %vm399_vm2, %v13911_v27, 0 }
 0x956   :  { %v10069_v35 = vmax.f32 %v9890_v58, 0.0  ;;  %v10072_v20 = vpack.c.bf16 %v10068_v10, %v10064_v24  ;;  %v10061_v15 = vpop.f32.mrf.mxu0  ;;  %v13913_v58 = vld [vmem:[#allocation11 + $0x50] sm:$0xff]   ;;  %v13915_v10 = vld [vmem:[#allocation11 + $0x40] sm:$0xff]  }
 0x957   :  { %v10126_v24 = vld [vmem:[%s16377_s18] sm:$0x3] }
 0x958   :  { %v10073_v39 = vpack.c.bf16 %v10069_v35, %v10065_v28  ;;  %v10131_v36 = vrot.slane %v10126_v24, %v14317_v62  ;;  %v11915_v62 = vld [vmem:[%s16379_s20] ss:$0 sm:$0xff] }
 0x95a   :  { %10423 = vmatprep.mubr.bf16.mxu0 %v10073_v39  ;;  %v10135_v39 = vrot.slane %v10126_v24, %v14311_v60 }
 0x95b   :  { %10424 = vmatmul.mubr.bf16.vlgmr.msra.gmra.mxu0 %v10072_v20 }
 0x98d   :  { %v9926_v43 = vpop.f32.mrf.mxu1 }
 0x98e   :  { %v9927_v25 = vadd.f32 %v9926_v43, %v8708_v54 }
 0x98f   :  { %v9928_v49 = vpop.f32.mrf.mxu1 }
 0x990   :  { %v9929_v55 = vadd.f32 %v9928_v49, %v8712_v51  ;;  %v9970_v63 = vadd.f32 %v9969_v19, %v9927_v25 }
 0x991   :  { %v9930_v56 = vpop.f32.mrf.mxu1 }
 0x992   :  { %v9931_v33 = vadd.f32 %v9930_v56, %v8708_v54  ;;  %v9972_v59 = vadd.f32 %v9971_v42, %v9929_v55 }
 0x993   :  { %v9932_v57 = vpop.f32.mrf.mxu1 }
 0x994   :  { %v9933_v34 = vadd.f32 %v9932_v57, %v8712_v51  ;;  %v9974_v40 = vadd.f32 %v9973_v46, %v9931_v33 }
 0x996   :  { %v9976_v13 = vadd.f32 %v9975_v5, %v9933_v34 }
 0x9cd   :  { %v10012_v12 = vpop.f32.mrf.mxu1 }
 0x9ce   :  { %v10013_v9 = vadd.f32 %v10012_v12, %v9970_v63 }
 0x9cf   :  { %v10014_v4 = vpop.f32.mrf.mxu1 }
 0x9d0   :  { %v10015_v22 = vadd.f32 %v10014_v4, %v9972_v59  ;;  %v10056_v47 = vadd.f32 %v10055_v16, %v10013_v9 }
 0x9d1   :  { %v10016_v11 = vpop.f32.mrf.mxu1 }
 0x9d2   :  { %v10017_v44 = vadd.f32 %v10016_v11, %v9974_v40  ;;  %v10058_v53 = vadd.f32 %v10057_v52, %v10015_v22  ;;  %v10066_v18 = vmax.f32 %v10056_v47, 0.0 }
 0x9d3   :  { %v10018_v45 = vpop.f32.mrf.mxu1 }
 0x9d4   :  { %v10060_v3 = vadd.f32 %v10059_v37, %v10017_v44  ;;  %v10019_v7 = vadd.f32 %v10018_v45, %v9976_v13  ;;  %v10067_v61 = vmax.f32 %v10058_v53, 0.0 }
 0x9d6   :  { %v10062_v14 = vadd.f32 %v10061_v15, %v10019_v7  ;;  %v10070_v17 = vmax.f32 %v10060_v3, 0.0 }
 0x9d8   :  { %v10071_v21 = vmax.f32 %v10062_v14, 0.0  ;;  %v10074_v6 = vpack.c.bf16 %v10070_v17, %v10066_v18 }
 0x9da   :  { %v10075_v32 = vpack.c.bf16 %v10071_v21, %v10067_v61 }
 0x9dc   :  { %11914 = vmatprep.mubr.msk.bf16.mxu1 %vm2247_vm4, %v10075_v32 }
 0x9dd   :  { %10467 = vmatmul.mubr.bf16.vlgmr.msra.gmra.mxu1 %v10074_v6 }
 0x9de   :  { %10597 = vmatpush1.bf16.msra.mxu1 %v13903_v23 }
 0x9df   :  { %10598 = vmatprep.subr.bf16.mxu1 %v14081_v0 }
 0x9e2   :  { %10599 = vmatpush1.bf16.msra.mxu1 %v13904_v30 }
 0x9e3   :  { %10600 = vmatprep.subr.bf16.mxu1 %v14081_v0 }
 0x9e6   :  { %10601 = vmatpush1.bf16.msra.mxu1 %v13905_v31 }
 0x9e7   :  { %10602 = vmatprep.subr.bf16.mxu1 %v14081_v0 }
 0x9ea   :  { %10603 = vmatpush1.bf16.msra.mxu1 %v13906_v26 }
 0x9eb   :  { %10604 = vmatprep.subr.bf16.mxu1 %v14081_v0 }
 0x9ee   :  { %10605 = vmatpush1.bf16.msra.mxu1 %v13907_v1 }
 0x9ef   :  { %10606 = vmatprep.subr.bf16.mxu1 %v14081_v0 }
 0x9f2   :  { %10607 = vmatpush1.bf16.msra.mxu1 %v13908_v48 }
 0x9f3   :  { %10608 = vmatprep.subr.bf16.mxu1 %v14081_v0 }
 0x9f6   :  { %10609 = vmatpush1.bf16.msra.mxu1 %v13909_v8 }
 0x9f7   :  { %10610 = vmatprep.subr.bf16.mxu1 %v14081_v0 }
 0x9fa   :  { %10611 = vmatpush1.bf16.msra.mxu1 %v13910_v41 }
 0x9fb   :  { %10618 = vmatprep.subr.bf16.mxu1 %v14081_v0 }
 0x9fe   :  { %10619 = vmatpush2.bf16.msra.mxu1 %v10594_v38 }
 0x9ff   :  { %10620 = vmatprep.subr.bf16.mxu1 %v14081_v0 }
 0xa02   :  { %10621 = vmatpush2.bf16.msra.mxu1 %v13912_v29 }
 0xa03   :  { %10622 = vmatprep.subr.bf16.mxu1 %v14081_v0 }
 0xa06   :  { %10623 = vmatpush2.bf16.msra.mxu1 %v13913_v58 }
 0xa07   :  { %10624 = vmatprep.subr.bf16.mxu1 %v14081_v0 }
 0xa0a   :  { %10625 = vmatpush2.bf16.msra.mxu1 %v13914_v50 }
 0xa0b   :  { %10626 = vmatprep.subr.bf16.mxu1 %v14081_v0 }
 0xa0e   :  { %10627 = vmatpush2.bf16.msra.mxu1 %v13915_v10 }
 0xa1b   :  { %v10425_v28 = vpop.f32.mrf.mxu0 }
 0xa1c   :  { %v10426_v49 = vadd.f32 %v10425_v28, %v10131_v36 }
 0xa1d   :  { %v10427_v35 = vpop.f32.mrf.mxu0 }
 0xa1e   :  { %v10428_v43 = vadd.f32 %v10427_v35, %v10135_v39 }
 0xa1f   :  { %v10429_v2 = vpop.f32.mrf.mxu0 }
 0xa20   :  { %v10430_v46 = vadd.f32 %v10429_v2, %v10131_v36 }
 0xa21   :  { %v10431_v19 = vpop.f32.mrf.mxu0 }
 0xa22   :  { %v10432_v5 = vadd.f32 %v10431_v19, %v10135_v39 }
 0xa9d   :  { %v10468_v20 = vpop.f32.mrf.mxu1 }
 0xa9e   :  { %v10469_v56 = vadd.f32 %v10468_v20, %v10426_v49 }
 0xa9f   :  { %v10470_v42 = vpop.f32.mrf.mxu1 }
 0xaa0   :  { %v10471_v51 = vadd.f32 %v10470_v42, %v10428_v43  ;;  %v10477_v52 = vmax.f32 %v10469_v56, 0.0 }
 0xaa1   :  { %v10472_v0 = vpop.f32.mrf.mxu1 }
 0xaa2   :  { %v10473_v54 = vadd.f32 %v10472_v0, %v10430_v46  ;;  %v10478_v57 = vmax.f32 %v10471_v51, 0.0 }
 0xaa3   :  { %v10474_v16 = vpop.f32.mrf.mxu1 }
 0xaa4   :  { %v10475_v55 = vadd.f32 %v10474_v16, %v10432_v5  ;;  %v10479_v25 = vmax.f32 %v10473_v54, 0.0 }
 0xaa6   :  { %v10480_v33 = vmax.f32 %v10475_v55, 0.0  ;;  %v10481_v12 = vpack.c.bf16 %v10479_v25, %v10477_v52 }
 0xaa8   :  { %v10482_v60 = vpack.c.bf16 %v10480_v33, %v10478_v57 }
 0xaaa   :  { %11929 = vmatprep.mubr.msk.bf16.mxu1 %vm395_vm3, %v10482_v60 }
 0xaab   :  { %10629 = vmatmul.mubr.bf16.vlgmr.msra.gmra.mxu1 %v10481_v12 }
 0xb6b   :  { %v10630_v34 = vpop.f32.mrf.mxu1 }
 0xb6c   :  { %v10631_v59 = vadd.f32 %v11915_v62, %v10630_v34 }
 0xb6d   :  { %v10632_v63 = vpop.f32.mrf.mxu1 }
 0xb6e   :  { %10637 = vst [vmem:[#allocation13] sm:$0xff] %v10631_v59 }
 0xb6f   :  { %v10633_v4 = vpop.f32.mrf.mxu1 }
 0xb70   :  { %v10634_v22 = vadd.f32 %v11915_v62, %v10633_v4 }
 0xb71   :  { %v10635_v40 = vpop.f32.mrf.mxu1 }
 0xb72   :  { %10638 = vst [vmem:[#allocation13 + $0x8] sm:$0xff] %v10634_v22 }
 0xb73   :  { %14048 = shalt.err (!%p14045_p6)
}
 0xb74   :  { %10650 = dma.vmem_to_hbm [thread:$0]  %s10645_s28, 256, %s16380_s21, [#allocation4], %s14074_s25, %s14074_s25, %s14075_s26  }
 0xb75   :  { %14065 = dma.done.wait [#allocation4], 256  }
 0xb76   :  { %14066 = vsyncadd [#allocation4], 4294967040 }
 0xb77   :  { %10654 = vsyncpa [#allocation3], 1 }
 0xb78   :  { %10655 = vsyncpa [#allocation6], 1 }
 0xb79   :  { %10656 = vsyncpa [#allocation9], 1 }
 0xb7a   :  { %10657 = vsyncpa [#allocation12], 1 }
 0xb7b   :  { %10658 = vsyncpa [#allocation4], 1 }

</bundles_post_ra>
